<compile_context>
chip_gen: v5e
topology: v5e:2x2
jax: 0.10.0
libtpu: 0.0.40
codegen_flags: <defaults>
</compile_context>

<pallas_src>
import functools

import jax
import jax.numpy as jnp
import numpy as np
from jax.experimental import pallas as pl
from jax.experimental.pallas import tpu as pltpu


# ----------------------------------------------------------------------------
# Pallas kernels
# ----------------------------------------------------------------------------
def gemm_kernel(*refs, apply_relu, has_residual):
    """out = act(A @ B + bias [+ residual]); K is the last grid axis."""
    if has_residual:
        a_ref, b_ref, c_ref, r_ref, o_ref, acc_ref = refs
    else:
        a_ref, b_ref, c_ref, o_ref, acc_ref = refs
        r_ref = None

    k = pl.program_id(2)

    @pl.when(k == 0)
    def _():
        acc_ref[...] = jnp.zeros_like(acc_ref)

    acc_ref[...] += jnp.dot(a_ref[...], b_ref[...],
                            preferred_element_type=jnp.float32)

    @pl.when(k == pl.num_programs(2) - 1)
    def _():
        y = acc_ref[...] + c_ref[...]
        if r_ref is not None:
            y = y + r_ref[...]
        if apply_relu:
            y = jnp.maximum(y, 0.0)
        o_ref[...] = y.astype(o_ref.dtype)


def maxk_kernel(*refs):
    """Elementwise max over a variable number of same-shaped input tiles."""
    *in_refs, o_ref = refs
    m = in_refs[0][...]
    for r in in_refs[1:]:
        m = jnp.maximum(m, r[...])
    o_ref[...] = m


# ----------------------------------------------------------------------------
# Kernel wrappers
# ----------------------------------------------------------------------------
def _round_up(x, m):
    return ((x + m - 1) // m) * m


def matmul_bias_act(a, b, bias, *, relu, residual=None):
    """a:[M,K] f32, b:[K,N] f32 (BN scale already folded into columns),
    bias:[N] f32.  Returns act(a @ b + bias [+ residual]) as f32 [M, N]."""
    M, K = a.shape
    _, N = b.shape

    # --- tile sizes -----------------------------------------------------
    tk = 256                                  # fat K slabs (v6e/v7x MXU is 256 deep)
    Kp = _round_up(K, tk)

    Np = _round_up(N, 128)                    # lane-dense outputs
    TN = 256 if Np % 256 == 0 else 128

    Mp8 = _round_up(M, 8)
    TM = 256 if Mp8 >= 256 else Mp8
    Mp = _round_up(Mp8, TM)

    # --- pad + cast MXU operands to bf16 (f32 accumulation in-kernel) ----
    a_p = jnp.pad(a.astype(jnp.float32),
                  ((0, Mp - M), (0, Kp - K))).astype(jnp.bfloat16)
    b_p = jnp.pad(b.astype(jnp.float32),
                  ((0, Kp - K), (0, Np - N))).astype(jnp.bfloat16)
    c_p = jnp.pad(bias.astype(jnp.float32), (0, Np - N)).reshape(1, Np)

    inputs = [a_p, b_p, c_p]
    in_specs = [
        pl.BlockSpec((TM, tk), lambda i, j, k: (i, k)),
        pl.BlockSpec((tk, TN), lambda i, j, k: (k, j)),
        pl.BlockSpec((1, TN), lambda i, j, k: (0, j)),
    ]

    has_res = residual is not None
    if has_res:
        r_p = jnp.pad(residual.astype(jnp.float32),
                      ((0, Mp - M), (0, Np - N)))
        inputs.append(r_p)
        in_specs.append(pl.BlockSpec((TM, TN), lambda i, j, k: (i, j)))

    kernel = functools.partial(gemm_kernel, apply_relu=relu,
                               has_residual=has_res)
    out = pl.pallas_call(
        kernel,
        out_shape=jax.ShapeDtypeStruct((Mp, Np), jnp.float32),
        grid_spec=pltpu.PrefetchScalarGridSpec(
            num_scalar_prefetch=0,
            grid=(Mp // TM, Np // TN, Kp // tk),
            in_specs=in_specs,
            out_specs=pl.BlockSpec((TM, TN), lambda i, j, k: (i, j)),
            scratch_shapes=[pltpu.VMEM((TM, TN), jnp.float32)],
        ),
        compiler_params=pltpu.CompilerParams(
            dimension_semantics=("parallel", "parallel", "arbitrary")),
    )(*inputs)
    return out[:M, :N]


def elementwise_max(xs):
    """Elementwise max over a list of equally-shaped f32 tensors (tiled)."""
    shape = xs[0].shape
    flat = int(np.prod(shape))
    lane = 128
    rows = pl.cdiv(flat, lane)
    row_tile = 512
    if rows <= row_tile:
        rows_p = _round_up(rows, 8)
        tile = rows_p
    else:
        rows_p = _round_up(rows, row_tile)
        tile = row_tile
    padded = rows_p * lane
    xs2 = [jnp.pad(x.reshape(-1), (0, padded - flat)).reshape(rows_p, lane)
           for x in xs]

    out = pl.pallas_call(
        maxk_kernel,
        out_shape=jax.ShapeDtypeStruct((rows_p, lane), jnp.float32),
        grid_spec=pltpu.PrefetchScalarGridSpec(
            num_scalar_prefetch=0,
            grid=(rows_p // tile,),
            in_specs=[pl.BlockSpec((tile, lane), lambda i: (i, 0))
                      for _ in xs2],
            out_specs=pl.BlockSpec((tile, lane), lambda i: (i, 0)),
        ),
        compiler_params=pltpu.CompilerParams(
            dimension_semantics=("parallel",)),
    )(*xs2)
    return out.reshape(-1)[:flat].reshape(shape)


def maxpool_3x3_s2(x):
    """3x3 / stride-2 / pad-1 max pool on NHWC, done separably (3+3 taps)."""
    N, H, W, C = x.shape
    pad, stride, k = 1, 2, 3
    OH = (H + 2 * pad - k) // stride + 1
    OW = (W + 2 * pad - k) // stride + 1
    xp = jnp.pad(x, ((0, 0), (pad, pad), (pad, pad), (0, 0)),
                 constant_values=-jnp.inf)
    # column maxes (3 taps), then row maxes (3 taps)
    col_taps = [xp[:, :, j:j + stride * OW:stride, :] for j in range(k)]
    cmax = elementwise_max(col_taps)                       # [N, H+2, OW, C]
    row_taps = [cmax[:, i:i + stride * OH:stride, :, :] for i in range(k)]
    return elementwise_max(row_taps)                       # [N, OH, OW, C]


# ----------------------------------------------------------------------------
# Convolution = im2col (glue, natural tap order) + Pallas GEMM
# ----------------------------------------------------------------------------
def im2col_nhwc(x, kh, kw, stride, pad):
    N, H, W, C = x.shape
    OH = (H + 2 * pad - kh) // stride + 1
    OW = (W + 2 * pad - kw) // stride + 1
    xp = jnp.pad(x, ((0, 0), (pad, pad), (pad, pad), (0, 0)))
    taps = []
    for i in range(kh):
        for j in range(kw):
            taps.append(xp[:, i:i + stride * OH:stride, j:j + stride * OW:stride, :])
    # Feature order along K is (kh, kw, c) -- no activation transpose needed;
    # the (tiny) weight tensor is reordered instead.
    patches = jnp.concatenate(taps, axis=-1)               # [N,OH,OW,KH*KW*C]
    return patches.reshape(N * OH * OW, kh * kw * C), OH, OW


def conv_bn(x, w, scale, bias, stride, pad, relu, residual=None):
    """x: NHWC, w: PyTorch layout [OC, C, KH, KW].  Fused conv + folded BN
    (+ optional residual add) (+ optional ReLU)."""
    N = x.shape[0]
    oc, ic, kh, kw = w.shape
    a, OH, OW = im2col_nhwc(x, kh, kw, stride, pad)
    # weights in (kh, kw, c, oc) order to match the im2col tap order;
    # BN scale folded into the columns (bias stays in the GEMM epilogue).
    b = w.transpose(2, 3, 1, 0).reshape(kh * kw * ic, oc) * scale[None, :]
    r = None if residual is None else residual.reshape(N * OH * OW, oc)
    y = matmul_bias_act(a, b, bias, relu=relu, residual=r)  # [N*OH*OW, OC]
    return y.reshape(N, OH, OW, oc)


# ----------------------------------------------------------------------------
# Deterministic parameter initialization (shapes of torchvision resnet18)
# ----------------------------------------------------------------------------
BN_EPS = 1e-5


def _conv_init(key, oc, ic, k):
    return (jax.random.normal(key, (oc, ic, k, k), jnp.float32)
            * (1.0 / np.sqrt(ic * k * k)))


def _bn_fold(key, c):
    k1, k2, k3, k4 = jax.random.split(key, 4)
    gamma = 1.0 + 0.1 * jax.random.normal(k1, (c,), jnp.float32)
    beta = 0.1 * jax.random.normal(k2, (c,), jnp.float32)
    rmean = 0.1 * jax.random.normal(k3, (c,), jnp.float32)
    rvar = 1.0 + 0.1 * jnp.abs(jax.random.normal(k4, (c,), jnp.float32))
    scale = gamma / jnp.sqrt(rvar + BN_EPS)
    bias = beta - rmean * scale
    return scale, bias


def init_params(key):
    keys = iter(jax.random.split(key, 128))
    nk = lambda: next(keys)
    params = {}
    params["conv1_w"] = _conv_init(nk(), 64, 3, 7)
    params["bn1_s"], params["bn1_b"] = _bn_fold(nk(), 64)

    def make_block(in_c, out_c, stride):
        p = {}
        p["conv1_w"] = _conv_init(nk(), out_c, in_c, 3)
        p["bn1_s"], p["bn1_b"] = _bn_fold(nk(), out_c)
        p["conv2_w"] = _conv_init(nk(), out_c, out_c, 3)
        p["bn2_s"], p["bn2_b"] = _bn_fold(nk(), out_c)
        if stride != 1 or in_c != out_c:
            p["down_w"] = _conv_init(nk(), out_c, in_c, 1)
            p["down_s"], p["down_b"] = _bn_fold(nk(), out_c)
        return p

    layer_cfg = [(64, 64, 1), (64, 128, 2), (128, 256, 2), (256, 512, 2)]
    for li, (in_c, out_c, stride) in enumerate(layer_cfg, start=1):
        params[f"layer{li}"] = [make_block(in_c, out_c, stride),
                                make_block(out_c, out_c, 1)]

    params["fc_w"] = 0.05 * jax.random.normal(nk(), (1, 512), jnp.float32)
    params["fc_b"] = 0.05 * jax.random.normal(nk(), (1,), jnp.float32)
    return params


# ----------------------------------------------------------------------------
# Forward pass
# ----------------------------------------------------------------------------
def basic_block(x, p, stride):
    if "down_w" in p:
        identity = conv_bn(x, p["down_w"], p["down_s"], p["down_b"],
                           stride, 0, relu=False)
    else:
        identity = x
    out = conv_bn(x, p["conv1_w"], p["bn1_s"], p["bn1_b"], stride, 1, relu=True)
    # residual add + ReLU fused into the second conv's GEMM epilogue
    out = conv_bn(out, p["conv2_w"], p["bn2_s"], p["bn2_b"], 1, 1,
                  relu=True, residual=identity)
    return out


def bigram_resnet_forward(x_nchw, params):
    # layout: NCHW input (PyTorch) -> NHWC internal.
    x = jnp.transpose(x_nchw.astype(jnp.float32), (0, 2, 3, 1))
    x = conv_bn(x, params["conv1_w"], params["bn1_s"], params["bn1_b"],
                stride=2, pad=3, relu=True)
    x = maxpool_3x3_s2(x)
    for li in range(1, 5):
        for bi in range(2):
            stride = 2 if (li > 1 and bi == 0) else 1
            x = basic_block(x, params[f"layer{li}"][bi], stride)
    # Adaptive average pool to 1x1 (tiny reduction, plain-JAX glue).
    x = jnp.mean(x, axis=(1, 2))                              # [N, 512]
    # Final fc (512 -> 1) through the same Pallas GEMM kernel (lane-padded).
    y = matmul_bias_act(x, params["fc_w"].T, params["fc_b"], relu=False)
    return y                                                  # [N, 1]


# TODO(synk): BatchNorm is implemented in eval/inference mode (folded running
# stats); training-mode batch statistics are not reproduced.
# TODO(synk): im2col is still materialized by XLA glue (tap concatenation); a
# fully fused conv would add a kh*kw grid axis reading the padded NHWC input.

if __name__ == "__main__":
    key = jax.random.PRNGKey(0)
    pkey, xkey = jax.random.split(key)
    params = init_params(pkey)
    x = jax.random.normal(xkey, (2, 3, 32, 32), jnp.float32)

    fwd = jax.jit(bigram_resnet_forward)
    out = fwd(x, params)
    out = jax.block_until_ready(out)
    assert out.shape == (2, 1) and out.dtype == jnp.float32
    print("KERNEL_OK")
</pallas_src>

<mosaic_0001>
module attributes {stable_mosaic.version = 11 : i64} {
  func.func @gemm_kernel(%arg0: i32, %arg1: i32, %arg2: i32, %arg3: memref<256x256xbf16, #tpu.memory_space<vmem>>, %arg4: memref<256x128xbf16, #tpu.memory_space<vmem>>, %arg5: memref<1x128xf32, #tpu.memory_space<vmem>>, %arg6: memref<256x128xf32, #tpu.memory_space<vmem>>, %arg7: memref<256x128xf32, #tpu.memory_space<vmem>>) attributes {dimension_semantics = [#tpu.dimension_semantics<parallel>, #tpu.dimension_semantics<parallel>, #tpu.dimension_semantics<arbitrary>], iteration_bounds = array<i64: 2, 1, 1>, scalar_prefetch = 0 : i64, scratch_operands = 1 : i64, tpu.core_type = #tpu.core_type<tc>, window_params = [{transform_indices = @transform_0, window_bounds = array<i64: 256, 256>}, {transform_indices = @transform_1, window_bounds = array<i64: 256, 128>}, {transform_indices = @transform_2, window_bounds = array<i64: 1, 128>}, {transform_indices = @transform_3, window_bounds = array<i64: 256, 128>}]} {
    %c0_i32 = arith.constant 0 : i32
    %0 = arith.cmpi eq, %arg2, %c0_i32 : i32
    %1 = arith.extui %0 : i1 to i32
    %c0_i32_0 = arith.constant 0 : i32
    %2 = arith.cmpi ne, %1, %c0_i32_0 : i32
    scf.if %2 {
      %cst_10 = arith.constant 0.000000e+00 : f32
      %12 = vector.broadcast %cst_10 : f32 to vector<256x128xf32>
      %c0_11 = arith.constant 0 : index
      %c0_12 = arith.constant 0 : index
      %13 = vector.load %arg7[%c0_11, %c0_12] : memref<256x128xf32, #tpu.memory_space<vmem>>, vector<256x128xf32>
      tpu.vector_store %arg7[%c0_11, %c0_12], %12 {strides = array<i32>} : memref<256x128xf32, #tpu.memory_space<vmem>>, vector<256x128xf32>,
    } else {
    }
    %c0 = arith.constant 0 : index
    %c0_1 = arith.constant 0 : index
    %3 = vector.load %arg7[%c0, %c0_1] : memref<256x128xf32, #tpu.memory_space<vmem>>, vector<256x128xf32>
    %c0_2 = arith.constant 0 : index
    %c0_3 = arith.constant 0 : index
    %4 = vector.load %arg3[%c0_2, %c0_3] : memref<256x256xbf16, #tpu.memory_space<vmem>>, vector<256x256xbf16>
    %c0_4 = arith.constant 0 : index
    %c0_5 = arith.constant 0 : index
    %5 = vector.load %arg4[%c0_4, %c0_5] : memref<256x128xbf16, #tpu.memory_space<vmem>>, vector<256x128xbf16>
    %cst = arith.constant dense<0.000000e+00> : vector<256x128xf32>
    %6 = tpu.matmul %4, %5, %cst {dimension_numbers = #tpu.dot_dimension_numbers<[1], [0], [0], [1], [0, 0, 1, 1], [], []>} : vector<256x256xbf16>, vector<256x128xbf16>, vector<256x128xf32> -> vector<256x128xf32>
    %7 = arith.addf %3, %6 : vector<256x128xf32>
    %c0_6 = arith.constant 0 : index
    %c0_7 = arith.constant 0 : index
    %8 = vector.load %arg7[%c0_6, %c0_7] : memref<256x128xf32, #tpu.memory_space<vmem>>, vector<256x128xf32>
    tpu.vector_store %arg7[%c0_6, %c0_7], %7 {strides = array<i32>} : memref<256x128xf32, #tpu.memory_space<vmem>>, vector<256x128xf32>,
    %c0_i32_8 = arith.constant 0 : i32
    %9 = arith.cmpi eq, %arg2, %c0_i32_8 : i32
    %10 = arith.extui %9 : i1 to i32
    %c0_i32_9 = arith.constant 0 : i32
    %11 = arith.cmpi ne, %10, %c0_i32_9 : i32
    scf.if %11 {
      %c0_10 = arith.constant 0 : index
      %c0_11 = arith.constant 0 : index
      %12 = vector.load %arg7[%c0_10, %c0_11] : memref<256x128xf32, #tpu.memory_space<vmem>>, vector<256x128xf32>
      %c0_12 = arith.constant 0 : index
      %c0_13 = arith.constant 0 : index
      %13 = vector.load %arg5[%c0_12, %c0_13] : memref<1x128xf32, #tpu.memory_space<vmem>>, vector<1x128xf32>
      %14 = vector.broadcast %13 : vector<1x128xf32> to vector<256x128xf32>
      %15 = arith.addf %12, %14 : vector<256x128xf32>
      %cst_14 = arith.constant 0.000000e+00 : f32
      %16 = vector.broadcast %cst_14 : f32 to vector<256x128xf32>
      %17 = arith.maximumf %15, %16 : vector<256x128xf32>
      %c0_15 = arith.constant 0 : index
      %c0_16 = arith.constant 0 : index
      %18 = vector.load %arg6[%c0_15, %c0_16] : memref<256x128xf32, #tpu.memory_space<vmem>>, vector<256x128xf32>
      tpu.vector_store %arg6[%c0_15, %c0_16], %17 {strides = array<i32>} : memref<256x128xf32, #tpu.memory_space<vmem>>, vector<256x128xf32>,
    } else {
    }
    return
  }
  func.func @transform_0(%arg0: i32, %arg1: i32, %arg2: i32) -> (i32, i32) {
    %c0_i32 = arith.constant 0 : i32
    return %arg0, %arg2 : i32, i32
  }
  func.func @transform_1(%arg0: i32, %arg1: i32, %arg2: i32) -> (i32, i32) {
    %c0_i32 = arith.constant 0 : i32
    return %arg2, %arg1 : i32, i32
  }
  func.func @transform_2(%arg0: i32, %arg1: i32, %arg2: i32) -> (i32, i32) {
    %c0_i32 = arith.constant 0 : i32
    %c0_i32_0 = arith.constant 0 : i32
    return %c0_i32, %arg1 : i32, i32
  }
  func.func @transform_3(%arg0: i32, %arg1: i32, %arg2: i32) -> (i32, i32) {
    %c0_i32 = arith.constant 0 : i32
    return %arg0, %arg1 : i32, i32
  }
}

module attributes {stable_mosaic.version = 11 : i64} {
  func.func @maxk_kernel(%arg0: i32, %arg1: memref<144x128xf32, #tpu.memory_space<vmem>>, %arg2: memref<144x128xf32, #tpu.memory_space<vmem>>, %arg3: memref<144x128xf32, #tpu.memory_space<vmem>>, %arg4: memref<144x128xf32, #tpu.memory_space<vmem>>) attributes {dimension_semantics = [#tpu.dimension_semantics<parallel>], iteration_bounds = array<i64: 1>, scalar_prefetch = 0 : i64, scratch_operands = 0 : i64, tpu.core_type = #tpu.core_type<tc>, window_params = [{transform_indices = @transform_0, window_bounds = array<i64: 144, 128>}, {transform_indices = @transform_1, window_bounds = array<i64: 144, 128>}, {transform_indices = @transform_2, window_bounds = array<i64: 144, 128>}, {transform_indices = @transform_3, window_bounds = array<i64: 144, 128>}]} {
    %c0 = arith.constant 0 : index
    %c0_0 = arith.constant 0 : index
    %0 = vector.load %arg1[%c0, %c0_0] : memref<144x128xf32, #tpu.memory_space<vmem>>, vector<144x128xf32>
    %c0_1 = arith.constant 0 : index
    %c0_2 = arith.constant 0 : index
    %1 = vector.load %arg2[%c0_1, %c0_2] : memref<144x128xf32, #tpu.memory_space<vmem>>, vector<144x128xf32>
    %2 = arith.maximumf %0, %1 : vector<144x128xf32>
    %c0_3 = arith.constant 0 : index
    %c0_4 = arith.constant 0 : index
    %3 = vector.load %arg3[%c0_3, %c0_4] : memref<144x128xf32, #tpu.memory_space<vmem>>, vector<144x128xf32>
    %4 = arith.maximumf %2, %3 : vector<144x128xf32>
    %c0_5 = arith.constant 0 : index
    %c0_6 = arith.constant 0 : index
    %5 = vector.load %arg4[%c0_5, %c0_6] : memref<144x128xf32, #tpu.memory_space<vmem>>, vector<144x128xf32>
    tpu.vector_store %arg4[%c0_5, %c0_6], %4 {strides = array<i32>} : memref<144x128xf32, #tpu.memory_space<vmem>>, vector<144x128xf32>,
    return
  }
  func.func @transform_0(%arg0: i32) -> (i32, i32) {
    %c0_i32 = arith.constant 0 : i32
    %c0_i32_0 = arith.constant 0 : i32
    return %arg0, %c0_i32 : i32, i32
  }
  func.func @transform_1(%arg0: i32) -> (i32, i32) {
    %c0_i32 = arith.constant 0 : i32
    %c0_i32_0 = arith.constant 0 : i32
    return %arg0, %c0_i32 : i32, i32
  }
  func.func @transform_2(%arg0: i32) -> (i32, i32) {
    %c0_i32 = arith.constant 0 : i32
    %c0_i32_0 = arith.constant 0 : i32
    return %arg0, %c0_i32 : i32, i32
  }
  func.func @transform_3(%arg0: i32) -> (i32, i32) {
    %c0_i32 = arith.constant 0 : i32
    %c0_i32_0 = arith.constant 0 : i32
    return %arg0, %c0_i32 : i32, i32
  }
}

module attributes {stable_mosaic.version = 11 : i64} {
  func.func @maxk_kernel(%arg0: i32, %arg1: memref<64x128xf32, #tpu.memory_space<vmem>>, %arg2: memref<64x128xf32, #tpu.memory_space<vmem>>, %arg3: memref<64x128xf32, #tpu.memory_space<vmem>>, %arg4: memref<64x128xf32, #tpu.memory_space<vmem>>) attributes {dimension_semantics = [#tpu.dimension_semantics<parallel>], iteration_bounds = array<i64: 1>, scalar_prefetch = 0 : i64, scratch_operands = 0 : i64, tpu.core_type = #tpu.core_type<tc>, window_params = [{transform_indices = @transform_0, window_bounds = array<i64: 64, 128>}, {transform_indices = @transform_1, window_bounds = array<i64: 64, 128>}, {transform_indices = @transform_2, window_bounds = array<i64: 64, 128>}, {transform_indices = @transform_3, window_bounds = array<i64: 64, 128>}]} {
    %c0 = arith.constant 0 : index
    %c0_0 = arith.constant 0 : index
    %0 = vector.load %arg1[%c0, %c0_0] : memref<64x128xf32, #tpu.memory_space<vmem>>, vector<64x128xf32>
    %c0_1 = arith.constant 0 : index
    %c0_2 = arith.constant 0 : index
    %1 = vector.load %arg2[%c0_1, %c0_2] : memref<64x128xf32, #tpu.memory_space<vmem>>, vector<64x128xf32>
    %2 = arith.maximumf %0, %1 : vector<64x128xf32>
    %c0_3 = arith.constant 0 : index
    %c0_4 = arith.constant 0 : index
    %3 = vector.load %arg3[%c0_3, %c0_4] : memref<64x128xf32, #tpu.memory_space<vmem>>, vector<64x128xf32>
    %4 = arith.maximumf %2, %3 : vector<64x128xf32>
    %c0_5 = arith.constant 0 : index
    %c0_6 = arith.constant 0 : index
    %5 = vector.load %arg4[%c0_5, %c0_6] : memref<64x128xf32, #tpu.memory_space<vmem>>, vector<64x128xf32>
    tpu.vector_store %arg4[%c0_5, %c0_6], %4 {strides = array<i32>} : memref<64x128xf32, #tpu.memory_space<vmem>>, vector<64x128xf32>,
    return
  }
  func.func @transform_0(%arg0: i32) -> (i32, i32) {
    %c0_i32 = arith.constant 0 : i32
    %c0_i32_0 = arith.constant 0 : i32
    return %arg0, %c0_i32 : i32, i32
  }
  func.func @transform_1(%arg0: i32) -> (i32, i32) {
    %c0_i32 = arith.constant 0 : i32
    %c0_i32_0 = arith.constant 0 : i32
    return %arg0, %c0_i32 : i32, i32
  }
  func.func @transform_2(%arg0: i32) -> (i32, i32) {
    %c0_i32 = arith.constant 0 : i32
    %c0_i32_0 = arith.constant 0 : i32
    return %arg0, %c0_i32 : i32, i32
  }
  func.func @transform_3(%arg0: i32) -> (i32, i32) {
    %c0_i32 = arith.constant 0 : i32
    %c0_i32_0 = arith.constant 0 : i32
    return %arg0, %c0_i32 : i32, i32
  }
}

module attributes {stable_mosaic.version = 11 : i64} {
  func.func @gemm_kernel(%arg0: i32, %arg1: i32, %arg2: i32, %arg3: memref<128x256xbf16, #tpu.memory_space<vmem>>, %arg4: memref<256x128xbf16, #tpu.memory_space<vmem>>, %arg5: memref<1x128xf32, #tpu.memory_space<vmem>>, %arg6: memref<128x128xf32, #tpu.memory_space<vmem>>, %arg7: memref<128x128xf32, #tpu.memory_space<vmem>>) attributes {dimension_semantics = [#tpu.dimension_semantics<parallel>, #tpu.dimension_semantics<parallel>, #tpu.dimension_semantics<arbitrary>], iteration_bounds = array<i64: 1, 1, 3>, scalar_prefetch = 0 : i64, scratch_operands = 1 : i64, tpu.core_type = #tpu.core_type<tc>, window_params = [{transform_indices = @transform_0, window_bounds = array<i64: 128, 256>}, {transform_indices = @transform_1, window_bounds = array<i64: 256, 128>}, {transform_indices = @transform_2, window_bounds = array<i64: 1, 128>}, {transform_indices = @transform_3, window_bounds = array<i64: 128, 128>}]} {
    %c0_i32 = arith.constant 0 : i32
    %0 = arith.cmpi eq, %arg2, %c0_i32 : i32
    %1 = arith.extui %0 : i1 to i32
    %c0_i32_0 = arith.constant 0 : i32
    %2 = arith.cmpi ne, %1, %c0_i32_0 : i32
    scf.if %2 {
      %cst_9 = arith.constant 0.000000e+00 : f32
      %12 = vector.broadcast %cst_9 : f32 to vector<128x128xf32>
      %c0_10 = arith.constant 0 : index
      %c0_11 = arith.constant 0 : index
      %13 = vector.load %arg7[%c0_10, %c0_11] : memref<128x128xf32, #tpu.memory_space<vmem>>, vector<128x128xf32>
      tpu.vector_store %arg7[%c0_10, %c0_11], %12 {strides = array<i32>} : memref<128x128xf32, #tpu.memory_space<vmem>>, vector<128x128xf32>,
    } else {
    }
    %c0 = arith.constant 0 : index
    %c0_1 = arith.constant 0 : index
    %3 = vector.load %arg7[%c0, %c0_1] : memref<128x128xf32, #tpu.memory_space<vmem>>, vector<128x128xf32>
    %c0_2 = arith.constant 0 : index
    %c0_3 = arith.constant 0 : index
    %4 = vector.load %arg3[%c0_2, %c0_3] : memref<128x256xbf16, #tpu.memory_space<vmem>>, vector<128x256xbf16>
    %c0_4 = arith.constant 0 : index
    %c0_5 = arith.constant 0 : index
    %5 = vector.load %arg4[%c0_4, %c0_5] : memref<256x128xbf16, #tpu.memory_space<vmem>>, vector<256x128xbf16>
    %cst = arith.constant dense<0.000000e+00> : vector<128x128xf32>
    %6 = tpu.matmul %4, %5, %cst {dimension_numbers = #tpu.dot_dimension_numbers<[1], [0], [0], [1], [0, 0, 1, 1], [], []>} : vector<128x256xbf16>, vector<256x128xbf16>, vector<128x128xf32> -> vector<128x128xf32>
    %7 = arith.addf %3, %6 : vector<128x128xf32>
    %c0_6 = arith.constant 0 : index
    %c0_7 = arith.constant 0 : index
    %8 = vector.load %arg7[%c0_6, %c0_7] : memref<128x128xf32, #tpu.memory_space<vmem>>, vector<128x128xf32>
    tpu.vector_store %arg7[%c0_6, %c0_7], %7 {strides = array<i32>} : memref<128x128xf32, #tpu.memory_space<vmem>>, vector<128x128xf32>,
    %c2_i32 = arith.constant 2 : i32
    %9 = arith.cmpi eq, %arg2, %c2_i32 : i32
    %10 = arith.extui %9 : i1 to i32
    %c0_i32_8 = arith.constant 0 : i32
    %11 = arith.cmpi ne, %10, %c0_i32_8 : i32
    scf.if %11 {
      %c0_9 = arith.constant 0 : index
      %c0_10 = arith.constant 0 : index
      %12 = vector.load %arg7[%c0_9, %c0_10] : memref<128x128xf32, #tpu.memory_space<vmem>>, vector<128x128xf32>
      %c0_11 = arith.constant 0 : index
      %c0_12 = arith.constant 0 : index
      %13 = vector.load %arg5[%c0_11, %c0_12] : memref<1x128xf32, #tpu.memory_space<vmem>>, vector<1x128xf32>
      %14 = vector.broadcast %13 : vector<1x128xf32> to vector<128x128xf32>
      %15 = arith.addf %12, %14 : vector<128x128xf32>
      %cst_13 = arith.constant 0.000000e+00 : f32
      %16 = vector.broadcast %cst_13 : f32 to vector<128x128xf32>
      %17 = arith.maximumf %15, %16 : vector<128x128xf32>
      %c0_14 = arith.constant 0 : index
      %c0_15 = arith.constant 0 : index
      %18 = vector.load %arg6[%c0_14, %c0_15] : memref<128x128xf32, #tpu.memory_space<vmem>>, vector<128x128xf32>
      tpu.vector_store %arg6[%c0_14, %c0_15], %17 {strides = array<i32>} : memref<128x128xf32, #tpu.memory_space<vmem>>, vector<128x128xf32>,
    } else {
    }
    return
  }
  func.func @transform_0(%arg0: i32, %arg1: i32, %arg2: i32) -> (i32, i32) {
    %c0_i32 = arith.constant 0 : i32
    return %arg0, %arg2 : i32, i32
  }
  func.func @transform_1(%arg0: i32, %arg1: i32, %arg2: i32) -> (i32, i32) {
    %c0_i32 = arith.constant 0 : i32
    return %arg2, %arg1 : i32, i32
  }
  func.func @transform_2(%arg0: i32, %arg1: i32, %arg2: i32) -> (i32, i32) {
    %c0_i32 = arith.constant 0 : i32
    %c0_i32_0 = arith.constant 0 : i32
    return %c0_i32, %arg1 : i32, i32
  }
  func.func @transform_3(%arg0: i32, %arg1: i32, %arg2: i32) -> (i32, i32) {
    %c0_i32 = arith.constant 0 : i32
    return %arg0, %arg1 : i32, i32
  }
}

module attributes {stable_mosaic.version = 11 : i64} {
  func.func @gemm_kernel(%arg0: i32, %arg1: i32, %arg2: i32, %arg3: memref<128x256xbf16, #tpu.memory_space<vmem>>, %arg4: memref<256x128xbf16, #tpu.memory_space<vmem>>, %arg5: memref<1x128xf32, #tpu.memory_space<vmem>>, %arg6: memref<128x128xf32, #tpu.memory_space<vmem>>, %arg7: memref<128x128xf32, #tpu.memory_space<vmem>>, %arg8: memref<128x128xf32, #tpu.memory_space<vmem>>) attributes {dimension_semantics = [#tpu.dimension_semantics<parallel>, #tpu.dimension_semantics<parallel>, #tpu.dimension_semantics<arbitrary>], iteration_bounds = array<i64: 1, 1, 3>, scalar_prefetch = 0 : i64, scratch_operands = 1 : i64, tpu.core_type = #tpu.core_type<tc>, window_params = [{transform_indices = @transform_0, window_bounds = array<i64: 128, 256>}, {transform_indices = @transform_1, window_bounds = array<i64: 256, 128>}, {transform_indices = @transform_2, window_bounds = array<i64: 1, 128>}, {transform_indices = @transform_3, window_bounds = array<i64: 128, 128>}, {transform_indices = @transform_4, window_bounds = array<i64: 128, 128>}]} {
    %c0_i32 = arith.constant 0 : i32
    %0 = arith.cmpi eq, %arg2, %c0_i32 : i32
    %1 = arith.extui %0 : i1 to i32
    %c0_i32_0 = arith.constant 0 : i32
    %2 = arith.cmpi ne, %1, %c0_i32_0 : i32
    scf.if %2 {
      %cst_9 = arith.constant 0.000000e+00 : f32
      %12 = vector.broadcast %cst_9 : f32 to vector<128x128xf32>
      %c0_10 = arith.constant 0 : index
      %c0_11 = arith.constant 0 : index
      %13 = vector.load %arg8[%c0_10, %c0_11] : memref<128x128xf32, #tpu.memory_space<vmem>>, vector<128x128xf32>
      tpu.vector_store %arg8[%c0_10, %c0_11], %12 {strides = array<i32>} : memref<128x128xf32, #tpu.memory_space<vmem>>, vector<128x128xf32>,
    } else {
    }
    %c0 = arith.constant 0 : index
    %c0_1 = arith.constant 0 : index
    %3 = vector.load %arg8[%c0, %c0_1] : memref<128x128xf32, #tpu.memory_space<vmem>>, vector<128x128xf32>
    %c0_2 = arith.constant 0 : index
    %c0_3 = arith.constant 0 : index
    %4 = vector.load %arg3[%c0_2, %c0_3] : memref<128x256xbf16, #tpu.memory_space<vmem>>, vector<128x256xbf16>
    %c0_4 = arith.constant 0 : index
    %c0_5 = arith.constant 0 : index
    %5 = vector.load %arg4[%c0_4, %c0_5] : memref<256x128xbf16, #tpu.memory_space<vmem>>, vector<256x128xbf16>
    %cst = arith.constant dense<0.000000e+00> : vector<128x128xf32>
    %6 = tpu.matmul %4, %5, %cst {dimension_numbers = #tpu.dot_dimension_numbers<[1], [0], [0], [1], [0, 0, 1, 1], [], []>} : vector<128x256xbf16>, vector<256x128xbf16>, vector<128x128xf32> -> vector<128x128xf32>
    %7 = arith.addf %3, %6 : vector<128x128xf32>
    %c0_6 = arith.constant 0 : index
    %c0_7 = arith.constant 0 : index
    %8 = vector.load %arg8[%c0_6, %c0_7] : memref<128x128xf32, #tpu.memory_space<vmem>>, vector<128x128xf32>
    tpu.vector_store %arg8[%c0_6, %c0_7], %7 {strides = array<i32>} : memref<128x128xf32, #tpu.memory_space<vmem>>, vector<128x128xf32>,
    %c2_i32 = arith.constant 2 : i32
    %9 = arith.cmpi eq, %arg2, %c2_i32 : i32
    %10 = arith.extui %9 : i1 to i32
    %c0_i32_8 = arith.constant 0 : i32
    %11 = arith.cmpi ne, %10, %c0_i32_8 : i32
    scf.if %11 {
      %c0_9 = arith.constant 0 : index
      %c0_10 = arith.constant 0 : index
      %12 = vector.load %arg8[%c0_9, %c0_10] : memref<128x128xf32, #tpu.memory_space<vmem>>, vector<128x128xf32>
      %c0_11 = arith.constant 0 : index
      %c0_12 = arith.constant 0 : index
      %13 = vector.load %arg5[%c0_11, %c0_12] : memref<1x128xf32, #tpu.memory_space<vmem>>, vector<1x128xf32>
      %14 = vector.broadcast %13 : vector<1x128xf32> to vector<128x128xf32>
      %15 = arith.addf %12, %14 : vector<128x128xf32>
      %c0_13 = arith.constant 0 : index
      %c0_14 = arith.constant 0 : index
      %16 = vector.load %arg6[%c0_13, %c0_14] : memref<128x128xf32, #tpu.memory_space<vmem>>, vector<128x128xf32>
      %17 = arith.addf %15, %16 : vector<128x128xf32>
      %cst_15 = arith.constant 0.000000e+00 : f32
      %18 = vector.broadcast %cst_15 : f32 to vector<128x128xf32>
      %19 = arith.maximumf %17, %18 : vector<128x128xf32>
      %c0_16 = arith.constant 0 : index
      %c0_17 = arith.constant 0 : index
      %20 = vector.load %arg7[%c0_16, %c0_17] : memref<128x128xf32, #tpu.memory_space<vmem>>, vector<128x128xf32>
      tpu.vector_store %arg7[%c0_16, %c0_17], %19 {strides = array<i32>} : memref<128x128xf32, #tpu.memory_space<vmem>>, vector<128x128xf32>,
    } else {
    }
    return
  }
  func.func @transform_0(%arg0: i32, %arg1: i32, %arg2: i32) -> (i32, i32) {
    %c0_i32 = arith.constant 0 : i32
    return %arg0, %arg2 : i32, i32
  }
  func.func @transform_1(%arg0: i32, %arg1: i32, %arg2: i32) -> (i32, i32) {
    %c0_i32 = arith.constant 0 : i32
    return %arg2, %arg1 : i32, i32
  }
  func.func @transform_2(%arg0: i32, %arg1: i32, %arg2: i32) -> (i32, i32) {
    %c0_i32 = arith.constant 0 : i32
    %c0_i32_0 = arith.constant 0 : i32
    return %c0_i32, %arg1 : i32, i32
  }
  func.func @transform_3(%arg0: i32, %arg1: i32, %arg2: i32) -> (i32, i32) {
    %c0_i32 = arith.constant 0 : i32
    return %arg0, %arg1 : i32, i32
  }
  func.func @transform_4(%arg0: i32, %arg1: i32, %arg2: i32) -> (i32, i32) {
    %c0_i32 = arith.constant 0 : i32
    return %arg0, %arg1 : i32, i32
  }
}

module attributes {stable_mosaic.version = 11 : i64} {
  func.func @gemm_kernel(%arg0: i32, %arg1: i32, %arg2: i32, %arg3: memref<32x256xbf16, #tpu.memory_space<vmem>>, %arg4: memref<256x128xbf16, #tpu.memory_space<vmem>>, %arg5: memref<1x128xf32, #tpu.memory_space<vmem>>, %arg6: memref<32x128xf32, #tpu.memory_space<vmem>>, %arg7: memref<32x128xf32, #tpu.memory_space<vmem>>) attributes {dimension_semantics = [#tpu.dimension_semantics<parallel>, #tpu.dimension_semantics<parallel>, #tpu.dimension_semantics<arbitrary>], iteration_bounds = array<i64: 1, 1, 3>, scalar_prefetch = 0 : i64, scratch_operands = 1 : i64, tpu.core_type = #tpu.core_type<tc>, window_params = [{transform_indices = @transform_0, window_bounds = array<i64: 32, 256>}, {transform_indices = @transform_1, window_bounds = array<i64: 256, 128>}, {transform_indices = @transform_2, window_bounds = array<i64: 1, 128>}, {transform_indices = @transform_3, window_bounds = array<i64: 32, 128>}]} {
    %c0_i32 = arith.constant 0 : i32
    %0 = arith.cmpi eq, %arg2, %c0_i32 : i32
    %1 = arith.extui %0 : i1 to i32
    %c0_i32_0 = arith.constant 0 : i32
    %2 = arith.cmpi ne, %1, %c0_i32_0 : i32
    scf.if %2 {
      %cst_9 = arith.constant 0.000000e+00 : f32
      %12 = vector.broadcast %cst_9 : f32 to vector<32x128xf32>
      %c0_10 = arith.constant 0 : index
      %c0_11 = arith.constant 0 : index
      %13 = vector.load %arg7[%c0_10, %c0_11] : memref<32x128xf32, #tpu.memory_space<vmem>>, vector<32x128xf32>
      tpu.vector_store %arg7[%c0_10, %c0_11], %12 {strides = array<i32>} : memref<32x128xf32, #tpu.memory_space<vmem>>, vector<32x128xf32>,
    } else {
    }
    %c0 = arith.constant 0 : index
    %c0_1 = arith.constant 0 : index
    %3 = vector.load %arg7[%c0, %c0_1] : memref<32x128xf32, #tpu.memory_space<vmem>>, vector<32x128xf32>
    %c0_2 = arith.constant 0 : index
    %c0_3 = arith.constant 0 : index
    %4 = vector.load %arg3[%c0_2, %c0_3] : memref<32x256xbf16, #tpu.memory_space<vmem>>, vector<32x256xbf16>
    %c0_4 = arith.constant 0 : index
    %c0_5 = arith.constant 0 : index
    %5 = vector.load %arg4[%c0_4, %c0_5] : memref<256x128xbf16, #tpu.memory_space<vmem>>, vector<256x128xbf16>
    %cst = arith.constant dense<0.000000e+00> : vector<32x128xf32>
    %6 = tpu.matmul %4, %5, %cst {dimension_numbers = #tpu.dot_dimension_numbers<[1], [0], [0], [1], [0, 0, 1, 1], [], []>} : vector<32x256xbf16>, vector<256x128xbf16>, vector<32x128xf32> -> vector<32x128xf32>
    %7 = arith.addf %3, %6 : vector<32x128xf32>
    %c0_6 = arith.constant 0 : index
    %c0_7 = arith.constant 0 : index
    %8 = vector.load %arg7[%c0_6, %c0_7] : memref<32x128xf32, #tpu.memory_space<vmem>>, vector<32x128xf32>
    tpu.vector_store %arg7[%c0_6, %c0_7], %7 {strides = array<i32>} : memref<32x128xf32, #tpu.memory_space<vmem>>, vector<32x128xf32>,
    %c2_i32 = arith.constant 2 : i32
    %9 = arith.cmpi eq, %arg2, %c2_i32 : i32
    %10 = arith.extui %9 : i1 to i32
    %c0_i32_8 = arith.constant 0 : i32
    %11 = arith.cmpi ne, %10, %c0_i32_8 : i32
    scf.if %11 {
      %c0_9 = arith.constant 0 : index
      %c0_10 = arith.constant 0 : index
      %12 = vector.load %arg7[%c0_9, %c0_10] : memref<32x128xf32, #tpu.memory_space<vmem>>, vector<32x128xf32>
      %c0_11 = arith.constant 0 : index
      %c0_12 = arith.constant 0 : index
      %13 = vector.load %arg5[%c0_11, %c0_12] : memref<1x128xf32, #tpu.memory_space<vmem>>, vector<1x128xf32>
      %14 = vector.broadcast %13 : vector<1x128xf32> to vector<32x128xf32>
      %15 = arith.addf %12, %14 : vector<32x128xf32>
      %cst_13 = arith.constant 0.000000e+00 : f32
      %16 = vector.broadcast %cst_13 : f32 to vector<32x128xf32>
      %17 = arith.maximumf %15, %16 : vector<32x128xf32>
      %c0_14 = arith.constant 0 : index
      %c0_15 = arith.constant 0 : index
      %18 = vector.load %arg6[%c0_14, %c0_15] : memref<32x128xf32, #tpu.memory_space<vmem>>, vector<32x128xf32>
      tpu.vector_store %arg6[%c0_14, %c0_15], %17 {strides = array<i32>} : memref<32x128xf32, #tpu.memory_space<vmem>>, vector<32x128xf32>,
    } else {
    }
    return
  }
  func.func @transform_0(%arg0: i32, %arg1: i32, %arg2: i32) -> (i32, i32) {
    %c0_i32 = arith.constant 0 : i32
    return %arg0, %arg2 : i32, i32
  }
  func.func @transform_1(%arg0: i32, %arg1: i32, %arg2: i32) -> (i32, i32) {
    %c0_i32 = arith.constant 0 : i32
    return %arg2, %arg1 : i32, i32
  }
  func.func @transform_2(%arg0: i32, %arg1: i32, %arg2: i32) -> (i32, i32) {
    %c0_i32 = arith.constant 0 : i32
    %c0_i32_0 = arith.constant 0 : i32
    return %c0_i32, %arg1 : i32, i32
  }
  func.func @transform_3(%arg0: i32, %arg1: i32, %arg2: i32) -> (i32, i32) {
    %c0_i32 = arith.constant 0 : i32
    return %arg0, %arg1 : i32, i32
  }
}

module attributes {stable_mosaic.version = 11 : i64} {
  func.func @gemm_kernel(%arg0: i32, %arg1: i32, %arg2: i32, %arg3: memref<32x256xbf16, #tpu.memory_space<vmem>>, %arg4: memref<256x128xbf16, #tpu.memory_space<vmem>>, %arg5: memref<1x128xf32, #tpu.memory_space<vmem>>, %arg6: memref<32x128xf32, #tpu.memory_space<vmem>>, %arg7: memref<32x128xf32, #tpu.memory_space<vmem>>) attributes {dimension_semantics = [#tpu.dimension_semantics<parallel>, #tpu.dimension_semantics<parallel>, #tpu.dimension_semantics<arbitrary>], iteration_bounds = array<i64: 1, 1, 1>, scalar_prefetch = 0 : i64, scratch_operands = 1 : i64, tpu.core_type = #tpu.core_type<tc>, window_params = [{transform_indices = @transform_0, window_bounds = array<i64: 32, 256>}, {transform_indices = @transform_1, window_bounds = array<i64: 256, 128>}, {transform_indices = @transform_2, window_bounds = array<i64: 1, 128>}, {transform_indices = @transform_3, window_bounds = array<i64: 32, 128>}]} {
    %c0_i32 = arith.constant 0 : i32
    %0 = arith.cmpi eq, %arg2, %c0_i32 : i32
    %1 = arith.extui %0 : i1 to i32
    %c0_i32_0 = arith.constant 0 : i32
    %2 = arith.cmpi ne, %1, %c0_i32_0 : i32
    scf.if %2 {
      %cst_10 = arith.constant 0.000000e+00 : f32
      %12 = vector.broadcast %cst_10 : f32 to vector<32x128xf32>
      %c0_11 = arith.constant 0 : index
      %c0_12 = arith.constant 0 : index
      %13 = vector.load %arg7[%c0_11, %c0_12] : memref<32x128xf32, #tpu.memory_space<vmem>>, vector<32x128xf32>
      tpu.vector_store %arg7[%c0_11, %c0_12], %12 {strides = array<i32>} : memref<32x128xf32, #tpu.memory_space<vmem>>, vector<32x128xf32>,
    } else {
    }
    %c0 = arith.constant 0 : index
    %c0_1 = arith.constant 0 : index
    %3 = vector.load %arg7[%c0, %c0_1] : memref<32x128xf32, #tpu.memory_space<vmem>>, vector<32x128xf32>
    %c0_2 = arith.constant 0 : index
    %c0_3 = arith.constant 0 : index
    %4 = vector.load %arg3[%c0_2, %c0_3] : memref<32x256xbf16, #tpu.memory_space<vmem>>, vector<32x256xbf16>
    %c0_4 = arith.constant 0 : index
    %c0_5 = arith.constant 0 : index
    %5 = vector.load %arg4[%c0_4, %c0_5] : memref<256x128xbf16, #tpu.memory_space<vmem>>, vector<256x128xbf16>
    %cst = arith.constant dense<0.000000e+00> : vector<32x128xf32>
    %6 = tpu.matmul %4, %5, %cst {dimension_numbers = #tpu.dot_dimension_numbers<[1], [0], [0], [1], [0, 0, 1, 1], [], []>} : vector<32x256xbf16>, vector<256x128xbf16>, vector<32x128xf32> -> vector<32x128xf32>
    %7 = arith.addf %3, %6 : vector<32x128xf32>
    %c0_6 = arith.constant 0 : index
    %c0_7 = arith.constant 0 : index
    %8 = vector.load %arg7[%c0_6, %c0_7] : memref<32x128xf32, #tpu.memory_space<vmem>>, vector<32x128xf32>
    tpu.vector_store %arg7[%c0_6, %c0_7], %7 {strides = array<i32>} : memref<32x128xf32, #tpu.memory_space<vmem>>, vector<32x128xf32>,
    %c0_i32_8 = arith.constant 0 : i32
    %9 = arith.cmpi eq, %arg2, %c0_i32_8 : i32
    %10 = arith.extui %9 : i1 to i32
    %c0_i32_9 = arith.constant 0 : i32
    %11 = arith.cmpi ne, %10, %c0_i32_9 : i32
    scf.if %11 {
      %c0_10 = arith.constant 0 : index
      %c0_11 = arith.constant 0 : index
      %12 = vector.load %arg7[%c0_10, %c0_11] : memref<32x128xf32, #tpu.memory_space<vmem>>, vector<32x128xf32>
      %c0_12 = arith.constant 0 : index
      %c0_13 = arith.constant 0 : index
      %13 = vector.load %arg5[%c0_12, %c0_13] : memref<1x128xf32, #tpu.memory_space<vmem>>, vector<1x128xf32>
      %14 = vector.broadcast %13 : vector<1x128xf32> to vector<32x128xf32>
      %15 = arith.addf %12, %14 : vector<32x128xf32>
      %c0_14 = arith.constant 0 : index
      %c0_15 = arith.constant 0 : index
      %16 = vector.load %arg6[%c0_14, %c0_15] : memref<32x128xf32, #tpu.memory_space<vmem>>, vector<32x128xf32>
      tpu.vector_store %arg6[%c0_14, %c0_15], %15 {strides = array<i32>} : memref<32x128xf32, #tpu.memory_space<vmem>>, vector<32x128xf32>,
    } else {
    }
    return
  }
  func.func @transform_0(%arg0: i32, %arg1: i32, %arg2: i32) -> (i32, i32) {
    %c0_i32 = arith.constant 0 : i32
    return %arg0, %arg2 : i32, i32
  }
  func.func @transform_1(%arg0: i32, %arg1: i32, %arg2: i32) -> (i32, i32) {
    %c0_i32 = arith.constant 0 : i32
    return %arg2, %arg1 : i32, i32
  }
  func.func @transform_2(%arg0: i32, %arg1: i32, %arg2: i32) -> (i32, i32) {
    %c0_i32 = arith.constant 0 : i32
    %c0_i32_0 = arith.constant 0 : i32
    return %c0_i32, %arg1 : i32, i32
  }
  func.func @transform_3(%arg0: i32, %arg1: i32, %arg2: i32) -> (i32, i32) {
    %c0_i32 = arith.constant 0 : i32
    return %arg0, %arg1 : i32, i32
  }
}

module attributes {stable_mosaic.version = 11 : i64} {
  func.func @gemm_kernel(%arg0: i32, %arg1: i32, %arg2: i32, %arg3: memref<32x256xbf16, #tpu.memory_space<vmem>>, %arg4: memref<256x128xbf16, #tpu.memory_space<vmem>>, %arg5: memref<1x128xf32, #tpu.memory_space<vmem>>, %arg6: memref<32x128xf32, #tpu.memory_space<vmem>>, %arg7: memref<32x128xf32, #tpu.memory_space<vmem>>, %arg8: memref<32x128xf32, #tpu.memory_space<vmem>>) attributes {dimension_semantics = [#tpu.dimension_semantics<parallel>, #tpu.dimension_semantics<parallel>, #tpu.dimension_semantics<arbitrary>], iteration_bounds = array<i64: 1, 1, 5>, scalar_prefetch = 0 : i64, scratch_operands = 1 : i64, tpu.core_type = #tpu.core_type<tc>, window_params = [{transform_indices = @transform_0, window_bounds = array<i64: 32, 256>}, {transform_indices = @transform_1, window_bounds = array<i64: 256, 128>}, {transform_indices = @transform_2, window_bounds = array<i64: 1, 128>}, {transform_indices = @transform_3, window_bounds = array<i64: 32, 128>}, {transform_indices = @transform_4, window_bounds = array<i64: 32, 128>}]} {
    %c0_i32 = arith.constant 0 : i32
    %0 = arith.cmpi eq, %arg2, %c0_i32 : i32
    %1 = arith.extui %0 : i1 to i32
    %c0_i32_0 = arith.constant 0 : i32
    %2 = arith.cmpi ne, %1, %c0_i32_0 : i32
    scf.if %2 {
      %cst_9 = arith.constant 0.000000e+00 : f32
      %12 = vector.broadcast %cst_9 : f32 to vector<32x128xf32>
      %c0_10 = arith.constant 0 : index
      %c0_11 = arith.constant 0 : index
      %13 = vector.load %arg8[%c0_10, %c0_11] : memref<32x128xf32, #tpu.memory_space<vmem>>, vector<32x128xf32>
      tpu.vector_store %arg8[%c0_10, %c0_11], %12 {strides = array<i32>} : memref<32x128xf32, #tpu.memory_space<vmem>>, vector<32x128xf32>,
    } else {
    }
    %c0 = arith.constant 0 : index
    %c0_1 = arith.constant 0 : index
    %3 = vector.load %arg8[%c0, %c0_1] : memref<32x128xf32, #tpu.memory_space<vmem>>, vector<32x128xf32>
    %c0_2 = arith.constant 0 : index
    %c0_3 = arith.constant 0 : index
    %4 = vector.load %arg3[%c0_2, %c0_3] : memref<32x256xbf16, #tpu.memory_space<vmem>>, vector<32x256xbf16>
    %c0_4 = arith.constant 0 : index
    %c0_5 = arith.constant 0 : index
    %5 = vector.load %arg4[%c0_4, %c0_5] : memref<256x128xbf16, #tpu.memory_space<vmem>>, vector<256x128xbf16>
    %cst = arith.constant dense<0.000000e+00> : vector<32x128xf32>
    %6 = tpu.matmul %4, %5, %cst {dimension_numbers = #tpu.dot_dimension_numbers<[1], [0], [0], [1], [0, 0, 1, 1], [], []>} : vector<32x256xbf16>, vector<256x128xbf16>, vector<32x128xf32> -> vector<32x128xf32>
    %7 = arith.addf %3, %6 : vector<32x128xf32>
    %c0_6 = arith.constant 0 : index
    %c0_7 = arith.constant 0 : index
    %8 = vector.load %arg8[%c0_6, %c0_7] : memref<32x128xf32, #tpu.memory_space<vmem>>, vector<32x128xf32>
    tpu.vector_store %arg8[%c0_6, %c0_7], %7 {strides = array<i32>} : memref<32x128xf32, #tpu.memory_space<vmem>>, vector<32x128xf32>,
    %c4_i32 = arith.constant 4 : i32
    %9 = arith.cmpi eq, %arg2, %c4_i32 : i32
    %10 = arith.extui %9 : i1 to i32
    %c0_i32_8 = arith.constant 0 : i32
    %11 = arith.cmpi ne, %10, %c0_i32_8 : i32
    scf.if %11 {
      %c0_9 = arith.constant 0 : index
      %c0_10 = arith.constant 0 : index
      %12 = vector.load %arg8[%c0_9, %c0_10] : memref<32x128xf32, #tpu.memory_space<vmem>>, vector<32x128xf32>
      %c0_11 = arith.constant 0 : index
      %c0_12 = arith.constant 0 : index
      %13 = vector.load %arg5[%c0_11, %c0_12] : memref<1x128xf32, #tpu.memory_space<vmem>>, vector<1x128xf32>
      %14 = vector.broadcast %13 : vector<1x128xf32> to vector<32x128xf32>
      %15 = arith.addf %12, %14 : vector<32x128xf32>
      %c0_13 = arith.constant 0 : index
      %c0_14 = arith.constant 0 : index
      %16 = vector.load %arg6[%c0_13, %c0_14] : memref<32x128xf32, #tpu.memory_space<vmem>>, vector<32x128xf32>
      %17 = arith.addf %15, %16 : vector<32x128xf32>
      %cst_15 = arith.constant 0.000000e+00 : f32
      %18 = vector.broadcast %cst_15 : f32 to vector<32x128xf32>
      %19 = arith.maximumf %17, %18 : vector<32x128xf32>
      %c0_16 = arith.constant 0 : index
      %c0_17 = arith.constant 0 : index
      %20 = vector.load %arg7[%c0_16, %c0_17] : memref<32x128xf32, #tpu.memory_space<vmem>>, vector<32x128xf32>
      tpu.vector_store %arg7[%c0_16, %c0_17], %19 {strides = array<i32>} : memref<32x128xf32, #tpu.memory_space<vmem>>, vector<32x128xf32>,
    } else {
    }
    return
  }
  func.func @transform_0(%arg0: i32, %arg1: i32, %arg2: i32) -> (i32, i32) {
    %c0_i32 = arith.constant 0 : i32
    return %arg0, %arg2 : i32, i32
  }
  func.func @transform_1(%arg0: i32, %arg1: i32, %arg2: i32) -> (i32, i32) {
    %c0_i32 = arith.constant 0 : i32
    return %arg2, %arg1 : i32, i32
  }
  func.func @transform_2(%arg0: i32, %arg1: i32, %arg2: i32) -> (i32, i32) {
    %c0_i32 = arith.constant 0 : i32
    %c0_i32_0 = arith.constant 0 : i32
    return %c0_i32, %arg1 : i32, i32
  }
  func.func @transform_3(%arg0: i32, %arg1: i32, %arg2: i32) -> (i32, i32) {
    %c0_i32 = arith.constant 0 : i32
    return %arg0, %arg1 : i32, i32
  }
  func.func @transform_4(%arg0: i32, %arg1: i32, %arg2: i32) -> (i32, i32) {
    %c0_i32 = arith.constant 0 : i32
    return %arg0, %arg1 : i32, i32
  }
}

module attributes {stable_mosaic.version = 11 : i64} {
  func.func @gemm_kernel(%arg0: i32, %arg1: i32, %arg2: i32, %arg3: memref<32x256xbf16, #tpu.memory_space<vmem>>, %arg4: memref<256x128xbf16, #tpu.memory_space<vmem>>, %arg5: memref<1x128xf32, #tpu.memory_space<vmem>>, %arg6: memref<32x128xf32, #tpu.memory_space<vmem>>, %arg7: memref<32x128xf32, #tpu.memory_space<vmem>>) attributes {dimension_semantics = [#tpu.dimension_semantics<parallel>, #tpu.dimension_semantics<parallel>, #tpu.dimension_semantics<arbitrary>], iteration_bounds = array<i64: 1, 1, 5>, scalar_prefetch = 0 : i64, scratch_operands = 1 : i64, tpu.core_type = #tpu.core_type<tc>, window_params = [{transform_indices = @transform_0, window_bounds = array<i64: 32, 256>}, {transform_indices = @transform_1, window_bounds = array<i64: 256, 128>}, {transform_indices = @transform_2, window_bounds = array<i64: 1, 128>}, {transform_indices = @transform_3, window_bounds = array<i64: 32, 128>}]} {
    %c0_i32 = arith.constant 0 : i32
    %0 = arith.cmpi eq, %arg2, %c0_i32 : i32
    %1 = arith.extui %0 : i1 to i32
    %c0_i32_0 = arith.constant 0 : i32
    %2 = arith.cmpi ne, %1, %c0_i32_0 : i32
    scf.if %2 {
      %cst_9 = arith.constant 0.000000e+00 : f32
      %12 = vector.broadcast %cst_9 : f32 to vector<32x128xf32>
      %c0_10 = arith.constant 0 : index
      %c0_11 = arith.constant 0 : index
      %13 = vector.load %arg7[%c0_10, %c0_11] : memref<32x128xf32, #tpu.memory_space<vmem>>, vector<32x128xf32>
      tpu.vector_store %arg7[%c0_10, %c0_11], %12 {strides = array<i32>} : memref<32x128xf32, #tpu.memory_space<vmem>>, vector<32x128xf32>,
    } else {
    }
    %c0 = arith.constant 0 : index
    %c0_1 = arith.constant 0 : index
    %3 = vector.load %arg7[%c0, %c0_1] : memref<32x128xf32, #tpu.memory_space<vmem>>, vector<32x128xf32>
    %c0_2 = arith.constant 0 : index
    %c0_3 = arith.constant 0 : index
    %4 = vector.load %arg3[%c0_2, %c0_3] : memref<32x256xbf16, #tpu.memory_space<vmem>>, vector<32x256xbf16>
    %c0_4 = arith.constant 0 : index
    %c0_5 = arith.constant 0 : index
    %5 = vector.load %arg4[%c0_4, %c0_5] : memref<256x128xbf16, #tpu.memory_space<vmem>>, vector<256x128xbf16>
    %cst = arith.constant dense<0.000000e+00> : vector<32x128xf32>
    %6 = tpu.matmul %4, %5, %cst {dimension_numbers = #tpu.dot_dimension_numbers<[1], [0], [0], [1], [0, 0, 1, 1], [], []>} : vector<32x256xbf16>, vector<256x128xbf16>, vector<32x128xf32> -> vector<32x128xf32>
    %7 = arith.addf %3, %6 : vector<32x128xf32>
    %c0_6 = arith.constant 0 : index
    %c0_7 = arith.constant 0 : index
    %8 = vector.load %arg7[%c0_6, %c0_7] : memref<32x128xf32, #tpu.memory_space<vmem>>, vector<32x128xf32>
    tpu.vector_store %arg7[%c0_6, %c0_7], %7 {strides = array<i32>} : memref<32x128xf32, #tpu.memory_space<vmem>>, vector<32x128xf32>,
    %c4_i32 = arith.constant 4 : i32
    %9 = arith.cmpi eq, %arg2, %c4_i32 : i32
    %10 = arith.extui %9 : i1 to i32
    %c0_i32_8 = arith.constant 0 : i32
    %11 = arith.cmpi ne, %10, %c0_i32_8 : i32
    scf.if %11 {
      %c0_9 = arith.constant 0 : index
      %c0_10 = arith.constant 0 : index
      %12 = vector.load %arg7[%c0_9, %c0_10] : memref<32x128xf32, #tpu.memory_space<vmem>>, vector<32x128xf32>
      %c0_11 = arith.constant 0 : index
      %c0_12 = arith.constant 0 : index
      %13 = vector.load %arg5[%c0_11, %c0_12] : memref<1x128xf32, #tpu.memory_space<vmem>>, vector<1x128xf32>
      %14 = vector.broadcast %13 : vector<1x128xf32> to vector<32x128xf32>
      %15 = arith.addf %12, %14 : vector<32x128xf32>
      %cst_13 = arith.constant 0.000000e+00 : f32
      %16 = vector.broadcast %cst_13 : f32 to vector<32x128xf32>
      %17 = arith.maximumf %15, %16 : vector<32x128xf32>
      %c0_14 = arith.constant 0 : index
      %c0_15 = arith.constant 0 : index
      %18 = vector.load %arg6[%c0_14, %c0_15] : memref<32x128xf32, #tpu.memory_space<vmem>>, vector<32x128xf32>
      tpu.vector_store %arg6[%c0_14, %c0_15], %17 {strides = array<i32>} : memref<32x128xf32, #tpu.memory_space<vmem>>, vector<32x128xf32>,
    } else {
    }
    return
  }
  func.func @transform_0(%arg0: i32, %arg1: i32, %arg2: i32) -> (i32, i32) {
    %c0_i32 = arith.constant 0 : i32
    return %arg0, %arg2 : i32, i32
  }
  func.func @transform_1(%arg0: i32, %arg1: i32, %arg2: i32) -> (i32, i32) {
    %c0_i32 = arith.constant 0 : i32
    return %arg2, %arg1 : i32, i32
  }
  func.func @transform_2(%arg0: i32, %arg1: i32, %arg2: i32) -> (i32, i32) {
    %c0_i32 = arith.constant 0 : i32
    %c0_i32_0 = arith.constant 0 : i32
    return %c0_i32, %arg1 : i32, i32
  }
  func.func @transform_3(%arg0: i32, %arg1: i32, %arg2: i32) -> (i32, i32) {
    %c0_i32 = arith.constant 0 : i32
    return %arg0, %arg1 : i32, i32
  }
}

module attributes {stable_mosaic.version = 11 : i64} {
  func.func @gemm_kernel(%arg0: i32, %arg1: i32, %arg2: i32, %arg3: memref<8x256xbf16, #tpu.memory_space<vmem>>, %arg4: memref<256x256xbf16, #tpu.memory_space<vmem>>, %arg5: memref<1x256xf32, #tpu.memory_space<vmem>>, %arg6: memref<8x256xf32, #tpu.memory_space<vmem>>, %arg7: memref<8x256xf32, #tpu.memory_space<vmem>>) attributes {dimension_semantics = [#tpu.dimension_semantics<parallel>, #tpu.dimension_semantics<parallel>, #tpu.dimension_semantics<arbitrary>], iteration_bounds = array<i64: 1, 1, 5>, scalar_prefetch = 0 : i64, scratch_operands = 1 : i64, tpu.core_type = #tpu.core_type<tc>, window_params = [{transform_indices = @transform_0, window_bounds = array<i64: 8, 256>}, {transform_indices = @transform_1, window_bounds = array<i64: 256, 256>}, {transform_indices = @transform_2, window_bounds = array<i64: 1, 256>}, {transform_indices = @transform_3, window_bounds = array<i64: 8, 256>}]} {
    %c0_i32 = arith.constant 0 : i32
    %0 = arith.cmpi eq, %arg2, %c0_i32 : i32
    %1 = arith.extui %0 : i1 to i32
    %c0_i32_0 = arith.constant 0 : i32
    %2 = arith.cmpi ne, %1, %c0_i32_0 : i32
    scf.if %2 {
      %cst_9 = arith.constant 0.000000e+00 : f32
      %12 = vector.broadcast %cst_9 : f32 to vector<8x256xf32>
      %c0_10 = arith.constant 0 : index
      %c0_11 = arith.constant 0 : index
      %13 = vector.load %arg7[%c0_10, %c0_11] : memref<8x256xf32, #tpu.memory_space<vmem>>, vector<8x256xf32>
      tpu.vector_store %arg7[%c0_10, %c0_11], %12 {strides = array<i32>} : memref<8x256xf32, #tpu.memory_space<vmem>>, vector<8x256xf32>,
    } else {
    }
    %c0 = arith.constant 0 : index
    %c0_1 = arith.constant 0 : index
    %3 = vector.load %arg7[%c0, %c0_1] : memref<8x256xf32, #tpu.memory_space<vmem>>, vector<8x256xf32>
    %c0_2 = arith.constant 0 : index
    %c0_3 = arith.constant 0 : index
    %4 = vector.load %arg3[%c0_2, %c0_3] : memref<8x256xbf16, #tpu.memory_space<vmem>>, vector<8x256xbf16>
    %c0_4 = arith.constant 0 : index
    %c0_5 = arith.constant 0 : index
    %5 = vector.load %arg4[%c0_4, %c0_5] : memref<256x256xbf16, #tpu.memory_space<vmem>>, vector<256x256xbf16>
    %cst = arith.constant dense<0.000000e+00> : vector<8x256xf32>
    %6 = tpu.matmul %4, %5, %cst {dimension_numbers = #tpu.dot_dimension_numbers<[1], [0], [0], [1], [0, 0, 1, 1], [], []>} : vector<8x256xbf16>, vector<256x256xbf16>, vector<8x256xf32> -> vector<8x256xf32>
    %7 = arith.addf %3, %6 : vector<8x256xf32>
    %c0_6 = arith.constant 0 : index
    %c0_7 = arith.constant 0 : index
    %8 = vector.load %arg7[%c0_6, %c0_7] : memref<8x256xf32, #tpu.memory_space<vmem>>, vector<8x256xf32>
    tpu.vector_store %arg7[%c0_6, %c0_7], %7 {strides = array<i32>} : memref<8x256xf32, #tpu.memory_space<vmem>>, vector<8x256xf32>,
    %c4_i32 = arith.constant 4 : i32
    %9 = arith.cmpi eq, %arg2, %c4_i32 : i32
    %10 = arith.extui %9 : i1 to i32
    %c0_i32_8 = arith.constant 0 : i32
    %11 = arith.cmpi ne, %10, %c0_i32_8 : i32
    scf.if %11 {
      %c0_9 = arith.constant 0 : index
      %c0_10 = arith.constant 0 : index
      %12 = vector.load %arg7[%c0_9, %c0_10] : memref<8x256xf32, #tpu.memory_space<vmem>>, vector<8x256xf32>
      %c0_11 = arith.constant 0 : index
      %c0_12 = arith.constant 0 : index
      %13 = vector.load %arg5[%c0_11, %c0_12] : memref<1x256xf32, #tpu.memory_space<vmem>>, vector<1x256xf32>
      %14 = vector.broadcast %13 : vector<1x256xf32> to vector<8x256xf32>
      %15 = arith.addf %12, %14 : vector<8x256xf32>
      %cst_13 = arith.constant 0.000000e+00 : f32
      %16 = vector.broadcast %cst_13 : f32 to vector<8x256xf32>
      %17 = arith.maximumf %15, %16 : vector<8x256xf32>
      %c0_14 = arith.constant 0 : index
      %c0_15 = arith.constant 0 : index
      %18 = vector.load %arg6[%c0_14, %c0_15] : memref<8x256xf32, #tpu.memory_space<vmem>>, vector<8x256xf32>
      tpu.vector_store %arg6[%c0_14, %c0_15], %17 {strides = array<i32>} : memref<8x256xf32, #tpu.memory_space<vmem>>, vector<8x256xf32>,
    } else {
    }
    return
  }
  func.func @transform_0(%arg0: i32, %arg1: i32, %arg2: i32) -> (i32, i32) {
    %c0_i32 = arith.constant 0 : i32
    return %arg0, %arg2 : i32, i32
  }
  func.func @transform_1(%arg0: i32, %arg1: i32, %arg2: i32) -> (i32, i32) {
    %c0_i32 = arith.constant 0 : i32
    return %arg2, %arg1 : i32, i32
  }
  func.func @transform_2(%arg0: i32, %arg1: i32, %arg2: i32) -> (i32, i32) {
    %c0_i32 = arith.constant 0 : i32
    %c0_i32_0 = arith.constant 0 : i32
    return %c0_i32, %arg1 : i32, i32
  }
  func.func @transform_3(%arg0: i32, %arg1: i32, %arg2: i32) -> (i32, i32) {
    %c0_i32 = arith.constant 0 : i32
    return %arg0, %arg1 : i32, i32
  }
}

module attributes {stable_mosaic.version = 11 : i64} {
  func.func @gemm_kernel(%arg0: i32, %arg1: i32, %arg2: i32, %arg3: memref<8x256xbf16, #tpu.memory_space<vmem>>, %arg4: memref<256x256xbf16, #tpu.memory_space<vmem>>, %arg5: memref<1x256xf32, #tpu.memory_space<vmem>>, %arg6: memref<8x256xf32, #tpu.memory_space<vmem>>, %arg7: memref<8x256xf32, #tpu.memory_space<vmem>>) attributes {dimension_semantics = [#tpu.dimension_semantics<parallel>, #tpu.dimension_semantics<parallel>, #tpu.dimension_semantics<arbitrary>], iteration_bounds = array<i64: 1, 1, 1>, scalar_prefetch = 0 : i64, scratch_operands = 1 : i64, tpu.core_type = #tpu.core_type<tc>, window_params = [{transform_indices = @transform_0, window_bounds = array<i64: 8, 256>}, {transform_indices = @transform_1, window_bounds = array<i64: 256, 256>}, {transform_indices = @transform_2, window_bounds = array<i64: 1, 256>}, {transform_indices = @transform_3, window_bounds = array<i64: 8, 256>}]} {
    %c0_i32 = arith.constant 0 : i32
    %0 = arith.cmpi eq, %arg2, %c0_i32 : i32
    %1 = arith.extui %0 : i1 to i32
    %c0_i32_0 = arith.constant 0 : i32
    %2 = arith.cmpi ne, %1, %c0_i32_0 : i32
    scf.if %2 {
      %cst_10 = arith.constant 0.000000e+00 : f32
      %12 = vector.broadcast %cst_10 : f32 to vector<8x256xf32>
      %c0_11 = arith.constant 0 : index
      %c0_12 = arith.constant 0 : index
      %13 = vector.load %arg7[%c0_11, %c0_12] : memref<8x256xf32, #tpu.memory_space<vmem>>, vector<8x256xf32>
      tpu.vector_store %arg7[%c0_11, %c0_12], %12 {strides = array<i32>} : memref<8x256xf32, #tpu.memory_space<vmem>>, vector<8x256xf32>,
    } else {
    }
    %c0 = arith.constant 0 : index
    %c0_1 = arith.constant 0 : index
    %3 = vector.load %arg7[%c0, %c0_1] : memref<8x256xf32, #tpu.memory_space<vmem>>, vector<8x256xf32>
    %c0_2 = arith.constant 0 : index
    %c0_3 = arith.constant 0 : index
    %4 = vector.load %arg3[%c0_2, %c0_3] : memref<8x256xbf16, #tpu.memory_space<vmem>>, vector<8x256xbf16>
    %c0_4 = arith.constant 0 : index
    %c0_5 = arith.constant 0 : index
    %5 = vector.load %arg4[%c0_4, %c0_5] : memref<256x256xbf16, #tpu.memory_space<vmem>>, vector<256x256xbf16>
    %cst = arith.constant dense<0.000000e+00> : vector<8x256xf32>
    %6 = tpu.matmul %4, %5, %cst {dimension_numbers = #tpu.dot_dimension_numbers<[1], [0], [0], [1], [0, 0, 1, 1], [], []>} : vector<8x256xbf16>, vector<256x256xbf16>, vector<8x256xf32> -> vector<8x256xf32>
    %7 = arith.addf %3, %6 : vector<8x256xf32>
    %c0_6 = arith.constant 0 : index
    %c0_7 = arith.constant 0 : index
    %8 = vector.load %arg7[%c0_6, %c0_7] : memref<8x256xf32, #tpu.memory_space<vmem>>, vector<8x256xf32>
    tpu.vector_store %arg7[%c0_6, %c0_7], %7 {strides = array<i32>} : memref<8x256xf32, #tpu.memory_space<vmem>>, vector<8x256xf32>,
    %c0_i32_8 = arith.constant 0 : i32
    %9 = arith.cmpi eq, %arg2, %c0_i32_8 : i32
    %10 = arith.extui %9 : i1 to i32
    %c0_i32_9 = arith.constant 0 : i32
    %11 = arith.cmpi ne, %10, %c0_i32_9 : i32
    scf.if %11 {
      %c0_10 = arith.constant 0 : index
      %c0_11 = arith.constant 0 : index
      %12 = vector.load %arg7[%c0_10, %c0_11] : memref<8x256xf32, #tpu.memory_space<vmem>>, vector<8x256xf32>
      %c0_12 = arith.constant 0 : index
      %c0_13 = arith.constant 0 : index
      %13 = vector.load %arg5[%c0_12, %c0_13] : memref<1x256xf32, #tpu.memory_space<vmem>>, vector<1x256xf32>
      %14 = vector.broadcast %13 : vector<1x256xf32> to vector<8x256xf32>
      %15 = arith.addf %12, %14 : vector<8x256xf32>
      %c0_14 = arith.constant 0 : index
      %c0_15 = arith.constant 0 : index
      %16 = vector.load %arg6[%c0_14, %c0_15] : memref<8x256xf32, #tpu.memory_space<vmem>>, vector<8x256xf32>
      tpu.vector_store %arg6[%c0_14, %c0_15], %15 {strides = array<i32>} : memref<8x256xf32, #tpu.memory_space<vmem>>, vector<8x256xf32>,
    } else {
    }
    return
  }
  func.func @transform_0(%arg0: i32, %arg1: i32, %arg2: i32) -> (i32, i32) {
    %c0_i32 = arith.constant 0 : i32
    return %arg0, %arg2 : i32, i32
  }
  func.func @transform_1(%arg0: i32, %arg1: i32, %arg2: i32) -> (i32, i32) {
    %c0_i32 = arith.constant 0 : i32
    return %arg2, %arg1 : i32, i32
  }
  func.func @transform_2(%arg0: i32, %arg1: i32, %arg2: i32) -> (i32, i32) {
    %c0_i32 = arith.constant 0 : i32
    %c0_i32_0 = arith.constant 0 : i32
    return %c0_i32, %arg1 : i32, i32
  }
  func.func @transform_3(%arg0: i32, %arg1: i32, %arg2: i32) -> (i32, i32) {
    %c0_i32 = arith.constant 0 : i32
    return %arg0, %arg1 : i32, i32
  }
}

module attributes {stable_mosaic.version = 11 : i64} {
  func.func @gemm_kernel(%arg0: i32, %arg1: i32, %arg2: i32, %arg3: memref<8x256xbf16, #tpu.memory_space<vmem>>, %arg4: memref<256x256xbf16, #tpu.memory_space<vmem>>, %arg5: memref<1x256xf32, #tpu.memory_space<vmem>>, %arg6: memref<8x256xf32, #tpu.memory_space<vmem>>, %arg7: memref<8x256xf32, #tpu.memory_space<vmem>>, %arg8: memref<8x256xf32, #tpu.memory_space<vmem>>) attributes {dimension_semantics = [#tpu.dimension_semantics<parallel>, #tpu.dimension_semantics<parallel>, #tpu.dimension_semantics<arbitrary>], iteration_bounds = array<i64: 1, 1, 9>, scalar_prefetch = 0 : i64, scratch_operands = 1 : i64, tpu.core_type = #tpu.core_type<tc>, window_params = [{transform_indices = @transform_0, window_bounds = array<i64: 8, 256>}, {transform_indices = @transform_1, window_bounds = array<i64: 256, 256>}, {transform_indices = @transform_2, window_bounds = array<i64: 1, 256>}, {transform_indices = @transform_3, window_bounds = array<i64: 8, 256>}, {transform_indices = @transform_4, window_bounds = array<i64: 8, 256>}]} {
    %c0_i32 = arith.constant 0 : i32
    %0 = arith.cmpi eq, %arg2, %c0_i32 : i32
    %1 = arith.extui %0 : i1 to i32
    %c0_i32_0 = arith.constant 0 : i32
    %2 = arith.cmpi ne, %1, %c0_i32_0 : i32
    scf.if %2 {
      %cst_9 = arith.constant 0.000000e+00 : f32
      %12 = vector.broadcast %cst_9 : f32 to vector<8x256xf32>
      %c0_10 = arith.constant 0 : index
      %c0_11 = arith.constant 0 : index
      %13 = vector.load %arg8[%c0_10, %c0_11] : memref<8x256xf32, #tpu.memory_space<vmem>>, vector<8x256xf32>
      tpu.vector_store %arg8[%c0_10, %c0_11], %12 {strides = array<i32>} : memref<8x256xf32, #tpu.memory_space<vmem>>, vector<8x256xf32>,
    } else {
    }
    %c0 = arith.constant 0 : index
    %c0_1 = arith.constant 0 : index
    %3 = vector.load %arg8[%c0, %c0_1] : memref<8x256xf32, #tpu.memory_space<vmem>>, vector<8x256xf32>
    %c0_2 = arith.constant 0 : index
    %c0_3 = arith.constant 0 : index
    %4 = vector.load %arg3[%c0_2, %c0_3] : memref<8x256xbf16, #tpu.memory_space<vmem>>, vector<8x256xbf16>
    %c0_4 = arith.constant 0 : index
    %c0_5 = arith.constant 0 : index
    %5 = vector.load %arg4[%c0_4, %c0_5] : memref<256x256xbf16, #tpu.memory_space<vmem>>, vector<256x256xbf16>
    %cst = arith.constant dense<0.000000e+00> : vector<8x256xf32>
    %6 = tpu.matmul %4, %5, %cst {dimension_numbers = #tpu.dot_dimension_numbers<[1], [0], [0], [1], [0, 0, 1, 1], [], []>} : vector<8x256xbf16>, vector<256x256xbf16>, vector<8x256xf32> -> vector<8x256xf32>
    %7 = arith.addf %3, %6 : vector<8x256xf32>
    %c0_6 = arith.constant 0 : index
    %c0_7 = arith.constant 0 : index
    %8 = vector.load %arg8[%c0_6, %c0_7] : memref<8x256xf32, #tpu.memory_space<vmem>>, vector<8x256xf32>
    tpu.vector_store %arg8[%c0_6, %c0_7], %7 {strides = array<i32>} : memref<8x256xf32, #tpu.memory_space<vmem>>, vector<8x256xf32>,
    %c8_i32 = arith.constant 8 : i32
    %9 = arith.cmpi eq, %arg2, %c8_i32 : i32
    %10 = arith.extui %9 : i1 to i32
    %c0_i32_8 = arith.constant 0 : i32
    %11 = arith.cmpi ne, %10, %c0_i32_8 : i32
    scf.if %11 {
      %c0_9 = arith.constant 0 : index
      %c0_10 = arith.constant 0 : index
      %12 = vector.load %arg8[%c0_9, %c0_10] : memref<8x256xf32, #tpu.memory_space<vmem>>, vector<8x256xf32>
      %c0_11 = arith.constant 0 : index
      %c0_12 = arith.constant 0 : index
      %13 = vector.load %arg5[%c0_11, %c0_12] : memref<1x256xf32, #tpu.memory_space<vmem>>, vector<1x256xf32>
      %14 = vector.broadcast %13 : vector<1x256xf32> to vector<8x256xf32>
      %15 = arith.addf %12, %14 : vector<8x256xf32>
      %c0_13 = arith.constant 0 : index
      %c0_14 = arith.constant 0 : index
      %16 = vector.load %arg6[%c0_13, %c0_14] : memref<8x256xf32, #tpu.memory_space<vmem>>, vector<8x256xf32>
      %17 = arith.addf %15, %16 : vector<8x256xf32>
      %cst_15 = arith.constant 0.000000e+00 : f32
      %18 = vector.broadcast %cst_15 : f32 to vector<8x256xf32>
      %19 = arith.maximumf %17, %18 : vector<8x256xf32>
      %c0_16 = arith.constant 0 : index
      %c0_17 = arith.constant 0 : index
      %20 = vector.load %arg7[%c0_16, %c0_17] : memref<8x256xf32, #tpu.memory_space<vmem>>, vector<8x256xf32>
      tpu.vector_store %arg7[%c0_16, %c0_17], %19 {strides = array<i32>} : memref<8x256xf32, #tpu.memory_space<vmem>>, vector<8x256xf32>,
    } else {
    }
    return
  }
  func.func @transform_0(%arg0: i32, %arg1: i32, %arg2: i32) -> (i32, i32) {
    %c0_i32 = arith.constant 0 : i32
    return %arg0, %arg2 : i32, i32
  }
  func.func @transform_1(%arg0: i32, %arg1: i32, %arg2: i32) -> (i32, i32) {
    %c0_i32 = arith.constant 0 : i32
    return %arg2, %arg1 : i32, i32
  }
  func.func @transform_2(%arg0: i32, %arg1: i32, %arg2: i32) -> (i32, i32) {
    %c0_i32 = arith.constant 0 : i32
    %c0_i32_0 = arith.constant 0 : i32
    return %c0_i32, %arg1 : i32, i32
  }
  func.func @transform_3(%arg0: i32, %arg1: i32, %arg2: i32) -> (i32, i32) {
    %c0_i32 = arith.constant 0 : i32
    return %arg0, %arg1 : i32, i32
  }
  func.func @transform_4(%arg0: i32, %arg1: i32, %arg2: i32) -> (i32, i32) {
    %c0_i32 = arith.constant 0 : i32
    return %arg0, %arg1 : i32, i32
  }
}

module attributes {stable_mosaic.version = 11 : i64} {
  func.func @gemm_kernel(%arg0: i32, %arg1: i32, %arg2: i32, %arg3: memref<8x256xbf16, #tpu.memory_space<vmem>>, %arg4: memref<256x256xbf16, #tpu.memory_space<vmem>>, %arg5: memref<1x256xf32, #tpu.memory_space<vmem>>, %arg6: memref<8x256xf32, #tpu.memory_space<vmem>>, %arg7: memref<8x256xf32, #tpu.memory_space<vmem>>) attributes {dimension_semantics = [#tpu.dimension_semantics<parallel>, #tpu.dimension_semantics<parallel>, #tpu.dimension_semantics<arbitrary>], iteration_bounds = array<i64: 1, 1, 9>, scalar_prefetch = 0 : i64, scratch_operands = 1 : i64, tpu.core_type = #tpu.core_type<tc>, window_params = [{transform_indices = @transform_0, window_bounds = array<i64: 8, 256>}, {transform_indices = @transform_1, window_bounds = array<i64: 256, 256>}, {transform_indices = @transform_2, window_bounds = array<i64: 1, 256>}, {transform_indices = @transform_3, window_bounds = array<i64: 8, 256>}]} {
    %c0_i32 = arith.constant 0 : i32
    %0 = arith.cmpi eq, %arg2, %c0_i32 : i32
    %1 = arith.extui %0 : i1 to i32
    %c0_i32_0 = arith.constant 0 : i32
    %2 = arith.cmpi ne, %1, %c0_i32_0 : i32
    scf.if %2 {
      %cst_9 = arith.constant 0.000000e+00 : f32
      %12 = vector.broadcast %cst_9 : f32 to vector<8x256xf32>
      %c0_10 = arith.constant 0 : index
      %c0_11 = arith.constant 0 : index
      %13 = vector.load %arg7[%c0_10, %c0_11] : memref<8x256xf32, #tpu.memory_space<vmem>>, vector<8x256xf32>
      tpu.vector_store %arg7[%c0_10, %c0_11], %12 {strides = array<i32>} : memref<8x256xf32, #tpu.memory_space<vmem>>, vector<8x256xf32>,
    } else {
    }
    %c0 = arith.constant 0 : index
    %c0_1 = arith.constant 0 : index
    %3 = vector.load %arg7[%c0, %c0_1] : memref<8x256xf32, #tpu.memory_space<vmem>>, vector<8x256xf32>
    %c0_2 = arith.constant 0 : index
    %c0_3 = arith.constant 0 : index
    %4 = vector.load %arg3[%c0_2, %c0_3] : memref<8x256xbf16, #tpu.memory_space<vmem>>, vector<8x256xbf16>
    %c0_4 = arith.constant 0 : index
    %c0_5 = arith.constant 0 : index
    %5 = vector.load %arg4[%c0_4, %c0_5] : memref<256x256xbf16, #tpu.memory_space<vmem>>, vector<256x256xbf16>
    %cst = arith.constant dense<0.000000e+00> : vector<8x256xf32>
    %6 = tpu.matmul %4, %5, %cst {dimension_numbers = #tpu.dot_dimension_numbers<[1], [0], [0], [1], [0, 0, 1, 1], [], []>} : vector<8x256xbf16>, vector<256x256xbf16>, vector<8x256xf32> -> vector<8x256xf32>
    %7 = arith.addf %3, %6 : vector<8x256xf32>
    %c0_6 = arith.constant 0 : index
    %c0_7 = arith.constant 0 : index
    %8 = vector.load %arg7[%c0_6, %c0_7] : memref<8x256xf32, #tpu.memory_space<vmem>>, vector<8x256xf32>
    tpu.vector_store %arg7[%c0_6, %c0_7], %7 {strides = array<i32>} : memref<8x256xf32, #tpu.memory_space<vmem>>, vector<8x256xf32>,
    %c8_i32 = arith.constant 8 : i32
    %9 = arith.cmpi eq, %arg2, %c8_i32 : i32
    %10 = arith.extui %9 : i1 to i32
    %c0_i32_8 = arith.constant 0 : i32
    %11 = arith.cmpi ne, %10, %c0_i32_8 : i32
    scf.if %11 {
      %c0_9 = arith.constant 0 : index
      %c0_10 = arith.constant 0 : index
      %12 = vector.load %arg7[%c0_9, %c0_10] : memref<8x256xf32, #tpu.memory_space<vmem>>, vector<8x256xf32>
      %c0_11 = arith.constant 0 : index
      %c0_12 = arith.constant 0 : index
      %13 = vector.load %arg5[%c0_11, %c0_12] : memref<1x256xf32, #tpu.memory_space<vmem>>, vector<1x256xf32>
      %14 = vector.broadcast %13 : vector<1x256xf32> to vector<8x256xf32>
      %15 = arith.addf %12, %14 : vector<8x256xf32>
      %cst_13 = arith.constant 0.000000e+00 : f32
      %16 = vector.broadcast %cst_13 : f32 to vector<8x256xf32>
      %17 = arith.maximumf %15, %16 : vector<8x256xf32>
      %c0_14 = arith.constant 0 : index
      %c0_15 = arith.constant 0 : index
      %18 = vector.load %arg6[%c0_14, %c0_15] : memref<8x256xf32, #tpu.memory_space<vmem>>, vector<8x256xf32>
      tpu.vector_store %arg6[%c0_14, %c0_15], %17 {strides = array<i32>} : memref<8x256xf32, #tpu.memory_space<vmem>>, vector<8x256xf32>,
    } else {
    }
    return
  }
  func.func @transform_0(%arg0: i32, %arg1: i32, %arg2: i32) -> (i32, i32) {
    %c0_i32 = arith.constant 0 : i32
    return %arg0, %arg2 : i32, i32
  }
  func.func @transform_1(%arg0: i32, %arg1: i32, %arg2: i32) -> (i32, i32) {
    %c0_i32 = arith.constant 0 : i32
    return %arg2, %arg1 : i32, i32
  }
  func.func @transform_2(%arg0: i32, %arg1: i32, %arg2: i32) -> (i32, i32) {
    %c0_i32 = arith.constant 0 : i32
    %c0_i32_0 = arith.constant 0 : i32
    return %c0_i32, %arg1 : i32, i32
  }
  func.func @transform_3(%arg0: i32, %arg1: i32, %arg2: i32) -> (i32, i32) {
    %c0_i32 = arith.constant 0 : i32
    return %arg0, %arg1 : i32, i32
  }
}

module attributes {stable_mosaic.version = 11 : i64} {
  func.func @gemm_kernel(%arg0: i32, %arg1: i32, %arg2: i32, %arg3: memref<8x256xbf16, #tpu.memory_space<vmem>>, %arg4: memref<256x256xbf16, #tpu.memory_space<vmem>>, %arg5: memref<1x256xf32, #tpu.memory_space<vmem>>, %arg6: memref<8x256xf32, #tpu.memory_space<vmem>>, %arg7: memref<8x256xf32, #tpu.memory_space<vmem>>) attributes {dimension_semantics = [#tpu.dimension_semantics<parallel>, #tpu.dimension_semantics<parallel>, #tpu.dimension_semantics<arbitrary>], iteration_bounds = array<i64: 1, 2, 9>, scalar_prefetch = 0 : i64, scratch_operands = 1 : i64, tpu.core_type = #tpu.core_type<tc>, window_params = [{transform_indices = @transform_0, window_bounds = array<i64: 8, 256>}, {transform_indices = @transform_1, window_bounds = array<i64: 256, 256>}, {transform_indices = @transform_2, window_bounds = array<i64: 1, 256>}, {transform_indices = @transform_3, window_bounds = array<i64: 8, 256>}]} {
    %c0_i32 = arith.constant 0 : i32
    %0 = arith.cmpi eq, %arg2, %c0_i32 : i32
    %1 = arith.extui %0 : i1 to i32
    %c0_i32_0 = arith.constant 0 : i32
    %2 = arith.cmpi ne, %1, %c0_i32_0 : i32
    scf.if %2 {
      %cst_9 = arith.constant 0.000000e+00 : f32
      %12 = vector.broadcast %cst_9 : f32 to vector<8x256xf32>
      %c0_10 = arith.constant 0 : index
      %c0_11 = arith.constant 0 : index
      %13 = vector.load %arg7[%c0_10, %c0_11] : memref<8x256xf32, #tpu.memory_space<vmem>>, vector<8x256xf32>
      tpu.vector_store %arg7[%c0_10, %c0_11], %12 {strides = array<i32>} : memref<8x256xf32, #tpu.memory_space<vmem>>, vector<8x256xf32>,
    } else {
    }
    %c0 = arith.constant 0 : index
    %c0_1 = arith.constant 0 : index
    %3 = vector.load %arg7[%c0, %c0_1] : memref<8x256xf32, #tpu.memory_space<vmem>>, vector<8x256xf32>
    %c0_2 = arith.constant 0 : index
    %c0_3 = arith.constant 0 : index
    %4 = vector.load %arg3[%c0_2, %c0_3] : memref<8x256xbf16, #tpu.memory_space<vmem>>, vector<8x256xbf16>
    %c0_4 = arith.constant 0 : index
    %c0_5 = arith.constant 0 : index
    %5 = vector.load %arg4[%c0_4, %c0_5] : memref<256x256xbf16, #tpu.memory_space<vmem>>, vector<256x256xbf16>
    %cst = arith.constant dense<0.000000e+00> : vector<8x256xf32>
    %6 = tpu.matmul %4, %5, %cst {dimension_numbers = #tpu.dot_dimension_numbers<[1], [0], [0], [1], [0, 0, 1, 1], [], []>} : vector<8x256xbf16>, vector<256x256xbf16>, vector<8x256xf32> -> vector<8x256xf32>
    %7 = arith.addf %3, %6 : vector<8x256xf32>
    %c0_6 = arith.constant 0 : index
    %c0_7 = arith.constant 0 : index
    %8 = vector.load %arg7[%c0_6, %c0_7] : memref<8x256xf32, #tpu.memory_space<vmem>>, vector<8x256xf32>
    tpu.vector_store %arg7[%c0_6, %c0_7], %7 {strides = array<i32>} : memref<8x256xf32, #tpu.memory_space<vmem>>, vector<8x256xf32>,
    %c8_i32 = arith.constant 8 : i32
    %9 = arith.cmpi eq, %arg2, %c8_i32 : i32
    %10 = arith.extui %9 : i1 to i32
    %c0_i32_8 = arith.constant 0 : i32
    %11 = arith.cmpi ne, %10, %c0_i32_8 : i32
    scf.if %11 {
      %c0_9 = arith.constant 0 : index
      %c0_10 = arith.constant 0 : index
      %12 = vector.load %arg7[%c0_9, %c0_10] : memref<8x256xf32, #tpu.memory_space<vmem>>, vector<8x256xf32>
      %c0_11 = arith.constant 0 : index
      %c0_12 = arith.constant 0 : index
      %13 = vector.load %arg5[%c0_11, %c0_12] : memref<1x256xf32, #tpu.memory_space<vmem>>, vector<1x256xf32>
      %14 = vector.broadcast %13 : vector<1x256xf32> to vector<8x256xf32>
      %15 = arith.addf %12, %14 : vector<8x256xf32>
      %cst_13 = arith.constant 0.000000e+00 : f32
      %16 = vector.broadcast %cst_13 : f32 to vector<8x256xf32>
      %17 = arith.maximumf %15, %16 : vector<8x256xf32>
      %c0_14 = arith.constant 0 : index
      %c0_15 = arith.constant 0 : index
      %18 = vector.load %arg6[%c0_14, %c0_15] : memref<8x256xf32, #tpu.memory_space<vmem>>, vector<8x256xf32>
      tpu.vector_store %arg6[%c0_14, %c0_15], %17 {strides = array<i32>} : memref<8x256xf32, #tpu.memory_space<vmem>>, vector<8x256xf32>,
    } else {
    }
    return
  }
  func.func @transform_0(%arg0: i32, %arg1: i32, %arg2: i32) -> (i32, i32) {
    %c0_i32 = arith.constant 0 : i32
    return %arg0, %arg2 : i32, i32
  }
  func.func @transform_1(%arg0: i32, %arg1: i32, %arg2: i32) -> (i32, i32) {
    %c0_i32 = arith.constant 0 : i32
    return %arg2, %arg1 : i32, i32
  }
  func.func @transform_2(%arg0: i32, %arg1: i32, %arg2: i32) -> (i32, i32) {
    %c0_i32 = arith.constant 0 : i32
    %c0_i32_0 = arith.constant 0 : i32
    return %c0_i32, %arg1 : i32, i32
  }
  func.func @transform_3(%arg0: i32, %arg1: i32, %arg2: i32) -> (i32, i32) {
    %c0_i32 = arith.constant 0 : i32
    return %arg0, %arg1 : i32, i32
  }
}

module attributes {stable_mosaic.version = 11 : i64} {
  func.func @gemm_kernel(%arg0: i32, %arg1: i32, %arg2: i32, %arg3: memref<8x256xbf16, #tpu.memory_space<vmem>>, %arg4: memref<256x256xbf16, #tpu.memory_space<vmem>>, %arg5: memref<1x256xf32, #tpu.memory_space<vmem>>, %arg6: memref<8x256xf32, #tpu.memory_space<vmem>>, %arg7: memref<8x256xf32, #tpu.memory_space<vmem>>) attributes {dimension_semantics = [#tpu.dimension_semantics<parallel>, #tpu.dimension_semantics<parallel>, #tpu.dimension_semantics<arbitrary>], iteration_bounds = array<i64: 1, 2, 1>, scalar_prefetch = 0 : i64, scratch_operands = 1 : i64, tpu.core_type = #tpu.core_type<tc>, window_params = [{transform_indices = @transform_0, window_bounds = array<i64: 8, 256>}, {transform_indices = @transform_1, window_bounds = array<i64: 256, 256>}, {transform_indices = @transform_2, window_bounds = array<i64: 1, 256>}, {transform_indices = @transform_3, window_bounds = array<i64: 8, 256>}]} {
    %c0_i32 = arith.constant 0 : i32
    %0 = arith.cmpi eq, %arg2, %c0_i32 : i32
    %1 = arith.extui %0 : i1 to i32
    %c0_i32_0 = arith.constant 0 : i32
    %2 = arith.cmpi ne, %1, %c0_i32_0 : i32
    scf.if %2 {
      %cst_10 = arith.constant 0.000000e+00 : f32
      %12 = vector.broadcast %cst_10 : f32 to vector<8x256xf32>
      %c0_11 = arith.constant 0 : index
      %c0_12 = arith.constant 0 : index
      %13 = vector.load %arg7[%c0_11, %c0_12] : memref<8x256xf32, #tpu.memory_space<vmem>>, vector<8x256xf32>
      tpu.vector_store %arg7[%c0_11, %c0_12], %12 {strides = array<i32>} : memref<8x256xf32, #tpu.memory_space<vmem>>, vector<8x256xf32>,
    } else {
    }
    %c0 = arith.constant 0 : index
    %c0_1 = arith.constant 0 : index
    %3 = vector.load %arg7[%c0, %c0_1] : memref<8x256xf32, #tpu.memory_space<vmem>>, vector<8x256xf32>
    %c0_2 = arith.constant 0 : index
    %c0_3 = arith.constant 0 : index
    %4 = vector.load %arg3[%c0_2, %c0_3] : memref<8x256xbf16, #tpu.memory_space<vmem>>, vector<8x256xbf16>
    %c0_4 = arith.constant 0 : index
    %c0_5 = arith.constant 0 : index
    %5 = vector.load %arg4[%c0_4, %c0_5] : memref<256x256xbf16, #tpu.memory_space<vmem>>, vector<256x256xbf16>
    %cst = arith.constant dense<0.000000e+00> : vector<8x256xf32>
    %6 = tpu.matmul %4, %5, %cst {dimension_numbers = #tpu.dot_dimension_numbers<[1], [0], [0], [1], [0, 0, 1, 1], [], []>} : vector<8x256xbf16>, vector<256x256xbf16>, vector<8x256xf32> -> vector<8x256xf32>
    %7 = arith.addf %3, %6 : vector<8x256xf32>
    %c0_6 = arith.constant 0 : index
    %c0_7 = arith.constant 0 : index
    %8 = vector.load %arg7[%c0_6, %c0_7] : memref<8x256xf32, #tpu.memory_space<vmem>>, vector<8x256xf32>
    tpu.vector_store %arg7[%c0_6, %c0_7], %7 {strides = array<i32>} : memref<8x256xf32, #tpu.memory_space<vmem>>, vector<8x256xf32>,
    %c0_i32_8 = arith.constant 0 : i32
    %9 = arith.cmpi eq, %arg2, %c0_i32_8 : i32
    %10 = arith.extui %9 : i1 to i32
    %c0_i32_9 = arith.constant 0 : i32
    %11 = arith.cmpi ne, %10, %c0_i32_9 : i32
    scf.if %11 {
      %c0_10 = arith.constant 0 : index
      %c0_11 = arith.constant 0 : index
      %12 = vector.load %arg7[%c0_10, %c0_11] : memref<8x256xf32, #tpu.memory_space<vmem>>, vector<8x256xf32>
      %c0_12 = arith.constant 0 : index
      %c0_13 = arith.constant 0 : index
      %13 = vector.load %arg5[%c0_12, %c0_13] : memref<1x256xf32, #tpu.memory_space<vmem>>, vector<1x256xf32>
      %14 = vector.broadcast %13 : vector<1x256xf32> to vector<8x256xf32>
      %15 = arith.addf %12, %14 : vector<8x256xf32>
      %c0_14 = arith.constant 0 : index
      %c0_15 = arith.constant 0 : index
      %16 = vector.load %arg6[%c0_14, %c0_15] : memref<8x256xf32, #tpu.memory_space<vmem>>, vector<8x256xf32>
      tpu.vector_store %arg6[%c0_14, %c0_15], %15 {strides = array<i32>} : memref<8x256xf32, #tpu.memory_space<vmem>>, vector<8x256xf32>,
    } else {
    }
    return
  }
  func.func @transform_0(%arg0: i32, %arg1: i32, %arg2: i32) -> (i32, i32) {
    %c0_i32 = arith.constant 0 : i32
    return %arg0, %arg2 : i32, i32
  }
  func.func @transform_1(%arg0: i32, %arg1: i32, %arg2: i32) -> (i32, i32) {
    %c0_i32 = arith.constant 0 : i32
    return %arg2, %arg1 : i32, i32
  }
  func.func @transform_2(%arg0: i32, %arg1: i32, %arg2: i32) -> (i32, i32) {
    %c0_i32 = arith.constant 0 : i32
    %c0_i32_0 = arith.constant 0 : i32
    return %c0_i32, %arg1 : i32, i32
  }
  func.func @transform_3(%arg0: i32, %arg1: i32, %arg2: i32) -> (i32, i32) {
    %c0_i32 = arith.constant 0 : i32
    return %arg0, %arg1 : i32, i32
  }
}

module attributes {stable_mosaic.version = 11 : i64} {
  func.func @gemm_kernel(%arg0: i32, %arg1: i32, %arg2: i32, %arg3: memref<8x256xbf16, #tpu.memory_space<vmem>>, %arg4: memref<256x256xbf16, #tpu.memory_space<vmem>>, %arg5: memref<1x256xf32, #tpu.memory_space<vmem>>, %arg6: memref<8x256xf32, #tpu.memory_space<vmem>>, %arg7: memref<8x256xf32, #tpu.memory_space<vmem>>, %arg8: memref<8x256xf32, #tpu.memory_space<vmem>>) attributes {dimension_semantics = [#tpu.dimension_semantics<parallel>, #tpu.dimension_semantics<parallel>, #tpu.dimension_semantics<arbitrary>], iteration_bounds = array<i64: 1, 2, 18>, scalar_prefetch = 0 : i64, scratch_operands = 1 : i64, tpu.core_type = #tpu.core_type<tc>, window_params = [{transform_indices = @transform_0, window_bounds = array<i64: 8, 256>}, {transform_indices = @transform_1, window_bounds = array<i64: 256, 256>}, {transform_indices = @transform_2, window_bounds = array<i64: 1, 256>}, {transform_indices = @transform_3, window_bounds = array<i64: 8, 256>}, {transform_indices = @transform_4, window_bounds = array<i64: 8, 256>}]} {
    %c0_i32 = arith.constant 0 : i32
    %0 = arith.cmpi eq, %arg2, %c0_i32 : i32
    %1 = arith.extui %0 : i1 to i32
    %c0_i32_0 = arith.constant 0 : i32
    %2 = arith.cmpi ne, %1, %c0_i32_0 : i32
    scf.if %2 {
      %cst_9 = arith.constant 0.000000e+00 : f32
      %12 = vector.broadcast %cst_9 : f32 to vector<8x256xf32>
      %c0_10 = arith.constant 0 : index
      %c0_11 = arith.constant 0 : index
      %13 = vector.load %arg8[%c0_10, %c0_11] : memref<8x256xf32, #tpu.memory_space<vmem>>, vector<8x256xf32>
      tpu.vector_store %arg8[%c0_10, %c0_11], %12 {strides = array<i32>} : memref<8x256xf32, #tpu.memory_space<vmem>>, vector<8x256xf32>,
    } else {
    }
    %c0 = arith.constant 0 : index
    %c0_1 = arith.constant 0 : index
    %3 = vector.load %arg8[%c0, %c0_1] : memref<8x256xf32, #tpu.memory_space<vmem>>, vector<8x256xf32>
    %c0_2 = arith.constant 0 : index
    %c0_3 = arith.constant 0 : index
    %4 = vector.load %arg3[%c0_2, %c0_3] : memref<8x256xbf16, #tpu.memory_space<vmem>>, vector<8x256xbf16>
    %c0_4 = arith.constant 0 : index
    %c0_5 = arith.constant 0 : index
    %5 = vector.load %arg4[%c0_4, %c0_5] : memref<256x256xbf16, #tpu.memory_space<vmem>>, vector<256x256xbf16>
    %cst = arith.constant dense<0.000000e+00> : vector<8x256xf32>
    %6 = tpu.matmul %4, %5, %cst {dimension_numbers = #tpu.dot_dimension_numbers<[1], [0], [0], [1], [0, 0, 1, 1], [], []>} : vector<8x256xbf16>, vector<256x256xbf16>, vector<8x256xf32> -> vector<8x256xf32>
    %7 = arith.addf %3, %6 : vector<8x256xf32>
    %c0_6 = arith.constant 0 : index
    %c0_7 = arith.constant 0 : index
    %8 = vector.load %arg8[%c0_6, %c0_7] : memref<8x256xf32, #tpu.memory_space<vmem>>, vector<8x256xf32>
    tpu.vector_store %arg8[%c0_6, %c0_7], %7 {strides = array<i32>} : memref<8x256xf32, #tpu.memory_space<vmem>>, vector<8x256xf32>,
    %c17_i32 = arith.constant 17 : i32
    %9 = arith.cmpi eq, %arg2, %c17_i32 : i32
    %10 = arith.extui %9 : i1 to i32
    %c0_i32_8 = arith.constant 0 : i32
    %11 = arith.cmpi ne, %10, %c0_i32_8 : i32
    scf.if %11 {
      %c0_9 = arith.constant 0 : index
      %c0_10 = arith.constant 0 : index
      %12 = vector.load %arg8[%c0_9, %c0_10] : memref<8x256xf32, #tpu.memory_space<vmem>>, vector<8x256xf32>
      %c0_11 = arith.constant 0 : index
      %c0_12 = arith.constant 0 : index
      %13 = vector.load %arg5[%c0_11, %c0_12] : memref<1x256xf32, #tpu.memory_space<vmem>>, vector<1x256xf32>
      %14 = vector.broadcast %13 : vector<1x256xf32> to vector<8x256xf32>
      %15 = arith.addf %12, %14 : vector<8x256xf32>
      %c0_13 = arith.constant 0 : index
      %c0_14 = arith.constant 0 : index
      %16 = vector.load %arg6[%c0_13, %c0_14] : memref<8x256xf32, #tpu.memory_space<vmem>>, vector<8x256xf32>
      %17 = arith.addf %15, %16 : vector<8x256xf32>
      %cst_15 = arith.constant 0.000000e+00 : f32
      %18 = vector.broadcast %cst_15 : f32 to vector<8x256xf32>
      %19 = arith.maximumf %17, %18 : vector<8x256xf32>
      %c0_16 = arith.constant 0 : index
      %c0_17 = arith.constant 0 : index
      %20 = vector.load %arg7[%c0_16, %c0_17] : memref<8x256xf32, #tpu.memory_space<vmem>>, vector<8x256xf32>
      tpu.vector_store %arg7[%c0_16, %c0_17], %19 {strides = array<i32>} : memref<8x256xf32, #tpu.memory_space<vmem>>, vector<8x256xf32>,
    } else {
    }
    return
  }
  func.func @transform_0(%arg0: i32, %arg1: i32, %arg2: i32) -> (i32, i32) {
    %c0_i32 = arith.constant 0 : i32
    return %arg0, %arg2 : i32, i32
  }
  func.func @transform_1(%arg0: i32, %arg1: i32, %arg2: i32) -> (i32, i32) {
    %c0_i32 = arith.constant 0 : i32
    return %arg2, %arg1 : i32, i32
  }
  func.func @transform_2(%arg0: i32, %arg1: i32, %arg2: i32) -> (i32, i32) {
    %c0_i32 = arith.constant 0 : i32
    %c0_i32_0 = arith.constant 0 : i32
    return %c0_i32, %arg1 : i32, i32
  }
  func.func @transform_3(%arg0: i32, %arg1: i32, %arg2: i32) -> (i32, i32) {
    %c0_i32 = arith.constant 0 : i32
    return %arg0, %arg1 : i32, i32
  }
  func.func @transform_4(%arg0: i32, %arg1: i32, %arg2: i32) -> (i32, i32) {
    %c0_i32 = arith.constant 0 : i32
    return %arg0, %arg1 : i32, i32
  }
}

module attributes {stable_mosaic.version = 11 : i64} {
  func.func @gemm_kernel(%arg0: i32, %arg1: i32, %arg2: i32, %arg3: memref<8x256xbf16, #tpu.memory_space<vmem>>, %arg4: memref<256x256xbf16, #tpu.memory_space<vmem>>, %arg5: memref<1x256xf32, #tpu.memory_space<vmem>>, %arg6: memref<8x256xf32, #tpu.memory_space<vmem>>, %arg7: memref<8x256xf32, #tpu.memory_space<vmem>>) attributes {dimension_semantics = [#tpu.dimension_semantics<parallel>, #tpu.dimension_semantics<parallel>, #tpu.dimension_semantics<arbitrary>], iteration_bounds = array<i64: 1, 2, 18>, scalar_prefetch = 0 : i64, scratch_operands = 1 : i64, tpu.core_type = #tpu.core_type<tc>, window_params = [{transform_indices = @transform_0, window_bounds = array<i64: 8, 256>}, {transform_indices = @transform_1, window_bounds = array<i64: 256, 256>}, {transform_indices = @transform_2, window_bounds = array<i64: 1, 256>}, {transform_indices = @transform_3, window_bounds = array<i64: 8, 256>}]} {
    %c0_i32 = arith.constant 0 : i32
    %0 = arith.cmpi eq, %arg2, %c0_i32 : i32
    %1 = arith.extui %0 : i1 to i32
    %c0_i32_0 = arith.constant 0 : i32
    %2 = arith.cmpi ne, %1, %c0_i32_0 : i32
    scf.if %2 {
      %cst_9 = arith.constant 0.000000e+00 : f32
      %12 = vector.broadcast %cst_9 : f32 to vector<8x256xf32>
      %c0_10 = arith.constant 0 : index
      %c0_11 = arith.constant 0 : index
      %13 = vector.load %arg7[%c0_10, %c0_11] : memref<8x256xf32, #tpu.memory_space<vmem>>, vector<8x256xf32>
      tpu.vector_store %arg7[%c0_10, %c0_11], %12 {strides = array<i32>} : memref<8x256xf32, #tpu.memory_space<vmem>>, vector<8x256xf32>,
    } else {
    }
    %c0 = arith.constant 0 : index
    %c0_1 = arith.constant 0 : index
    %3 = vector.load %arg7[%c0, %c0_1] : memref<8x256xf32, #tpu.memory_space<vmem>>, vector<8x256xf32>
    %c0_2 = arith.constant 0 : index
    %c0_3 = arith.constant 0 : index
    %4 = vector.load %arg3[%c0_2, %c0_3] : memref<8x256xbf16, #tpu.memory_space<vmem>>, vector<8x256xbf16>
    %c0_4 = arith.constant 0 : index
    %c0_5 = arith.constant 0 : index
    %5 = vector.load %arg4[%c0_4, %c0_5] : memref<256x256xbf16, #tpu.memory_space<vmem>>, vector<256x256xbf16>
    %cst = arith.constant dense<0.000000e+00> : vector<8x256xf32>
    %6 = tpu.matmul %4, %5, %cst {dimension_numbers = #tpu.dot_dimension_numbers<[1], [0], [0], [1], [0, 0, 1, 1], [], []>} : vector<8x256xbf16>, vector<256x256xbf16>, vector<8x256xf32> -> vector<8x256xf32>
    %7 = arith.addf %3, %6 : vector<8x256xf32>
    %c0_6 = arith.constant 0 : index
    %c0_7 = arith.constant 0 : index
    %8 = vector.load %arg7[%c0_6, %c0_7] : memref<8x256xf32, #tpu.memory_space<vmem>>, vector<8x256xf32>
    tpu.vector_store %arg7[%c0_6, %c0_7], %7 {strides = array<i32>} : memref<8x256xf32, #tpu.memory_space<vmem>>, vector<8x256xf32>,
    %c17_i32 = arith.constant 17 : i32
    %9 = arith.cmpi eq, %arg2, %c17_i32 : i32
    %10 = arith.extui %9 : i1 to i32
    %c0_i32_8 = arith.constant 0 : i32
    %11 = arith.cmpi ne, %10, %c0_i32_8 : i32
    scf.if %11 {
      %c0_9 = arith.constant 0 : index
      %c0_10 = arith.constant 0 : index
      %12 = vector.load %arg7[%c0_9, %c0_10] : memref<8x256xf32, #tpu.memory_space<vmem>>, vector<8x256xf32>
      %c0_11 = arith.constant 0 : index
      %c0_12 = arith.constant 0 : index
      %13 = vector.load %arg5[%c0_11, %c0_12] : memref<1x256xf32, #tpu.memory_space<vmem>>, vector<1x256xf32>
      %14 = vector.broadcast %13 : vector<1x256xf32> to vector<8x256xf32>
      %15 = arith.addf %12, %14 : vector<8x256xf32>
      %cst_13 = arith.constant 0.000000e+00 : f32
      %16 = vector.broadcast %cst_13 : f32 to vector<8x256xf32>
      %17 = arith.maximumf %15, %16 : vector<8x256xf32>
      %c0_14 = arith.constant 0 : index
      %c0_15 = arith.constant 0 : index
      %18 = vector.load %arg6[%c0_14, %c0_15] : memref<8x256xf32, #tpu.memory_space<vmem>>, vector<8x256xf32>
      tpu.vector_store %arg6[%c0_14, %c0_15], %17 {strides = array<i32>} : memref<8x256xf32, #tpu.memory_space<vmem>>, vector<8x256xf32>,
    } else {
    }
    return
  }
  func.func @transform_0(%arg0: i32, %arg1: i32, %arg2: i32) -> (i32, i32) {
    %c0_i32 = arith.constant 0 : i32
    return %arg0, %arg2 : i32, i32
  }
  func.func @transform_1(%arg0: i32, %arg1: i32, %arg2: i32) -> (i32, i32) {
    %c0_i32 = arith.constant 0 : i32
    return %arg2, %arg1 : i32, i32
  }
  func.func @transform_2(%arg0: i32, %arg1: i32, %arg2: i32) -> (i32, i32) {
    %c0_i32 = arith.constant 0 : i32
    %c0_i32_0 = arith.constant 0 : i32
    return %c0_i32, %arg1 : i32, i32
  }
  func.func @transform_3(%arg0: i32, %arg1: i32, %arg2: i32) -> (i32, i32) {
    %c0_i32 = arith.constant 0 : i32
    return %arg0, %arg1 : i32, i32
  }
}

module attributes {stable_mosaic.version = 11 : i64} {
  func.func @gemm_kernel(%arg0: i32, %arg1: i32, %arg2: i32, %arg3: memref<8x256xbf16, #tpu.memory_space<vmem>>, %arg4: memref<256x128xbf16, #tpu.memory_space<vmem>>, %arg5: memref<1x128xf32, #tpu.memory_space<vmem>>, %arg6: memref<8x128xf32, #tpu.memory_space<vmem>>, %arg7: memref<8x128xf32, #tpu.memory_space<vmem>>) attributes {dimension_semantics = [#tpu.dimension_semantics<parallel>, #tpu.dimension_semantics<parallel>, #tpu.dimension_semantics<arbitrary>], iteration_bounds = array<i64: 1, 1, 2>, scalar_prefetch = 0 : i64, scratch_operands = 1 : i64, tpu.core_type = #tpu.core_type<tc>, window_params = [{transform_indices = @transform_0, window_bounds = array<i64: 8, 256>}, {transform_indices = @transform_1, window_bounds = array<i64: 256, 128>}, {transform_indices = @transform_2, window_bounds = array<i64: 1, 128>}, {transform_indices = @transform_3, window_bounds = array<i64: 8, 128>}]} {
    %c0_i32 = arith.constant 0 : i32
    %0 = arith.cmpi eq, %arg2, %c0_i32 : i32
    %1 = arith.extui %0 : i1 to i32
    %c0_i32_0 = arith.constant 0 : i32
    %2 = arith.cmpi ne, %1, %c0_i32_0 : i32
    scf.if %2 {
      %cst_9 = arith.constant 0.000000e+00 : f32
      %12 = vector.broadcast %cst_9 : f32 to vector<8x128xf32>
      %c0_10 = arith.constant 0 : index
      %c0_11 = arith.constant 0 : index
      %13 = vector.load %arg7[%c0_10, %c0_11] : memref<8x128xf32, #tpu.memory_space<vmem>>, vector<8x128xf32>
      tpu.vector_store %arg7[%c0_10, %c0_11], %12 {strides = array<i32>} : memref<8x128xf32, #tpu.memory_space<vmem>>, vector<8x128xf32>,
    } else {
    }
    %c0 = arith.constant 0 : index
    %c0_1 = arith.constant 0 : index
    %3 = vector.load %arg7[%c0, %c0_1] : memref<8x128xf32, #tpu.memory_space<vmem>>, vector<8x128xf32>
    %c0_2 = arith.constant 0 : index
    %c0_3 = arith.constant 0 : index
    %4 = vector.load %arg3[%c0_2, %c0_3] : memref<8x256xbf16, #tpu.memory_space<vmem>>, vector<8x256xbf16>
    %c0_4 = arith.constant 0 : index
    %c0_5 = arith.constant 0 : index
    %5 = vector.load %arg4[%c0_4, %c0_5] : memref<256x128xbf16, #tpu.memory_space<vmem>>, vector<256x128xbf16>
    %cst = arith.constant dense<0.000000e+00> : vector<8x128xf32>
    %6 = tpu.matmul %4, %5, %cst {dimension_numbers = #tpu.dot_dimension_numbers<[1], [0], [0], [1], [0, 0, 1, 1], [], []>} : vector<8x256xbf16>, vector<256x128xbf16>, vector<8x128xf32> -> vector<8x128xf32>
    %7 = arith.addf %3, %6 : vector<8x128xf32>
    %c0_6 = arith.constant 0 : index
    %c0_7 = arith.constant 0 : index
    %8 = vector.load %arg7[%c0_6, %c0_7] : memref<8x128xf32, #tpu.memory_space<vmem>>, vector<8x128xf32>
    tpu.vector_store %arg7[%c0_6, %c0_7], %7 {strides = array<i32>} : memref<8x128xf32, #tpu.memory_space<vmem>>, vector<8x128xf32>,
    %c1_i32 = arith.constant 1 : i32
    %9 = arith.cmpi eq, %arg2, %c1_i32 : i32
    %10 = arith.extui %9 : i1 to i32
    %c0_i32_8 = arith.constant 0 : i32
    %11 = arith.cmpi ne, %10, %c0_i32_8 : i32
    scf.if %11 {
      %c0_9 = arith.constant 0 : index
      %c0_10 = arith.constant 0 : index
      %12 = vector.load %arg7[%c0_9, %c0_10] : memref<8x128xf32, #tpu.memory_space<vmem>>, vector<8x128xf32>
      %c0_11 = arith.constant 0 : index
      %c0_12 = arith.constant 0 : index
      %13 = vector.load %arg5[%c0_11, %c0_12] : memref<1x128xf32, #tpu.memory_space<vmem>>, vector<1x128xf32>
      %14 = vector.broadcast %13 : vector<1x128xf32> to vector<8x128xf32>
      %15 = arith.addf %12, %14 : vector<8x128xf32>
      %c0_13 = arith.constant 0 : index
      %c0_14 = arith.constant 0 : index
      %16 = vector.load %arg6[%c0_13, %c0_14] : memref<8x128xf32, #tpu.memory_space<vmem>>, vector<8x128xf32>
      tpu.vector_store %arg6[%c0_13, %c0_14], %15 {strides = array<i32>} : memref<8x128xf32, #tpu.memory_space<vmem>>, vector<8x128xf32>,
    } else {
    }
    return
  }
  func.func @transform_0(%arg0: i32, %arg1: i32, %arg2: i32) -> (i32, i32) {
    %c0_i32 = arith.constant 0 : i32
    return %arg0, %arg2 : i32, i32
  }
  func.func @transform_1(%arg0: i32, %arg1: i32, %arg2: i32) -> (i32, i32) {
    %c0_i32 = arith.constant 0 : i32
    return %arg2, %arg1 : i32, i32
  }
  func.func @transform_2(%arg0: i32, %arg1: i32, %arg2: i32) -> (i32, i32) {
    %c0_i32 = arith.constant 0 : i32
    %c0_i32_0 = arith.constant 0 : i32
    return %c0_i32, %arg1 : i32, i32
  }
  func.func @transform_3(%arg0: i32, %arg1: i32, %arg2: i32) -> (i32, i32) {
    %c0_i32 = arith.constant 0 : i32
    return %arg0, %arg1 : i32, i32
  }
}

</mosaic_0001>

<bundles_post_ra>
// kernel: bigram_resnet_forward.24
= control target key start
LH: loop header
LB: loop body
LE: loop exit
PB: predicated region body
PF: predicated region fallthrough
CT: control target
= control target key end

     0   :  { %s362_s0 = inlined_call_operand.vmem [shape: f32[144,128], index: 0, kind: input, shape index: {}]   ;;  %s363_s1 = inlined_call_operand.vmem [shape: f32[144,128], index: 1, kind: input, shape index: {}]   ;;  %s364_s2 = inlined_call_operand.vmem [shape: f32[144,128], index: 2, kind: input, shape index: {}]   ;;  %s365_s3 = inlined_call_operand.vmem [shape: f32[144,128], index: 3, kind: output, shape index: {}]  }
   0x1   :  { %v14_v0 = vld [vmem:[%s362_s0] sm:$0xff]  ;;  %v15_v4 = vld [vmem:[%s362_s0 + $0x8] sm:$0xff]  ;;  %v16_v8 = vld [vmem:[%s362_s0 + $0x10] sm:$0xff] }
   0x2   :  { %v32_v1 = vld [vmem:[%s363_s1] sm:$0xff]  ;;  %v33_v5 = vld [vmem:[%s363_s1 + $0x8] sm:$0xff]  ;;  %v34_v9 = vld [vmem:[%s363_s1 + $0x10] sm:$0xff] }
   0x3   :  { %v68_v2 = vld [vmem:[%s364_s2] sm:$0xff]  ;;  %v50_v3 = vmax.f32 %v14_v0, %v32_v1  ;;  %v69_v6 = vld [vmem:[%s364_s2 + $0x8] sm:$0xff]  ;;  %v51_v7 = vmax.f32 %v15_v4, %v33_v5  ;;  %v70_v10 = vld [vmem:[%s364_s2 + $0x10] sm:$0xff]  ;;  %v52_v12 = vmax.f32 %v16_v8, %v34_v9 }
   0x4   :  { %v17_v13 = vld [vmem:[%s362_s0 + $0x18] sm:$0xff]  ;;  %v18_v18 = vld [vmem:[%s362_s0 + $0x20] sm:$0xff]  ;;  %v19_v23 = vld [vmem:[%s362_s0 + $0x28] sm:$0xff] }
   0x5   :  { %v86_v11 = vmax.f32 %v50_v3, %v68_v2  ;;  %v35_v14 = vld [vmem:[%s363_s1 + $0x18] sm:$0xff]  ;;  %v87_v16 = vmax.f32 %v51_v7, %v69_v6  ;;  %v36_v19 = vld [vmem:[%s363_s1 + $0x20] sm:$0xff]  ;;  %v88_v21 = vmax.f32 %v52_v12, %v70_v10  ;;  %v37_v24 = vld [vmem:[%s363_s1 + $0x28] sm:$0xff] }
   0x6   :  { %v71_v15 = vld [vmem:[%s364_s2 + $0x18] sm:$0xff]  ;;  %v53_v17 = vmax.f32 %v17_v13, %v35_v14  ;;  %v72_v20 = vld [vmem:[%s364_s2 + $0x20] sm:$0xff]  ;;  %v54_v22 = vmax.f32 %v18_v18, %v36_v19  ;;  %v73_v25 = vld [vmem:[%s364_s2 + $0x28] sm:$0xff]  ;;  %v55_v27 = vmax.f32 %v19_v23, %v37_v24 }
   0x7   :  { %104 = vst [vmem:[%s365_s3] sm:$0xff] %v86_v11  ;;  %v20_v28 = vld [vmem:[%s362_s0 + $0x30] sm:$0xff]  ;;  %v21_v33 = vld [vmem:[%s362_s0 + $0x38] sm:$0xff]  ;;  %v22_v38 = vld [vmem:[%s362_s0 + $0x40] sm:$0xff] }
   0x8   :  { %105 = vst [vmem:[%s365_s3 + $0x8] sm:$0xff] %v87_v16  ;;  %v89_v26 = vmax.f32 %v53_v17, %v71_v15  ;;  %v38_v29 = vld [vmem:[%s363_s1 + $0x30] sm:$0xff]  ;;  %v90_v31 = vmax.f32 %v54_v22, %v72_v20  ;;  %v39_v34 = vld [vmem:[%s363_s1 + $0x38] sm:$0xff]  ;;  %v91_v36 = vmax.f32 %v55_v27, %v73_v25  ;;  %v40_v39 = vld [vmem:[%s363_s1 + $0x40] sm:$0xff] }
   0x9   :  { %v74_v30 = vld [vmem:[%s364_s2 + $0x30] sm:$0xff]  ;;  %106 = vst [vmem:[%s365_s3 + $0x10] sm:$0xff] %v88_v21  ;;  %v56_v32 = vmax.f32 %v20_v28, %v38_v29  ;;  %v75_v35 = vld [vmem:[%s364_s2 + $0x38] sm:$0xff]  ;;  %v57_v37 = vmax.f32 %v21_v33, %v39_v34  ;;  %v76_v40 = vld [vmem:[%s364_s2 + $0x40] sm:$0xff]  ;;  %v58_v42 = vmax.f32 %v22_v38, %v40_v39 }
   0xa   :  { %107 = vst [vmem:[%s365_s3 + $0x18] sm:$0xff] %v89_v26  ;;  %v23_v43 = vld [vmem:[%s362_s0 + $0x48] sm:$0xff]  ;;  %v24_v48 = vld [vmem:[%s362_s0 + $0x50] sm:$0xff]  ;;  %v25_v53 = vld [vmem:[%s362_s0 + $0x58] sm:$0xff] }
   0xb   :  { %108 = vst [vmem:[%s365_s3 + $0x20] sm:$0xff] %v90_v31  ;;  %v92_v41 = vmax.f32 %v56_v32, %v74_v30  ;;  %v41_v44 = vld [vmem:[%s363_s1 + $0x48] sm:$0xff]  ;;  %v93_v46 = vmax.f32 %v57_v37, %v75_v35  ;;  %v42_v49 = vld [vmem:[%s363_s1 + $0x50] sm:$0xff]  ;;  %v94_v51 = vmax.f32 %v58_v42, %v76_v40  ;;  %v43_v54 = vld [vmem:[%s363_s1 + $0x58] sm:$0xff] }
   0xc   :  { %v77_v45 = vld [vmem:[%s364_s2 + $0x48] sm:$0xff]  ;;  %109 = vst [vmem:[%s365_s3 + $0x28] sm:$0xff] %v91_v36  ;;  %v59_v47 = vmax.f32 %v23_v43, %v41_v44  ;;  %v78_v50 = vld [vmem:[%s364_s2 + $0x50] sm:$0xff]  ;;  %v60_v52 = vmax.f32 %v24_v48, %v42_v49  ;;  %v79_v55 = vld [vmem:[%s364_s2 + $0x58] sm:$0xff]  ;;  %v61_v57 = vmax.f32 %v25_v53, %v43_v54 }
   0xd   :  { %110 = vst [vmem:[%s365_s3 + $0x30] sm:$0xff] %v92_v41  ;;  %v26_v58 = vld [vmem:[%s362_s0 + $0x60] sm:$0xff]  ;;  %v27_v63 = vld [vmem:[%s362_s0 + $0x68] sm:$0xff]  ;;  %v28_v4 = vld [vmem:[%s362_s0 + $0x70] sm:$0xff] }
   0xe   :  { %111 = vst [vmem:[%s365_s3 + $0x38] sm:$0xff] %v93_v46  ;;  %v95_v56 = vmax.f32 %v59_v47, %v77_v45  ;;  %v44_v59 = vld [vmem:[%s363_s1 + $0x60] sm:$0xff]  ;;  %v96_v61 = vmax.f32 %v60_v52, %v78_v50  ;;  %v45_v0 = vld [vmem:[%s363_s1 + $0x68] sm:$0xff]  ;;  %v97_v2 = vmax.f32 %v61_v57, %v79_v55  ;;  %v46_v5 = vld [vmem:[%s363_s1 + $0x70] sm:$0xff] }
   0xf   :  { %v80_v60 = vld [vmem:[%s364_s2 + $0x60] sm:$0xff]  ;;  %112 = vst [vmem:[%s365_s3 + $0x40] sm:$0xff] %v94_v51  ;;  %v62_v62 = vmax.f32 %v26_v58, %v44_v59  ;;  %v81_v1 = vld [vmem:[%s364_s2 + $0x68] sm:$0xff]  ;;  %v63_v3 = vmax.f32 %v27_v63, %v45_v0  ;;  %v82_v6 = vld [vmem:[%s364_s2 + $0x70] sm:$0xff]  ;;  %v64_v8 = vmax.f32 %v28_v4, %v46_v5 }
  0x10   :  { %113 = vst [vmem:[%s365_s3 + $0x48] sm:$0xff] %v95_v56  ;;  %v29_v9 = vld [vmem:[%s362_s0 + $0x78] sm:$0xff]  ;;  %v30_v14 = vld [vmem:[%s362_s0 + $0x80] sm:$0xff]  ;;  %v31_v19 = vld [vmem:[%s362_s0 + $0x88] sm:$0xff] }
  0x11   :  { %114 = vst [vmem:[%s365_s3 + $0x50] sm:$0xff] %v96_v61  ;;  %v98_v7 = vmax.f32 %v62_v62, %v80_v60  ;;  %v47_v10 = vld [vmem:[%s363_s1 + $0x78] sm:$0xff]  ;;  %v99_v12 = vmax.f32 %v63_v3, %v81_v1  ;;  %v48_v15 = vld [vmem:[%s363_s1 + $0x80] sm:$0xff]  ;;  %v100_v17 = vmax.f32 %v64_v8, %v82_v6  ;;  %v49_v20 = vld [vmem:[%s363_s1 + $0x88] sm:$0xff] }
  0x12   :  { %v83_v11 = vld [vmem:[%s364_s2 + $0x78] sm:$0xff]  ;;  %115 = vst [vmem:[%s365_s3 + $0x58] sm:$0xff] %v97_v2  ;;  %v65_v13 = vmax.f32 %v29_v9, %v47_v10  ;;  %v84_v16 = vld [vmem:[%s364_s2 + $0x80] sm:$0xff]  ;;  %v66_v18 = vmax.f32 %v30_v14, %v48_v15  ;;  %v85_v21 = vld [vmem:[%s364_s2 + $0x88] sm:$0xff]  ;;  %v67_v23 = vmax.f32 %v31_v19, %v49_v20 }
  0x13   :  { %116 = vst [vmem:[%s365_s3 + $0x60] sm:$0xff] %v98_v7 }
  0x14   :  { %117 = vst [vmem:[%s365_s3 + $0x68] sm:$0xff] %v99_v12  ;;  %v101_v22 = vmax.f32 %v65_v13, %v83_v11  ;;  %v102_v24 = vmax.f32 %v66_v18, %v84_v16  ;;  %v103_v25 = vmax.f32 %v67_v23, %v85_v21 }
  0x15   :  { %118 = vst [vmem:[%s365_s3 + $0x70] sm:$0xff] %v100_v17 }
  0x16   :  { %119 = vst [vmem:[%s365_s3 + $0x78] sm:$0xff] %v101_v22 }
  0x17   :  { %120 = vst [vmem:[%s365_s3 + $0x80] sm:$0xff] %v102_v24 }
  0x18   :  { %121 = vst [vmem:[%s365_s3 + $0x88] sm:$0xff] %v103_v25 }

// kernel: bigram_resnet_forward.25
= control target key start
LH: loop header
LB: loop body
LE: loop exit
PB: predicated region body
PF: predicated region fallthrough
CT: control target
= control target key end

     0   :  { %s182_s0 = inlined_call_operand.vmem [shape: f32[64,128], index: 0, kind: input, shape index: {}]   ;;  %s183_s1 = inlined_call_operand.vmem [shape: f32[64,128], index: 1, kind: input, shape index: {}]   ;;  %s184_s2 = inlined_call_operand.vmem [shape: f32[64,128], index: 2, kind: input, shape index: {}]   ;;  %s185_s3 = inlined_call_operand.vmem [shape: f32[64,128], index: 3, kind: output, shape index: {}]  }
   0x1   :  { %v14_v0 = vld [vmem:[%s182_s0] sm:$0xff]  ;;  %v15_v4 = vld [vmem:[%s182_s0 + $0x8] sm:$0xff]  ;;  %v16_v8 = vld [vmem:[%s182_s0 + $0x10] sm:$0xff] }
   0x2   :  { %v22_v1 = vld [vmem:[%s183_s1] sm:$0xff]  ;;  %v23_v5 = vld [vmem:[%s183_s1 + $0x8] sm:$0xff]  ;;  %v24_v9 = vld [vmem:[%s183_s1 + $0x10] sm:$0xff] }
   0x3   :  { %v38_v2 = vld [vmem:[%s184_s2] sm:$0xff]  ;;  %v30_v3 = vmax.f32 %v14_v0, %v22_v1  ;;  %v39_v6 = vld [vmem:[%s184_s2 + $0x8] sm:$0xff]  ;;  %v31_v7 = vmax.f32 %v15_v4, %v23_v5  ;;  %v40_v10 = vld [vmem:[%s184_s2 + $0x10] sm:$0xff]  ;;  %v32_v12 = vmax.f32 %v16_v8, %v24_v9 }
   0x4   :  { %v17_v13 = vld [vmem:[%s182_s0 + $0x18] sm:$0xff]  ;;  %v18_v18 = vld [vmem:[%s182_s0 + $0x20] sm:$0xff]  ;;  %v19_v23 = vld [vmem:[%s182_s0 + $0x28] sm:$0xff] }
   0x5   :  { %v46_v11 = vmax.f32 %v30_v3, %v38_v2  ;;  %v25_v14 = vld [vmem:[%s183_s1 + $0x18] sm:$0xff]  ;;  %v47_v16 = vmax.f32 %v31_v7, %v39_v6  ;;  %v26_v19 = vld [vmem:[%s183_s1 + $0x20] sm:$0xff]  ;;  %v48_v21 = vmax.f32 %v32_v12, %v40_v10  ;;  %v27_v24 = vld [vmem:[%s183_s1 + $0x28] sm:$0xff] }
   0x6   :  { %v41_v15 = vld [vmem:[%s184_s2 + $0x18] sm:$0xff]  ;;  %v33_v17 = vmax.f32 %v17_v13, %v25_v14  ;;  %v42_v20 = vld [vmem:[%s184_s2 + $0x20] sm:$0xff]  ;;  %v34_v22 = vmax.f32 %v18_v18, %v26_v19  ;;  %v43_v25 = vld [vmem:[%s184_s2 + $0x28] sm:$0xff]  ;;  %v35_v27 = vmax.f32 %v19_v23, %v27_v24 }
   0x7   :  { %54 = vst [vmem:[%s185_s3] sm:$0xff] %v46_v11  ;;  %v20_v28 = vld [vmem:[%s182_s0 + $0x30] sm:$0xff]  ;;  %v21_v33 = vld [vmem:[%s182_s0 + $0x38] sm:$0xff] }
   0x8   :  { %55 = vst [vmem:[%s185_s3 + $0x8] sm:$0xff] %v47_v16  ;;  %v49_v26 = vmax.f32 %v33_v17, %v41_v15  ;;  %v28_v29 = vld [vmem:[%s183_s1 + $0x30] sm:$0xff]  ;;  %v50_v31 = vmax.f32 %v34_v22, %v42_v20  ;;  %v29_v34 = vld [vmem:[%s183_s1 + $0x38] sm:$0xff]  ;;  %v51_v36 = vmax.f32 %v35_v27, %v43_v25 }
   0x9   :  { %v44_v30 = vld [vmem:[%s184_s2 + $0x30] sm:$0xff]  ;;  %56 = vst [vmem:[%s185_s3 + $0x10] sm:$0xff] %v48_v21  ;;  %v36_v32 = vmax.f32 %v20_v28, %v28_v29  ;;  %v45_v35 = vld [vmem:[%s184_s2 + $0x38] sm:$0xff]  ;;  %v37_v37 = vmax.f32 %v21_v33, %v29_v34 }
   0xa   :  { %57 = vst [vmem:[%s185_s3 + $0x18] sm:$0xff] %v49_v26 }
   0xb   :  { %58 = vst [vmem:[%s185_s3 + $0x20] sm:$0xff] %v50_v31  ;;  %v52_v38 = vmax.f32 %v36_v32, %v44_v30  ;;  %v53_v39 = vmax.f32 %v37_v37, %v45_v35 }
   0xc   :  { %59 = vst [vmem:[%s185_s3 + $0x28] sm:$0xff] %v51_v36 }
   0xd   :  { %60 = vst [vmem:[%s185_s3 + $0x30] sm:$0xff] %v52_v38 }
   0xe   :  { %61 = vst [vmem:[%s185_s3 + $0x38] sm:$0xff] %v53_v39 }

// kernel: bigram_resnet_forward.23
= control target key start
LH: loop header
LB: loop body
LE: loop exit
PB: predicated region body
PF: predicated region fallthrough
CT: control target
= control target key end

     0   :  { %s1486_s12 = smov 0   ;;  %s1488_s13 = smov 0   ;;  %s1714_s0 = inlined_call_operand.vmem [shape: bf16[512,256], index: 0, kind: input, shape index: {}]   ;;  %s1715_s1 = inlined_call_operand.vmem [shape: bf16[256,128], index: 1, kind: input, shape index: {}]   ;;  %s1716_s2 = inlined_call_operand.vmem [shape: f32[1,128], index: 2, kind: input, shape index: {}]   ;;  %s1717_s3 = inlined_call_operand.vmem [shape: f32[512,128], index: 3, kind: output, shape index: {}]  }
   0x1   :  { %s1490_s14 = smov 0  }
   0x2 LB: > { %s32_s15 = sadd.s32 1, %s1460_s13  ;;  %p1152_p0 = scmp.ge.s32.totalorder %s1464_s14, 1  ;;  %s1464_s14 = sphi %s1490_s14, %s13_s14   ;;  %s1460_s13 = sphi %s1488_s13, %s1719_s13   ;;  %s1456_s12 = sphi %s1486_s12, %s1718_s12  }
   0x3   : > { %p34_p1 = scmp.ge.s32.totalorder %s32_s15, 2  ;;  %p191_p2 = scmp.lt.s32.totalorder %s1464_s14, 3 }
   0x5   : > { %s1721_s15 = smov (%p34_p1, %s32_s15), 0  ;;  %p192_p3 = pnand %p1152_p0, %p191_p2 }
   0x6   : > { %s1153_s28 = sshll.u32 (!%p192_p3), %s1456_s12, 5 }
   0x7   : > { %195 = sbr.rel (%p192_p3) target bundleno = 304 (0x130), region = 32  ;;  %p236_p4 = scmp.lt.s32.totalorder (!%p192_p3), %s1153_s28, 63 }
   0xc   : > { %v1392_v0 = vld [vmem:[%s1715_s1 + $0x38] sm:$0xff]  ;;  %v1391_v2 = vld [vmem:[%s1715_s1 + $0x30] sm:$0xff]  ;;  %v1390_v4 = vld [vmem:[%s1715_s1 + $0x28] sm:$0xff]  ;;  %s1723_s28 = smov (!%p236_p4, %s1153_s28), 63 }
   0xd   : > { %v1400_v1 = vld [vmem:[%s1715_s1 + $0x78] sm:$0xff]  ;;  %655 = vmatpush.bf16.msra.mxu0 %v1392_v0  ;;  %1401 = vmatpush.bf16.msra.mxu2 %v1392_v0  ;;  %v1399_v3 = vld [vmem:[%s1715_s1 + $0x70] sm:$0xff]  ;;  %v1398_v5 = vld [vmem:[%s1715_s1 + $0x68] sm:$0xff]  ;;  %s1352_s17 = sshll.u32 %s1723_s28, 3 }
   0xe   : > { %744 = vmatpush.bf16.msra.mxu1 %v1400_v1  ;;  %1409 = vmatpush.bf16.msra.mxu3 %v1400_v1  ;;  %v1389_v6 = vld [vmem:[%s1715_s1 + $0x20] sm:$0xff]  ;;  %v1388_v8 = vld [vmem:[%s1715_s1 + $0x18] sm:$0xff]  ;;  %v1387_v10 = vld [vmem:[%s1715_s1 + $0x10] sm:$0xff]  ;;  %s1554_s22 = scalar_lea.vmem %s1714_s0, %s1352_s17  ;;  %s1640_s7 = scalar_lea.vmem %s1717_s3, %s1352_s17 }
   0xf   : > { %v1397_v7 = vld [vmem:[%s1715_s1 + $0x60] sm:$0xff]  ;;  %v1396_v9 = vld [vmem:[%s1715_s1 + $0x58] sm:$0xff]  ;;  %v1395_v11 = vld [vmem:[%s1715_s1 + $0x50] sm:$0xff] }
  0x10   : > { %v1386_v12 = vld [vmem:[%s1715_s1 + $0x8] sm:$0xff]  ;;  %v1385_v14 = vld [vmem:[%s1715_s1] sm:$0xff]  ;;  %v1168_v28 = vld [vmem:[%s1554_s22 + $0x10] sm:$0xf] }
  0x11   : > { %656 = vmatpush.bf16.msra.mxu0 %v1391_v2  ;;  %1402 = vmatpush.bf16.msra.mxu2 %v1391_v2  ;;  %v1394_v13 = vld [vmem:[%s1715_s1 + $0x48] sm:$0xff]  ;;  %v1393_v15 = vld [vmem:[%s1715_s1 + $0x40] sm:$0xff]  ;;  %v1356_v29 = vld [vmem:[%s1554_s22 + $0x14] sm:$0xf0] }
  0x12   : > { %745 = vmatpush.bf16.msra.mxu1 %v1399_v3  ;;  %1410 = vmatpush.bf16.msra.mxu3 %v1399_v3  ;;  %v1160_v16 = vld [vmem:[%s1554_s22] sm:$0xf]  ;;  %v1354_v17 = vld [vmem:[%s1554_s22 + $0x4] sm:$0xf0]  ;;  %v1353_v20 = vld [vmem:[%s1554_s22 + $0x4] sm:$0xf]  ;;  %v1169_v36 = vor.u32 %v1356_v29, %v1168_v28 }
  0x13   : > { %v1224_v18 = vld [vmem:[%s1554_s22 + $0x80] sm:$0xf]  ;;  %v1370_v19 = vld [vmem:[%s1554_s22 + $0x84] sm:$0xf0]  ;;  %v1162_v21 = vld [vmem:[%s1554_s22 + $0x8] sm:$0xf0]  ;;  %v1161_v24 = vor.u32 %v1354_v17, %v1160_v16 }
  0x14   : > { %v1369_v22 = vld [vmem:[%s1554_s22 + $0x84] sm:$0xf]  ;;  %v1226_v23 = vld [vmem:[%s1554_s22 + $0x88] sm:$0xf0]  ;;  %v1225_v25 = vor.u32 %v1370_v19, %v1224_v18  ;;  %v1165_v26 = vor.u32 %v1353_v20, %v1162_v21  ;;  %v1232_v30 = vld [vmem:[%s1554_s22 + $0x90] sm:$0xf] }
  0x15   : > { %657 = vmatpush.bf16.msra.mxu0 %v1390_v4  ;;  %1403 = vmatpush.bf16.msra.mxu2 %v1390_v4  ;;  %v1229_v27 = vor.u32 %v1369_v22, %v1226_v23  ;;  %v1372_v31 = vld [vmem:[%s1554_s22 + $0x94] sm:$0xf0]  ;;  %v1355_v32 = vld [vmem:[%s1554_s22 + $0x14] sm:$0xf]  ;;  %v1170_v33 = vld [vmem:[%s1554_s22 + $0x18] sm:$0xf0] }
  0x16   : > { %746 = vmatpush.bf16.msra.mxu1 %v1398_v5  ;;  %1411 = vmatpush.bf16.msra.mxu3 %v1398_v5  ;;  %v1371_v34 = vld [vmem:[%s1554_s22 + $0x94] sm:$0xf]  ;;  %v1234_v35 = vld [vmem:[%s1554_s22 + $0x98] sm:$0xf0]  ;;  %v1233_v37 = vor.u32 %v1372_v31, %v1232_v30  ;;  %v1173_v38 = vor.u32 %v1355_v32, %v1170_v33  ;;  %v1176_v40 = vld [vmem:[%s1554_s22 + $0x20] sm:$0xf] }
  0x17   : > { %v1237_v39 = vor.u32 %v1371_v34, %v1234_v35  ;;  %v1358_v41 = vld [vmem:[%s1554_s22 + $0x24] sm:$0xf0]  ;;  %v1240_v42 = vld [vmem:[%s1554_s22 + $0xa0] sm:$0xf]  ;;  %v1357_v44 = vld [vmem:[%s1554_s22 + $0x24] sm:$0xf] }
  0x18   : > { %v1374_v43 = vld [vmem:[%s1554_s22 + $0xa4] sm:$0xf0]  ;;  %v1178_v45 = vld [vmem:[%s1554_s22 + $0x28] sm:$0xf0]  ;;  %v1373_v46 = vld [vmem:[%s1554_s22 + $0xa4] sm:$0xf]  ;;  %v1177_v48 = vor.u32 %v1358_v41, %v1176_v40 }
  0x19   : > { %658 = vmatpush.bf16.msra.mxu0 %v1389_v6  ;;  %1404 = vmatpush.bf16.msra.mxu2 %v1389_v6  ;;  %v1242_v47 = vld [vmem:[%s1554_s22 + $0xa8] sm:$0xf0]  ;;  %v1241_v49 = vor.u32 %v1374_v43, %v1240_v42  ;;  %v1181_v50 = vor.u32 %v1357_v44, %v1178_v45  ;;  %v1184_v52 = vld [vmem:[%s1554_s22 + $0x30] sm:$0xf]  ;;  %v1360_v53 = vld [vmem:[%s1554_s22 + $0x34] sm:$0xf0] }
  0x1a   : > { %747 = vmatpush.bf16.msra.mxu1 %v1397_v7  ;;  %1412 = vmatpush.bf16.msra.mxu3 %v1397_v7  ;;  %v1245_v51 = vor.u32 %v1373_v46, %v1242_v47  ;;  %v1248_v54 = vld [vmem:[%s1554_s22 + $0xb0] sm:$0xf]  ;;  %v1376_v55 = vld [vmem:[%s1554_s22 + $0xb4] sm:$0xf0]  ;;  %v1359_v56 = vld [vmem:[%s1554_s22 + $0x34] sm:$0xf]  ;;  %v1185_v60 = vor.u32 %v1360_v53, %v1184_v52 }
  0x1b   : > { %v1186_v57 = vld [vmem:[%s1554_s22 + $0x38] sm:$0xf0]  ;;  %v1375_v58 = vld [vmem:[%s1554_s22 + $0xb4] sm:$0xf]  ;;  %v1249_v61 = vor.u32 %v1376_v55, %v1248_v54  ;;  %v1192_v0 = vld [vmem:[%s1554_s22 + $0x40] sm:$0xf] }
  0x1c   : > { %v1250_v59 = vld [vmem:[%s1554_s22 + $0xb8] sm:$0xf0]  ;;  %v1189_v62 = vor.u32 %v1359_v56, %v1186_v57  ;;  %v1362_v1 = vld [vmem:[%s1554_s22 + $0x44] sm:$0xf0]  ;;  %v1256_v2 = vld [vmem:[%s1554_s22 + $0xc0] sm:$0xf] }
  0x1d   : > { %659 = vmatpush.bf16.msra.mxu0 %v1388_v8  ;;  %1405 = vmatpush.bf16.msra.mxu2 %v1388_v8  ;;  %v1253_v63 = vor.u32 %v1375_v58, %v1250_v59  ;;  %v1378_v3 = vld [vmem:[%s1554_s22 + $0xc4] sm:$0xf0]  ;;  %v1361_v4 = vld [vmem:[%s1554_s22 + $0x44] sm:$0xf]  ;;  %v1194_v5 = vld [vmem:[%s1554_s22 + $0x48] sm:$0xf0]  ;;  %v1193_v8 = vor.u32 %v1362_v1, %v1192_v0 }
  0x1e   : > { %748 = vmatpush.bf16.msra.mxu1 %v1396_v9  ;;  %1413 = vmatpush.bf16.msra.mxu3 %v1396_v9  ;;  %v1377_v6 = vld [vmem:[%s1554_s22 + $0xc4] sm:$0xf]  ;;  %v1258_v7 = vld [vmem:[%s1554_s22 + $0xc8] sm:$0xf0]  ;;  %v1257_v9 = vor.u32 %v1378_v3, %v1256_v2  ;;  %v1363_v16 = vld [vmem:[%s1554_s22 + $0x54] sm:$0xf] }
  0x1f   : > { %v1202_v17 = vld [vmem:[%s1554_s22 + $0x58] sm:$0xf0]  ;;  %v1379_v18 = vld [vmem:[%s1554_s22 + $0xd4] sm:$0xf]  ;;  %v1365_v28 = vld [vmem:[%s1554_s22 + $0x64] sm:$0xf] }
  0x20   : > { %v1266_v19 = vld [vmem:[%s1554_s22 + $0xd8] sm:$0xf0]  ;;  %v1205_v22 = vor.u32 %v1363_v16, %v1202_v17  ;;  %v1210_v29 = vld [vmem:[%s1554_s22 + $0x68] sm:$0xf0]  ;;  %v1381_v30 = vld [vmem:[%s1554_s22 + $0xe4] sm:$0xf] }
  0x21   : > { %660 = vmatpush.bf16.msra.mxu0 %v1387_v10  ;;  %1406 = vmatpush.bf16.msra.mxu2 %v1387_v10  ;;  %v1197_v10 = vor.u32 %v1361_v4, %v1194_v5  ;;  %v1269_v23 = vor.u32 %v1379_v18, %v1266_v19  ;;  %v1274_v31 = vld [vmem:[%s1554_s22 + $0xe8] sm:$0xf0]  ;;  %v1213_v34 = vor.u32 %v1365_v28, %v1210_v29  ;;  %v1367_v40 = vld [vmem:[%s1554_s22 + $0x74] sm:$0xf]  ;;  %v1218_v41 = vld [vmem:[%s1554_s22 + $0x78] sm:$0xf0] }
  0x22   : > { %749 = vmatpush.bf16.msra.mxu1 %v1395_v11  ;;  %1414 = vmatpush.bf16.msra.mxu3 %v1395_v11  ;;  %v1261_v11 = vor.u32 %v1377_v6, %v1258_v7  ;;  %v1277_v35 = vor.u32 %v1381_v30, %v1274_v31  ;;  %v1383_v42 = vld [vmem:[%s1554_s22 + $0xf4] sm:$0xf]  ;;  %v1282_v43 = vld [vmem:[%s1554_s22 + $0xf8] sm:$0xf0]  ;;  %v1221_v46 = vor.u32 %v1367_v40, %v1218_v41 }
  0x23   : > { %v1285_v47 = vor.u32 %v1383_v42, %v1282_v43 }
  0x25   : > { %661 = vmatpush.bf16.msra.mxu0 %v1386_v12  ;;  %1407 = vmatpush.bf16.msra.mxu2 %v1386_v12  ;;  %v1200_v12 = vld [vmem:[%s1554_s22 + $0x50] sm:$0xf] }
  0x26   : > { %750 = vmatpush.bf16.msra.mxu1 %v1394_v13  ;;  %1415 = vmatpush.bf16.msra.mxu3 %v1394_v13  ;;  %v1364_v13 = vld [vmem:[%s1554_s22 + $0x54] sm:$0xf0] }
  0x27   : > { %v1201_v20 = vor.u32 %v1364_v13, %v1200_v12 }
  0x29   : > { %662 = vmatpush.bf16.msra.mxu0 %v1385_v14  ;;  %1408 = vmatpush.bf16.msra.mxu2 %v1385_v14  ;;  %v1264_v14 = vld [vmem:[%s1554_s22 + $0xd0] sm:$0xf] }
  0x2a   : > { %751 = vmatpush.bf16.msra.mxu1 %v1393_v15  ;;  %1416 = vmatpush.bf16.msra.mxu3 %v1393_v15  ;;  %v1380_v15 = vld [vmem:[%s1554_s22 + $0xd4] sm:$0xf0] }
  0x2b   : > { %v1265_v21 = vor.u32 %v1380_v15, %v1264_v14 }
  0x2c   : > { %663 = vmatmul.bf16.vlgmr.msra.gmra.mxu0 %v1161_v24  ;;  %703 = vmatmul.bf16.vlgmr.msra.gmra.mxu2 %v1225_v25  ;;  %v1208_v24 = vld [vmem:[%s1554_s22 + $0x60] sm:$0xf]  ;;  %v1366_v25 = vld [vmem:[%s1554_s22 + $0x64] sm:$0xf0] }
  0x2d   : > { %752 = vmatmul.bf16.vlgmr.msra.gmra.mxu1 %v1165_v26  ;;  %792 = vmatmul.bf16.vlgmr.msra.gmra.mxu3 %v1229_v27  ;;  %v1272_v26 = vld [vmem:[%s1554_s22 + $0xe0] sm:$0xf]  ;;  %v1382_v27 = vld [vmem:[%s1554_s22 + $0xe4] sm:$0xf0]  ;;  %v1209_v32 = vor.u32 %v1366_v25, %v1208_v24 }
  0x2e   : > { %v1273_v33 = vor.u32 %v1382_v27, %v1272_v26 }
  0x3c   : > { %668 = vmatmul.bf16.gmra.mxu0 %v1169_v36  ;;  %708 = vmatmul.bf16.gmra.mxu2 %v1233_v37  ;;  %v1216_v36 = vld [vmem:[%s1554_s22 + $0x70] sm:$0xf]  ;;  %v1368_v37 = vld [vmem:[%s1554_s22 + $0x74] sm:$0xf0] }
  0x3d   : > { %757 = vmatmul.bf16.gmra.mxu1 %v1173_v38  ;;  %797 = vmatmul.bf16.gmra.mxu3 %v1237_v39  ;;  %v1280_v38 = vld [vmem:[%s1554_s22 + $0xf0] sm:$0xf]  ;;  %v1384_v39 = vld [vmem:[%s1554_s22 + $0xf4] sm:$0xf0]  ;;  %v1217_v44 = vor.u32 %v1368_v37, %v1216_v36 }
  0x3e   : > { %v1281_v45 = vor.u32 %v1384_v39, %v1280_v38 }
  0x4c   : > { %673 = vmatmul.bf16.gmra.mxu0 %v1177_v48  ;;  %713 = vmatmul.bf16.gmra.mxu2 %v1241_v49  ;;  %v1632_v49 = vld [vmem:[%s1716_s2] ss:$0 sm:$0xff] }
  0x4d   : > { %762 = vmatmul.bf16.gmra.mxu1 %v1181_v50  ;;  %802 = vmatmul.bf16.gmra.mxu3 %v1245_v51 }
  0x5c   : > { %678 = vmatmul.bf16.gmra.mxu0 %v1185_v60  ;;  %718 = vmatmul.bf16.gmra.mxu2 %v1249_v61 }
  0x5d   : > { %767 = vmatmul.bf16.gmra.mxu1 %v1189_v62  ;;  %807 = vmatmul.bf16.gmra.mxu3 %v1253_v63 }
  0x6c   : > { %683 = vmatmul.bf16.gmra.mxu0 %v1193_v8  ;;  %723 = vmatmul.bf16.gmra.mxu2 %v1257_v9 }
  0x6d   : > { %772 = vmatmul.bf16.gmra.mxu1 %v1197_v10  ;;  %812 = vmatmul.bf16.gmra.mxu3 %v1261_v11 }
  0x7c   : > { %688 = vmatmul.bf16.gmra.mxu0 %v1201_v20  ;;  %728 = vmatmul.bf16.gmra.mxu2 %v1265_v21 }
  0x7d   : > { %777 = vmatmul.bf16.gmra.mxu1 %v1205_v22  ;;  %817 = vmatmul.bf16.gmra.mxu3 %v1269_v23 }
  0x8c   : > { %693 = vmatmul.bf16.gmra.mxu0 %v1209_v32  ;;  %733 = vmatmul.bf16.gmra.mxu2 %v1273_v33 }
  0x8d   : > { %782 = vmatmul.bf16.gmra.mxu1 %v1213_v34  ;;  %822 = vmatmul.bf16.gmra.mxu3 %v1277_v35 }
  0x9c   : > { %698 = vmatmul.bf16.gmra.mxu0 %v1217_v44  ;;  %738 = vmatmul.bf16.gmra.mxu2 %v1281_v45 }
  0x9d   : > { %787 = vmatmul.bf16.gmra.mxu1 %v1221_v46  ;;  %827 = vmatmul.bf16.gmra.mxu3 %v1285_v47 }
  0xa9   : > { %v664_v48 = vpop.f32.mrf.mxu0 }
  0xaa   : > { %v753_v50 = vpop.f32.mrf.mxu1 }
  0xab   : > { %v754_v51 = vadd.f32 %v753_v50, %v664_v48 }
  0xad   : > { %v936_v52 = vadd.f32 %v1632_v49, %v754_v51 }
  0xaf   : > { %v968_v53 = vmax.f32 %v936_v52, 0.0  ;;  %v704_v54 = vpop.f32.mrf.mxu2 }
  0xb0   : > { %v793_v55 = vpop.f32.mrf.mxu3 }
  0xb1   : > { %1000 = vst [vmem:[%s1640_s7] sm:$0xff] %v968_v53  ;;  %v794_v56 = vadd.f32 %v793_v55, %v704_v54  ;;  %v666_v57 = vpop.f32.mrf.mxu0 }
  0xb2   : > { %v755_v58 = vpop.f32.mrf.mxu1 }
  0xb3   : > { %v952_v59 = vadd.f32 %v1632_v49, %v794_v56  ;;  %v756_v60 = vadd.f32 %v755_v58, %v666_v57 }
  0xb5   : > { %v984_v61 = vmax.f32 %v952_v59, 0.0  ;;  %v937_v62 = vadd.f32 %v1632_v49, %v756_v60 }
  0xb7   : > { %1016 = vst [vmem:[%s1640_s7 + $0x80] sm:$0xff] %v984_v61  ;;  %v969_v63 = vmax.f32 %v937_v62, 0.0  ;;  %v706_v0 = vpop.f32.mrf.mxu2 }
  0xb8   : > { %v795_v1 = vpop.f32.mrf.mxu3 }
  0xb9   : > { %1001 = vst [vmem:[%s1640_s7 + $0x8] sm:$0xff] %v969_v63  ;;  %v796_v2 = vadd.f32 %v795_v1, %v706_v0  ;;  %v669_v3 = vpop.f32.mrf.mxu0 }
  0xba   : > { %v758_v4 = vpop.f32.mrf.mxu1 }
  0xbb   : > { %v953_v5 = vadd.f32 %v1632_v49, %v796_v2  ;;  %v759_v6 = vadd.f32 %v758_v4, %v669_v3 }
  0xbd   : > { %v985_v7 = vmax.f32 %v953_v5, 0.0  ;;  %v938_v8 = vadd.f32 %v1632_v49, %v759_v6 }
  0xbf   : > { %1017 = vst [vmem:[%s1640_s7 + $0x88] sm:$0xff] %v985_v7  ;;  %v970_v9 = vmax.f32 %v938_v8, 0.0  ;;  %v709_v10 = vpop.f32.mrf.mxu2 }
  0xc0   : > { %v798_v11 = vpop.f32.mrf.mxu3 }
  0xc1   : > { %1002 = vst [vmem:[%s1640_s7 + $0x10] sm:$0xff] %v970_v9  ;;  %v799_v12 = vadd.f32 %v798_v11, %v709_v10  ;;  %v671_v13 = vpop.f32.mrf.mxu0 }
  0xc2   : > { %v760_v14 = vpop.f32.mrf.mxu1 }
  0xc3   : > { %v954_v15 = vadd.f32 %v1632_v49, %v799_v12  ;;  %v761_v16 = vadd.f32 %v760_v14, %v671_v13 }
  0xc5   : > { %v986_v17 = vmax.f32 %v954_v15, 0.0  ;;  %v939_v18 = vadd.f32 %v1632_v49, %v761_v16 }
  0xc7   : > { %1018 = vst [vmem:[%s1640_s7 + $0x90] sm:$0xff] %v986_v17  ;;  %v971_v19 = vmax.f32 %v939_v18, 0.0  ;;  %v711_v20 = vpop.f32.mrf.mxu2 }
  0xc8   : > { %v800_v21 = vpop.f32.mrf.mxu3 }
  0xc9   : > { %1003 = vst [vmem:[%s1640_s7 + $0x18] sm:$0xff] %v971_v19  ;;  %v801_v22 = vadd.f32 %v800_v21, %v711_v20  ;;  %v674_v23 = vpop.f32.mrf.mxu0 }
  0xca   : > { %v763_v24 = vpop.f32.mrf.mxu1 }
  0xcb   : > { %v955_v25 = vadd.f32 %v1632_v49, %v801_v22  ;;  %v764_v26 = vadd.f32 %v763_v24, %v674_v23 }
  0xcd   : > { %v987_v27 = vmax.f32 %v955_v25, 0.0  ;;  %v940_v28 = vadd.f32 %v1632_v49, %v764_v26 }
  0xcf   : > { %1019 = vst [vmem:[%s1640_s7 + $0x98] sm:$0xff] %v987_v27  ;;  %v972_v29 = vmax.f32 %v940_v28, 0.0  ;;  %v714_v30 = vpop.f32.mrf.mxu2 }
  0xd0   : > { %v803_v31 = vpop.f32.mrf.mxu3 }
  0xd1   : > { %1004 = vst [vmem:[%s1640_s7 + $0x20] sm:$0xff] %v972_v29  ;;  %v804_v32 = vadd.f32 %v803_v31, %v714_v30  ;;  %v676_v33 = vpop.f32.mrf.mxu0 }
  0xd2   : > { %v765_v34 = vpop.f32.mrf.mxu1 }
  0xd3   : > { %v956_v35 = vadd.f32 %v1632_v49, %v804_v32  ;;  %v766_v36 = vadd.f32 %v765_v34, %v676_v33 }
  0xd5   : > { %v988_v37 = vmax.f32 %v956_v35, 0.0  ;;  %v941_v38 = vadd.f32 %v1632_v49, %v766_v36 }
  0xd7   : > { %1020 = vst [vmem:[%s1640_s7 + $0xa0] sm:$0xff] %v988_v37  ;;  %v973_v39 = vmax.f32 %v941_v38, 0.0  ;;  %v716_v40 = vpop.f32.mrf.mxu2 }
  0xd8   : > { %v805_v41 = vpop.f32.mrf.mxu3 }
  0xd9   : > { %1005 = vst [vmem:[%s1640_s7 + $0x28] sm:$0xff] %v973_v39  ;;  %v806_v42 = vadd.f32 %v805_v41, %v716_v40  ;;  %v679_v43 = vpop.f32.mrf.mxu0 }
  0xda   : > { %v768_v44 = vpop.f32.mrf.mxu1 }
  0xdb   : > { %v957_v45 = vadd.f32 %v1632_v49, %v806_v42  ;;  %v769_v46 = vadd.f32 %v768_v44, %v679_v43 }
  0xdd   : > { %v989_v47 = vmax.f32 %v957_v45, 0.0  ;;  %v942_v48 = vadd.f32 %v1632_v49, %v769_v46 }
  0xdf   : > { %1021 = vst [vmem:[%s1640_s7 + $0xa8] sm:$0xff] %v989_v47  ;;  %v974_v50 = vmax.f32 %v942_v48, 0.0  ;;  %v719_v51 = vpop.f32.mrf.mxu2 }
  0xe0   : > { %v808_v52 = vpop.f32.mrf.mxu3 }
  0xe1   : > { %1006 = vst [vmem:[%s1640_s7 + $0x30] sm:$0xff] %v974_v50  ;;  %v809_v53 = vadd.f32 %v808_v52, %v719_v51  ;;  %v681_v54 = vpop.f32.mrf.mxu0 }
  0xe2   : > { %v770_v55 = vpop.f32.mrf.mxu1 }
  0xe3   : > { %v958_v56 = vadd.f32 %v1632_v49, %v809_v53  ;;  %v771_v57 = vadd.f32 %v770_v55, %v681_v54 }
  0xe5   : > { %v990_v58 = vmax.f32 %v958_v56, 0.0  ;;  %v943_v59 = vadd.f32 %v1632_v49, %v771_v57 }
  0xe7   : > { %1022 = vst [vmem:[%s1640_s7 + $0xb0] sm:$0xff] %v990_v58  ;;  %v975_v60 = vmax.f32 %v943_v59, 0.0  ;;  %v721_v61 = vpop.f32.mrf.mxu2 }
  0xe8   : > { %v810_v62 = vpop.f32.mrf.mxu3 }
  0xe9   : > { %1007 = vst [vmem:[%s1640_s7 + $0x38] sm:$0xff] %v975_v60  ;;  %v811_v63 = vadd.f32 %v810_v62, %v721_v61  ;;  %v684_v0 = vpop.f32.mrf.mxu0 }
  0xea   : > { %v773_v1 = vpop.f32.mrf.mxu1 }
  0xeb   : > { %v959_v2 = vadd.f32 %v1632_v49, %v811_v63  ;;  %v774_v3 = vadd.f32 %v773_v1, %v684_v0 }
  0xed   : > { %v991_v4 = vmax.f32 %v959_v2, 0.0  ;;  %v944_v5 = vadd.f32 %v1632_v49, %v774_v3 }
  0xef   : > { %1023 = vst [vmem:[%s1640_s7 + $0xb8] sm:$0xff] %v991_v4  ;;  %v976_v6 = vmax.f32 %v944_v5, 0.0  ;;  %v724_v7 = vpop.f32.mrf.mxu2 }
  0xf0   : > { %v813_v8 = vpop.f32.mrf.mxu3 }
  0xf1   : > { %1008 = vst [vmem:[%s1640_s7 + $0x40] sm:$0xff] %v976_v6  ;;  %v814_v9 = vadd.f32 %v813_v8, %v724_v7  ;;  %v686_v10 = vpop.f32.mrf.mxu0 }
  0xf2   : > { %v775_v11 = vpop.f32.mrf.mxu1 }
  0xf3   : > { %v960_v12 = vadd.f32 %v1632_v49, %v814_v9  ;;  %v776_v13 = vadd.f32 %v775_v11, %v686_v10 }
  0xf5   : > { %v992_v14 = vmax.f32 %v960_v12, 0.0  ;;  %v945_v15 = vadd.f32 %v1632_v49, %v776_v13 }
  0xf7   : > { %1024 = vst [vmem:[%s1640_s7 + $0xc0] sm:$0xff] %v992_v14  ;;  %v977_v16 = vmax.f32 %v945_v15, 0.0  ;;  %v726_v17 = vpop.f32.mrf.mxu2 }
  0xf8   : > { %v815_v18 = vpop.f32.mrf.mxu3 }
  0xf9   : > { %1009 = vst [vmem:[%s1640_s7 + $0x48] sm:$0xff] %v977_v16  ;;  %v816_v19 = vadd.f32 %v815_v18, %v726_v17  ;;  %v689_v20 = vpop.f32.mrf.mxu0 }
  0xfa   : > { %v778_v21 = vpop.f32.mrf.mxu1 }
  0xfb   : > { %v961_v22 = vadd.f32 %v1632_v49, %v816_v19  ;;  %v779_v23 = vadd.f32 %v778_v21, %v689_v20 }
  0xfd   : > { %v993_v24 = vmax.f32 %v961_v22, 0.0  ;;  %v946_v25 = vadd.f32 %v1632_v49, %v779_v23 }
  0xff   : > { %1025 = vst [vmem:[%s1640_s7 + $0xc8] sm:$0xff] %v993_v24  ;;  %v978_v26 = vmax.f32 %v946_v25, 0.0  ;;  %v729_v27 = vpop.f32.mrf.mxu2 }
 0x100   : > { %v818_v28 = vpop.f32.mrf.mxu3 }
 0x101   : > { %1010 = vst [vmem:[%s1640_s7 + $0x50] sm:$0xff] %v978_v26  ;;  %v819_v29 = vadd.f32 %v818_v28, %v729_v27  ;;  %v691_v30 = vpop.f32.mrf.mxu0 }
 0x102   : > { %v780_v31 = vpop.f32.mrf.mxu1 }
 0x103   : > { %v962_v32 = vadd.f32 %v1632_v49, %v819_v29  ;;  %v781_v33 = vadd.f32 %v780_v31, %v691_v30 }
 0x105   : > { %v994_v34 = vmax.f32 %v962_v32, 0.0  ;;  %v947_v35 = vadd.f32 %v1632_v49, %v781_v33 }
 0x107   : > { %1026 = vst [vmem:[%s1640_s7 + $0xd0] sm:$0xff] %v994_v34  ;;  %v979_v36 = vmax.f32 %v947_v35, 0.0  ;;  %v731_v37 = vpop.f32.mrf.mxu2 }
 0x108   : > { %v820_v38 = vpop.f32.mrf.mxu3 }
 0x109   : > { %1011 = vst [vmem:[%s1640_s7 + $0x58] sm:$0xff] %v979_v36  ;;  %v821_v39 = vadd.f32 %v820_v38, %v731_v37  ;;  %v694_v40 = vpop.f32.mrf.mxu0 }
 0x10a   : > { %v783_v41 = vpop.f32.mrf.mxu1 }
 0x10b   : > { %v963_v42 = vadd.f32 %v1632_v49, %v821_v39  ;;  %v784_v43 = vadd.f32 %v783_v41, %v694_v40 }
 0x10d   : > { %v995_v44 = vmax.f32 %v963_v42, 0.0  ;;  %v948_v45 = vadd.f32 %v1632_v49, %v784_v43 }
 0x10f   : > { %1027 = vst [vmem:[%s1640_s7 + $0xd8] sm:$0xff] %v995_v44  ;;  %v980_v46 = vmax.f32 %v948_v45, 0.0  ;;  %v734_v47 = vpop.f32.mrf.mxu2 }
 0x110   : > { %v823_v48 = vpop.f32.mrf.mxu3 }
 0x111   : > { %1012 = vst [vmem:[%s1640_s7 + $0x60] sm:$0xff] %v980_v46  ;;  %v824_v50 = vadd.f32 %v823_v48, %v734_v47  ;;  %v696_v51 = vpop.f32.mrf.mxu0 }
 0x112   : > { %v785_v52 = vpop.f32.mrf.mxu1 }
 0x113   : > { %v964_v53 = vadd.f32 %v1632_v49, %v824_v50  ;;  %v786_v54 = vadd.f32 %v785_v52, %v696_v51 }
 0x115   : > { %v996_v55 = vmax.f32 %v964_v53, 0.0  ;;  %v949_v56 = vadd.f32 %v1632_v49, %v786_v54 }
 0x117   : > { %1028 = vst [vmem:[%s1640_s7 + $0xe0] sm:$0xff] %v996_v55  ;;  %v981_v57 = vmax.f32 %v949_v56, 0.0  ;;  %v736_v58 = vpop.f32.mrf.mxu2 }
 0x118   : > { %v825_v59 = vpop.f32.mrf.mxu3 }
 0x119   : > { %1013 = vst [vmem:[%s1640_s7 + $0x68] sm:$0xff] %v981_v57  ;;  %v826_v60 = vadd.f32 %v825_v59, %v736_v58  ;;  %v699_v61 = vpop.f32.mrf.mxu0 }
 0x11a   : > { %v788_v62 = vpop.f32.mrf.mxu1 }
 0x11b   : > { %v965_v63 = vadd.f32 %v1632_v49, %v826_v60  ;;  %v789_v0 = vadd.f32 %v788_v62, %v699_v61 }
 0x11d   : > { %v997_v1 = vmax.f32 %v965_v63, 0.0  ;;  %v950_v2 = vadd.f32 %v1632_v49, %v789_v0 }
 0x11f   : > { %1029 = vst [vmem:[%s1640_s7 + $0xe8] sm:$0xff] %v997_v1  ;;  %v982_v3 = vmax.f32 %v950_v2, 0.0  ;;  %v739_v4 = vpop.f32.mrf.mxu2 }
 0x120   : > { %v828_v5 = vpop.f32.mrf.mxu3 }
 0x121   : > { %1014 = vst [vmem:[%s1640_s7 + $0x70] sm:$0xff] %v982_v3  ;;  %v829_v6 = vadd.f32 %v828_v5, %v739_v4  ;;  %v701_v7 = vpop.f32.mrf.mxu0 }
 0x122   : > { %v790_v8 = vpop.f32.mrf.mxu1 }
 0x123   : > { %v966_v9 = vadd.f32 %v1632_v49, %v829_v6  ;;  %v791_v10 = vadd.f32 %v790_v8, %v701_v7 }
 0x125   : > { %v998_v11 = vmax.f32 %v966_v9, 0.0  ;;  %v951_v12 = vadd.f32 %v1632_v49, %v791_v10 }
 0x127   : > { %1030 = vst [vmem:[%s1640_s7 + $0xf0] sm:$0xff] %v998_v11  ;;  %v983_v13 = vmax.f32 %v951_v12, 0.0  ;;  %v741_v14 = vpop.f32.mrf.mxu2 }
 0x128   : > { %v830_v15 = vpop.f32.mrf.mxu3 }
 0x129   : > { %1015 = vst [vmem:[%s1640_s7 + $0x78] sm:$0xff] %v983_v13  ;;  %v831_v16 = vadd.f32 %v830_v15, %v741_v14 }
 0x12b   : > { %v967_v17 = vadd.f32 %v1632_v49, %v831_v16 }
 0x12d   : > { %v999_v18 = vmax.f32 %v967_v17, 0.0 }
 0x12f   : > { %1031 = vst [vmem:[%s1640_s7 + $0xf8] sm:$0xff] %v999_v18 }
 0x130 PF: > { %s13_s14 = sadd.s32 1, %s1464_s14   ;;  %s1718_s12 = smov %s1460_s13 }
 0x131   : > { %p10_p5 = scmp.ge.s32.totalorder %s13_s14, 4   ;;  %s1719_s13 = smov %s1721_s15 }
 0x133   :  { %12 = sbr.rel (!%p10_p5) target bundleno = 2 (0x2), region = 76 }

// kernel: bigram_resnet_forward.27
= control target key start
LH: loop header
LB: loop body
LE: loop exit
PB: predicated region body
PF: predicated region fallthrough
CT: control target
= control target key end

     0   :  { %s1335_s15 = smov 0   ;;  %s1337_s16 = smov 0   ;;  %s1589_s0 = inlined_call_operand.vmem [shape: bf16[128,768], index: 0, kind: input, shape index: {}]   ;;  %s1590_s1 = inlined_call_operand.vmem [shape: bf16[768,128], index: 1, kind: input, shape index: {}]   ;;  %s1591_s2 = inlined_call_operand.vmem [shape: f32[1,128], index: 2, kind: input, shape index: {}]   ;;  %s1592_s3 = inlined_call_operand.vmem [shape: f32[128,128], index: 3, kind: input, shape index: {}]   ;;  %s1593_s4 = inlined_call_operand.vmem [shape: f32[128,128], index: 4, kind: output, shape index: {}]  }
   0x1   :  { %s1339_s17 = smov 0   ;;  %s1341_s18 = smov 0  }
   0x2   :  { %s1343_s19 = smov 0  }
   0x3 LB: > { %s26_s20 = sadd.s32 1, %s1303_s18  ;;  %p49_p1 = scmp.ne.s32.totalorder %s1295_s16, %s1291_s15  ;;  %s1307_s19 = sphi %s1343_s19, %s14_s19   ;;  %s1303_s18 = sphi %s1341_s18, %s1597_s18   ;;  %s1299_s17 = sphi %s1339_s17, %s1596_s17   ;;  %s1295_s16 = sphi %s1337_s16, %s1595_s16   ;;  %s1291_s15 = sphi %s1335_s15, %s1594_s15  }
   0x4   : > { %p27_p0 = scmp.ge.s32.totalorder %s26_s20, 3  ;;  %p50_p2 = scmp.eq.s32.totalorder %s1307_s19, 0 }
   0x5   : > { %s42_s22 = sadd.s32 1, %s1295_s16  ;;  %p1036_p5 = scmp.ge.s32.totalorder %s1307_s19, 3 }
   0x6   : > { %s1599_s20 = smov (%p27_p0, %s26_s20), 0  ;;  %p51_p3 = por %p50_p2, %p49_p1 }
   0x7   : > { %s38_s21 = ssub.s32 %s1303_s18, %s1599_s20  ;;  %203 = sbr.rel (%p1036_p5) target bundleno = 32 (0x20), region = 24 }
   0x8   : > { %p40_p4 = scmp.eq.s32.totalorder %s38_s21, 0 }
   0xa   : > { %s1370_s23 = scalar_select %p40_p4, %s1295_s16, %s42_s22  }
   0xc   : > { %206 = sbr.rel (!%p51_p3) target bundleno = 32 (0x20), region = 28  ;;  %s208_s24 = sand.u32 (%p51_p3), 1, %s1295_s16  }
   0xd   : > { %s1178_s25 = sshll.u32 (%p51_p3), %s1303_s18, 3  ;;  %s1037_s26 = sshll.u32 (%p51_p3), %s208_s24, 7 }
   0xe   : > { %s1378_s29 = scalar_lea.vmem (%p51_p3), %s1589_s0, %s1178_s25  ;;  %s210_s30 = scalar_lea.vmem (%p51_p3), [#allocation3], %s1037_s26 }
   0xf   : > { %v275_v0 = vld [vmem:[%s1378_s29] sm:$0xff] (%p51_p3)  ;;  %v277_v1 = vld [vmem:[%s1378_s29 + $0x18] sm:$0xff] (%p51_p3)  ;;  %v279_v2 = vld [vmem:[%s1378_s29 + $0x30] sm:$0xff] (%p51_p3) }
  0x10   : > { %276 = vst [vmem:[%s210_s30] sm:$0xff] (%p51_p3), %v275_v0  ;;  %v281_v3 = vld [vmem:[%s1378_s29 + $0x48] sm:$0xff] (%p51_p3)  ;;  %v283_v4 = vld [vmem:[%s1378_s29 + $0x60] sm:$0xff] (%p51_p3)  ;;  %v285_v5 = vld [vmem:[%s1378_s29 + $0x78] sm:$0xff] (%p51_p3) }
  0x11   : > { %278 = vst [vmem:[%s210_s30 + $0x8] sm:$0xff] %v277_v1  ;;  %v287_v6 = vld [vmem:[%s1378_s29 + $0x90] sm:$0xff]  ;;  %v289_v7 = vld [vmem:[%s1378_s29 + $0xa8] sm:$0xff]  ;;  %v291_v8 = vld [vmem:[%s1378_s29 + $0xc0] sm:$0xff] }
  0x12   : > { %280 = vst [vmem:[%s210_s30 + $0x10] sm:$0xff] %v279_v2  ;;  %v293_v9 = vld [vmem:[%s1378_s29 + $0xd8] sm:$0xff]  ;;  %v295_v10 = vld [vmem:[%s1378_s29 + $0xf0] sm:$0xff]  ;;  %v297_v11 = vld [vmem:[%s1378_s29 + $0x108] sm:$0xff] }
  0x13   : > { %282 = vst [vmem:[%s210_s30 + $0x18] sm:$0xff] %v281_v3  ;;  %v299_v12 = vld [vmem:[%s1378_s29 + $0x120] sm:$0xff]  ;;  %v301_v13 = vld [vmem:[%s1378_s29 + $0x138] sm:$0xff]  ;;  %v303_v14 = vld [vmem:[%s1378_s29 + $0x150] sm:$0xff] }
  0x14   : > { %284 = vst [vmem:[%s210_s30 + $0x20] sm:$0xff] %v283_v4  ;;  %v305_v15 = vld [vmem:[%s1378_s29 + $0x168] sm:$0xff] }
  0x15   : > { %286 = vst [vmem:[%s210_s30 + $0x28] sm:$0xff] %v285_v5 }
  0x16   : > { %288 = vst [vmem:[%s210_s30 + $0x30] sm:$0xff] %v287_v6 }
  0x17   : > { %290 = vst [vmem:[%s210_s30 + $0x38] sm:$0xff] %v289_v7 }
  0x18   : > { %292 = vst [vmem:[%s210_s30 + $0x40] sm:$0xff] %v291_v8 }
  0x19   : > { %294 = vst [vmem:[%s210_s30 + $0x48] sm:$0xff] %v293_v9 }
  0x1a   : > { %296 = vst [vmem:[%s210_s30 + $0x50] sm:$0xff] %v295_v10 }
  0x1b   : > { %298 = vst [vmem:[%s210_s30 + $0x58] sm:$0xff] %v297_v11 }
  0x1c   : > { %300 = vst [vmem:[%s210_s30 + $0x60] sm:$0xff] %v299_v12 }
  0x1d   : > { %302 = vst [vmem:[%s210_s30 + $0x68] sm:$0xff] %v301_v13 }
  0x1e   : > { %304 = vst [vmem:[%s210_s30 + $0x70] sm:$0xff] %v303_v14 }
  0x1f   : > { %306 = vst [vmem:[%s210_s30 + $0x78] sm:$0xff] %v305_v15 }
  0x20 PF: > { %p1040_p6 = scmp.ge.s32.totalorder %s1307_s19, 1  ;;  %p323_p7 = scmp.lt.s32.totalorder %s1307_s19, 4 }
  0x22   : > { %p324_p8 = pnand %p1040_p6, %p323_p7 }
  0x23   : > { %s330_s5 = sand.u32 (!%p324_p8), 1, %s1291_s15   ;;  %s1042_s6 = sshll.u32 (!%p324_p8), %s1299_s17, 5 }
  0x24   : > { %327 = sbr.rel (%p324_p8) target bundleno = 312 (0x138), region = 70  ;;  %s1041_s7 = sshll.u32 (!%p324_p8), %s330_s5, 7 }
  0x25   : > { %p380_p9 = scmp.lt.s32.totalorder (!%p324_p8), %s1042_s6, 95  ;;  %s1405_s12 = scalar_lea.vmem (!%p324_p8), [#allocation3], %s1041_s7 }
  0x26   : > { %p1044_p10 = scmp.ne.s32.totalorder (!%p324_p8), %s1299_s17, 0 }
  0x29   : > { %s1601_s6 = smov (!%p380_p9, %s1042_s6), 95  ;;  %412 = sbr.rel (%p1044_p10) target bundleno = 63 (0x3f), region = 78 }
  0x2a   : > { %s1043_s8 = sshll.u32 %s1601_s6, 2 }
  0x2b   : > { %s1403_s11 = scalar_lea.vmem %s1590_s1, %s1043_s8 }
  0x2e   : > { %v1309_v16 = vmov 0.0  }
  0x2f   : > { %413 = vst [vmem:[#allocation2 + $0x30] sm:$0xff] %v1309_v16 }
  0x30   : > { %414 = vst [vmem:[#allocation2] sm:$0xff] %v1309_v16 }
  0x31   : > { %415 = vst [vmem:[#allocation2 + $0x58] sm:$0xff] %v1309_v16 }
  0x32   : > { %416 = vst [vmem:[#allocation2 + $0x18] sm:$0xff] %v1309_v16 }
  0x33   : > { %417 = vst [vmem:[#allocation2 + $0x50] sm:$0xff] %v1309_v16 }
  0x34   : > { %418 = vst [vmem:[#allocation2 + $0x68] sm:$0xff] %v1309_v16 }
  0x35   : > { %419 = vst [vmem:[#allocation2 + $0x8] sm:$0xff] %v1309_v16 }
  0x36   : > { %420 = vst [vmem:[#allocation2 + $0x48] sm:$0xff] %v1309_v16 }
  0x37   : > { %421 = vst [vmem:[#allocation2 + $0x40] sm:$0xff] %v1309_v16 }
  0x38   : > { %422 = vst [vmem:[#allocation2 + $0x20] sm:$0xff] %v1309_v16 }
  0x39   : > { %423 = vst [vmem:[#allocation2 + $0x10] sm:$0xff] %v1309_v16 }
  0x3a   : > { %424 = vst [vmem:[#allocation2 + $0x38] sm:$0xff] %v1309_v16 }
  0x3b   : > { %425 = vst [vmem:[#allocation2 + $0x60] sm:$0xff] %v1309_v16 }
  0x3c   : > { %426 = vst [vmem:[#allocation2 + $0x70] sm:$0xff] %v1309_v16 }
  0x3d   : > { %427 = vst [vmem:[#allocation2 + $0x78] sm:$0xff] %v1309_v16 }
  0x3e   : > { %428 = vst [vmem:[#allocation2 + $0x28] sm:$0xff] %v1309_v16 }
  0x3f PF: > { %v1202_v17 = vld [vmem:[%s1403_s11 + $0x38] sm:$0xff]  ;;  %v1201_v19 = vld [vmem:[%s1403_s11 + $0x30] sm:$0xff]  ;;  %v1200_v21 = vld [vmem:[%s1403_s11 + $0x28] sm:$0xff]  ;;  %p1173_p11 = scmp.ne.s32.totalorder %s1299_s17, 2 }
  0x40   : > { %v1210_v18 = vld [vmem:[%s1403_s11 + $0x78] sm:$0xff]  ;;  %669 = vmatpush.bf16.msra.mxu0 %v1202_v17  ;;  %1211 = vmatpush.bf16.msra.mxu2 %v1202_v17  ;;  %v1209_v20 = vld [vmem:[%s1403_s11 + $0x70] sm:$0xff]  ;;  %v1208_v22 = vld [vmem:[%s1403_s11 + $0x68] sm:$0xff] }
  0x41   : > { %718 = vmatpush.bf16.msra.mxu1 %v1210_v18  ;;  %1219 = vmatpush.bf16.msra.mxu3 %v1210_v18  ;;  %v1199_v23 = vld [vmem:[%s1403_s11 + $0x20] sm:$0xff]  ;;  %v1198_v25 = vld [vmem:[%s1403_s11 + $0x18] sm:$0xff]  ;;  %v1197_v27 = vld [vmem:[%s1403_s11 + $0x10] sm:$0xff] }
  0x42   : > { %v1207_v24 = vld [vmem:[%s1403_s11 + $0x60] sm:$0xff]  ;;  %v1206_v26 = vld [vmem:[%s1403_s11 + $0x58] sm:$0xff]  ;;  %v1205_v28 = vld [vmem:[%s1403_s11 + $0x50] sm:$0xff] }
  0x43   : > { %v1196_v29 = vld [vmem:[%s1403_s11 + $0x8] sm:$0xff]  ;;  %v1195_v31 = vld [vmem:[%s1403_s11] sm:$0xff]  ;;  %v1055_v45 = vld [vmem:[%s1405_s12 + $0x10] sm:$0xf] }
  0x44   : > { %670 = vmatpush.bf16.msra.mxu0 %v1201_v19  ;;  %1212 = vmatpush.bf16.msra.mxu2 %v1201_v19  ;;  %v1204_v30 = vld [vmem:[%s1403_s11 + $0x48] sm:$0xff]  ;;  %v1203_v32 = vld [vmem:[%s1403_s11 + $0x40] sm:$0xff]  ;;  %v1182_v46 = vld [vmem:[%s1405_s12 + $0x14] sm:$0xf0] }
  0x45   : > { %719 = vmatpush.bf16.msra.mxu1 %v1209_v20  ;;  %1220 = vmatpush.bf16.msra.mxu3 %v1209_v20  ;;  %v1047_v33 = vld [vmem:[%s1405_s12] sm:$0xf]  ;;  %v1180_v34 = vld [vmem:[%s1405_s12 + $0x4] sm:$0xf0]  ;;  %v1179_v37 = vld [vmem:[%s1405_s12 + $0x4] sm:$0xf]  ;;  %v1056_v53 = vor.u32 %v1182_v46, %v1055_v45 }
  0x46   : > { %v1079_v35 = vld [vmem:[%s1405_s12 + $0x40] sm:$0xf]  ;;  %v1188_v36 = vld [vmem:[%s1405_s12 + $0x44] sm:$0xf0]  ;;  %v1049_v38 = vld [vmem:[%s1405_s12 + $0x8] sm:$0xf0]  ;;  %v1048_v41 = vor.u32 %v1180_v34, %v1047_v33 }
  0x47   : > { %v1187_v39 = vld [vmem:[%s1405_s12 + $0x44] sm:$0xf]  ;;  %v1081_v40 = vld [vmem:[%s1405_s12 + $0x48] sm:$0xf0]  ;;  %v1080_v42 = vor.u32 %v1188_v36, %v1079_v35  ;;  %v1052_v43 = vor.u32 %v1179_v37, %v1049_v38  ;;  %v1087_v47 = vld [vmem:[%s1405_s12 + $0x50] sm:$0xf] }
  0x48   : > { %671 = vmatpush.bf16.msra.mxu0 %v1200_v21  ;;  %1213 = vmatpush.bf16.msra.mxu2 %v1200_v21  ;;  %v1084_v44 = vor.u32 %v1187_v39, %v1081_v40  ;;  %v1190_v48 = vld [vmem:[%s1405_s12 + $0x54] sm:$0xf0]  ;;  %v1181_v49 = vld [vmem:[%s1405_s12 + $0x14] sm:$0xf]  ;;  %v1057_v50 = vld [vmem:[%s1405_s12 + $0x18] sm:$0xf0] }
  0x49   : > { %720 = vmatpush.bf16.msra.mxu1 %v1208_v22  ;;  %1221 = vmatpush.bf16.msra.mxu3 %v1208_v22  ;;  %v1189_v51 = vld [vmem:[%s1405_s12 + $0x54] sm:$0xf]  ;;  %v1089_v52 = vld [vmem:[%s1405_s12 + $0x58] sm:$0xf0]  ;;  %v1088_v54 = vor.u32 %v1190_v48, %v1087_v47  ;;  %v1060_v55 = vor.u32 %v1181_v49, %v1057_v50  ;;  %v1063_v57 = vld [vmem:[%s1405_s12 + $0x20] sm:$0xf] }
  0x4a   : > { %v1092_v56 = vor.u32 %v1189_v51, %v1089_v52  ;;  %v1184_v58 = vld [vmem:[%s1405_s12 + $0x24] sm:$0xf0]  ;;  %v1095_v59 = vld [vmem:[%s1405_s12 + $0x60] sm:$0xf]  ;;  %v1183_v61 = vld [vmem:[%s1405_s12 + $0x24] sm:$0xf] }
  0x4b   : > { %v1192_v60 = vld [vmem:[%s1405_s12 + $0x64] sm:$0xf0]  ;;  %v1065_v62 = vld [vmem:[%s1405_s12 + $0x28] sm:$0xf0]  ;;  %v1191_v63 = vld [vmem:[%s1405_s12 + $0x64] sm:$0xf]  ;;  %v1064_v1 = vor.u32 %v1184_v58, %v1063_v57 }
  0x4c   : > { %672 = vmatpush.bf16.msra.mxu0 %v1199_v23  ;;  %1214 = vmatpush.bf16.msra.mxu2 %v1199_v23  ;;  %v1097_v0 = vld [vmem:[%s1405_s12 + $0x68] sm:$0xf0]  ;;  %v1096_v2 = vor.u32 %v1192_v60, %v1095_v59  ;;  %v1068_v3 = vor.u32 %v1183_v61, %v1065_v62  ;;  %v1071_v5 = vld [vmem:[%s1405_s12 + $0x30] sm:$0xf]  ;;  %v1186_v6 = vld [vmem:[%s1405_s12 + $0x34] sm:$0xf0] }
  0x4d   : > { %721 = vmatpush.bf16.msra.mxu1 %v1207_v24  ;;  %1222 = vmatpush.bf16.msra.mxu3 %v1207_v24  ;;  %v1100_v4 = vor.u32 %v1191_v63, %v1097_v0  ;;  %v1103_v7 = vld [vmem:[%s1405_s12 + $0x70] sm:$0xf]  ;;  %v1194_v8 = vld [vmem:[%s1405_s12 + $0x74] sm:$0xf0]  ;;  %v1185_v9 = vld [vmem:[%s1405_s12 + $0x34] sm:$0xf]  ;;  %v1072_v13 = vor.u32 %v1186_v6, %v1071_v5 }
  0x4e   : > { %v1073_v10 = vld [vmem:[%s1405_s12 + $0x38] sm:$0xf0]  ;;  %v1193_v11 = vld [vmem:[%s1405_s12 + $0x74] sm:$0xf]  ;;  %v1104_v14 = vor.u32 %v1194_v8, %v1103_v7  ;;  %v437_v23 = vld [vmem:[#allocation2 + $0x40] sm:$0xff] }
  0x4f   : > { %v1105_v12 = vld [vmem:[%s1405_s12 + $0x78] sm:$0xf0]  ;;  %v1076_v15 = vor.u32 %v1185_v9, %v1073_v10  ;;  %v429_v18 = vld [vmem:[#allocation2 + $0x30] sm:$0xff]  ;;  %v438_v33 = vld [vmem:[#allocation2 + $0x20] sm:$0xff] }
  0x50   : > { %673 = vmatpush.bf16.msra.mxu0 %v1198_v25  ;;  %1215 = vmatpush.bf16.msra.mxu2 %v1198_v25  ;;  %v1108_v16 = vor.u32 %v1193_v11, %v1105_v12  ;;  %v431_v37 = vld [vmem:[#allocation2 + $0x58] sm:$0xff]  ;;  %v433_v57 = vld [vmem:[#allocation2 + $0x50] sm:$0xff]  ;;  %v441_v63 = vld [vmem:[#allocation2 + $0x60] sm:$0xff] }
  0x51   : > { %722 = vmatpush.bf16.msra.mxu1 %v1206_v26  ;;  %1223 = vmatpush.bf16.msra.mxu3 %v1206_v26  ;;  %v432_v47 = vld [vmem:[#allocation2 + $0x18] sm:$0xff]  ;;  %v442_v9 = vld [vmem:[#allocation2 + $0x70] sm:$0xff] }
  0x54   : > { %674 = vmatpush.bf16.msra.mxu0 %v1197_v27  ;;  %1216 = vmatpush.bf16.msra.mxu2 %v1197_v27  ;;  %v430_v27 = vld [vmem:[#allocation2] sm:$0xff] }
  0x55   : > { %723 = vmatpush.bf16.msra.mxu1 %v1205_v28  ;;  %1224 = vmatpush.bf16.msra.mxu3 %v1205_v28 }
  0x58   : > { %675 = vmatpush.bf16.msra.mxu0 %v1196_v29  ;;  %1217 = vmatpush.bf16.msra.mxu2 %v1196_v29 }
  0x59   : > { %724 = vmatpush.bf16.msra.mxu1 %v1204_v30  ;;  %1225 = vmatpush.bf16.msra.mxu3 %v1204_v30 }
  0x5c   : > { %676 = vmatpush.bf16.msra.mxu0 %v1195_v31  ;;  %1218 = vmatpush.bf16.msra.mxu2 %v1195_v31 }
  0x5d   : > { %725 = vmatpush.bf16.msra.mxu1 %v1203_v32  ;;  %1226 = vmatpush.bf16.msra.mxu3 %v1203_v32 }
  0x5f   : > { %677 = vmatmul.bf16.vlgmr.msra.gmra.mxu0 %v1048_v41  ;;  %697 = vmatmul.bf16.vlgmr.msra.gmra.mxu2 %v1080_v42 }
  0x60   : > { %726 = vmatmul.bf16.vlgmr.msra.gmra.mxu1 %v1052_v43  ;;  %746 = vmatmul.bf16.vlgmr.msra.gmra.mxu3 %v1084_v44  ;;  %v439_v43 = vld [vmem:[#allocation2 + $0x10] sm:$0xff] }
  0x6f   : > { %682 = vmatmul.bf16.gmra.mxu0 %v1056_v53  ;;  %702 = vmatmul.bf16.gmra.mxu2 %v1088_v54  ;;  %v440_v53 = vld [vmem:[#allocation2 + $0x38] sm:$0xff] }
  0x70   : > { %731 = vmatmul.bf16.gmra.mxu1 %v1060_v55  ;;  %751 = vmatmul.bf16.gmra.mxu3 %v1092_v56 }
  0x7f   : > { %687 = vmatmul.bf16.gmra.mxu0 %v1064_v1  ;;  %707 = vmatmul.bf16.gmra.mxu2 %v1096_v2 }
  0x80   : > { %736 = vmatmul.bf16.gmra.mxu1 %v1068_v3  ;;  %756 = vmatmul.bf16.gmra.mxu3 %v1100_v4  ;;  %v434_v3 = vld [vmem:[#allocation2 + $0x68] sm:$0xff] }
  0x8f   : > { %692 = vmatmul.bf16.gmra.mxu0 %v1072_v13  ;;  %712 = vmatmul.bf16.gmra.mxu2 %v1104_v14  ;;  %v435_v13 = vld [vmem:[#allocation2 + $0x8] sm:$0xff] }
  0x90   : > { %741 = vmatmul.bf16.gmra.mxu1 %v1076_v15  ;;  %761 = vmatmul.bf16.gmra.mxu3 %v1108_v16 }
  0xdc   : > { %v678_v17 = vpop.f32.mrf.mxu0 }
  0xdd   : > { %v727_v19 = vpop.f32.mrf.mxu1 }
  0xde   : > { %v728_v20 = vadd.f32 %v727_v19, %v678_v17  ;;  %v443_v19 = vld [vmem:[#allocation2 + $0x78] sm:$0xff] }
  0xe0   : > { %v767_v21 = vadd.f32 %v728_v20, %v429_v18 }
  0xe2   : > { %783 = vst [vmem:[#allocation2 + $0x30] sm:$0xff] %v767_v21  ;;  %v698_v22 = vpop.f32.mrf.mxu2 }
  0xe3   : > { %v747_v24 = vpop.f32.mrf.mxu3 }
  0xe4   : > { %v748_v25 = vadd.f32 %v747_v24, %v698_v22  ;;  %v680_v26 = vpop.f32.mrf.mxu0 }
  0xe5   : > { %v729_v28 = vpop.f32.mrf.mxu1 }
  0xe6   : > { %v775_v29 = vadd.f32 %v748_v25, %v437_v23  ;;  %v730_v30 = vadd.f32 %v729_v28, %v680_v26  ;;  %v436_v23 = vld [vmem:[#allocation2 + $0x48] sm:$0xff] }
  0xe8   : > { %791 = vst [vmem:[#allocation2 + $0x40] sm:$0xff] %v775_v29  ;;  %v768_v31 = vadd.f32 %v730_v30, %v430_v27  ;;  %v444_v29 = vld [vmem:[#allocation2 + $0x28] sm:$0xff] }
  0xea   : > { %784 = vst [vmem:[#allocation2] sm:$0xff] %v768_v31  ;;  %v700_v32 = vpop.f32.mrf.mxu2 }
  0xeb   : > { %v749_v34 = vpop.f32.mrf.mxu3 }
  0xec   : > { %v750_v35 = vadd.f32 %v749_v34, %v700_v32  ;;  %v683_v36 = vpop.f32.mrf.mxu0 }
  0xed   : > { %v732_v38 = vpop.f32.mrf.mxu1 }
  0xee   : > { %v776_v39 = vadd.f32 %v750_v35, %v438_v33  ;;  %v733_v40 = vadd.f32 %v732_v38, %v683_v36 }
  0xf0   : > { %792 = vst [vmem:[#allocation2 + $0x20] sm:$0xff] %v776_v39  ;;  %v769_v41 = vadd.f32 %v733_v40, %v431_v37 }
  0xf2   : > { %785 = vst [vmem:[#allocation2 + $0x58] sm:$0xff] %v769_v41  ;;  %v703_v42 = vpop.f32.mrf.mxu2 }
  0xf3   : > { %v752_v44 = vpop.f32.mrf.mxu3 }
  0xf4   : > { %v753_v45 = vadd.f32 %v752_v44, %v703_v42  ;;  %v685_v46 = vpop.f32.mrf.mxu0 }
  0xf5   : > { %v734_v48 = vpop.f32.mrf.mxu1 }
  0xf6   : > { %v777_v49 = vadd.f32 %v753_v45, %v439_v43  ;;  %v735_v50 = vadd.f32 %v734_v48, %v685_v46 }
  0xf8   : > { %793 = vst [vmem:[#allocation2 + $0x10] sm:$0xff] %v777_v49  ;;  %v770_v51 = vadd.f32 %v735_v50, %v432_v47 }
  0xfa   : > { %786 = vst [vmem:[#allocation2 + $0x18] sm:$0xff] %v770_v51  ;;  %v705_v52 = vpop.f32.mrf.mxu2 }
  0xfb   : > { %v754_v54 = vpop.f32.mrf.mxu3 }
  0xfc   : > { %v755_v55 = vadd.f32 %v754_v54, %v705_v52  ;;  %v688_v56 = vpop.f32.mrf.mxu0 }
  0xfd   : > { %v737_v58 = vpop.f32.mrf.mxu1 }
  0xfe   : > { %v778_v59 = vadd.f32 %v755_v55, %v440_v53  ;;  %v738_v60 = vadd.f32 %v737_v58, %v688_v56 }
 0x100   : > { %794 = vst [vmem:[#allocation2 + $0x38] sm:$0xff] %v778_v59  ;;  %v771_v61 = vadd.f32 %v738_v60, %v433_v57 }
 0x102   : > { %787 = vst [vmem:[#allocation2 + $0x50] sm:$0xff] %v771_v61  ;;  %v708_v62 = vpop.f32.mrf.mxu2 }
 0x103   : > { %v757_v0 = vpop.f32.mrf.mxu3 }
 0x104   : > { %v758_v1 = vadd.f32 %v757_v0, %v708_v62  ;;  %v690_v2 = vpop.f32.mrf.mxu0 }
 0x105   : > { %v739_v4 = vpop.f32.mrf.mxu1 }
 0x106   : > { %v779_v5 = vadd.f32 %v758_v1, %v441_v63  ;;  %v740_v6 = vadd.f32 %v739_v4, %v690_v2 }
 0x108   : > { %795 = vst [vmem:[#allocation2 + $0x60] sm:$0xff] %v779_v5  ;;  %v772_v7 = vadd.f32 %v740_v6, %v434_v3 }
 0x10a   : > { %788 = vst [vmem:[#allocation2 + $0x68] sm:$0xff] %v772_v7  ;;  %v710_v8 = vpop.f32.mrf.mxu2 }
 0x10b   : > { %v759_v10 = vpop.f32.mrf.mxu3 }
 0x10c   : > { %v760_v11 = vadd.f32 %v759_v10, %v710_v8  ;;  %v693_v12 = vpop.f32.mrf.mxu0 }
 0x10d   : > { %v742_v14 = vpop.f32.mrf.mxu1 }
 0x10e   : > { %v780_v15 = vadd.f32 %v760_v11, %v442_v9  ;;  %v743_v16 = vadd.f32 %v742_v14, %v693_v12 }
 0x110   : > { %796 = vst [vmem:[#allocation2 + $0x70] sm:$0xff] %v780_v15  ;;  %v773_v17 = vadd.f32 %v743_v16, %v435_v13 }
 0x112   : > { %789 = vst [vmem:[#allocation2 + $0x8] sm:$0xff] %v773_v17  ;;  %v713_v18 = vpop.f32.mrf.mxu2 }
 0x113   : > { %v762_v20 = vpop.f32.mrf.mxu3 }
 0x114   : > { %v763_v21 = vadd.f32 %v762_v20, %v713_v18  ;;  %v695_v22 = vpop.f32.mrf.mxu0 }
 0x115   : > { %v744_v24 = vpop.f32.mrf.mxu1 }
 0x116   : > { %v781_v25 = vadd.f32 %v763_v21, %v443_v19  ;;  %v745_v26 = vadd.f32 %v744_v24, %v695_v22 }
 0x118   : > { %797 = vst [vmem:[#allocation2 + $0x78] sm:$0xff] %v781_v25  ;;  %v774_v27 = vadd.f32 %v745_v26, %v436_v23 }
 0x11a   : > { %790 = vst [vmem:[#allocation2 + $0x48] sm:$0xff] %v774_v27  ;;  %v715_v28 = vpop.f32.mrf.mxu2 }
 0x11b   : > { %v764_v30 = vpop.f32.mrf.mxu3 }
 0x11c   : > { %v765_v31 = vadd.f32 %v764_v30, %v715_v28  ;;  %802 = sbr.rel (%p1173_p11) target bundleno = 312 (0x138), region = 82 }
 0x11e   : > { %v782_v32 = vadd.f32 %v765_v31, %v444_v29 }
 0x120   : > { %798 = vst [vmem:[#allocation2 + $0x28] sm:$0xff] %v782_v32 }
 0x121   : > { %v803_v33 = vld [vmem:[#allocation2 + $0x30] sm:$0xff]  ;;  %v1460_v34 = vld [vmem:[%s1591_s2] ss:$0 sm:$0xff]  ;;  %v840_v37 = vld [vmem:[%s1592_s3 + $0x8] sm:$0xff] }
 0x122   : > { %v839_v35 = vld [vmem:[%s1592_s3] sm:$0xff]  ;;  %v823_v38 = vadd.f32 %v1460_v34, %v803_v33  ;;  %v805_v40 = vld [vmem:[#allocation2 + $0x58] sm:$0xff]  ;;  %v841_v41 = vld [vmem:[%s1592_s3 + $0x10] sm:$0xff] }
 0x123   : > { %v804_v36 = vld [vmem:[#allocation2] sm:$0xff]  ;;  %v806_v42 = vld [vmem:[#allocation2 + $0x18] sm:$0xff]  ;;  %v825_v43 = vadd.f32 %v1460_v34, %v805_v40  ;;  %v807_v46 = vld [vmem:[#allocation2 + $0x50] sm:$0xff] }
 0x124   : > { %v824_v39 = vadd.f32 %v1460_v34, %v804_v36  ;;  %v826_v44 = vadd.f32 %v1460_v34, %v806_v42  ;;  %v842_v45 = vld [vmem:[%s1592_s3 + $0x18] sm:$0xff]  ;;  %v843_v47 = vld [vmem:[%s1592_s3 + $0x20] sm:$0xff]  ;;  %v855_v48 = vadd.f32 %v839_v35, %v823_v38  ;;  %v827_v50 = vadd.f32 %v1460_v34, %v807_v46  ;;  %v808_v51 = vld [vmem:[#allocation2 + $0x68] sm:$0xff] }
 0x125   : > { %v844_v52 = vld [vmem:[%s1592_s3 + $0x28] sm:$0xff]  ;;  %v857_v54 = vadd.f32 %v841_v41, %v825_v43  ;;  %v828_v56 = vadd.f32 %v1460_v34, %v808_v51  ;;  %v845_v58 = vld [vmem:[%s1592_s3 + $0x30] sm:$0xff]  ;;  %v846_v60 = vld [vmem:[%s1592_s3 + $0x38] sm:$0xff] }
 0x126   : > { %v856_v49 = vadd.f32 %v840_v37, %v824_v39  ;;  %v809_v53 = vld [vmem:[#allocation2 + $0x8] sm:$0xff]  ;;  %v858_v55 = vadd.f32 %v842_v45, %v826_v44  ;;  %v871_v61 = vmax.f32 %v855_v48, 0.0  ;;  %v859_v63 = vadd.f32 %v843_v47, %v827_v50  ;;  %v811_v1 = vld [vmem:[#allocation2 + $0x40] sm:$0xff]  ;;  %v813_v9 = vld [vmem:[#allocation2 + $0x10] sm:$0xff] }
 0x127   : > { %v829_v57 = vadd.f32 %v1460_v34, %v809_v53  ;;  %v810_v59 = vld [vmem:[#allocation2 + $0x48] sm:$0xff]  ;;  %v847_v2 = vld [vmem:[%s1592_s3 + $0x40] sm:$0xff]  ;;  %v873_v4 = vmax.f32 %v857_v54, 0.0  ;;  %v860_v6 = vadd.f32 %v844_v52, %v828_v56  ;;  %v849_v10 = vld [vmem:[%s1592_s3 + $0x50] sm:$0xff]  ;;  %v831_v13 = vadd.f32 %v1460_v34, %v811_v1 }
 0x128   : > { %v872_v62 = vmax.f32 %v856_v49, 0.0  ;;  %v830_v0 = vadd.f32 %v1460_v34, %v810_v59  ;;  %v812_v3 = vld [vmem:[#allocation2 + $0x20] sm:$0xff]  ;;  %v874_v5 = vmax.f32 %v858_v55, 0.0  ;;  %v848_v8 = vld [vmem:[%s1592_s3 + $0x48] sm:$0xff]  ;;  %887 = vst [vmem:[%s1593_s4] sm:$0xff] %v871_v61  ;;  %v875_v11 = vmax.f32 %v859_v63, 0.0  ;;  %v814_v15 = vld [vmem:[#allocation2 + $0x38] sm:$0xff] }
 0x129   : > { %v861_v7 = vadd.f32 %v845_v58, %v829_v57  ;;  %v832_v14 = vadd.f32 %v1460_v34, %v812_v3  ;;  %v850_v16 = vld [vmem:[%s1592_s3 + $0x58] sm:$0xff]  ;;  %v815_v17 = vld [vmem:[#allocation2 + $0x60] sm:$0xff]  ;;  %v876_v18 = vmax.f32 %v860_v6, 0.0  ;;  %v833_v20 = vadd.f32 %v1460_v34, %v813_v9  ;;  %v816_v23 = vld [vmem:[#allocation2 + $0x70] sm:$0xff]  ;;  %889 = vst [vmem:[%s1593_s4 + $0x10] sm:$0xff] %v873_v4 }
 0x12a   : > { %v862_v12 = vadd.f32 %v846_v60, %v830_v0  ;;  %888 = vst [vmem:[%s1593_s4 + $0x8] sm:$0xff] %v872_v62  ;;  %v834_v21 = vadd.f32 %v1460_v34, %v814_v15  ;;  %v851_v22 = vld [vmem:[%s1592_s3 + $0x60] sm:$0xff]  ;;  %v863_v25 = vadd.f32 %v847_v2, %v831_v13  ;;  %v835_v27 = vadd.f32 %v1460_v34, %v815_v17  ;;  %v852_v28 = vld [vmem:[%s1592_s3 + $0x68] sm:$0xff]  ;;  %v817_v29 = vld [vmem:[#allocation2 + $0x78] sm:$0xff] }
 0x12b   : > { %v877_v19 = vmax.f32 %v861_v7, 0.0  ;;  %v864_v26 = vadd.f32 %v848_v8, %v832_v14  ;;  %v818_v30 = vld [vmem:[#allocation2 + $0x28] sm:$0xff]  ;;  %890 = vst [vmem:[%s1593_s4 + $0x18] sm:$0xff] %v874_v5  ;;  %v865_v31 = vadd.f32 %v849_v10, %v833_v20  ;;  %v836_v33 = vadd.f32 %v1460_v34, %v816_v23  ;;  %v853_v36 = vld [vmem:[%s1592_s3 + $0x70] sm:$0xff]  ;;  %v854_v40 = vld [vmem:[%s1592_s3 + $0x78] sm:$0xff] }
 0x12c   : > { %v878_v24 = vmax.f32 %v862_v12, 0.0  ;;  %v866_v32 = vadd.f32 %v850_v16, %v834_v21  ;;  %v837_v35 = vadd.f32 %v1460_v34, %v817_v29  ;;  %891 = vst [vmem:[%s1593_s4 + $0x20] sm:$0xff] %v875_v11  ;;  %v879_v37 = vmax.f32 %v863_v25, 0.0 }
 0x12d   : > { %v867_v38 = vadd.f32 %v851_v22, %v835_v27  ;;  %v838_v39 = vadd.f32 %v1460_v34, %v818_v30  ;;  %892 = vst [vmem:[%s1593_s4 + $0x28] sm:$0xff] %v876_v18  ;;  %v880_v41 = vmax.f32 %v864_v26, 0.0  ;;  %v868_v42 = vadd.f32 %v852_v28, %v836_v33 }
 0x12e   : > { %893 = vst [vmem:[%s1593_s4 + $0x30] sm:$0xff] %v877_v19  ;;  %v881_v43 = vmax.f32 %v865_v31, 0.0  ;;  %v869_v44 = vadd.f32 %v853_v36, %v837_v35  ;;  %v882_v34 = vmax.f32 %v866_v32, 0.0 }
 0x12f   : > { %894 = vst [vmem:[%s1593_s4 + $0x38] sm:$0xff] %v878_v24  ;;  %v870_v45 = vadd.f32 %v854_v40, %v838_v39  ;;  %v883_v46 = vmax.f32 %v867_v38, 0.0  ;;  %v884_v47 = vmax.f32 %v868_v42, 0.0 }
 0x130   : > { %895 = vst [vmem:[%s1593_s4 + $0x40] sm:$0xff] %v879_v37  ;;  %v885_v48 = vmax.f32 %v869_v44, 0.0 }
 0x131   : > { %896 = vst [vmem:[%s1593_s4 + $0x48] sm:$0xff] %v880_v41  ;;  %v886_v49 = vmax.f32 %v870_v45, 0.0 }
 0x132   : > { %897 = vst [vmem:[%s1593_s4 + $0x50] sm:$0xff] %v881_v43 }
 0x133   : > { %898 = vst [vmem:[%s1593_s4 + $0x58] sm:$0xff] %v882_v34 }
 0x134   : > { %899 = vst [vmem:[%s1593_s4 + $0x60] sm:$0xff] %v883_v46 }
 0x135   : > { %900 = vst [vmem:[%s1593_s4 + $0x68] sm:$0xff] %v884_v47 }
 0x136   : > { %901 = vst [vmem:[%s1593_s4 + $0x70] sm:$0xff] %v885_v48 }
 0x137   : > { %902 = vst [vmem:[%s1593_s4 + $0x78] sm:$0xff] %v886_v49 }
 0x138 PF: > { %s14_s19 = sadd.s32 1, %s1307_s19   ;;  %s1594_s15 = smov %s1295_s16 }
 0x139   : > { %p11_p12 = scmp.ge.s32.totalorder %s14_s19, 5   ;;  %s1595_s16 = smov %s1370_s23 }
 0x13a   : > { %s1596_s17 = smov %s1303_s18  ;;  %s1597_s18 = smov %s1599_s20 }
 0x13b   :  { %13 = sbr.rel (!%p11_p12) target bundleno = 3 (0x3), region = 126 }

// kernel: bigram_resnet_forward.26
= control target key start
LH: loop header
LB: loop body
LE: loop exit
PB: predicated region body
PF: predicated region fallthrough
CT: control target
= control target key end

     0   :  { %s1219_s12 = smov 0   ;;  %s1221_s13 = smov 0   ;;  %s1407_s0 = inlined_call_operand.vmem [shape: bf16[128,768], index: 0, kind: input, shape index: {}]   ;;  %s1408_s1 = inlined_call_operand.vmem [shape: bf16[768,128], index: 1, kind: input, shape index: {}]   ;;  %s1409_s2 = inlined_call_operand.vmem [shape: f32[1,128], index: 2, kind: input, shape index: {}]   ;;  %s1410_s3 = inlined_call_operand.vmem [shape: f32[128,128], index: 3, kind: output, shape index: {}]  }
   0x1   :  { %s1223_s14 = smov 0   ;;  %s1225_s15 = smov 0  }
   0x2   :  { %s1227_s16 = smov 0  }
   0x3 LB: > { %s25_s17 = sadd.s32 1, %s1192_s15  ;;  %p48_p1 = scmp.ne.s32.totalorder %s1184_s13, %s1180_s12  ;;  %s1196_s16 = sphi %s1227_s16, %s13_s16   ;;  %s1192_s15 = sphi %s1225_s15, %s1414_s15   ;;  %s1188_s14 = sphi %s1223_s14, %s1413_s14   ;;  %s1184_s13 = sphi %s1221_s13, %s1412_s13   ;;  %s1180_s12 = sphi %s1219_s12, %s1411_s12  }
   0x4   : > { %p26_p0 = scmp.ge.s32.totalorder %s25_s17, 3  ;;  %p49_p2 = scmp.eq.s32.totalorder %s1196_s16, 0 }
   0x5   : > { %s41_s19 = sadd.s32 1, %s1184_s13  ;;  %p925_p5 = scmp.ge.s32.totalorder %s1196_s16, 3 }
   0x6   : > { %s1416_s17 = smov (%p26_p0, %s25_s17), 0  ;;  %p50_p3 = por %p49_p2, %p48_p1 }
   0x7   : > { %s37_s18 = ssub.s32 %s1192_s15, %s1416_s17  ;;  %162 = sbr.rel (%p925_p5) target bundleno = 32 (0x20), region = 20 }
   0x8   : > { %p39_p4 = scmp.eq.s32.totalorder %s37_s18, 0 }
   0xa   : > { %s1254_s20 = scalar_select %p39_p4, %s1184_s13, %s41_s19  }
   0xc   : > { %165 = sbr.rel (!%p50_p3) target bundleno = 32 (0x20), region = 24  ;;  %s167_s21 = sand.u32 (%p50_p3), 1, %s1184_s13  }
   0xd   : > { %s1067_s22 = sshll.u32 (%p50_p3), %s1192_s15, 3  ;;  %s926_s23 = sshll.u32 (%p50_p3), %s167_s21, 7 }
   0xe   : > { %s1262_s26 = scalar_lea.vmem (%p50_p3), %s1407_s0, %s1067_s22  ;;  %s169_s27 = scalar_lea.vmem (%p50_p3), [#allocation3], %s926_s23 }
   0xf   : > { %v234_v0 = vld [vmem:[%s1262_s26] sm:$0xff] (%p50_p3)  ;;  %v236_v1 = vld [vmem:[%s1262_s26 + $0x18] sm:$0xff] (%p50_p3)  ;;  %v238_v2 = vld [vmem:[%s1262_s26 + $0x30] sm:$0xff] (%p50_p3) }
  0x10   : > { %235 = vst [vmem:[%s169_s27] sm:$0xff] (%p50_p3), %v234_v0  ;;  %v240_v3 = vld [vmem:[%s1262_s26 + $0x48] sm:$0xff] (%p50_p3)  ;;  %v242_v4 = vld [vmem:[%s1262_s26 + $0x60] sm:$0xff] (%p50_p3)  ;;  %v244_v5 = vld [vmem:[%s1262_s26 + $0x78] sm:$0xff] (%p50_p3) }
  0x11   : > { %237 = vst [vmem:[%s169_s27 + $0x8] sm:$0xff] %v236_v1  ;;  %v246_v6 = vld [vmem:[%s1262_s26 + $0x90] sm:$0xff]  ;;  %v248_v7 = vld [vmem:[%s1262_s26 + $0xa8] sm:$0xff]  ;;  %v250_v8 = vld [vmem:[%s1262_s26 + $0xc0] sm:$0xff] }
  0x12   : > { %239 = vst [vmem:[%s169_s27 + $0x10] sm:$0xff] %v238_v2  ;;  %v252_v9 = vld [vmem:[%s1262_s26 + $0xd8] sm:$0xff]  ;;  %v254_v10 = vld [vmem:[%s1262_s26 + $0xf0] sm:$0xff]  ;;  %v256_v11 = vld [vmem:[%s1262_s26 + $0x108] sm:$0xff] }
  0x13   : > { %241 = vst [vmem:[%s169_s27 + $0x18] sm:$0xff] %v240_v3  ;;  %v258_v12 = vld [vmem:[%s1262_s26 + $0x120] sm:$0xff]  ;;  %v260_v13 = vld [vmem:[%s1262_s26 + $0x138] sm:$0xff]  ;;  %v262_v14 = vld [vmem:[%s1262_s26 + $0x150] sm:$0xff] }
  0x14   : > { %243 = vst [vmem:[%s169_s27 + $0x20] sm:$0xff] %v242_v4  ;;  %v264_v15 = vld [vmem:[%s1262_s26 + $0x168] sm:$0xff] }
  0x15   : > { %245 = vst [vmem:[%s169_s27 + $0x28] sm:$0xff] %v244_v5 }
  0x16   : > { %247 = vst [vmem:[%s169_s27 + $0x30] sm:$0xff] %v246_v6 }
  0x17   : > { %249 = vst [vmem:[%s169_s27 + $0x38] sm:$0xff] %v248_v7 }
  0x18   : > { %251 = vst [vmem:[%s169_s27 + $0x40] sm:$0xff] %v250_v8 }
  0x19   : > { %253 = vst [vmem:[%s169_s27 + $0x48] sm:$0xff] %v252_v9 }
  0x1a   : > { %255 = vst [vmem:[%s169_s27 + $0x50] sm:$0xff] %v254_v10 }
  0x1b   : > { %257 = vst [vmem:[%s169_s27 + $0x58] sm:$0xff] %v256_v11 }
  0x1c   : > { %259 = vst [vmem:[%s169_s27 + $0x60] sm:$0xff] %v258_v12 }
  0x1d   : > { %261 = vst [vmem:[%s169_s27 + $0x68] sm:$0xff] %v260_v13 }
  0x1e   : > { %263 = vst [vmem:[%s169_s27 + $0x70] sm:$0xff] %v262_v14 }
  0x1f   : > { %265 = vst [vmem:[%s169_s27 + $0x78] sm:$0xff] %v264_v15 }
  0x20 PF: > { %p929_p6 = scmp.ge.s32.totalorder %s1196_s16, 1  ;;  %p282_p7 = scmp.lt.s32.totalorder %s1196_s16, 4 }
  0x22   : > { %p283_p8 = pnand %p929_p6, %p282_p7 }
  0x23   : > { %s289_s28 = sand.u32 (!%p283_p8), 1, %s1180_s12   ;;  %s931_s29 = sshll.u32 (!%p283_p8), %s1188_s14, 5 }
  0x24   : > { %286 = sbr.rel (%p283_p8) target bundleno = 310 (0x136), region = 66  ;;  %s930_s30 = sshll.u32 (!%p283_p8), %s289_s28, 7 }
  0x25   : > { %p329_p9 = scmp.lt.s32.totalorder (!%p283_p8), %s931_s29, 95  ;;  %s1289_s8 = scalar_lea.vmem (!%p283_p8), [#allocation3], %s930_s30 }
  0x26   : > { %p933_p10 = scmp.ne.s32.totalorder (!%p283_p8), %s1188_s14, 0 }
  0x29   : > { %s1418_s29 = smov (!%p329_p9, %s931_s29), 95  ;;  %352 = sbr.rel (%p933_p10) target bundleno = 63 (0x3f), region = 74 }
  0x2a   : > { %s932_s4 = sshll.u32 %s1418_s29, 2 }
  0x2b   : > { %s1287_s7 = scalar_lea.vmem %s1408_s1, %s932_s4 }
  0x2e   : > { %v1198_v16 = vmov 0.0  }
  0x2f   : > { %353 = vst [vmem:[#allocation2 + $0x30] sm:$0xff] %v1198_v16 }
  0x30   : > { %354 = vst [vmem:[#allocation2] sm:$0xff] %v1198_v16 }
  0x31   : > { %355 = vst [vmem:[#allocation2 + $0x58] sm:$0xff] %v1198_v16 }
  0x32   : > { %356 = vst [vmem:[#allocation2 + $0x18] sm:$0xff] %v1198_v16 }
  0x33   : > { %357 = vst [vmem:[#allocation2 + $0x50] sm:$0xff] %v1198_v16 }
  0x34   : > { %358 = vst [vmem:[#allocation2 + $0x68] sm:$0xff] %v1198_v16 }
  0x35   : > { %359 = vst [vmem:[#allocation2 + $0x8] sm:$0xff] %v1198_v16 }
  0x36   : > { %360 = vst [vmem:[#allocation2 + $0x48] sm:$0xff] %v1198_v16 }
  0x37   : > { %361 = vst [vmem:[#allocation2 + $0x40] sm:$0xff] %v1198_v16 }
  0x38   : > { %362 = vst [vmem:[#allocation2 + $0x20] sm:$0xff] %v1198_v16 }
  0x39   : > { %363 = vst [vmem:[#allocation2 + $0x10] sm:$0xff] %v1198_v16 }
  0x3a   : > { %364 = vst [vmem:[#allocation2 + $0x38] sm:$0xff] %v1198_v16 }
  0x3b   : > { %365 = vst [vmem:[#allocation2 + $0x60] sm:$0xff] %v1198_v16 }
  0x3c   : > { %366 = vst [vmem:[#allocation2 + $0x70] sm:$0xff] %v1198_v16 }
  0x3d   : > { %367 = vst [vmem:[#allocation2 + $0x78] sm:$0xff] %v1198_v16 }
  0x3e   : > { %368 = vst [vmem:[#allocation2 + $0x28] sm:$0xff] %v1198_v16 }
  0x3f PF: > { %v1091_v17 = vld [vmem:[%s1287_s7 + $0x38] sm:$0xff]  ;;  %v1090_v19 = vld [vmem:[%s1287_s7 + $0x30] sm:$0xff]  ;;  %v1089_v21 = vld [vmem:[%s1287_s7 + $0x28] sm:$0xff]  ;;  %p1062_p11 = scmp.ne.s32.totalorder %s1188_s14, 2 }
  0x40   : > { %v1099_v18 = vld [vmem:[%s1287_s7 + $0x78] sm:$0xff]  ;;  %609 = vmatpush.bf16.msra.mxu0 %v1091_v17  ;;  %1100 = vmatpush.bf16.msra.mxu2 %v1091_v17  ;;  %v1098_v20 = vld [vmem:[%s1287_s7 + $0x70] sm:$0xff]  ;;  %v1097_v22 = vld [vmem:[%s1287_s7 + $0x68] sm:$0xff] }
  0x41   : > { %658 = vmatpush.bf16.msra.mxu1 %v1099_v18  ;;  %1108 = vmatpush.bf16.msra.mxu3 %v1099_v18  ;;  %v1088_v23 = vld [vmem:[%s1287_s7 + $0x20] sm:$0xff]  ;;  %v1087_v25 = vld [vmem:[%s1287_s7 + $0x18] sm:$0xff]  ;;  %v1086_v27 = vld [vmem:[%s1287_s7 + $0x10] sm:$0xff] }
  0x42   : > { %v1096_v24 = vld [vmem:[%s1287_s7 + $0x60] sm:$0xff]  ;;  %v1095_v26 = vld [vmem:[%s1287_s7 + $0x58] sm:$0xff]  ;;  %v1094_v28 = vld [vmem:[%s1287_s7 + $0x50] sm:$0xff] }
  0x43   : > { %v1085_v29 = vld [vmem:[%s1287_s7 + $0x8] sm:$0xff]  ;;  %v1084_v31 = vld [vmem:[%s1287_s7] sm:$0xff]  ;;  %v944_v45 = vld [vmem:[%s1289_s8 + $0x10] sm:$0xf] }
  0x44   : > { %610 = vmatpush.bf16.msra.mxu0 %v1090_v19  ;;  %1101 = vmatpush.bf16.msra.mxu2 %v1090_v19  ;;  %v1093_v30 = vld [vmem:[%s1287_s7 + $0x48] sm:$0xff]  ;;  %v1092_v32 = vld [vmem:[%s1287_s7 + $0x40] sm:$0xff]  ;;  %v1071_v46 = vld [vmem:[%s1289_s8 + $0x14] sm:$0xf0] }
  0x45   : > { %659 = vmatpush.bf16.msra.mxu1 %v1098_v20  ;;  %1109 = vmatpush.bf16.msra.mxu3 %v1098_v20  ;;  %v936_v33 = vld [vmem:[%s1289_s8] sm:$0xf]  ;;  %v1069_v34 = vld [vmem:[%s1289_s8 + $0x4] sm:$0xf0]  ;;  %v1068_v37 = vld [vmem:[%s1289_s8 + $0x4] sm:$0xf]  ;;  %v945_v53 = vor.u32 %v1071_v46, %v944_v45 }
  0x46   : > { %v968_v35 = vld [vmem:[%s1289_s8 + $0x40] sm:$0xf]  ;;  %v1077_v36 = vld [vmem:[%s1289_s8 + $0x44] sm:$0xf0]  ;;  %v938_v38 = vld [vmem:[%s1289_s8 + $0x8] sm:$0xf0]  ;;  %v937_v41 = vor.u32 %v1069_v34, %v936_v33 }
  0x47   : > { %v1076_v39 = vld [vmem:[%s1289_s8 + $0x44] sm:$0xf]  ;;  %v970_v40 = vld [vmem:[%s1289_s8 + $0x48] sm:$0xf0]  ;;  %v969_v42 = vor.u32 %v1077_v36, %v968_v35  ;;  %v941_v43 = vor.u32 %v1068_v37, %v938_v38  ;;  %v976_v47 = vld [vmem:[%s1289_s8 + $0x50] sm:$0xf] }
  0x48   : > { %611 = vmatpush.bf16.msra.mxu0 %v1089_v21  ;;  %1102 = vmatpush.bf16.msra.mxu2 %v1089_v21  ;;  %v973_v44 = vor.u32 %v1076_v39, %v970_v40  ;;  %v1079_v48 = vld [vmem:[%s1289_s8 + $0x54] sm:$0xf0]  ;;  %v1070_v49 = vld [vmem:[%s1289_s8 + $0x14] sm:$0xf]  ;;  %v946_v50 = vld [vmem:[%s1289_s8 + $0x18] sm:$0xf0] }
  0x49   : > { %660 = vmatpush.bf16.msra.mxu1 %v1097_v22  ;;  %1110 = vmatpush.bf16.msra.mxu3 %v1097_v22  ;;  %v1078_v51 = vld [vmem:[%s1289_s8 + $0x54] sm:$0xf]  ;;  %v978_v52 = vld [vmem:[%s1289_s8 + $0x58] sm:$0xf0]  ;;  %v977_v54 = vor.u32 %v1079_v48, %v976_v47  ;;  %v949_v55 = vor.u32 %v1070_v49, %v946_v50  ;;  %v952_v57 = vld [vmem:[%s1289_s8 + $0x20] sm:$0xf] }
  0x4a   : > { %v981_v56 = vor.u32 %v1078_v51, %v978_v52  ;;  %v1073_v58 = vld [vmem:[%s1289_s8 + $0x24] sm:$0xf0]  ;;  %v984_v59 = vld [vmem:[%s1289_s8 + $0x60] sm:$0xf]  ;;  %v1072_v61 = vld [vmem:[%s1289_s8 + $0x24] sm:$0xf] }
  0x4b   : > { %v1081_v60 = vld [vmem:[%s1289_s8 + $0x64] sm:$0xf0]  ;;  %v954_v62 = vld [vmem:[%s1289_s8 + $0x28] sm:$0xf0]  ;;  %v1080_v63 = vld [vmem:[%s1289_s8 + $0x64] sm:$0xf]  ;;  %v953_v1 = vor.u32 %v1073_v58, %v952_v57 }
  0x4c   : > { %612 = vmatpush.bf16.msra.mxu0 %v1088_v23  ;;  %1103 = vmatpush.bf16.msra.mxu2 %v1088_v23  ;;  %v986_v0 = vld [vmem:[%s1289_s8 + $0x68] sm:$0xf0]  ;;  %v985_v2 = vor.u32 %v1081_v60, %v984_v59  ;;  %v957_v3 = vor.u32 %v1072_v61, %v954_v62  ;;  %v960_v5 = vld [vmem:[%s1289_s8 + $0x30] sm:$0xf]  ;;  %v1075_v6 = vld [vmem:[%s1289_s8 + $0x34] sm:$0xf0] }
  0x4d   : > { %661 = vmatpush.bf16.msra.mxu1 %v1096_v24  ;;  %1111 = vmatpush.bf16.msra.mxu3 %v1096_v24  ;;  %v989_v4 = vor.u32 %v1080_v63, %v986_v0  ;;  %v992_v7 = vld [vmem:[%s1289_s8 + $0x70] sm:$0xf]  ;;  %v1083_v8 = vld [vmem:[%s1289_s8 + $0x74] sm:$0xf0]  ;;  %v1074_v9 = vld [vmem:[%s1289_s8 + $0x34] sm:$0xf]  ;;  %v961_v13 = vor.u32 %v1075_v6, %v960_v5 }
  0x4e   : > { %v962_v10 = vld [vmem:[%s1289_s8 + $0x38] sm:$0xf0]  ;;  %v1082_v11 = vld [vmem:[%s1289_s8 + $0x74] sm:$0xf]  ;;  %v993_v14 = vor.u32 %v1083_v8, %v992_v7  ;;  %v377_v23 = vld [vmem:[#allocation2 + $0x40] sm:$0xff] }
  0x4f   : > { %v994_v12 = vld [vmem:[%s1289_s8 + $0x78] sm:$0xf0]  ;;  %v965_v15 = vor.u32 %v1074_v9, %v962_v10  ;;  %v369_v18 = vld [vmem:[#allocation2 + $0x30] sm:$0xff]  ;;  %v378_v33 = vld [vmem:[#allocation2 + $0x20] sm:$0xff] }
  0x50   : > { %613 = vmatpush.bf16.msra.mxu0 %v1087_v25  ;;  %1104 = vmatpush.bf16.msra.mxu2 %v1087_v25  ;;  %v997_v16 = vor.u32 %v1082_v11, %v994_v12  ;;  %v371_v37 = vld [vmem:[#allocation2 + $0x58] sm:$0xff]  ;;  %v373_v57 = vld [vmem:[#allocation2 + $0x50] sm:$0xff]  ;;  %v381_v63 = vld [vmem:[#allocation2 + $0x60] sm:$0xff] }
  0x51   : > { %662 = vmatpush.bf16.msra.mxu1 %v1095_v26  ;;  %1112 = vmatpush.bf16.msra.mxu3 %v1095_v26  ;;  %v372_v47 = vld [vmem:[#allocation2 + $0x18] sm:$0xff]  ;;  %v382_v9 = vld [vmem:[#allocation2 + $0x70] sm:$0xff] }
  0x54   : > { %614 = vmatpush.bf16.msra.mxu0 %v1086_v27  ;;  %1105 = vmatpush.bf16.msra.mxu2 %v1086_v27  ;;  %v370_v27 = vld [vmem:[#allocation2] sm:$0xff] }
  0x55   : > { %663 = vmatpush.bf16.msra.mxu1 %v1094_v28  ;;  %1113 = vmatpush.bf16.msra.mxu3 %v1094_v28 }
  0x58   : > { %615 = vmatpush.bf16.msra.mxu0 %v1085_v29  ;;  %1106 = vmatpush.bf16.msra.mxu2 %v1085_v29 }
  0x59   : > { %664 = vmatpush.bf16.msra.mxu1 %v1093_v30  ;;  %1114 = vmatpush.bf16.msra.mxu3 %v1093_v30 }
  0x5c   : > { %616 = vmatpush.bf16.msra.mxu0 %v1084_v31  ;;  %1107 = vmatpush.bf16.msra.mxu2 %v1084_v31 }
  0x5d   : > { %665 = vmatpush.bf16.msra.mxu1 %v1092_v32  ;;  %1115 = vmatpush.bf16.msra.mxu3 %v1092_v32 }
  0x5f   : > { %617 = vmatmul.bf16.vlgmr.msra.gmra.mxu0 %v937_v41  ;;  %637 = vmatmul.bf16.vlgmr.msra.gmra.mxu2 %v969_v42 }
  0x60   : > { %666 = vmatmul.bf16.vlgmr.msra.gmra.mxu1 %v941_v43  ;;  %686 = vmatmul.bf16.vlgmr.msra.gmra.mxu3 %v973_v44  ;;  %v379_v43 = vld [vmem:[#allocation2 + $0x10] sm:$0xff] }
  0x6f   : > { %622 = vmatmul.bf16.gmra.mxu0 %v945_v53  ;;  %642 = vmatmul.bf16.gmra.mxu2 %v977_v54  ;;  %v380_v53 = vld [vmem:[#allocation2 + $0x38] sm:$0xff] }
  0x70   : > { %671 = vmatmul.bf16.gmra.mxu1 %v949_v55  ;;  %691 = vmatmul.bf16.gmra.mxu3 %v981_v56 }
  0x7f   : > { %627 = vmatmul.bf16.gmra.mxu0 %v953_v1  ;;  %647 = vmatmul.bf16.gmra.mxu2 %v985_v2 }
  0x80   : > { %676 = vmatmul.bf16.gmra.mxu1 %v957_v3  ;;  %696 = vmatmul.bf16.gmra.mxu3 %v989_v4  ;;  %v374_v3 = vld [vmem:[#allocation2 + $0x68] sm:$0xff] }
  0x8f   : > { %632 = vmatmul.bf16.gmra.mxu0 %v961_v13  ;;  %652 = vmatmul.bf16.gmra.mxu2 %v993_v14  ;;  %v375_v13 = vld [vmem:[#allocation2 + $0x8] sm:$0xff] }
  0x90   : > { %681 = vmatmul.bf16.gmra.mxu1 %v965_v15  ;;  %701 = vmatmul.bf16.gmra.mxu3 %v997_v16 }
  0xdc   : > { %v618_v17 = vpop.f32.mrf.mxu0 }
  0xdd   : > { %v667_v19 = vpop.f32.mrf.mxu1 }
  0xde   : > { %v668_v20 = vadd.f32 %v667_v19, %v618_v17  ;;  %v383_v19 = vld [vmem:[#allocation2 + $0x78] sm:$0xff] }
  0xe0   : > { %v707_v21 = vadd.f32 %v668_v20, %v369_v18 }
  0xe2   : > { %723 = vst [vmem:[#allocation2 + $0x30] sm:$0xff] %v707_v21  ;;  %v638_v22 = vpop.f32.mrf.mxu2 }
  0xe3   : > { %v687_v24 = vpop.f32.mrf.mxu3 }
  0xe4   : > { %v688_v25 = vadd.f32 %v687_v24, %v638_v22  ;;  %v620_v26 = vpop.f32.mrf.mxu0 }
  0xe5   : > { %v669_v28 = vpop.f32.mrf.mxu1 }
  0xe6   : > { %v715_v29 = vadd.f32 %v688_v25, %v377_v23  ;;  %v670_v30 = vadd.f32 %v669_v28, %v620_v26  ;;  %v376_v23 = vld [vmem:[#allocation2 + $0x48] sm:$0xff] }
  0xe8   : > { %731 = vst [vmem:[#allocation2 + $0x40] sm:$0xff] %v715_v29  ;;  %v708_v31 = vadd.f32 %v670_v30, %v370_v27  ;;  %v384_v29 = vld [vmem:[#allocation2 + $0x28] sm:$0xff] }
  0xea   : > { %724 = vst [vmem:[#allocation2] sm:$0xff] %v708_v31  ;;  %v640_v32 = vpop.f32.mrf.mxu2 }
  0xeb   : > { %v689_v34 = vpop.f32.mrf.mxu3 }
  0xec   : > { %v690_v35 = vadd.f32 %v689_v34, %v640_v32  ;;  %v623_v36 = vpop.f32.mrf.mxu0 }
  0xed   : > { %v672_v38 = vpop.f32.mrf.mxu1 }
  0xee   : > { %v716_v39 = vadd.f32 %v690_v35, %v378_v33  ;;  %v673_v40 = vadd.f32 %v672_v38, %v623_v36 }
  0xf0   : > { %732 = vst [vmem:[#allocation2 + $0x20] sm:$0xff] %v716_v39  ;;  %v709_v41 = vadd.f32 %v673_v40, %v371_v37 }
  0xf2   : > { %725 = vst [vmem:[#allocation2 + $0x58] sm:$0xff] %v709_v41  ;;  %v643_v42 = vpop.f32.mrf.mxu2 }
  0xf3   : > { %v692_v44 = vpop.f32.mrf.mxu3 }
  0xf4   : > { %v693_v45 = vadd.f32 %v692_v44, %v643_v42  ;;  %v625_v46 = vpop.f32.mrf.mxu0 }
  0xf5   : > { %v674_v48 = vpop.f32.mrf.mxu1 }
  0xf6   : > { %v717_v49 = vadd.f32 %v693_v45, %v379_v43  ;;  %v675_v50 = vadd.f32 %v674_v48, %v625_v46 }
  0xf8   : > { %733 = vst [vmem:[#allocation2 + $0x10] sm:$0xff] %v717_v49  ;;  %v710_v51 = vadd.f32 %v675_v50, %v372_v47 }
  0xfa   : > { %726 = vst [vmem:[#allocation2 + $0x18] sm:$0xff] %v710_v51  ;;  %v645_v52 = vpop.f32.mrf.mxu2 }
  0xfb   : > { %v694_v54 = vpop.f32.mrf.mxu3 }
  0xfc   : > { %v695_v55 = vadd.f32 %v694_v54, %v645_v52  ;;  %v628_v56 = vpop.f32.mrf.mxu0 }
  0xfd   : > { %v677_v58 = vpop.f32.mrf.mxu1 }
  0xfe   : > { %v718_v59 = vadd.f32 %v695_v55, %v380_v53  ;;  %v678_v60 = vadd.f32 %v677_v58, %v628_v56 }
 0x100   : > { %734 = vst [vmem:[#allocation2 + $0x38] sm:$0xff] %v718_v59  ;;  %v711_v61 = vadd.f32 %v678_v60, %v373_v57 }
 0x102   : > { %727 = vst [vmem:[#allocation2 + $0x50] sm:$0xff] %v711_v61  ;;  %v648_v62 = vpop.f32.mrf.mxu2 }
 0x103   : > { %v697_v0 = vpop.f32.mrf.mxu3 }
 0x104   : > { %v698_v1 = vadd.f32 %v697_v0, %v648_v62  ;;  %v630_v2 = vpop.f32.mrf.mxu0 }
 0x105   : > { %v679_v4 = vpop.f32.mrf.mxu1 }
 0x106   : > { %v719_v5 = vadd.f32 %v698_v1, %v381_v63  ;;  %v680_v6 = vadd.f32 %v679_v4, %v630_v2 }
 0x108   : > { %735 = vst [vmem:[#allocation2 + $0x60] sm:$0xff] %v719_v5  ;;  %v712_v7 = vadd.f32 %v680_v6, %v374_v3 }
 0x10a   : > { %728 = vst [vmem:[#allocation2 + $0x68] sm:$0xff] %v712_v7  ;;  %v650_v8 = vpop.f32.mrf.mxu2 }
 0x10b   : > { %v699_v10 = vpop.f32.mrf.mxu3 }
 0x10c   : > { %v700_v11 = vadd.f32 %v699_v10, %v650_v8  ;;  %v633_v12 = vpop.f32.mrf.mxu0 }
 0x10d   : > { %v682_v14 = vpop.f32.mrf.mxu1 }
 0x10e   : > { %v720_v15 = vadd.f32 %v700_v11, %v382_v9  ;;  %v683_v16 = vadd.f32 %v682_v14, %v633_v12 }
 0x110   : > { %736 = vst [vmem:[#allocation2 + $0x70] sm:$0xff] %v720_v15  ;;  %v713_v17 = vadd.f32 %v683_v16, %v375_v13 }
 0x112   : > { %729 = vst [vmem:[#allocation2 + $0x8] sm:$0xff] %v713_v17  ;;  %v653_v18 = vpop.f32.mrf.mxu2 }
 0x113   : > { %v702_v20 = vpop.f32.mrf.mxu3 }
 0x114   : > { %v703_v21 = vadd.f32 %v702_v20, %v653_v18  ;;  %v635_v22 = vpop.f32.mrf.mxu0 }
 0x115   : > { %v684_v24 = vpop.f32.mrf.mxu1 }
 0x116   : > { %v721_v25 = vadd.f32 %v703_v21, %v383_v19  ;;  %v685_v26 = vadd.f32 %v684_v24, %v635_v22 }
 0x118   : > { %737 = vst [vmem:[#allocation2 + $0x78] sm:$0xff] %v721_v25  ;;  %v714_v27 = vadd.f32 %v685_v26, %v376_v23 }
 0x11a   : > { %730 = vst [vmem:[#allocation2 + $0x48] sm:$0xff] %v714_v27  ;;  %v655_v28 = vpop.f32.mrf.mxu2 }
 0x11b   : > { %v704_v30 = vpop.f32.mrf.mxu3 }
 0x11c   : > { %v705_v31 = vadd.f32 %v704_v30, %v655_v28  ;;  %742 = sbr.rel (%p1062_p11) target bundleno = 310 (0x136), region = 78 }
 0x11e   : > { %v722_v32 = vadd.f32 %v705_v31, %v384_v29 }
 0x120   : > { %738 = vst [vmem:[#allocation2 + $0x28] sm:$0xff] %v722_v32 }
 0x121   : > { %v743_v33 = vld [vmem:[#allocation2 + $0x30] sm:$0xff]  ;;  %v1157_v34 = vld [vmem:[%s1409_s2] ss:$0 sm:$0xff]  ;;  %v745_v36 = vld [vmem:[#allocation2 + $0x58] sm:$0xff] }
 0x122   : > { %v744_v35 = vld [vmem:[#allocation2] sm:$0xff]  ;;  %v746_v37 = vld [vmem:[#allocation2 + $0x18] sm:$0xff]  ;;  %v763_v38 = vadd.f32 %v1157_v34, %v743_v33  ;;  %v765_v40 = vadd.f32 %v1157_v34, %v745_v36  ;;  %v747_v42 = vld [vmem:[#allocation2 + $0x50] sm:$0xff] }
 0x123   : > { %v764_v39 = vadd.f32 %v1157_v34, %v744_v35  ;;  %v766_v41 = vadd.f32 %v1157_v34, %v746_v37  ;;  %v748_v43 = vld [vmem:[#allocation2 + $0x68] sm:$0xff]  ;;  %v767_v45 = vadd.f32 %v1157_v34, %v747_v42  ;;  %v751_v48 = vld [vmem:[#allocation2 + $0x40] sm:$0xff]  ;;  %v753_v56 = vld [vmem:[#allocation2 + $0x10] sm:$0xff] }
 0x124   : > { %v749_v44 = vld [vmem:[#allocation2 + $0x8] sm:$0xff]  ;;  %v768_v46 = vadd.f32 %v1157_v34, %v748_v43  ;;  %v779_v49 = vmax.f32 %v763_v38, 0.0  ;;  %v781_v51 = vmax.f32 %v765_v40, 0.0  ;;  %v752_v53 = vld [vmem:[#allocation2 + $0x20] sm:$0xff]  ;;  %v771_v58 = vadd.f32 %v1157_v34, %v751_v48  ;;  %v754_v59 = vld [vmem:[#allocation2 + $0x38] sm:$0xff] }
 0x125   : > { %v750_v47 = vld [vmem:[#allocation2 + $0x48] sm:$0xff]  ;;  %v780_v50 = vmax.f32 %v764_v39, 0.0  ;;  %v769_v52 = vadd.f32 %v1157_v34, %v749_v44  ;;  %v782_v54 = vmax.f32 %v766_v41, 0.0  ;;  %v783_v57 = vmax.f32 %v767_v45, 0.0  ;;  %v755_v62 = vld [vmem:[#allocation2 + $0x60] sm:$0xff]  ;;  %v756_v1 = vld [vmem:[#allocation2 + $0x70] sm:$0xff] }
 0x126   : > { %v770_v55 = vadd.f32 %v1157_v34, %v750_v47  ;;  %795 = vst [vmem:[%s1410_s3] sm:$0xff] %v779_v49  ;;  %v784_v60 = vmax.f32 %v768_v46, 0.0  ;;  %v772_v61 = vadd.f32 %v1157_v34, %v752_v53  ;;  %v773_v0 = vadd.f32 %v1157_v34, %v753_v56  ;;  %v757_v4 = vld [vmem:[#allocation2 + $0x78] sm:$0xff] }
 0x127   : > { %796 = vst [vmem:[%s1410_s3 + $0x8] sm:$0xff] %v780_v50  ;;  %v785_v63 = vmax.f32 %v769_v52, 0.0  ;;  %v774_v3 = vadd.f32 %v1157_v34, %v754_v59  ;;  %v787_v5 = vmax.f32 %v771_v58, 0.0  ;;  %v775_v6 = vadd.f32 %v1157_v34, %v755_v62  ;;  %v758_v7 = vld [vmem:[#allocation2 + $0x28] sm:$0xff] }
 0x128   : > { %797 = vst [vmem:[%s1410_s3 + $0x10] sm:$0xff] %v781_v51  ;;  %v786_v2 = vmax.f32 %v770_v55, 0.0  ;;  %v788_v8 = vmax.f32 %v772_v61, 0.0  ;;  %v776_v9 = vadd.f32 %v1157_v34, %v756_v1  ;;  %v789_v10 = vmax.f32 %v773_v0, 0.0 }
 0x129   : > { %798 = vst [vmem:[%s1410_s3 + $0x18] sm:$0xff] %v782_v54  ;;  %v777_v11 = vadd.f32 %v1157_v34, %v757_v4  ;;  %v790_v12 = vmax.f32 %v774_v3, 0.0  ;;  %v778_v13 = vadd.f32 %v1157_v34, %v758_v7  ;;  %v791_v14 = vmax.f32 %v775_v6, 0.0 }
 0x12a   : > { %799 = vst [vmem:[%s1410_s3 + $0x20] sm:$0xff] %v783_v57  ;;  %v792_v15 = vmax.f32 %v776_v9, 0.0 }
 0x12b   : > { %800 = vst [vmem:[%s1410_s3 + $0x28] sm:$0xff] %v784_v60  ;;  %v793_v16 = vmax.f32 %v777_v11, 0.0  ;;  %v794_v17 = vmax.f32 %v778_v13, 0.0 }
 0x12c   : > { %801 = vst [vmem:[%s1410_s3 + $0x30] sm:$0xff] %v785_v63 }
 0x12d   : > { %802 = vst [vmem:[%s1410_s3 + $0x38] sm:$0xff] %v786_v2 }
 0x12e   : > { %803 = vst [vmem:[%s1410_s3 + $0x40] sm:$0xff] %v787_v5 }
 0x12f   : > { %804 = vst [vmem:[%s1410_s3 + $0x48] sm:$0xff] %v788_v8 }
 0x130   : > { %805 = vst [vmem:[%s1410_s3 + $0x50] sm:$0xff] %v789_v10 }
 0x131   : > { %806 = vst [vmem:[%s1410_s3 + $0x58] sm:$0xff] %v790_v12 }
 0x132   : > { %807 = vst [vmem:[%s1410_s3 + $0x60] sm:$0xff] %v791_v14 }
 0x133   : > { %808 = vst [vmem:[%s1410_s3 + $0x68] sm:$0xff] %v792_v15 }
 0x134   : > { %809 = vst [vmem:[%s1410_s3 + $0x70] sm:$0xff] %v793_v16 }
 0x135   : > { %810 = vst [vmem:[%s1410_s3 + $0x78] sm:$0xff] %v794_v17 }
 0x136 PF: > { %s13_s16 = sadd.s32 1, %s1196_s16   ;;  %s1411_s12 = smov %s1184_s13 }
 0x137   : > { %p10_p12 = scmp.ge.s32.totalorder %s13_s16, 5   ;;  %s1412_s13 = smov %s1254_s20 }
 0x138   : > { %s1413_s14 = smov %s1192_s15  ;;  %s1414_s15 = smov %s1416_s17 }
 0x139   :  { %12 = sbr.rel (!%p10_p12) target bundleno = 3 (0x3), region = 119 }

// kernel: bigram_resnet_forward.31
= control target key start
LH: loop header
LB: loop body
LE: loop exit
PB: predicated region body
PF: predicated region fallthrough
CT: control target
= control target key end

     0   :  { %s883_s12 = smov 0   ;;  %s885_s13 = smov 0   ;;  %s993_s0 = inlined_call_operand.vmem [shape: bf16[32,768], index: 0, kind: input, shape index: {}]   ;;  %s994_s1 = inlined_call_operand.vmem [shape: bf16[768,128], index: 1, kind: input, shape index: {}]   ;;  %s995_s2 = inlined_call_operand.vmem [shape: f32[1,128], index: 2, kind: input, shape index: {}]   ;;  %s996_s3 = inlined_call_operand.vmem [shape: f32[32,128], index: 3, kind: output, shape index: {}]  }
   0x1   :  { %s887_s14 = smov 0   ;;  %s889_s15 = smov 0  }
   0x2   :  { %s891_s16 = smov 0  }
   0x3 LB: > { %s25_s17 = sadd.s32 1, %s856_s15  ;;  %p48_p1 = scmp.ne.s32.totalorder %s848_s13, %s844_s12  ;;  %s860_s16 = sphi %s891_s16, %s13_s16   ;;  %s856_s15 = sphi %s889_s15, %s1000_s15   ;;  %s852_s14 = sphi %s887_s14, %s999_s14   ;;  %s848_s13 = sphi %s885_s13, %s998_s13   ;;  %s844_s12 = sphi %s883_s12, %s997_s12  }
   0x4   : > { %p26_p0 = scmp.ge.s32.totalorder %s25_s17, 3  ;;  %p49_p2 = scmp.eq.s32.totalorder %s860_s16, 0 }
   0x5   : > { %s41_s19 = sadd.s32 1, %s848_s13  ;;  %p649_p5 = scmp.ge.s32.totalorder %s860_s16, 3 }
   0x6   : > { %s1002_s17 = smov (%p26_p0, %s25_s17), 0  ;;  %p50_p3 = por %p49_p2, %p48_p1 }
   0x7   : > { %s37_s18 = ssub.s32 %s856_s15, %s1002_s17  ;;  %162 = sbr.rel (%p649_p5) target bundleno = 20 (0x14), region = 20 }
   0x8   : > { %p39_p4 = scmp.eq.s32.totalorder %s37_s18, 0 }
   0xa   : > { %s918_s20 = scalar_select %p39_p4, %s848_s13, %s41_s19  }
   0xc   : > { %165 = sbr.rel (!%p50_p3) target bundleno = 20 (0x14), region = 24  ;;  %s167_s21 = sand.u32 (%p50_p3), 1, %s848_s13  }
   0xd   : > { %s743_s22 = sshll.u32 (%p50_p3), %s856_s15, 3  ;;  %s650_s23 = sshll.u32 (%p50_p3), %s167_s21, 5 }
   0xe   : > { %s175_s26 = scalar_lea.vmem (%p50_p3), %s993_s0, %s743_s22  ;;  %s169_s27 = scalar_lea.vmem (%p50_p3), [#allocation3], %s650_s23 }
   0xf   : > { %v210_v0 = vld [vmem:[%s175_s26] sm:$0xff] (%p50_p3)  ;;  %v212_v1 = vld [vmem:[%s175_s26 + $0x18] sm:$0xff] (%p50_p3)  ;;  %v214_v2 = vld [vmem:[%s175_s26 + $0x30] sm:$0xff] (%p50_p3) }
  0x10   : > { %211 = vst [vmem:[%s169_s27] sm:$0xff] (%p50_p3), %v210_v0  ;;  %v216_v3 = vld [vmem:[%s175_s26 + $0x48] sm:$0xff] (%p50_p3) }
  0x11   : > { %213 = vst [vmem:[%s169_s27 + $0x8] sm:$0xff] %v212_v1 }
  0x12   : > { %215 = vst [vmem:[%s169_s27 + $0x10] sm:$0xff] %v214_v2 }
  0x13   : > { %217 = vst [vmem:[%s169_s27 + $0x18] sm:$0xff] %v216_v3 }
  0x14 PF: > { %p653_p6 = scmp.ge.s32.totalorder %s860_s16, 1  ;;  %p234_p7 = scmp.lt.s32.totalorder %s860_s16, 4 }
  0x16   : > { %p235_p8 = pnand %p653_p6, %p234_p7 }
  0x17   : > { %s241_s28 = sand.u32 (!%p235_p8), 1, %s844_s12   ;;  %s655_s29 = sshll.u32 (!%p235_p8), %s852_s14, 5 }
  0x18   : > { %238 = sbr.rel (%p235_p8) target bundleno = 229 (0xe5), region = 66  ;;  %s654_s30 = sshll.u32 (!%p235_p8), %s241_s28, 5 }
  0x19   : > { %p281_p9 = scmp.lt.s32.totalorder (!%p235_p8), %s655_s29, 95  ;;  %s935_s8 = scalar_lea.vmem (!%p235_p8), [#allocation3], %s654_s30 }
  0x1a   : > { %p657_p10 = scmp.ne.s32.totalorder (!%p235_p8), %s852_s14, 0 }
  0x1d   : > { %s1004_s29 = smov (!%p281_p9, %s655_s29), 95  ;;  %304 = sbr.rel (%p657_p10) target bundleno = 39 (0x27), region = 74 }
  0x1e   : > { %s656_s4 = sshll.u32 %s1004_s29, 2 }
  0x1f   : > { %s933_s7 = scalar_lea.vmem %s994_s1, %s656_s4 }
  0x22   : > { %v862_v4 = vmov 0.0  }
  0x23   : > { %305 = vst [vmem:[#allocation2 + $0x10] sm:$0xff] %v862_v4 }
  0x24   : > { %306 = vst [vmem:[#allocation2] sm:$0xff] %v862_v4 }
  0x25   : > { %307 = vst [vmem:[#allocation2 + $0x18] sm:$0xff] %v862_v4 }
  0x26   : > { %308 = vst [vmem:[#allocation2 + $0x8] sm:$0xff] %v862_v4 }
  0x27 PF: > { %v755_v5 = vld [vmem:[%s933_s7 + $0x38] sm:$0xff]  ;;  %v754_v7 = vld [vmem:[%s933_s7 + $0x30] sm:$0xff]  ;;  %v753_v9 = vld [vmem:[%s933_s7 + $0x28] sm:$0xff]  ;;  %p738_p11 = scmp.ne.s32.totalorder %s852_s14, 2 }
  0x28   : > { %v763_v6 = vld [vmem:[%s933_s7 + $0x78] sm:$0xff]  ;;  %465 = vmatpush.bf16.msra.mxu0 %v755_v5  ;;  %764 = vmatpush.bf16.msra.mxu2 %v755_v5  ;;  %v762_v8 = vld [vmem:[%s933_s7 + $0x70] sm:$0xff]  ;;  %v761_v10 = vld [vmem:[%s933_s7 + $0x68] sm:$0xff] }
  0x29   : > { %484 = vmatpush.bf16.msra.mxu1 %v763_v6  ;;  %772 = vmatpush.bf16.msra.mxu3 %v763_v6  ;;  %v752_v11 = vld [vmem:[%s933_s7 + $0x20] sm:$0xff]  ;;  %v751_v13 = vld [vmem:[%s933_s7 + $0x18] sm:$0xff]  ;;  %v750_v15 = vld [vmem:[%s933_s7 + $0x10] sm:$0xff] }
  0x2a   : > { %v760_v12 = vld [vmem:[%s933_s7 + $0x60] sm:$0xff]  ;;  %v759_v14 = vld [vmem:[%s933_s7 + $0x58] sm:$0xff]  ;;  %v758_v16 = vld [vmem:[%s933_s7 + $0x50] sm:$0xff] }
  0x2b   : > { %v749_v17 = vld [vmem:[%s933_s7 + $0x8] sm:$0xff]  ;;  %v748_v19 = vld [vmem:[%s933_s7] sm:$0xff]  ;;  %v668_v23 = vld [vmem:[%s935_s8 + $0x10] sm:$0xf] }
  0x2c   : > { %466 = vmatpush.bf16.msra.mxu0 %v754_v7  ;;  %765 = vmatpush.bf16.msra.mxu2 %v754_v7  ;;  %v757_v18 = vld [vmem:[%s933_s7 + $0x48] sm:$0xff]  ;;  %v756_v20 = vld [vmem:[%s933_s7 + $0x40] sm:$0xff]  ;;  %v747_v24 = vld [vmem:[%s935_s8 + $0x14] sm:$0xf0] }
  0x2d   : > { %485 = vmatpush.bf16.msra.mxu1 %v762_v8  ;;  %773 = vmatpush.bf16.msra.mxu3 %v762_v8  ;;  %v660_v21 = vld [vmem:[%s935_s8] sm:$0xf]  ;;  %v745_v22 = vld [vmem:[%s935_s8 + $0x4] sm:$0xf0]  ;;  %v744_v25 = vld [vmem:[%s935_s8 + $0x4] sm:$0xf]  ;;  %v669_v30 = vor.u32 %v747_v24, %v668_v23 }
  0x2e   : > { %v662_v26 = vld [vmem:[%s935_s8 + $0x8] sm:$0xf0]  ;;  %v746_v27 = vld [vmem:[%s935_s8 + $0x14] sm:$0xf]  ;;  %v670_v28 = vld [vmem:[%s935_s8 + $0x18] sm:$0xf0]  ;;  %v661_v29 = vor.u32 %v745_v22, %v660_v21 }
  0x2f   : > { %v665_v31 = vor.u32 %v744_v25, %v662_v26  ;;  %v673_v32 = vor.u32 %v746_v27, %v670_v28  ;;  %v309_v34 = vld [vmem:[#allocation2 + $0x10] sm:$0xff]  ;;  %v311_v39 = vld [vmem:[#allocation2 + $0x18] sm:$0xff]  ;;  %v310_v43 = vld [vmem:[#allocation2] sm:$0xff] }
  0x30   : > { %467 = vmatpush.bf16.msra.mxu0 %v753_v9  ;;  %766 = vmatpush.bf16.msra.mxu2 %v753_v9  ;;  %v312_v49 = vld [vmem:[#allocation2 + $0x8] sm:$0xff] }
  0x31   : > { %486 = vmatpush.bf16.msra.mxu1 %v761_v10  ;;  %774 = vmatpush.bf16.msra.mxu3 %v761_v10 }
  0x34   : > { %468 = vmatpush.bf16.msra.mxu0 %v752_v11  ;;  %767 = vmatpush.bf16.msra.mxu2 %v752_v11 }
  0x35   : > { %487 = vmatpush.bf16.msra.mxu1 %v760_v12  ;;  %775 = vmatpush.bf16.msra.mxu3 %v760_v12 }
  0x38   : > { %469 = vmatpush.bf16.msra.mxu0 %v751_v13  ;;  %768 = vmatpush.bf16.msra.mxu2 %v751_v13 }
  0x39   : > { %488 = vmatpush.bf16.msra.mxu1 %v759_v14  ;;  %776 = vmatpush.bf16.msra.mxu3 %v759_v14 }
  0x3c   : > { %470 = vmatpush.bf16.msra.mxu0 %v750_v15  ;;  %769 = vmatpush.bf16.msra.mxu2 %v750_v15 }
  0x3d   : > { %489 = vmatpush.bf16.msra.mxu1 %v758_v16  ;;  %777 = vmatpush.bf16.msra.mxu3 %v758_v16 }
  0x40   : > { %471 = vmatpush.bf16.msra.mxu0 %v749_v17  ;;  %770 = vmatpush.bf16.msra.mxu2 %v749_v17 }
  0x41   : > { %490 = vmatpush.bf16.msra.mxu1 %v757_v18  ;;  %778 = vmatpush.bf16.msra.mxu3 %v757_v18 }
  0x44   : > { %472 = vmatpush.bf16.msra.mxu0 %v748_v19  ;;  %771 = vmatpush.bf16.msra.mxu2 %v748_v19 }
  0x45   : > { %491 = vmatpush.bf16.msra.mxu1 %v756_v20  ;;  %779 = vmatpush.bf16.msra.mxu3 %v756_v20 }
  0x47   : > { %473 = vmatmul.bf16.vlgmr.msra.gmra.mxu0 %v661_v29  ;;  %478 = vmatmul.bf16.vlgmr.msra.gmra.mxu2 %v669_v30 }
  0x48   : > { %492 = vmatmul.bf16.vlgmr.msra.gmra.mxu1 %v665_v31  ;;  %497 = vmatmul.bf16.vlgmr.msra.gmra.mxu3 %v673_v32 }
  0xc4   : > { %v474_v33 = vpop.f32.mrf.mxu0 }
  0xc5   : > { %v493_v35 = vpop.f32.mrf.mxu1 }
  0xc6   : > { %v494_v36 = vadd.f32 %v493_v35, %v474_v33 }
  0xc8   : > { %v503_v37 = vadd.f32 %v494_v36, %v309_v34 }
  0xca   : > { %507 = vst [vmem:[#allocation2 + $0x10] sm:$0xff] %v503_v37  ;;  %v479_v38 = vpop.f32.mrf.mxu2 }
  0xcb   : > { %v498_v40 = vpop.f32.mrf.mxu3 }
  0xcc   : > { %v499_v41 = vadd.f32 %v498_v40, %v479_v38  ;;  %v476_v42 = vpop.f32.mrf.mxu0 }
  0xcd   : > { %v495_v44 = vpop.f32.mrf.mxu1 }
  0xce   : > { %v505_v45 = vadd.f32 %v499_v41, %v311_v39  ;;  %v496_v46 = vadd.f32 %v495_v44, %v476_v42 }
  0xd0   : > { %509 = vst [vmem:[#allocation2 + $0x18] sm:$0xff] %v505_v45  ;;  %v504_v47 = vadd.f32 %v496_v46, %v310_v43 }
  0xd2   : > { %508 = vst [vmem:[#allocation2] sm:$0xff] %v504_v47  ;;  %v481_v48 = vpop.f32.mrf.mxu2 }
  0xd3   : > { %v500_v50 = vpop.f32.mrf.mxu3 }
  0xd4   : > { %v501_v51 = vadd.f32 %v500_v50, %v481_v48  ;;  %514 = sbr.rel (%p738_p11) target bundleno = 229 (0xe5), region = 78 }
  0xd6   : > { %v506_v52 = vadd.f32 %v501_v51, %v312_v49 }
  0xd8   : > { %510 = vst [vmem:[#allocation2 + $0x8] sm:$0xff] %v506_v52 }
  0xd9   : > { %v515_v53 = vld [vmem:[#allocation2 + $0x10] sm:$0xff]  ;;  %v821_v54 = vld [vmem:[%s995_s2] ss:$0 sm:$0xff]  ;;  %v517_v56 = vld [vmem:[#allocation2 + $0x18] sm:$0xff] }
  0xda   : > { %v516_v55 = vld [vmem:[#allocation2] sm:$0xff]  ;;  %v523_v58 = vadd.f32 %v821_v54, %v515_v53  ;;  %v525_v60 = vadd.f32 %v821_v54, %v517_v56 }
  0xdb   : > { %v524_v59 = vadd.f32 %v821_v54, %v516_v55 }
  0xdc   : > { %v527_v62 = vmax.f32 %v523_v58, 0.0  ;;  %v529_v0 = vmax.f32 %v525_v60, 0.0 }
  0xdd   : > { %v528_v63 = vmax.f32 %v524_v59, 0.0 }
  0xde   : > { %531 = vst [vmem:[%s996_s3] sm:$0xff] %v527_v62 }
  0xdf   : > { %v518_v57 = vld [vmem:[#allocation2 + $0x8] sm:$0xff]  ;;  %532 = vst [vmem:[%s996_s3 + $0x8] sm:$0xff] %v528_v63 }
  0xe0   : > { %v526_v61 = vadd.f32 %v821_v54, %v518_v57  ;;  %533 = vst [vmem:[%s996_s3 + $0x10] sm:$0xff] %v529_v0 }
  0xe2   : > { %v530_v1 = vmax.f32 %v526_v61, 0.0 }
  0xe4   : > { %534 = vst [vmem:[%s996_s3 + $0x18] sm:$0xff] %v530_v1 }
  0xe5 PF: > { %s13_s16 = sadd.s32 1, %s860_s16   ;;  %s997_s12 = smov %s848_s13 }
  0xe6   : > { %p10_p12 = scmp.ge.s32.totalorder %s13_s16, 5   ;;  %s998_s13 = smov %s918_s20 }
  0xe7   : > { %s999_s14 = smov %s856_s15  ;;  %s1000_s15 = smov %s1002_s17 }
  0xe8   :  { %12 = sbr.rel (!%p10_p12) target bundleno = 3 (0x3), region = 119 }

// kernel: bigram_resnet_forward.30
= control target key start
LH: loop header
LB: loop body
LE: loop exit
PB: predicated region body
PF: predicated region fallthrough
CT: control target
= control target key end

     0   :  { %s471_s1 = inlined_call_operand.vmem [shape: bf16[256,128], index: 1, kind: input, shape index: {}]   ;;  %s472_s0 = inlined_call_operand.vmem [shape: bf16[32,256], index: 0, kind: input, shape index: {}]   ;;  %s473_s2 = inlined_call_operand.vmem [shape: f32[1,128], index: 2, kind: input, shape index: {}]   ;;  %s474_s3 = inlined_call_operand.vmem [shape: f32[32,128], index: 3, kind: output, shape index: {}]  }
   0x1   :  { %v338_v0 = vld [vmem:[%s471_s1 + $0x38] sm:$0xff]  ;;  %v337_v2 = vld [vmem:[%s471_s1 + $0x30] sm:$0xff]  ;;  %v336_v4 = vld [vmem:[%s471_s1 + $0x28] sm:$0xff] }
   0x2   :  { %v346_v1 = vld [vmem:[%s471_s1 + $0x78] sm:$0xff]  ;;  %178 = vmatpush.bf16.msra.mxu0 %v338_v0  ;;  %347 = vmatpush.bf16.msra.mxu2 %v338_v0  ;;  %v345_v3 = vld [vmem:[%s471_s1 + $0x70] sm:$0xff]  ;;  %v344_v5 = vld [vmem:[%s471_s1 + $0x68] sm:$0xff] }
   0x3   :  { %197 = vmatpush.bf16.msra.mxu1 %v346_v1  ;;  %355 = vmatpush.bf16.msra.mxu3 %v346_v1  ;;  %v335_v6 = vld [vmem:[%s471_s1 + $0x20] sm:$0xff]  ;;  %v334_v8 = vld [vmem:[%s471_s1 + $0x18] sm:$0xff]  ;;  %v333_v10 = vld [vmem:[%s471_s1 + $0x10] sm:$0xff] }
   0x4   :  { %v343_v7 = vld [vmem:[%s471_s1 + $0x60] sm:$0xff]  ;;  %v342_v9 = vld [vmem:[%s471_s1 + $0x58] sm:$0xff]  ;;  %v341_v11 = vld [vmem:[%s471_s1 + $0x50] sm:$0xff] }
   0x5   :  { %v332_v12 = vld [vmem:[%s471_s1 + $0x8] sm:$0xff]  ;;  %v331_v14 = vld [vmem:[%s471_s1] sm:$0xff]  ;;  %v257_v18 = vld [vmem:[%s472_s0 + $0x10] sm:$0xf] }
   0x6   :  { %179 = vmatpush.bf16.msra.mxu0 %v337_v2  ;;  %348 = vmatpush.bf16.msra.mxu2 %v337_v2  ;;  %v340_v13 = vld [vmem:[%s471_s1 + $0x48] sm:$0xff]  ;;  %v339_v15 = vld [vmem:[%s471_s1 + $0x40] sm:$0xff]  ;;  %v330_v19 = vld [vmem:[%s472_s0 + $0x14] sm:$0xf0] }
   0x7   :  { %198 = vmatpush.bf16.msra.mxu1 %v345_v3  ;;  %356 = vmatpush.bf16.msra.mxu3 %v345_v3  ;;  %v249_v16 = vld [vmem:[%s472_s0] sm:$0xf]  ;;  %v328_v17 = vld [vmem:[%s472_s0 + $0x4] sm:$0xf0]  ;;  %v327_v20 = vld [vmem:[%s472_s0 + $0x4] sm:$0xf]  ;;  %v258_v25 = vor.u32 %v330_v19, %v257_v18 }
   0x8   :  { %v251_v21 = vld [vmem:[%s472_s0 + $0x8] sm:$0xf0]  ;;  %v329_v22 = vld [vmem:[%s472_s0 + $0x14] sm:$0xf]  ;;  %v259_v23 = vld [vmem:[%s472_s0 + $0x18] sm:$0xf0]  ;;  %v250_v24 = vor.u32 %v328_v17, %v249_v16 }
   0x9   :  { %v254_v26 = vor.u32 %v327_v20, %v251_v21  ;;  %v262_v27 = vor.u32 %v329_v22, %v259_v23  ;;  %v363_v29 = vld [vmem:[%s473_s2] ss:$0 sm:$0xff] }
   0xa   :  { %180 = vmatpush.bf16.msra.mxu0 %v336_v4  ;;  %349 = vmatpush.bf16.msra.mxu2 %v336_v4 }
   0xb   :  { %199 = vmatpush.bf16.msra.mxu1 %v344_v5  ;;  %357 = vmatpush.bf16.msra.mxu3 %v344_v5 }
   0xe   :  { %181 = vmatpush.bf16.msra.mxu0 %v335_v6  ;;  %350 = vmatpush.bf16.msra.mxu2 %v335_v6 }
   0xf   :  { %200 = vmatpush.bf16.msra.mxu1 %v343_v7  ;;  %358 = vmatpush.bf16.msra.mxu3 %v343_v7 }
  0x12   :  { %182 = vmatpush.bf16.msra.mxu0 %v334_v8  ;;  %351 = vmatpush.bf16.msra.mxu2 %v334_v8 }
  0x13   :  { %201 = vmatpush.bf16.msra.mxu1 %v342_v9  ;;  %359 = vmatpush.bf16.msra.mxu3 %v342_v9 }
  0x16   :  { %183 = vmatpush.bf16.msra.mxu0 %v333_v10  ;;  %352 = vmatpush.bf16.msra.mxu2 %v333_v10 }
  0x17   :  { %202 = vmatpush.bf16.msra.mxu1 %v341_v11  ;;  %360 = vmatpush.bf16.msra.mxu3 %v341_v11 }
  0x1a   :  { %184 = vmatpush.bf16.msra.mxu0 %v332_v12  ;;  %353 = vmatpush.bf16.msra.mxu2 %v332_v12 }
  0x1b   :  { %203 = vmatpush.bf16.msra.mxu1 %v340_v13  ;;  %361 = vmatpush.bf16.msra.mxu3 %v340_v13 }
  0x1e   :  { %185 = vmatpush.bf16.msra.mxu0 %v331_v14  ;;  %354 = vmatpush.bf16.msra.mxu2 %v331_v14 }
  0x1f   :  { %204 = vmatpush.bf16.msra.mxu1 %v339_v15  ;;  %362 = vmatpush.bf16.msra.mxu3 %v339_v15 }
  0x21   :  { %186 = vmatmul.bf16.vlgmr.msra.gmra.mxu0 %v250_v24  ;;  %191 = vmatmul.bf16.vlgmr.msra.gmra.mxu2 %v258_v25 }
  0x22   :  { %205 = vmatmul.bf16.vlgmr.msra.gmra.mxu1 %v254_v26  ;;  %210 = vmatmul.bf16.vlgmr.msra.gmra.mxu3 %v262_v27 }
  0x9e   :  { %v187_v28 = vpop.f32.mrf.mxu0 }
  0x9f   :  { %v206_v30 = vpop.f32.mrf.mxu1 }
  0xa0   :  { %v207_v31 = vadd.f32 %v206_v30, %v187_v28 }
  0xa2   :  { %v235_v32 = vadd.f32 %v363_v29, %v207_v31 }
  0xa4   :  { %239 = vst [vmem:[%s474_s3] sm:$0xff] %v235_v32  ;;  %v192_v33 = vpop.f32.mrf.mxu2 }
  0xa5   :  { %v211_v34 = vpop.f32.mrf.mxu3 }
  0xa6   :  { %v212_v35 = vadd.f32 %v211_v34, %v192_v33  ;;  %v189_v36 = vpop.f32.mrf.mxu0 }
  0xa7   :  { %v208_v37 = vpop.f32.mrf.mxu1 }
  0xa8   :  { %v237_v38 = vadd.f32 %v363_v29, %v212_v35  ;;  %v209_v39 = vadd.f32 %v208_v37, %v189_v36 }
  0xaa   :  { %241 = vst [vmem:[%s474_s3 + $0x10] sm:$0xff] %v237_v38  ;;  %v236_v40 = vadd.f32 %v363_v29, %v209_v39 }
  0xac   :  { %240 = vst [vmem:[%s474_s3 + $0x8] sm:$0xff] %v236_v40  ;;  %v194_v41 = vpop.f32.mrf.mxu2 }
  0xad   :  { %v213_v42 = vpop.f32.mrf.mxu3 }
  0xae   :  { %v214_v43 = vadd.f32 %v213_v42, %v194_v41 }
  0xb0   :  { %v238_v44 = vadd.f32 %v363_v29, %v214_v43 }
  0xb2   :  { %242 = vst [vmem:[%s474_s3 + $0x18] sm:$0xff] %v238_v44 }

// kernel: bigram_resnet_forward.32
= control target key start
LH: loop header
LB: loop body
LE: loop exit
PB: predicated region body
PF: predicated region fallthrough
CT: control target
= control target key end

     0   :  { %s975_s15 = smov 0   ;;  %s977_s16 = smov 0   ;;  %s1097_s0 = inlined_call_operand.vmem [shape: bf16[32,1280], index: 0, kind: input, shape index: {}]   ;;  %s1098_s1 = inlined_call_operand.vmem [shape: bf16[1280,128], index: 1, kind: input, shape index: {}]   ;;  %s1099_s2 = inlined_call_operand.vmem [shape: f32[1,128], index: 2, kind: input, shape index: {}]   ;;  %s1100_s3 = inlined_call_operand.vmem [shape: f32[32,128], index: 3, kind: input, shape index: {}]   ;;  %s1101_s4 = inlined_call_operand.vmem [shape: f32[32,128], index: 4, kind: output, shape index: {}]  }
   0x1   :  { %s979_s17 = smov 0   ;;  %s981_s18 = smov 0  }
   0x2   :  { %s983_s19 = smov 0  }
   0x3 LB: > { %s26_s20 = sadd.s32 1, %s943_s18  ;;  %p49_p1 = scmp.ne.s32.totalorder %s935_s16, %s931_s15  ;;  %s947_s19 = sphi %s983_s19, %s14_s19   ;;  %s943_s18 = sphi %s981_s18, %s1105_s18   ;;  %s939_s17 = sphi %s979_s17, %s1104_s17   ;;  %s935_s16 = sphi %s977_s16, %s1103_s16   ;;  %s931_s15 = sphi %s975_s15, %s1102_s15  }
   0x4   : > { %p27_p0 = scmp.ge.s32.totalorder %s26_s20, 5  ;;  %p50_p2 = scmp.eq.s32.totalorder %s947_s19, 0 }
   0x5   : > { %s42_s22 = sadd.s32 1, %s935_s16  ;;  %p736_p5 = scmp.ge.s32.totalorder %s947_s19, 5 }
   0x6   : > { %s1107_s20 = smov (%p27_p0, %s26_s20), 0  ;;  %p51_p3 = por %p50_p2, %p49_p1 }
   0x7   : > { %s38_s21 = ssub.s32 %s943_s18, %s1107_s20  ;;  %203 = sbr.rel (%p736_p5) target bundleno = 20 (0x14), region = 24 }
   0x8   : > { %p40_p4 = scmp.eq.s32.totalorder %s38_s21, 0 }
   0xa   : > { %s1010_s23 = scalar_select %p40_p4, %s935_s16, %s42_s22  }
   0xc   : > { %206 = sbr.rel (!%p51_p3) target bundleno = 20 (0x14), region = 28  ;;  %s208_s24 = sand.u32 (%p51_p3), 1, %s935_s16  }
   0xd   : > { %s830_s25 = sshll.u32 (%p51_p3), %s943_s18, 3  ;;  %s737_s26 = sshll.u32 (%p51_p3), %s208_s24, 5 }
   0xe   : > { %s216_s29 = scalar_lea.vmem (%p51_p3), %s1097_s0, %s830_s25  ;;  %s210_s30 = scalar_lea.vmem (%p51_p3), [#allocation3], %s737_s26 }
   0xf   : > { %v251_v0 = vld [vmem:[%s216_s29] sm:$0xff] (%p51_p3)  ;;  %v253_v1 = vld [vmem:[%s216_s29 + $0x28] sm:$0xff] (%p51_p3)  ;;  %v255_v2 = vld [vmem:[%s216_s29 + $0x50] sm:$0xff] (%p51_p3) }
  0x10   : > { %252 = vst [vmem:[%s210_s30] sm:$0xff] (%p51_p3), %v251_v0  ;;  %v257_v3 = vld [vmem:[%s216_s29 + $0x78] sm:$0xff] (%p51_p3) }
  0x11   : > { %254 = vst [vmem:[%s210_s30 + $0x8] sm:$0xff] %v253_v1 }
  0x12   : > { %256 = vst [vmem:[%s210_s30 + $0x10] sm:$0xff] %v255_v2 }
  0x13   : > { %258 = vst [vmem:[%s210_s30 + $0x18] sm:$0xff] %v257_v3 }
  0x14 PF: > { %p740_p6 = scmp.ge.s32.totalorder %s947_s19, 1  ;;  %p275_p7 = scmp.lt.s32.totalorder %s947_s19, 6 }
  0x16   : > { %p276_p8 = pnand %p740_p6, %p275_p7 }
  0x17   : > { %s282_s5 = sand.u32 (!%p276_p8), 1, %s931_s15   ;;  %s742_s6 = sshll.u32 (!%p276_p8), %s939_s17, 5 }
  0x18   : > { %279 = sbr.rel (%p276_p8) target bundleno = 231 (0xe7), region = 70  ;;  %s741_s7 = sshll.u32 (!%p276_p8), %s282_s5, 5 }
  0x19   : > { %p332_p9 = scmp.lt.s32.totalorder (!%p276_p8), %s742_s6, 159  ;;  %s1027_s12 = scalar_lea.vmem (!%p276_p8), [#allocation3], %s741_s7 }
  0x1a   : > { %p744_p10 = scmp.ne.s32.totalorder (!%p276_p8), %s939_s17, 0 }
  0x1d   : > { %s1109_s6 = smov (!%p332_p9, %s742_s6), 159  ;;  %364 = sbr.rel (%p744_p10) target bundleno = 39 (0x27), region = 78 }
  0x1e   : > { %s743_s8 = sshll.u32 %s1109_s6, 2 }
  0x1f   : > { %s1025_s11 = scalar_lea.vmem %s1098_s1, %s743_s8 }
  0x22   : > { %v949_v4 = vmov 0.0  }
  0x23   : > { %365 = vst [vmem:[#allocation2 + $0x10] sm:$0xff] %v949_v4 }
  0x24   : > { %366 = vst [vmem:[#allocation2] sm:$0xff] %v949_v4 }
  0x25   : > { %367 = vst [vmem:[#allocation2 + $0x18] sm:$0xff] %v949_v4 }
  0x26   : > { %368 = vst [vmem:[#allocation2 + $0x8] sm:$0xff] %v949_v4 }
  0x27 PF: > { %v842_v5 = vld [vmem:[%s1025_s11 + $0x38] sm:$0xff]  ;;  %v841_v7 = vld [vmem:[%s1025_s11 + $0x30] sm:$0xff]  ;;  %v840_v9 = vld [vmem:[%s1025_s11 + $0x28] sm:$0xff]  ;;  %p825_p11 = scmp.ne.s32.totalorder %s939_s17, 4 }
  0x28   : > { %v850_v6 = vld [vmem:[%s1025_s11 + $0x78] sm:$0xff]  ;;  %525 = vmatpush.bf16.msra.mxu0 %v842_v5  ;;  %851 = vmatpush.bf16.msra.mxu2 %v842_v5  ;;  %v849_v8 = vld [vmem:[%s1025_s11 + $0x70] sm:$0xff]  ;;  %v848_v10 = vld [vmem:[%s1025_s11 + $0x68] sm:$0xff] }
  0x29   : > { %544 = vmatpush.bf16.msra.mxu1 %v850_v6  ;;  %859 = vmatpush.bf16.msra.mxu3 %v850_v6  ;;  %v839_v11 = vld [vmem:[%s1025_s11 + $0x20] sm:$0xff]  ;;  %v838_v13 = vld [vmem:[%s1025_s11 + $0x18] sm:$0xff]  ;;  %v837_v15 = vld [vmem:[%s1025_s11 + $0x10] sm:$0xff] }
  0x2a   : > { %v847_v12 = vld [vmem:[%s1025_s11 + $0x60] sm:$0xff]  ;;  %v846_v14 = vld [vmem:[%s1025_s11 + $0x58] sm:$0xff]  ;;  %v845_v16 = vld [vmem:[%s1025_s11 + $0x50] sm:$0xff] }
  0x2b   : > { %v836_v17 = vld [vmem:[%s1025_s11 + $0x8] sm:$0xff]  ;;  %v835_v19 = vld [vmem:[%s1025_s11] sm:$0xff]  ;;  %v755_v23 = vld [vmem:[%s1027_s12 + $0x10] sm:$0xf] }
  0x2c   : > { %526 = vmatpush.bf16.msra.mxu0 %v841_v7  ;;  %852 = vmatpush.bf16.msra.mxu2 %v841_v7  ;;  %v844_v18 = vld [vmem:[%s1025_s11 + $0x48] sm:$0xff]  ;;  %v843_v20 = vld [vmem:[%s1025_s11 + $0x40] sm:$0xff]  ;;  %v834_v24 = vld [vmem:[%s1027_s12 + $0x14] sm:$0xf0] }
  0x2d   : > { %545 = vmatpush.bf16.msra.mxu1 %v849_v8  ;;  %860 = vmatpush.bf16.msra.mxu3 %v849_v8  ;;  %v747_v21 = vld [vmem:[%s1027_s12] sm:$0xf]  ;;  %v832_v22 = vld [vmem:[%s1027_s12 + $0x4] sm:$0xf0]  ;;  %v831_v25 = vld [vmem:[%s1027_s12 + $0x4] sm:$0xf]  ;;  %v756_v30 = vor.u32 %v834_v24, %v755_v23 }
  0x2e   : > { %v749_v26 = vld [vmem:[%s1027_s12 + $0x8] sm:$0xf0]  ;;  %v833_v27 = vld [vmem:[%s1027_s12 + $0x14] sm:$0xf]  ;;  %v757_v28 = vld [vmem:[%s1027_s12 + $0x18] sm:$0xf0]  ;;  %v748_v29 = vor.u32 %v832_v22, %v747_v21 }
  0x2f   : > { %v752_v31 = vor.u32 %v831_v25, %v749_v26  ;;  %v760_v32 = vor.u32 %v833_v27, %v757_v28  ;;  %v369_v34 = vld [vmem:[#allocation2 + $0x10] sm:$0xff]  ;;  %v371_v39 = vld [vmem:[#allocation2 + $0x18] sm:$0xff]  ;;  %v370_v43 = vld [vmem:[#allocation2] sm:$0xff] }
  0x30   : > { %527 = vmatpush.bf16.msra.mxu0 %v840_v9  ;;  %853 = vmatpush.bf16.msra.mxu2 %v840_v9  ;;  %v372_v49 = vld [vmem:[#allocation2 + $0x8] sm:$0xff] }
  0x31   : > { %546 = vmatpush.bf16.msra.mxu1 %v848_v10  ;;  %861 = vmatpush.bf16.msra.mxu3 %v848_v10 }
  0x34   : > { %528 = vmatpush.bf16.msra.mxu0 %v839_v11  ;;  %854 = vmatpush.bf16.msra.mxu2 %v839_v11 }
  0x35   : > { %547 = vmatpush.bf16.msra.mxu1 %v847_v12  ;;  %862 = vmatpush.bf16.msra.mxu3 %v847_v12 }
  0x38   : > { %529 = vmatpush.bf16.msra.mxu0 %v838_v13  ;;  %855 = vmatpush.bf16.msra.mxu2 %v838_v13 }
  0x39   : > { %548 = vmatpush.bf16.msra.mxu1 %v846_v14  ;;  %863 = vmatpush.bf16.msra.mxu3 %v846_v14 }
  0x3c   : > { %530 = vmatpush.bf16.msra.mxu0 %v837_v15  ;;  %856 = vmatpush.bf16.msra.mxu2 %v837_v15 }
  0x3d   : > { %549 = vmatpush.bf16.msra.mxu1 %v845_v16  ;;  %864 = vmatpush.bf16.msra.mxu3 %v845_v16 }
  0x40   : > { %531 = vmatpush.bf16.msra.mxu0 %v836_v17  ;;  %857 = vmatpush.bf16.msra.mxu2 %v836_v17 }
  0x41   : > { %550 = vmatpush.bf16.msra.mxu1 %v844_v18  ;;  %865 = vmatpush.bf16.msra.mxu3 %v844_v18 }
  0x44   : > { %532 = vmatpush.bf16.msra.mxu0 %v835_v19  ;;  %858 = vmatpush.bf16.msra.mxu2 %v835_v19 }
  0x45   : > { %551 = vmatpush.bf16.msra.mxu1 %v843_v20  ;;  %866 = vmatpush.bf16.msra.mxu3 %v843_v20 }
  0x47   : > { %533 = vmatmul.bf16.vlgmr.msra.gmra.mxu0 %v748_v29  ;;  %538 = vmatmul.bf16.vlgmr.msra.gmra.mxu2 %v756_v30 }
  0x48   : > { %552 = vmatmul.bf16.vlgmr.msra.gmra.mxu1 %v752_v31  ;;  %557 = vmatmul.bf16.vlgmr.msra.gmra.mxu3 %v760_v32 }
  0xc4   : > { %v534_v33 = vpop.f32.mrf.mxu0 }
  0xc5   : > { %v553_v35 = vpop.f32.mrf.mxu1 }
  0xc6   : > { %v554_v36 = vadd.f32 %v553_v35, %v534_v33 }
  0xc8   : > { %v563_v37 = vadd.f32 %v554_v36, %v369_v34 }
  0xca   : > { %567 = vst [vmem:[#allocation2 + $0x10] sm:$0xff] %v563_v37  ;;  %v539_v38 = vpop.f32.mrf.mxu2 }
  0xcb   : > { %v558_v40 = vpop.f32.mrf.mxu3 }
  0xcc   : > { %v559_v41 = vadd.f32 %v558_v40, %v539_v38  ;;  %v536_v42 = vpop.f32.mrf.mxu0 }
  0xcd   : > { %v555_v44 = vpop.f32.mrf.mxu1 }
  0xce   : > { %v565_v45 = vadd.f32 %v559_v41, %v371_v39  ;;  %v556_v46 = vadd.f32 %v555_v44, %v536_v42 }
  0xd0   : > { %569 = vst [vmem:[#allocation2 + $0x18] sm:$0xff] %v565_v45  ;;  %v564_v47 = vadd.f32 %v556_v46, %v370_v43 }
  0xd2   : > { %568 = vst [vmem:[#allocation2] sm:$0xff] %v564_v47  ;;  %v541_v48 = vpop.f32.mrf.mxu2 }
  0xd3   : > { %v560_v50 = vpop.f32.mrf.mxu3 }
  0xd4   : > { %v561_v51 = vadd.f32 %v560_v50, %v541_v48  ;;  %574 = sbr.rel (%p825_p11) target bundleno = 231 (0xe7), region = 82 }
  0xd6   : > { %v566_v52 = vadd.f32 %v561_v51, %v372_v49 }
  0xd8   : > { %570 = vst [vmem:[#allocation2 + $0x8] sm:$0xff] %v566_v52 }
  0xd9   : > { %v575_v53 = vld [vmem:[#allocation2 + $0x10] sm:$0xff]  ;;  %v908_v54 = vld [vmem:[%s1099_s2] ss:$0 sm:$0xff]  ;;  %v588_v57 = vld [vmem:[%s1100_s3 + $0x8] sm:$0xff] }
  0xda   : > { %v587_v55 = vld [vmem:[%s1100_s3] sm:$0xff]  ;;  %v583_v58 = vadd.f32 %v908_v54, %v575_v53  ;;  %v577_v60 = vld [vmem:[#allocation2 + $0x18] sm:$0xff]  ;;  %v589_v61 = vld [vmem:[%s1100_s3 + $0x10] sm:$0xff] }
  0xdb   : > { %v576_v56 = vld [vmem:[#allocation2] sm:$0xff]  ;;  %v585_v63 = vadd.f32 %v908_v54, %v577_v60  ;;  %v590_v1 = vld [vmem:[%s1100_s3 + $0x18] sm:$0xff] }
  0xdc   : > { %v584_v59 = vadd.f32 %v908_v54, %v576_v56  ;;  %v591_v2 = vadd.f32 %v587_v55, %v583_v58 }
  0xdd   : > { %v593_v4 = vadd.f32 %v589_v61, %v585_v63 }
  0xde   : > { %v592_v3 = vadd.f32 %v588_v57, %v584_v59  ;;  %v595_v6 = vmax.f32 %v591_v2, 0.0 }
  0xdf   : > { %v578_v62 = vld [vmem:[#allocation2 + $0x8] sm:$0xff]  ;;  %v597_v8 = vmax.f32 %v593_v4, 0.0 }
  0xe0   : > { %v586_v0 = vadd.f32 %v908_v54, %v578_v62  ;;  %v596_v7 = vmax.f32 %v592_v3, 0.0  ;;  %599 = vst [vmem:[%s1101_s4] sm:$0xff] %v595_v6 }
  0xe1   : > { %601 = vst [vmem:[%s1101_s4 + $0x10] sm:$0xff] %v597_v8 }
  0xe2   : > { %v594_v5 = vadd.f32 %v590_v1, %v586_v0  ;;  %600 = vst [vmem:[%s1101_s4 + $0x8] sm:$0xff] %v596_v7 }
  0xe4   : > { %v598_v9 = vmax.f32 %v594_v5, 0.0 }
  0xe6   : > { %602 = vst [vmem:[%s1101_s4 + $0x18] sm:$0xff] %v598_v9 }
  0xe7 PF: > { %s14_s19 = sadd.s32 1, %s947_s19   ;;  %s1102_s15 = smov %s935_s16 }
  0xe8   : > { %p11_p12 = scmp.ge.s32.totalorder %s14_s19, 7   ;;  %s1103_s16 = smov %s1010_s23 }
  0xe9   : > { %s1104_s17 = smov %s943_s18  ;;  %s1105_s18 = smov %s1107_s20 }
  0xea   :  { %13 = sbr.rel (!%p11_p12) target bundleno = 3 (0x3), region = 126 }

// kernel: bigram_resnet_forward.33
= control target key start
LH: loop header
LB: loop body
LE: loop exit
PB: predicated region body
PF: predicated region fallthrough
CT: control target
= control target key end

     0   :  { %s883_s12 = smov 0   ;;  %s885_s13 = smov 0   ;;  %s993_s0 = inlined_call_operand.vmem [shape: bf16[32,1280], index: 0, kind: input, shape index: {}]   ;;  %s994_s1 = inlined_call_operand.vmem [shape: bf16[1280,128], index: 1, kind: input, shape index: {}]   ;;  %s995_s2 = inlined_call_operand.vmem [shape: f32[1,128], index: 2, kind: input, shape index: {}]   ;;  %s996_s3 = inlined_call_operand.vmem [shape: f32[32,128], index: 3, kind: output, shape index: {}]  }
   0x1   :  { %s887_s14 = smov 0   ;;  %s889_s15 = smov 0  }
   0x2   :  { %s891_s16 = smov 0  }
   0x3 LB: > { %s25_s17 = sadd.s32 1, %s856_s15  ;;  %p48_p1 = scmp.ne.s32.totalorder %s848_s13, %s844_s12  ;;  %s860_s16 = sphi %s891_s16, %s13_s16   ;;  %s856_s15 = sphi %s889_s15, %s1000_s15   ;;  %s852_s14 = sphi %s887_s14, %s999_s14   ;;  %s848_s13 = sphi %s885_s13, %s998_s13   ;;  %s844_s12 = sphi %s883_s12, %s997_s12  }
   0x4   : > { %p26_p0 = scmp.ge.s32.totalorder %s25_s17, 5  ;;  %p49_p2 = scmp.eq.s32.totalorder %s860_s16, 0 }
   0x5   : > { %s41_s19 = sadd.s32 1, %s848_s13  ;;  %p649_p5 = scmp.ge.s32.totalorder %s860_s16, 5 }
   0x6   : > { %s1002_s17 = smov (%p26_p0, %s25_s17), 0  ;;  %p50_p3 = por %p49_p2, %p48_p1 }
   0x7   : > { %s37_s18 = ssub.s32 %s856_s15, %s1002_s17  ;;  %162 = sbr.rel (%p649_p5) target bundleno = 20 (0x14), region = 20 }
   0x8   : > { %p39_p4 = scmp.eq.s32.totalorder %s37_s18, 0 }
   0xa   : > { %s918_s20 = scalar_select %p39_p4, %s848_s13, %s41_s19  }
   0xc   : > { %165 = sbr.rel (!%p50_p3) target bundleno = 20 (0x14), region = 24  ;;  %s167_s21 = sand.u32 (%p50_p3), 1, %s848_s13  }
   0xd   : > { %s743_s22 = sshll.u32 (%p50_p3), %s856_s15, 3  ;;  %s650_s23 = sshll.u32 (%p50_p3), %s167_s21, 5 }
   0xe   : > { %s175_s26 = scalar_lea.vmem (%p50_p3), %s993_s0, %s743_s22  ;;  %s169_s27 = scalar_lea.vmem (%p50_p3), [#allocation3], %s650_s23 }
   0xf   : > { %v210_v0 = vld [vmem:[%s175_s26] sm:$0xff] (%p50_p3)  ;;  %v212_v1 = vld [vmem:[%s175_s26 + $0x28] sm:$0xff] (%p50_p3)  ;;  %v214_v2 = vld [vmem:[%s175_s26 + $0x50] sm:$0xff] (%p50_p3) }
  0x10   : > { %211 = vst [vmem:[%s169_s27] sm:$0xff] (%p50_p3), %v210_v0  ;;  %v216_v3 = vld [vmem:[%s175_s26 + $0x78] sm:$0xff] (%p50_p3) }
  0x11   : > { %213 = vst [vmem:[%s169_s27 + $0x8] sm:$0xff] %v212_v1 }
  0x12   : > { %215 = vst [vmem:[%s169_s27 + $0x10] sm:$0xff] %v214_v2 }
  0x13   : > { %217 = vst [vmem:[%s169_s27 + $0x18] sm:$0xff] %v216_v3 }
  0x14 PF: > { %p653_p6 = scmp.ge.s32.totalorder %s860_s16, 1  ;;  %p234_p7 = scmp.lt.s32.totalorder %s860_s16, 6 }
  0x16   : > { %p235_p8 = pnand %p653_p6, %p234_p7 }
  0x17   : > { %s241_s28 = sand.u32 (!%p235_p8), 1, %s844_s12   ;;  %s655_s29 = sshll.u32 (!%p235_p8), %s852_s14, 5 }
  0x18   : > { %238 = sbr.rel (%p235_p8) target bundleno = 229 (0xe5), region = 66  ;;  %s654_s30 = sshll.u32 (!%p235_p8), %s241_s28, 5 }
  0x19   : > { %p281_p9 = scmp.lt.s32.totalorder (!%p235_p8), %s655_s29, 159  ;;  %s935_s8 = scalar_lea.vmem (!%p235_p8), [#allocation3], %s654_s30 }
  0x1a   : > { %p657_p10 = scmp.ne.s32.totalorder (!%p235_p8), %s852_s14, 0 }
  0x1d   : > { %s1004_s29 = smov (!%p281_p9, %s655_s29), 159  ;;  %304 = sbr.rel (%p657_p10) target bundleno = 39 (0x27), region = 74 }
  0x1e   : > { %s656_s4 = sshll.u32 %s1004_s29, 2 }
  0x1f   : > { %s933_s7 = scalar_lea.vmem %s994_s1, %s656_s4 }
  0x22   : > { %v862_v4 = vmov 0.0  }
  0x23   : > { %305 = vst [vmem:[#allocation2 + $0x10] sm:$0xff] %v862_v4 }
  0x24   : > { %306 = vst [vmem:[#allocation2] sm:$0xff] %v862_v4 }
  0x25   : > { %307 = vst [vmem:[#allocation2 + $0x18] sm:$0xff] %v862_v4 }
  0x26   : > { %308 = vst [vmem:[#allocation2 + $0x8] sm:$0xff] %v862_v4 }
  0x27 PF: > { %v755_v5 = vld [vmem:[%s933_s7 + $0x38] sm:$0xff]  ;;  %v754_v7 = vld [vmem:[%s933_s7 + $0x30] sm:$0xff]  ;;  %v753_v9 = vld [vmem:[%s933_s7 + $0x28] sm:$0xff]  ;;  %p738_p11 = scmp.ne.s32.totalorder %s852_s14, 4 }
  0x28   : > { %v763_v6 = vld [vmem:[%s933_s7 + $0x78] sm:$0xff]  ;;  %465 = vmatpush.bf16.msra.mxu0 %v755_v5  ;;  %764 = vmatpush.bf16.msra.mxu2 %v755_v5  ;;  %v762_v8 = vld [vmem:[%s933_s7 + $0x70] sm:$0xff]  ;;  %v761_v10 = vld [vmem:[%s933_s7 + $0x68] sm:$0xff] }
  0x29   : > { %484 = vmatpush.bf16.msra.mxu1 %v763_v6  ;;  %772 = vmatpush.bf16.msra.mxu3 %v763_v6  ;;  %v752_v11 = vld [vmem:[%s933_s7 + $0x20] sm:$0xff]  ;;  %v751_v13 = vld [vmem:[%s933_s7 + $0x18] sm:$0xff]  ;;  %v750_v15 = vld [vmem:[%s933_s7 + $0x10] sm:$0xff] }
  0x2a   : > { %v760_v12 = vld [vmem:[%s933_s7 + $0x60] sm:$0xff]  ;;  %v759_v14 = vld [vmem:[%s933_s7 + $0x58] sm:$0xff]  ;;  %v758_v16 = vld [vmem:[%s933_s7 + $0x50] sm:$0xff] }
  0x2b   : > { %v749_v17 = vld [vmem:[%s933_s7 + $0x8] sm:$0xff]  ;;  %v748_v19 = vld [vmem:[%s933_s7] sm:$0xff]  ;;  %v668_v23 = vld [vmem:[%s935_s8 + $0x10] sm:$0xf] }
  0x2c   : > { %466 = vmatpush.bf16.msra.mxu0 %v754_v7  ;;  %765 = vmatpush.bf16.msra.mxu2 %v754_v7  ;;  %v757_v18 = vld [vmem:[%s933_s7 + $0x48] sm:$0xff]  ;;  %v756_v20 = vld [vmem:[%s933_s7 + $0x40] sm:$0xff]  ;;  %v747_v24 = vld [vmem:[%s935_s8 + $0x14] sm:$0xf0] }
  0x2d   : > { %485 = vmatpush.bf16.msra.mxu1 %v762_v8  ;;  %773 = vmatpush.bf16.msra.mxu3 %v762_v8  ;;  %v660_v21 = vld [vmem:[%s935_s8] sm:$0xf]  ;;  %v745_v22 = vld [vmem:[%s935_s8 + $0x4] sm:$0xf0]  ;;  %v744_v25 = vld [vmem:[%s935_s8 + $0x4] sm:$0xf]  ;;  %v669_v30 = vor.u32 %v747_v24, %v668_v23 }
  0x2e   : > { %v662_v26 = vld [vmem:[%s935_s8 + $0x8] sm:$0xf0]  ;;  %v746_v27 = vld [vmem:[%s935_s8 + $0x14] sm:$0xf]  ;;  %v670_v28 = vld [vmem:[%s935_s8 + $0x18] sm:$0xf0]  ;;  %v661_v29 = vor.u32 %v745_v22, %v660_v21 }
  0x2f   : > { %v665_v31 = vor.u32 %v744_v25, %v662_v26  ;;  %v673_v32 = vor.u32 %v746_v27, %v670_v28  ;;  %v309_v34 = vld [vmem:[#allocation2 + $0x10] sm:$0xff]  ;;  %v311_v39 = vld [vmem:[#allocation2 + $0x18] sm:$0xff]  ;;  %v310_v43 = vld [vmem:[#allocation2] sm:$0xff] }
  0x30   : > { %467 = vmatpush.bf16.msra.mxu0 %v753_v9  ;;  %766 = vmatpush.bf16.msra.mxu2 %v753_v9  ;;  %v312_v49 = vld [vmem:[#allocation2 + $0x8] sm:$0xff] }
  0x31   : > { %486 = vmatpush.bf16.msra.mxu1 %v761_v10  ;;  %774 = vmatpush.bf16.msra.mxu3 %v761_v10 }
  0x34   : > { %468 = vmatpush.bf16.msra.mxu0 %v752_v11  ;;  %767 = vmatpush.bf16.msra.mxu2 %v752_v11 }
  0x35   : > { %487 = vmatpush.bf16.msra.mxu1 %v760_v12  ;;  %775 = vmatpush.bf16.msra.mxu3 %v760_v12 }
  0x38   : > { %469 = vmatpush.bf16.msra.mxu0 %v751_v13  ;;  %768 = vmatpush.bf16.msra.mxu2 %v751_v13 }
  0x39   : > { %488 = vmatpush.bf16.msra.mxu1 %v759_v14  ;;  %776 = vmatpush.bf16.msra.mxu3 %v759_v14 }
  0x3c   : > { %470 = vmatpush.bf16.msra.mxu0 %v750_v15  ;;  %769 = vmatpush.bf16.msra.mxu2 %v750_v15 }
  0x3d   : > { %489 = vmatpush.bf16.msra.mxu1 %v758_v16  ;;  %777 = vmatpush.bf16.msra.mxu3 %v758_v16 }
  0x40   : > { %471 = vmatpush.bf16.msra.mxu0 %v749_v17  ;;  %770 = vmatpush.bf16.msra.mxu2 %v749_v17 }
  0x41   : > { %490 = vmatpush.bf16.msra.mxu1 %v757_v18  ;;  %778 = vmatpush.bf16.msra.mxu3 %v757_v18 }
  0x44   : > { %472 = vmatpush.bf16.msra.mxu0 %v748_v19  ;;  %771 = vmatpush.bf16.msra.mxu2 %v748_v19 }
  0x45   : > { %491 = vmatpush.bf16.msra.mxu1 %v756_v20  ;;  %779 = vmatpush.bf16.msra.mxu3 %v756_v20 }
  0x47   : > { %473 = vmatmul.bf16.vlgmr.msra.gmra.mxu0 %v661_v29  ;;  %478 = vmatmul.bf16.vlgmr.msra.gmra.mxu2 %v669_v30 }
  0x48   : > { %492 = vmatmul.bf16.vlgmr.msra.gmra.mxu1 %v665_v31  ;;  %497 = vmatmul.bf16.vlgmr.msra.gmra.mxu3 %v673_v32 }
  0xc4   : > { %v474_v33 = vpop.f32.mrf.mxu0 }
  0xc5   : > { %v493_v35 = vpop.f32.mrf.mxu1 }
  0xc6   : > { %v494_v36 = vadd.f32 %v493_v35, %v474_v33 }
  0xc8   : > { %v503_v37 = vadd.f32 %v494_v36, %v309_v34 }
  0xca   : > { %507 = vst [vmem:[#allocation2 + $0x10] sm:$0xff] %v503_v37  ;;  %v479_v38 = vpop.f32.mrf.mxu2 }
  0xcb   : > { %v498_v40 = vpop.f32.mrf.mxu3 }
  0xcc   : > { %v499_v41 = vadd.f32 %v498_v40, %v479_v38  ;;  %v476_v42 = vpop.f32.mrf.mxu0 }
  0xcd   : > { %v495_v44 = vpop.f32.mrf.mxu1 }
  0xce   : > { %v505_v45 = vadd.f32 %v499_v41, %v311_v39  ;;  %v496_v46 = vadd.f32 %v495_v44, %v476_v42 }
  0xd0   : > { %509 = vst [vmem:[#allocation2 + $0x18] sm:$0xff] %v505_v45  ;;  %v504_v47 = vadd.f32 %v496_v46, %v310_v43 }
  0xd2   : > { %508 = vst [vmem:[#allocation2] sm:$0xff] %v504_v47  ;;  %v481_v48 = vpop.f32.mrf.mxu2 }
  0xd3   : > { %v500_v50 = vpop.f32.mrf.mxu3 }
  0xd4   : > { %v501_v51 = vadd.f32 %v500_v50, %v481_v48  ;;  %514 = sbr.rel (%p738_p11) target bundleno = 229 (0xe5), region = 78 }
  0xd6   : > { %v506_v52 = vadd.f32 %v501_v51, %v312_v49 }
  0xd8   : > { %510 = vst [vmem:[#allocation2 + $0x8] sm:$0xff] %v506_v52 }
  0xd9   : > { %v515_v53 = vld [vmem:[#allocation2 + $0x10] sm:$0xff]  ;;  %v821_v54 = vld [vmem:[%s995_s2] ss:$0 sm:$0xff]  ;;  %v517_v56 = vld [vmem:[#allocation2 + $0x18] sm:$0xff] }
  0xda   : > { %v516_v55 = vld [vmem:[#allocation2] sm:$0xff]  ;;  %v523_v58 = vadd.f32 %v821_v54, %v515_v53  ;;  %v525_v60 = vadd.f32 %v821_v54, %v517_v56 }
  0xdb   : > { %v524_v59 = vadd.f32 %v821_v54, %v516_v55 }
  0xdc   : > { %v527_v62 = vmax.f32 %v523_v58, 0.0  ;;  %v529_v0 = vmax.f32 %v525_v60, 0.0 }
  0xdd   : > { %v528_v63 = vmax.f32 %v524_v59, 0.0 }
  0xde   : > { %531 = vst [vmem:[%s996_s3] sm:$0xff] %v527_v62 }
  0xdf   : > { %v518_v57 = vld [vmem:[#allocation2 + $0x8] sm:$0xff]  ;;  %532 = vst [vmem:[%s996_s3 + $0x8] sm:$0xff] %v528_v63 }
  0xe0   : > { %v526_v61 = vadd.f32 %v821_v54, %v518_v57  ;;  %533 = vst [vmem:[%s996_s3 + $0x10] sm:$0xff] %v529_v0 }
  0xe2   : > { %v530_v1 = vmax.f32 %v526_v61, 0.0 }
  0xe4   : > { %534 = vst [vmem:[%s996_s3 + $0x18] sm:$0xff] %v530_v1 }
  0xe5 PF: > { %s13_s16 = sadd.s32 1, %s860_s16   ;;  %s997_s12 = smov %s848_s13 }
  0xe6   : > { %p10_p12 = scmp.ge.s32.totalorder %s13_s16, 7   ;;  %s998_s13 = smov %s918_s20 }
  0xe7   : > { %s999_s14 = smov %s856_s15  ;;  %s1000_s15 = smov %s1002_s17 }
  0xe8   :  { %12 = sbr.rel (!%p10_p12) target bundleno = 3 (0x3), region = 119 }

// kernel: bigram_resnet_forward.36
= control target key start
LH: loop header
LB: loop body
LE: loop exit
PB: predicated region body
PF: predicated region fallthrough
CT: control target
= control target key end

     0   :  { %s923_s12 = smov 0   ;;  %s925_s13 = smov 0   ;;  %s1040_s0 = inlined_call_operand.vmem [shape: bf16[8,1280], index: 0, kind: input, shape index: {}]   ;;  %s1041_s1 = inlined_call_operand.vmem [shape: bf16[1280,256], index: 1, kind: input, shape index: {}]   ;;  %s1042_s2 = inlined_call_operand.vmem [shape: f32[1,256], index: 2, kind: input, shape index: {}]   ;;  %s1043_s3 = inlined_call_operand.vmem [shape: f32[8,256], index: 3, kind: output, shape index: {}]  }
   0x1   :  { %s927_s14 = smov 0  }
   0x2 LB: > { %s25_s15 = sadd.s32 1, %s896_s13  ;;  %p680_p0 = scmp.ge.s32.totalorder %s900_s14, 1  ;;  %s900_s14 = sphi %s927_s14, %s13_s14   ;;  %s896_s13 = sphi %s925_s13, %s1045_s13   ;;  %s892_s12 = sphi %s923_s12, %s1044_s12  }
   0x3   : > { %p26_p1 = scmp.ge.s32.totalorder %s25_s15, 5  ;;  %p194_p2 = scmp.lt.s32.totalorder %s900_s14, 6 }
   0x5   : > { %s1047_s15 = smov (%p26_p1, %s25_s15), 0  ;;  %p195_p3 = pnand %p680_p0, %p194_p2 }
   0x6   : > { %s681_s16 = sshll.u32 (!%p195_p3), %s892_s12, 1  ;;  %s683_s17 = sshll.u32 (!%p195_p3), %s892_s12, 5 }
   0x7   : > { %198 = sbr.rel (%p195_p3) target bundleno = 209 (0xd1), region = 32  ;;  %p243_p4 = scmp.lt.s32.totalorder (!%p195_p3), %s681_s16, 9 }
   0x8   : > { %p252_p5 = scmp.lt.s32.totalorder (!%p195_p3), %s683_s17, 159  ;;  %p686_p6 = scmp.ne.s32.totalorder (!%p195_p3), %s892_s12, 0 }
   0xc   : > { %s1049_s16 = smov (!%p243_p4, %s681_s16), 9  ;;  %s1051_s17 = smov (!%p252_p5, %s683_s17), 159 }
   0xd   : > { %s682_s18 = sshll.u32 %s1049_s16, 2  ;;  %s820_s22 = sshll.u32 %s1051_s17, 3 }
   0xe   : > { %s948_s21 = scalar_lea.vmem %s1040_s0, %s682_s18  ;;  %s953_s25 = scalar_lea.vmem %s1041_s1, %s820_s22 }
   0xf   : > { %280 = sbr.rel (%p686_p6) target bundleno = 23 (0x17), region = 36 }
  0x14   : > { %v902_v0 = vmov 0.0  }
  0x15   : > { %281 = vst [vmem:[#allocation2] sm:$0xff] %v902_v0 }
  0x16   : > { %282 = vst [vmem:[#allocation2 + $0x8] sm:$0xff] %v902_v0 }
  0x17 PF: > { %v745_v1 = vld [vmem:[%s953_s25 + $0x70] sm:$0xf]  ;;  %v836_v2 = vld [vmem:[%s953_s25 + $0x74] sm:$0xf0]  ;;  %v835_v6 = vld [vmem:[%s953_s25 + $0x74] sm:$0xf] }
  0x18   : > { %v809_v3 = vld [vmem:[%s953_s25 + $0xf0] sm:$0xf]  ;;  %v746_v4 = vor.u32 %v836_v2, %v745_v1  ;;  %v852_v5 = vld [vmem:[%s953_s25 + $0xf4] sm:$0xf0]  ;;  %v747_v7 = vld [vmem:[%s953_s25 + $0x78] sm:$0xf0] }
  0x19   : > { %v810_v8 = vor.u32 %v852_v5, %v809_v3  ;;  %v750_v9 = vor.u32 %v835_v6, %v747_v7  ;;  %v851_v10 = vld [vmem:[%s953_s25 + $0xf4] sm:$0xf]  ;;  %v811_v11 = vld [vmem:[%s953_s25 + $0xf8] sm:$0xf0]  ;;  %v737_v12 = vld [vmem:[%s953_s25 + $0x60] sm:$0xf] }
  0x1a   : > { %485 = vmatpush.bf16.msra.mxu0 %v746_v4  ;;  %v814_v13 = vor.u32 %v851_v10, %v811_v11  ;;  %v834_v14 = vld [vmem:[%s953_s25 + $0x64] sm:$0xf0]  ;;  %v801_v15 = vld [vmem:[%s953_s25 + $0xe0] sm:$0xf]  ;;  %v833_v19 = vld [vmem:[%s953_s25 + $0x64] sm:$0xf] }
  0x1b   : > { %v850_v16 = vld [vmem:[%s953_s25 + $0xe4] sm:$0xf0]  ;;  %498 = vmatpush.bf16.msra.mxu1 %v810_v8  ;;  %511 = vmatpush.bf16.msra.mxu2 %v750_v9  ;;  %v738_v17 = vor.u32 %v834_v14, %v737_v12  ;;  %v739_v20 = vld [vmem:[%s953_s25 + $0x68] sm:$0xf0]  ;;  %v849_v21 = vld [vmem:[%s953_s25 + $0xe4] sm:$0xf] }
  0x1c   : > { %v802_v18 = vor.u32 %v850_v16, %v801_v15  ;;  %524 = vmatpush.bf16.msra.mxu3 %v814_v13  ;;  %v742_v22 = vor.u32 %v833_v19, %v739_v20  ;;  %v803_v23 = vld [vmem:[%s953_s25 + $0xe8] sm:$0xf0]  ;;  %v729_v24 = vld [vmem:[%s953_s25 + $0x50] sm:$0xf]  ;;  %v832_v25 = vld [vmem:[%s953_s25 + $0x54] sm:$0xf0] }
  0x1d   : > { %v806_v26 = vor.u32 %v849_v21, %v803_v23  ;;  %v793_v27 = vld [vmem:[%s953_s25 + $0xd0] sm:$0xf]  ;;  %v848_v28 = vld [vmem:[%s953_s25 + $0xd4] sm:$0xf0]  ;;  %v831_v29 = vld [vmem:[%s953_s25 + $0x54] sm:$0xf]  ;;  %v730_v30 = vor.u32 %v832_v25, %v729_v24 }
  0x1e   : > { %486 = vmatpush.bf16.msra.mxu0 %v738_v17  ;;  %v731_v31 = vld [vmem:[%s953_s25 + $0x58] sm:$0xf0]  ;;  %v847_v32 = vld [vmem:[%s953_s25 + $0xd4] sm:$0xf]  ;;  %v794_v34 = vor.u32 %v848_v28, %v793_v27  ;;  %v721_v36 = vld [vmem:[%s953_s25 + $0x40] sm:$0xf] }
  0x1f   : > { %v795_v33 = vld [vmem:[%s953_s25 + $0xd8] sm:$0xf0]  ;;  %499 = vmatpush.bf16.msra.mxu1 %v802_v18  ;;  %512 = vmatpush.bf16.msra.mxu2 %v742_v22  ;;  %v734_v35 = vor.u32 %v831_v29, %v731_v31  ;;  %v830_v37 = vld [vmem:[%s953_s25 + $0x44] sm:$0xf0]  ;;  %v785_v38 = vld [vmem:[%s953_s25 + $0xc0] sm:$0xf] }
  0x20   : > { %525 = vmatpush.bf16.msra.mxu3 %v806_v26  ;;  %v798_v39 = vor.u32 %v847_v32, %v795_v33  ;;  %v846_v40 = vld [vmem:[%s953_s25 + $0xc4] sm:$0xf0]  ;;  %v829_v41 = vld [vmem:[%s953_s25 + $0x44] sm:$0xf]  ;;  %v723_v42 = vld [vmem:[%s953_s25 + $0x48] sm:$0xf0]  ;;  %v722_v45 = vor.u32 %v830_v37, %v721_v36 }
  0x21   : > { %v845_v43 = vld [vmem:[%s953_s25 + $0xc4] sm:$0xf]  ;;  %v787_v44 = vld [vmem:[%s953_s25 + $0xc8] sm:$0xf0]  ;;  %v786_v46 = vor.u32 %v846_v40, %v785_v38  ;;  %v726_v47 = vor.u32 %v829_v41, %v723_v42  ;;  %v713_v48 = vld [vmem:[%s953_s25 + $0x30] sm:$0xf] }
  0x22   : > { %487 = vmatpush.bf16.msra.mxu0 %v730_v30  ;;  %v828_v49 = vld [vmem:[%s953_s25 + $0x34] sm:$0xf0]  ;;  %v777_v50 = vld [vmem:[%s953_s25 + $0xb0] sm:$0xf]  ;;  %v790_v51 = vor.u32 %v845_v43, %v787_v44  ;;  %v827_v53 = vld [vmem:[%s953_s25 + $0x34] sm:$0xf] }
  0x23   : > { %500 = vmatpush.bf16.msra.mxu1 %v794_v34  ;;  %513 = vmatpush.bf16.msra.mxu2 %v734_v35  ;;  %v844_v52 = vld [vmem:[%s953_s25 + $0xb4] sm:$0xf0]  ;;  %v715_v54 = vld [vmem:[%s953_s25 + $0x38] sm:$0xf0]  ;;  %v843_v55 = vld [vmem:[%s953_s25 + $0xb4] sm:$0xf]  ;;  %v714_v57 = vor.u32 %v828_v49, %v713_v48 }
  0x24   : > { %526 = vmatpush.bf16.msra.mxu3 %v798_v39  ;;  %v779_v56 = vld [vmem:[%s953_s25 + $0xb8] sm:$0xf0]  ;;  %v778_v58 = vor.u32 %v844_v52, %v777_v50  ;;  %v718_v59 = vor.u32 %v827_v53, %v715_v54  ;;  %v705_v60 = vld [vmem:[%s953_s25 + $0x20] sm:$0xf]  ;;  %v826_v61 = vld [vmem:[%s953_s25 + $0x24] sm:$0xf0] }
  0x25   : > { %v769_v62 = vld [vmem:[%s953_s25 + $0xa0] sm:$0xf]  ;;  %v782_v63 = vor.u32 %v843_v55, %v779_v56  ;;  %v842_v0 = vld [vmem:[%s953_s25 + $0xa4] sm:$0xf0]  ;;  %v825_v1 = vld [vmem:[%s953_s25 + $0x24] sm:$0xf]  ;;  %v706_v5 = vor.u32 %v826_v61, %v705_v60 }
  0x26   : > { %488 = vmatpush.bf16.msra.mxu0 %v722_v45  ;;  %v707_v2 = vld [vmem:[%s953_s25 + $0x28] sm:$0xf0]  ;;  %v841_v3 = vld [vmem:[%s953_s25 + $0xa4] sm:$0xf]  ;;  %v770_v6 = vor.u32 %v842_v0, %v769_v62  ;;  %v697_v8 = vld [vmem:[%s953_s25 + $0x10] sm:$0xf] }
  0x27   : > { %501 = vmatpush.bf16.msra.mxu1 %v786_v46  ;;  %514 = vmatpush.bf16.msra.mxu2 %v726_v47  ;;  %v771_v4 = vld [vmem:[%s953_s25 + $0xa8] sm:$0xf0]  ;;  %v710_v7 = vor.u32 %v825_v1, %v707_v2  ;;  %v824_v9 = vld [vmem:[%s953_s25 + $0x14] sm:$0xf0]  ;;  %v761_v10 = vld [vmem:[%s953_s25 + $0x90] sm:$0xf] }
  0x28   : > { %527 = vmatpush.bf16.msra.mxu3 %v790_v51  ;;  %v774_v11 = vor.u32 %v841_v3, %v771_v4  ;;  %v840_v12 = vld [vmem:[%s953_s25 + $0x94] sm:$0xf0]  ;;  %v823_v13 = vld [vmem:[%s953_s25 + $0x14] sm:$0xf]  ;;  %v699_v14 = vld [vmem:[%s953_s25 + $0x18] sm:$0xf0]  ;;  %v698_v17 = vor.u32 %v824_v9, %v697_v8 }
  0x29   : > { %v839_v15 = vld [vmem:[%s953_s25 + $0x94] sm:$0xf]  ;;  %v763_v16 = vld [vmem:[%s953_s25 + $0x98] sm:$0xf0]  ;;  %v285_v18 = vld [vmem:[%s948_s21] sm:$0xff]  ;;  %v762_v19 = vor.u32 %v840_v12, %v761_v10  ;;  %v702_v20 = vor.u32 %v823_v13, %v699_v14  ;;  %p815_p7 = scmp.ne.s32.totalorder %s892_s12, 4 }
  0x2a   : > { %489 = vmatpush.bf16.msra.mxu0 %v714_v57  ;;  %v689_v21 = vld [vmem:[%s953_s25] sm:$0xf]  ;;  %v822_v22 = vld [vmem:[%s953_s25 + $0x4] sm:$0xf0]  ;;  %v766_v24 = vor.u32 %v839_v15, %v763_v16  ;;  %v821_v26 = vld [vmem:[%s953_s25 + $0x4] sm:$0xf]  ;;  %v319_v30 = vunpack.c.l.b16 %v285_v18  ;;  %v320_v32 = vunpack.c.h.b16 %v285_v18 }
  0x2b   : > { %502 = vmatpush.bf16.msra.mxu1 %v778_v58  ;;  %515 = vmatpush.bf16.msra.mxu2 %v718_v59  ;;  %v753_v23 = vld [vmem:[%s953_s25 + $0x80] sm:$0xf]  ;;  %v838_v25 = vld [vmem:[%s953_s25 + $0x84] sm:$0xf0]  ;;  %v691_v27 = vld [vmem:[%s953_s25 + $0x8] sm:$0xf0]  ;;  %v690_v31 = vor.u32 %v822_v22, %v689_v21 }
  0x2c   : > { %528 = vmatpush.bf16.msra.mxu3 %v782_v63  ;;  %v837_v28 = vld [vmem:[%s953_s25 + $0x84] sm:$0xf]  ;;  %v755_v29 = vld [vmem:[%s953_s25 + $0x88] sm:$0xf0]  ;;  %v754_v33 = vor.u32 %v838_v25, %v753_v23  ;;  %v694_v34 = vor.u32 %v821_v26, %v691_v27  ;;  %v321_v36 = vpack.c.b16 %v319_v30, %v319_v30  ;;  %v322_v37 = vpack.c.b16 %v320_v32, %v320_v32 }
  0x2d   : > { %v758_v35 = vor.u32 %v837_v28, %v755_v29  ;;  %v283_v39 = vld [vmem:[#allocation2] sm:$0xff]  ;;  %v284_v44 = vld [vmem:[#allocation2 + $0x8] sm:$0xff] }
  0x2e   : > { %490 = vmatpush.bf16.msra.mxu0 %v706_v5 }
  0x2f   : > { %503 = vmatpush.bf16.msra.mxu1 %v770_v6  ;;  %516 = vmatpush.bf16.msra.mxu2 %v710_v7 }
  0x30   : > { %529 = vmatpush.bf16.msra.mxu3 %v774_v11 }
  0x32   : > { %491 = vmatpush.bf16.msra.mxu0 %v698_v17 }
  0x33   : > { %504 = vmatpush.bf16.msra.mxu1 %v762_v19  ;;  %517 = vmatpush.bf16.msra.mxu2 %v702_v20 }
  0x34   : > { %530 = vmatpush.bf16.msra.mxu3 %v766_v24 }
  0x36   : > { %492 = vmatpush.bf16.msra.mxu0 %v690_v31 }
  0x37   : > { %505 = vmatpush.bf16.msra.mxu1 %v754_v33  ;;  %518 = vmatpush.bf16.msra.mxu2 %v694_v34 }
  0x38   : > { %531 = vmatpush.bf16.msra.mxu3 %v758_v35 }
  0x39   : > { %493 = vmatmul.bf16.vlgmr.msra.gmra.mxu0 %v321_v36 }
  0x3a   : > { %506 = vmatmul.bf16.vlgmr.msra.gmra.mxu1 %v322_v37  ;;  %519 = vmatmul.bf16.vlgmr.msra.gmra.mxu2 %v321_v36 }
  0x3b   : > { %532 = vmatmul.bf16.vlgmr.msra.gmra.mxu3 %v322_v37 }
  0xb6   : > { %v494_v38 = vpop.f32.mrf.mxu0 }
  0xb7   : > { %v507_v40 = vpop.f32.mrf.mxu1 }
  0xb8   : > { %v508_v41 = vadd.f32 %v507_v40, %v494_v38 }
  0xba   : > { %v537_v42 = vadd.f32 %v508_v41, %v283_v39 }
  0xbc   : > { %539 = vst [vmem:[#allocation2] sm:$0xff] %v537_v42 }
  0xbd   : > { %v520_v43 = vpop.f32.mrf.mxu2 }
  0xbe   : > { %v533_v45 = vpop.f32.mrf.mxu3  ;;  %v496_v46 = vpop.f32.mrf.mxu0 }
  0xbf   : > { %v534_v47 = vadd.f32 %v533_v45, %v520_v43  ;;  %v509_v48 = vpop.f32.mrf.mxu1 }
  0xc1   : > { %v538_v49 = vadd.f32 %v534_v47, %v284_v44 }
  0xc2   : > { %544 = sbr.rel (%p815_p7) target bundleno = 209 (0xd1), region = 40 }
  0xc3   : > { %540 = vst [vmem:[#allocation2 + $0x8] sm:$0xff] %v538_v49 }
  0xc5   : > { %v522_v50 = vpop.f32.mrf.mxu2 }
  0xc6   : > { %v535_v51 = vpop.f32.mrf.mxu3 }
  0xc7   : > { %v545_v52 = vld [vmem:[#allocation2] sm:$0xff] }
  0xc8   : > { %v547_v53 = vld [vmem:[%s1042_s2] sm:$0x3] }
  0xc9   : > { %v549_v55 = vperm.slane %v547_v53, 0  ;;  %v550_v56 = vperm.slane %v547_v53, 1 }
  0xca   : > { %v546_v54 = vld [vmem:[#allocation2 + $0x8] sm:$0xff] }
  0xcb   : > { %v553_v57 = vadd.f32 %v549_v55, %v545_v52  ;;  %v554_v58 = vadd.f32 %v550_v56, %v546_v54 }
  0xcd   : > { %v555_v59 = vmax.f32 %v553_v57, 0.0  ;;  %v556_v60 = vmax.f32 %v554_v58, 0.0 }
  0xcf   : > { %557 = vst [vmem:[%s1043_s3] sm:$0xff] %v555_v59 }
  0xd0   : > { %558 = vst [vmem:[%s1043_s3 + $0x8] sm:$0xff] %v556_v60 }
  0xd1 PF: > { %s13_s14 = sadd.s32 1, %s900_s14   ;;  %s1044_s12 = smov %s896_s13 }
  0xd2   : > { %p10_p8 = scmp.ge.s32.totalorder %s13_s14, 7   ;;  %s1045_s13 = smov %s1047_s15 }
  0xd4   :  { %12 = sbr.rel (!%p10_p8) target bundleno = 2 (0x2), region = 76 }

// kernel: bigram_resnet_forward.35
= control target key start
LH: loop header
LB: loop body
LE: loop exit
PB: predicated region body
PF: predicated region fallthrough
CT: control target
= control target key end

     0   :  { %s681_s1 = inlined_call_operand.vmem [shape: bf16[256,256], index: 1, kind: input, shape index: {}]   ;;  %s682_s0 = inlined_call_operand.vmem [shape: bf16[8,256], index: 0, kind: input, shape index: {}]   ;;  %s683_s2 = inlined_call_operand.vmem [shape: f32[1,256], index: 2, kind: input, shape index: {}]   ;;  %s684_s3 = inlined_call_operand.vmem [shape: f32[8,256], index: 3, kind: output, shape index: {}]  }
   0x1   :  { %v355_v0 = vld [vmem:[%s681_s1 + $0x70] sm:$0xf]  ;;  %v440_v1 = vld [vmem:[%s681_s1 + $0x74] sm:$0xf0]  ;;  %v439_v5 = vld [vmem:[%s681_s1 + $0x74] sm:$0xf] }
   0x2   :  { %v419_v2 = vld [vmem:[%s681_s1 + $0xf0] sm:$0xf]  ;;  %v356_v3 = vor.u32 %v440_v1, %v355_v0  ;;  %v456_v4 = vld [vmem:[%s681_s1 + $0xf4] sm:$0xf0]  ;;  %v357_v6 = vld [vmem:[%s681_s1 + $0x78] sm:$0xf0] }
   0x3   :  { %v420_v7 = vor.u32 %v456_v4, %v419_v2  ;;  %v360_v8 = vor.u32 %v439_v5, %v357_v6  ;;  %v455_v9 = vld [vmem:[%s681_s1 + $0xf4] sm:$0xf]  ;;  %v421_v10 = vld [vmem:[%s681_s1 + $0xf8] sm:$0xf0]  ;;  %v347_v11 = vld [vmem:[%s681_s1 + $0x60] sm:$0xf] }
   0x4   :  { %222 = vmatpush.bf16.msra.mxu0 %v356_v3  ;;  %v424_v12 = vor.u32 %v455_v9, %v421_v10  ;;  %v438_v13 = vld [vmem:[%s681_s1 + $0x64] sm:$0xf0]  ;;  %v411_v14 = vld [vmem:[%s681_s1 + $0xe0] sm:$0xf]  ;;  %v437_v18 = vld [vmem:[%s681_s1 + $0x64] sm:$0xf] }
   0x5   :  { %v454_v15 = vld [vmem:[%s681_s1 + $0xe4] sm:$0xf0]  ;;  %235 = vmatpush.bf16.msra.mxu1 %v420_v7  ;;  %248 = vmatpush.bf16.msra.mxu2 %v360_v8  ;;  %v348_v16 = vor.u32 %v438_v13, %v347_v11  ;;  %v349_v19 = vld [vmem:[%s681_s1 + $0x68] sm:$0xf0]  ;;  %v453_v20 = vld [vmem:[%s681_s1 + $0xe4] sm:$0xf] }
   0x6   :  { %v412_v17 = vor.u32 %v454_v15, %v411_v14  ;;  %261 = vmatpush.bf16.msra.mxu3 %v424_v12  ;;  %v352_v21 = vor.u32 %v437_v18, %v349_v19  ;;  %v413_v22 = vld [vmem:[%s681_s1 + $0xe8] sm:$0xf0]  ;;  %v339_v23 = vld [vmem:[%s681_s1 + $0x50] sm:$0xf]  ;;  %v436_v24 = vld [vmem:[%s681_s1 + $0x54] sm:$0xf0] }
   0x7   :  { %v416_v25 = vor.u32 %v453_v20, %v413_v22  ;;  %v403_v26 = vld [vmem:[%s681_s1 + $0xd0] sm:$0xf]  ;;  %v452_v27 = vld [vmem:[%s681_s1 + $0xd4] sm:$0xf0]  ;;  %v435_v28 = vld [vmem:[%s681_s1 + $0x54] sm:$0xf]  ;;  %v340_v29 = vor.u32 %v436_v24, %v339_v23 }
   0x8   :  { %223 = vmatpush.bf16.msra.mxu0 %v348_v16  ;;  %v341_v30 = vld [vmem:[%s681_s1 + $0x58] sm:$0xf0]  ;;  %v451_v31 = vld [vmem:[%s681_s1 + $0xd4] sm:$0xf]  ;;  %v404_v33 = vor.u32 %v452_v27, %v403_v26  ;;  %v331_v35 = vld [vmem:[%s681_s1 + $0x40] sm:$0xf] }
   0x9   :  { %v405_v32 = vld [vmem:[%s681_s1 + $0xd8] sm:$0xf0]  ;;  %236 = vmatpush.bf16.msra.mxu1 %v412_v17  ;;  %249 = vmatpush.bf16.msra.mxu2 %v352_v21  ;;  %v344_v34 = vor.u32 %v435_v28, %v341_v30  ;;  %v434_v36 = vld [vmem:[%s681_s1 + $0x44] sm:$0xf0]  ;;  %v395_v37 = vld [vmem:[%s681_s1 + $0xc0] sm:$0xf] }
   0xa   :  { %262 = vmatpush.bf16.msra.mxu3 %v416_v25  ;;  %v408_v38 = vor.u32 %v451_v31, %v405_v32  ;;  %v450_v39 = vld [vmem:[%s681_s1 + $0xc4] sm:$0xf0]  ;;  %v433_v40 = vld [vmem:[%s681_s1 + $0x44] sm:$0xf]  ;;  %v333_v41 = vld [vmem:[%s681_s1 + $0x48] sm:$0xf0]  ;;  %v332_v44 = vor.u32 %v434_v36, %v331_v35 }
   0xb   :  { %v449_v42 = vld [vmem:[%s681_s1 + $0xc4] sm:$0xf]  ;;  %v397_v43 = vld [vmem:[%s681_s1 + $0xc8] sm:$0xf0]  ;;  %v396_v45 = vor.u32 %v450_v39, %v395_v37  ;;  %v336_v46 = vor.u32 %v433_v40, %v333_v41  ;;  %v323_v47 = vld [vmem:[%s681_s1 + $0x30] sm:$0xf] }
   0xc   :  { %224 = vmatpush.bf16.msra.mxu0 %v340_v29  ;;  %v432_v48 = vld [vmem:[%s681_s1 + $0x34] sm:$0xf0]  ;;  %v387_v49 = vld [vmem:[%s681_s1 + $0xb0] sm:$0xf]  ;;  %v400_v50 = vor.u32 %v449_v42, %v397_v43  ;;  %v431_v52 = vld [vmem:[%s681_s1 + $0x34] sm:$0xf] }
   0xd   :  { %237 = vmatpush.bf16.msra.mxu1 %v404_v33  ;;  %250 = vmatpush.bf16.msra.mxu2 %v344_v34  ;;  %v448_v51 = vld [vmem:[%s681_s1 + $0xb4] sm:$0xf0]  ;;  %v325_v53 = vld [vmem:[%s681_s1 + $0x38] sm:$0xf0]  ;;  %v447_v54 = vld [vmem:[%s681_s1 + $0xb4] sm:$0xf]  ;;  %v324_v56 = vor.u32 %v432_v48, %v323_v47 }
   0xe   :  { %263 = vmatpush.bf16.msra.mxu3 %v408_v38  ;;  %v389_v55 = vld [vmem:[%s681_s1 + $0xb8] sm:$0xf0]  ;;  %v388_v57 = vor.u32 %v448_v51, %v387_v49  ;;  %v328_v58 = vor.u32 %v431_v52, %v325_v53  ;;  %v315_v59 = vld [vmem:[%s681_s1 + $0x20] sm:$0xf]  ;;  %v430_v60 = vld [vmem:[%s681_s1 + $0x24] sm:$0xf0] }
   0xf   :  { %v379_v61 = vld [vmem:[%s681_s1 + $0xa0] sm:$0xf]  ;;  %v392_v62 = vor.u32 %v447_v54, %v389_v55  ;;  %v446_v63 = vld [vmem:[%s681_s1 + $0xa4] sm:$0xf0]  ;;  %v429_v0 = vld [vmem:[%s681_s1 + $0x24] sm:$0xf]  ;;  %v316_v4 = vor.u32 %v430_v60, %v315_v59 }
  0x10   :  { %225 = vmatpush.bf16.msra.mxu0 %v332_v44  ;;  %v317_v1 = vld [vmem:[%s681_s1 + $0x28] sm:$0xf0]  ;;  %v445_v2 = vld [vmem:[%s681_s1 + $0xa4] sm:$0xf]  ;;  %v380_v5 = vor.u32 %v446_v63, %v379_v61  ;;  %v307_v7 = vld [vmem:[%s681_s1 + $0x10] sm:$0xf] }
  0x11   :  { %238 = vmatpush.bf16.msra.mxu1 %v396_v45  ;;  %251 = vmatpush.bf16.msra.mxu2 %v336_v46  ;;  %v381_v3 = vld [vmem:[%s681_s1 + $0xa8] sm:$0xf0]  ;;  %v320_v6 = vor.u32 %v429_v0, %v317_v1  ;;  %v428_v8 = vld [vmem:[%s681_s1 + $0x14] sm:$0xf0]  ;;  %v371_v9 = vld [vmem:[%s681_s1 + $0x90] sm:$0xf] }
  0x12   :  { %264 = vmatpush.bf16.msra.mxu3 %v400_v50  ;;  %v384_v10 = vor.u32 %v445_v2, %v381_v3  ;;  %v444_v11 = vld [vmem:[%s681_s1 + $0x94] sm:$0xf0]  ;;  %v427_v12 = vld [vmem:[%s681_s1 + $0x14] sm:$0xf]  ;;  %v309_v13 = vld [vmem:[%s681_s1 + $0x18] sm:$0xf0]  ;;  %v308_v16 = vor.u32 %v428_v8, %v307_v7 }
  0x13   :  { %v443_v14 = vld [vmem:[%s681_s1 + $0x94] sm:$0xf]  ;;  %v373_v15 = vld [vmem:[%s681_s1 + $0x98] sm:$0xf0]  ;;  %v22_v17 = vld [vmem:[%s682_s0] sm:$0xff]  ;;  %v372_v18 = vor.u32 %v444_v11, %v371_v9  ;;  %v312_v19 = vor.u32 %v427_v12, %v309_v13 }
  0x14   :  { %226 = vmatpush.bf16.msra.mxu0 %v324_v56  ;;  %v299_v20 = vld [vmem:[%s681_s1] sm:$0xf]  ;;  %v426_v21 = vld [vmem:[%s681_s1 + $0x4] sm:$0xf0]  ;;  %v376_v23 = vor.u32 %v443_v14, %v373_v15  ;;  %v425_v25 = vld [vmem:[%s681_s1 + $0x4] sm:$0xf]  ;;  %v56_v29 = vunpack.c.l.b16 %v22_v17  ;;  %v57_v31 = vunpack.c.h.b16 %v22_v17 }
  0x15   :  { %239 = vmatpush.bf16.msra.mxu1 %v388_v57  ;;  %252 = vmatpush.bf16.msra.mxu2 %v328_v58  ;;  %v363_v22 = vld [vmem:[%s681_s1 + $0x80] sm:$0xf]  ;;  %v442_v24 = vld [vmem:[%s681_s1 + $0x84] sm:$0xf0]  ;;  %v301_v26 = vld [vmem:[%s681_s1 + $0x8] sm:$0xf0]  ;;  %v300_v30 = vor.u32 %v426_v21, %v299_v20 }
  0x16   :  { %265 = vmatpush.bf16.msra.mxu3 %v392_v62  ;;  %v441_v27 = vld [vmem:[%s681_s1 + $0x84] sm:$0xf]  ;;  %v365_v28 = vld [vmem:[%s681_s1 + $0x88] sm:$0xf0]  ;;  %v364_v32 = vor.u32 %v442_v24, %v363_v22  ;;  %v304_v33 = vor.u32 %v425_v25, %v301_v26  ;;  %v58_v35 = vpack.c.b16 %v56_v29, %v56_v29  ;;  %v59_v36 = vpack.c.b16 %v57_v31, %v57_v31  ;;  %v283_v37 = vld [vmem:[%s683_s2] sm:$0x3] }
  0x17   :  { %v368_v34 = vor.u32 %v441_v27, %v365_v28  ;;  %v285_v39 = vperm.slane %v283_v37, 0  ;;  %v286_v44 = vperm.slane %v283_v37, 1 }
  0x18   :  { %227 = vmatpush.bf16.msra.mxu0 %v316_v4 }
  0x19   :  { %240 = vmatpush.bf16.msra.mxu1 %v380_v5  ;;  %253 = vmatpush.bf16.msra.mxu2 %v320_v6 }
  0x1a   :  { %266 = vmatpush.bf16.msra.mxu3 %v384_v10 }
  0x1c   :  { %228 = vmatpush.bf16.msra.mxu0 %v308_v16 }
  0x1d   :  { %241 = vmatpush.bf16.msra.mxu1 %v372_v18  ;;  %254 = vmatpush.bf16.msra.mxu2 %v312_v19 }
  0x1e   :  { %267 = vmatpush.bf16.msra.mxu3 %v376_v23 }
  0x20   :  { %229 = vmatpush.bf16.msra.mxu0 %v300_v30 }
  0x21   :  { %242 = vmatpush.bf16.msra.mxu1 %v364_v32  ;;  %255 = vmatpush.bf16.msra.mxu2 %v304_v33 }
  0x22   :  { %268 = vmatpush.bf16.msra.mxu3 %v368_v34 }
  0x23   :  { %230 = vmatmul.bf16.vlgmr.msra.gmra.mxu0 %v58_v35 }
  0x24   :  { %243 = vmatmul.bf16.vlgmr.msra.gmra.mxu1 %v59_v36  ;;  %256 = vmatmul.bf16.vlgmr.msra.gmra.mxu2 %v58_v35 }
  0x25   :  { %269 = vmatmul.bf16.vlgmr.msra.gmra.mxu3 %v59_v36 }
  0xa0   :  { %v231_v38 = vpop.f32.mrf.mxu0 }
  0xa1   :  { %v244_v40 = vpop.f32.mrf.mxu1 }
  0xa2   :  { %v245_v41 = vadd.f32 %v244_v40, %v231_v38 }
  0xa4   :  { %v289_v42 = vadd.f32 %v285_v39, %v245_v41 }
  0xa6   :  { %291 = vst [vmem:[%s684_s3] sm:$0xff] %v289_v42 }
  0xa7   :  { %v257_v43 = vpop.f32.mrf.mxu2 }
  0xa8   :  { %v270_v45 = vpop.f32.mrf.mxu3  ;;  %v233_v46 = vpop.f32.mrf.mxu0 }
  0xa9   :  { %v271_v47 = vadd.f32 %v270_v45, %v257_v43  ;;  %v246_v48 = vpop.f32.mrf.mxu1 }
  0xab   :  { %v290_v49 = vadd.f32 %v286_v44, %v271_v47 }
  0xad   :  { %292 = vst [vmem:[%s684_s3 + $0x8] sm:$0xff] %v290_v49 }
  0xaf   :  { %v259_v50 = vpop.f32.mrf.mxu2 }
  0xb0   :  { %v272_v51 = vpop.f32.mrf.mxu3 }

// kernel: bigram_resnet_forward.37
= control target key start
LH: loop header
LB: loop body
LE: loop exit
PB: predicated region body
PF: predicated region fallthrough
CT: control target
= control target key end

     0   :  { %s1017_s15 = smov 0   ;;  %s1019_s16 = smov 0   ;;  %s1140_s0 = inlined_call_operand.vmem [shape: bf16[8,2304], index: 0, kind: input, shape index: {}]   ;;  %s1141_s1 = inlined_call_operand.vmem [shape: bf16[2304,256], index: 1, kind: input, shape index: {}]   ;;  %s1142_s2 = inlined_call_operand.vmem [shape: f32[1,256], index: 2, kind: input, shape index: {}]   ;;  %s1143_s3 = inlined_call_operand.vmem [shape: f32[8,256], index: 3, kind: input, shape index: {}]   ;;  %s1144_s4 = inlined_call_operand.vmem [shape: f32[8,256], index: 4, kind: output, shape index: {}]  }
   0x1   :  { %s1021_s17 = smov 0  }
   0x2 LB: > { %s26_s18 = sadd.s32 1, %s985_s16  ;;  %p769_p0 = scmp.ge.s32.totalorder %s989_s17, 1  ;;  %s989_s17 = sphi %s1021_s17, %s14_s17   ;;  %s985_s16 = sphi %s1019_s16, %s1146_s16   ;;  %s981_s15 = sphi %s1017_s15, %s1145_s15  }
   0x3   : > { %p27_p1 = scmp.ge.s32.totalorder %s26_s18, 9  ;;  %p236_p2 = scmp.lt.s32.totalorder %s989_s17, 10 }
   0x5   : > { %s1148_s18 = smov (%p27_p1, %s26_s18), 0  ;;  %p237_p3 = pnand %p769_p0, %p236_p2 }
   0x6   : > { %s770_s19 = sshll.u32 (!%p237_p3), %s981_s15, 1  ;;  %s772_s20 = sshll.u32 (!%p237_p3), %s981_s15, 5 }
   0x7   : > { %240 = sbr.rel (%p237_p3) target bundleno = 211 (0xd3), region = 36  ;;  %p296_p4 = scmp.lt.s32.totalorder (!%p237_p3), %s770_s19, 17 }
   0x8   : > { %p305_p5 = scmp.lt.s32.totalorder (!%p237_p3), %s772_s20, 287  ;;  %p775_p6 = scmp.ne.s32.totalorder (!%p237_p3), %s981_s15, 0 }
   0xc   : > { %s1150_s19 = smov (!%p296_p4, %s770_s19), 17  ;;  %s1152_s20 = smov (!%p305_p5, %s772_s20), 287 }
   0xd   : > { %s771_s21 = sshll.u32 %s1150_s19, 2  ;;  %s909_s25 = sshll.u32 %s1152_s20, 3 }
   0xe   : > { %s1042_s24 = scalar_lea.vmem %s1140_s0, %s771_s21  ;;  %s1047_s28 = scalar_lea.vmem %s1141_s1, %s909_s25 }
   0xf   : > { %343 = sbr.rel (%p775_p6) target bundleno = 23 (0x17), region = 40 }
  0x14   : > { %v991_v0 = vmov 0.0  }
  0x15   : > { %344 = vst [vmem:[#allocation2] sm:$0xff] %v991_v0 }
  0x16   : > { %345 = vst [vmem:[#allocation2 + $0x8] sm:$0xff] %v991_v0 }
  0x17 PF: > { %v834_v1 = vld [vmem:[%s1047_s28 + $0x70] sm:$0xf]  ;;  %v925_v2 = vld [vmem:[%s1047_s28 + $0x74] sm:$0xf0]  ;;  %v924_v6 = vld [vmem:[%s1047_s28 + $0x74] sm:$0xf] }
  0x18   : > { %v898_v3 = vld [vmem:[%s1047_s28 + $0xf0] sm:$0xf]  ;;  %v835_v4 = vor.u32 %v925_v2, %v834_v1  ;;  %v941_v5 = vld [vmem:[%s1047_s28 + $0xf4] sm:$0xf0]  ;;  %v836_v7 = vld [vmem:[%s1047_s28 + $0x78] sm:$0xf0] }
  0x19   : > { %v899_v8 = vor.u32 %v941_v5, %v898_v3  ;;  %v839_v9 = vor.u32 %v924_v6, %v836_v7  ;;  %v940_v10 = vld [vmem:[%s1047_s28 + $0xf4] sm:$0xf]  ;;  %v900_v11 = vld [vmem:[%s1047_s28 + $0xf8] sm:$0xf0]  ;;  %v826_v12 = vld [vmem:[%s1047_s28 + $0x60] sm:$0xf] }
  0x1a   : > { %548 = vmatpush.bf16.msra.mxu0 %v835_v4  ;;  %v903_v13 = vor.u32 %v940_v10, %v900_v11  ;;  %v923_v14 = vld [vmem:[%s1047_s28 + $0x64] sm:$0xf0]  ;;  %v890_v15 = vld [vmem:[%s1047_s28 + $0xe0] sm:$0xf]  ;;  %v922_v19 = vld [vmem:[%s1047_s28 + $0x64] sm:$0xf] }
  0x1b   : > { %v939_v16 = vld [vmem:[%s1047_s28 + $0xe4] sm:$0xf0]  ;;  %561 = vmatpush.bf16.msra.mxu1 %v899_v8  ;;  %574 = vmatpush.bf16.msra.mxu2 %v839_v9  ;;  %v827_v17 = vor.u32 %v923_v14, %v826_v12  ;;  %v828_v20 = vld [vmem:[%s1047_s28 + $0x68] sm:$0xf0]  ;;  %v938_v21 = vld [vmem:[%s1047_s28 + $0xe4] sm:$0xf] }
  0x1c   : > { %v891_v18 = vor.u32 %v939_v16, %v890_v15  ;;  %587 = vmatpush.bf16.msra.mxu3 %v903_v13  ;;  %v831_v22 = vor.u32 %v922_v19, %v828_v20  ;;  %v892_v23 = vld [vmem:[%s1047_s28 + $0xe8] sm:$0xf0]  ;;  %v818_v24 = vld [vmem:[%s1047_s28 + $0x50] sm:$0xf]  ;;  %v921_v25 = vld [vmem:[%s1047_s28 + $0x54] sm:$0xf0] }
  0x1d   : > { %v895_v26 = vor.u32 %v938_v21, %v892_v23  ;;  %v882_v27 = vld [vmem:[%s1047_s28 + $0xd0] sm:$0xf]  ;;  %v937_v28 = vld [vmem:[%s1047_s28 + $0xd4] sm:$0xf0]  ;;  %v920_v29 = vld [vmem:[%s1047_s28 + $0x54] sm:$0xf]  ;;  %v819_v30 = vor.u32 %v921_v25, %v818_v24 }
  0x1e   : > { %549 = vmatpush.bf16.msra.mxu0 %v827_v17  ;;  %v820_v31 = vld [vmem:[%s1047_s28 + $0x58] sm:$0xf0]  ;;  %v936_v32 = vld [vmem:[%s1047_s28 + $0xd4] sm:$0xf]  ;;  %v883_v34 = vor.u32 %v937_v28, %v882_v27  ;;  %v810_v36 = vld [vmem:[%s1047_s28 + $0x40] sm:$0xf] }
  0x1f   : > { %v884_v33 = vld [vmem:[%s1047_s28 + $0xd8] sm:$0xf0]  ;;  %562 = vmatpush.bf16.msra.mxu1 %v891_v18  ;;  %575 = vmatpush.bf16.msra.mxu2 %v831_v22  ;;  %v823_v35 = vor.u32 %v920_v29, %v820_v31  ;;  %v919_v37 = vld [vmem:[%s1047_s28 + $0x44] sm:$0xf0]  ;;  %v874_v38 = vld [vmem:[%s1047_s28 + $0xc0] sm:$0xf] }
  0x20   : > { %588 = vmatpush.bf16.msra.mxu3 %v895_v26  ;;  %v887_v39 = vor.u32 %v936_v32, %v884_v33  ;;  %v935_v40 = vld [vmem:[%s1047_s28 + $0xc4] sm:$0xf0]  ;;  %v918_v41 = vld [vmem:[%s1047_s28 + $0x44] sm:$0xf]  ;;  %v812_v42 = vld [vmem:[%s1047_s28 + $0x48] sm:$0xf0]  ;;  %v811_v45 = vor.u32 %v919_v37, %v810_v36 }
  0x21   : > { %v934_v43 = vld [vmem:[%s1047_s28 + $0xc4] sm:$0xf]  ;;  %v876_v44 = vld [vmem:[%s1047_s28 + $0xc8] sm:$0xf0]  ;;  %v875_v46 = vor.u32 %v935_v40, %v874_v38  ;;  %v815_v47 = vor.u32 %v918_v41, %v812_v42  ;;  %v802_v48 = vld [vmem:[%s1047_s28 + $0x30] sm:$0xf] }
  0x22   : > { %550 = vmatpush.bf16.msra.mxu0 %v819_v30  ;;  %v917_v49 = vld [vmem:[%s1047_s28 + $0x34] sm:$0xf0]  ;;  %v866_v50 = vld [vmem:[%s1047_s28 + $0xb0] sm:$0xf]  ;;  %v879_v51 = vor.u32 %v934_v43, %v876_v44  ;;  %v916_v53 = vld [vmem:[%s1047_s28 + $0x34] sm:$0xf] }
  0x23   : > { %563 = vmatpush.bf16.msra.mxu1 %v883_v34  ;;  %576 = vmatpush.bf16.msra.mxu2 %v823_v35  ;;  %v933_v52 = vld [vmem:[%s1047_s28 + $0xb4] sm:$0xf0]  ;;  %v804_v54 = vld [vmem:[%s1047_s28 + $0x38] sm:$0xf0]  ;;  %v932_v55 = vld [vmem:[%s1047_s28 + $0xb4] sm:$0xf]  ;;  %v803_v57 = vor.u32 %v917_v49, %v802_v48 }
  0x24   : > { %589 = vmatpush.bf16.msra.mxu3 %v887_v39  ;;  %v868_v56 = vld [vmem:[%s1047_s28 + $0xb8] sm:$0xf0]  ;;  %v867_v58 = vor.u32 %v933_v52, %v866_v50  ;;  %v807_v59 = vor.u32 %v916_v53, %v804_v54  ;;  %v794_v60 = vld [vmem:[%s1047_s28 + $0x20] sm:$0xf]  ;;  %v915_v61 = vld [vmem:[%s1047_s28 + $0x24] sm:$0xf0] }
  0x25   : > { %v858_v62 = vld [vmem:[%s1047_s28 + $0xa0] sm:$0xf]  ;;  %v871_v63 = vor.u32 %v932_v55, %v868_v56  ;;  %v931_v0 = vld [vmem:[%s1047_s28 + $0xa4] sm:$0xf0]  ;;  %v914_v1 = vld [vmem:[%s1047_s28 + $0x24] sm:$0xf]  ;;  %v795_v5 = vor.u32 %v915_v61, %v794_v60 }
  0x26   : > { %551 = vmatpush.bf16.msra.mxu0 %v811_v45  ;;  %v796_v2 = vld [vmem:[%s1047_s28 + $0x28] sm:$0xf0]  ;;  %v930_v3 = vld [vmem:[%s1047_s28 + $0xa4] sm:$0xf]  ;;  %v859_v6 = vor.u32 %v931_v0, %v858_v62  ;;  %v786_v8 = vld [vmem:[%s1047_s28 + $0x10] sm:$0xf] }
  0x27   : > { %564 = vmatpush.bf16.msra.mxu1 %v875_v46  ;;  %577 = vmatpush.bf16.msra.mxu2 %v815_v47  ;;  %v860_v4 = vld [vmem:[%s1047_s28 + $0xa8] sm:$0xf0]  ;;  %v799_v7 = vor.u32 %v914_v1, %v796_v2  ;;  %v913_v9 = vld [vmem:[%s1047_s28 + $0x14] sm:$0xf0]  ;;  %v850_v10 = vld [vmem:[%s1047_s28 + $0x90] sm:$0xf] }
  0x28   : > { %590 = vmatpush.bf16.msra.mxu3 %v879_v51  ;;  %v863_v11 = vor.u32 %v930_v3, %v860_v4  ;;  %v929_v12 = vld [vmem:[%s1047_s28 + $0x94] sm:$0xf0]  ;;  %v912_v13 = vld [vmem:[%s1047_s28 + $0x14] sm:$0xf]  ;;  %v788_v14 = vld [vmem:[%s1047_s28 + $0x18] sm:$0xf0]  ;;  %v787_v17 = vor.u32 %v913_v9, %v786_v8 }
  0x29   : > { %v928_v15 = vld [vmem:[%s1047_s28 + $0x94] sm:$0xf]  ;;  %v852_v16 = vld [vmem:[%s1047_s28 + $0x98] sm:$0xf0]  ;;  %v348_v18 = vld [vmem:[%s1042_s24] sm:$0xff]  ;;  %v851_v19 = vor.u32 %v929_v12, %v850_v10  ;;  %v791_v20 = vor.u32 %v912_v13, %v788_v14  ;;  %p904_p7 = scmp.ne.s32.totalorder %s981_s15, 8 }
  0x2a   : > { %552 = vmatpush.bf16.msra.mxu0 %v803_v57  ;;  %v778_v21 = vld [vmem:[%s1047_s28] sm:$0xf]  ;;  %v911_v22 = vld [vmem:[%s1047_s28 + $0x4] sm:$0xf0]  ;;  %v855_v24 = vor.u32 %v928_v15, %v852_v16  ;;  %v910_v26 = vld [vmem:[%s1047_s28 + $0x4] sm:$0xf]  ;;  %v382_v30 = vunpack.c.l.b16 %v348_v18  ;;  %v383_v32 = vunpack.c.h.b16 %v348_v18 }
  0x2b   : > { %565 = vmatpush.bf16.msra.mxu1 %v867_v58  ;;  %578 = vmatpush.bf16.msra.mxu2 %v807_v59  ;;  %v842_v23 = vld [vmem:[%s1047_s28 + $0x80] sm:$0xf]  ;;  %v927_v25 = vld [vmem:[%s1047_s28 + $0x84] sm:$0xf0]  ;;  %v780_v27 = vld [vmem:[%s1047_s28 + $0x8] sm:$0xf0]  ;;  %v779_v31 = vor.u32 %v911_v22, %v778_v21 }
  0x2c   : > { %591 = vmatpush.bf16.msra.mxu3 %v871_v63  ;;  %v926_v28 = vld [vmem:[%s1047_s28 + $0x84] sm:$0xf]  ;;  %v844_v29 = vld [vmem:[%s1047_s28 + $0x88] sm:$0xf0]  ;;  %v843_v33 = vor.u32 %v927_v25, %v842_v23  ;;  %v783_v34 = vor.u32 %v910_v26, %v780_v27  ;;  %v384_v36 = vpack.c.b16 %v382_v30, %v382_v30  ;;  %v385_v37 = vpack.c.b16 %v383_v32, %v383_v32 }
  0x2d   : > { %v847_v35 = vor.u32 %v926_v28, %v844_v29  ;;  %v346_v39 = vld [vmem:[#allocation2] sm:$0xff]  ;;  %v347_v44 = vld [vmem:[#allocation2 + $0x8] sm:$0xff] }
  0x2e   : > { %553 = vmatpush.bf16.msra.mxu0 %v795_v5 }
  0x2f   : > { %566 = vmatpush.bf16.msra.mxu1 %v859_v6  ;;  %579 = vmatpush.bf16.msra.mxu2 %v799_v7 }
  0x30   : > { %592 = vmatpush.bf16.msra.mxu3 %v863_v11 }
  0x32   : > { %554 = vmatpush.bf16.msra.mxu0 %v787_v17 }
  0x33   : > { %567 = vmatpush.bf16.msra.mxu1 %v851_v19  ;;  %580 = vmatpush.bf16.msra.mxu2 %v791_v20 }
  0x34   : > { %593 = vmatpush.bf16.msra.mxu3 %v855_v24 }
  0x36   : > { %555 = vmatpush.bf16.msra.mxu0 %v779_v31 }
  0x37   : > { %568 = vmatpush.bf16.msra.mxu1 %v843_v33  ;;  %581 = vmatpush.bf16.msra.mxu2 %v783_v34 }
  0x38   : > { %594 = vmatpush.bf16.msra.mxu3 %v847_v35 }
  0x39   : > { %556 = vmatmul.bf16.vlgmr.msra.gmra.mxu0 %v384_v36 }
  0x3a   : > { %569 = vmatmul.bf16.vlgmr.msra.gmra.mxu1 %v385_v37  ;;  %582 = vmatmul.bf16.vlgmr.msra.gmra.mxu2 %v384_v36 }
  0x3b   : > { %595 = vmatmul.bf16.vlgmr.msra.gmra.mxu3 %v385_v37 }
  0xb6   : > { %v557_v38 = vpop.f32.mrf.mxu0 }
  0xb7   : > { %v570_v40 = vpop.f32.mrf.mxu1 }
  0xb8   : > { %v571_v41 = vadd.f32 %v570_v40, %v557_v38 }
  0xba   : > { %v600_v42 = vadd.f32 %v571_v41, %v346_v39 }
  0xbc   : > { %602 = vst [vmem:[#allocation2] sm:$0xff] %v600_v42 }
  0xbd   : > { %v583_v43 = vpop.f32.mrf.mxu2 }
  0xbe   : > { %v596_v45 = vpop.f32.mrf.mxu3  ;;  %v559_v46 = vpop.f32.mrf.mxu0 }
  0xbf   : > { %v597_v47 = vadd.f32 %v596_v45, %v583_v43  ;;  %v572_v48 = vpop.f32.mrf.mxu1 }
  0xc1   : > { %v601_v49 = vadd.f32 %v597_v47, %v347_v44 }
  0xc2   : > { %607 = sbr.rel (%p904_p7) target bundleno = 211 (0xd3), region = 44 }
  0xc3   : > { %603 = vst [vmem:[#allocation2 + $0x8] sm:$0xff] %v601_v49 }
  0xc5   : > { %v585_v50 = vpop.f32.mrf.mxu2 }
  0xc6   : > { %v598_v51 = vpop.f32.mrf.mxu3 }
  0xc7   : > { %v608_v52 = vld [vmem:[#allocation2] sm:$0xff]  ;;  %v619_v58 = vld [vmem:[%s1143_s3 + $0x8] sm:$0xff] }
  0xc8   : > { %v610_v53 = vld [vmem:[%s1142_s2] sm:$0x3] }
  0xc9   : > { %v612_v54 = vperm.slane %v610_v53, 0  ;;  %v613_v56 = vperm.slane %v610_v53, 1  ;;  %v618_v57 = vld [vmem:[%s1143_s3] sm:$0xff] }
  0xca   : > { %v609_v55 = vld [vmem:[#allocation2 + $0x8] sm:$0xff] }
  0xcb   : > { %v616_v59 = vadd.f32 %v612_v54, %v608_v52  ;;  %v617_v60 = vadd.f32 %v613_v56, %v609_v55 }
  0xcd   : > { %v620_v61 = vadd.f32 %v618_v57, %v616_v59  ;;  %v621_v62 = vadd.f32 %v619_v58, %v617_v60 }
  0xcf   : > { %v622_v63 = vmax.f32 %v620_v61, 0.0  ;;  %v623_v0 = vmax.f32 %v621_v62, 0.0 }
  0xd1   : > { %624 = vst [vmem:[%s1144_s4] sm:$0xff] %v622_v63 }
  0xd2   : > { %625 = vst [vmem:[%s1144_s4 + $0x8] sm:$0xff] %v623_v0 }
  0xd3 PF: > { %s14_s17 = sadd.s32 1, %s989_s17   ;;  %s1145_s15 = smov %s985_s16 }
  0xd4   : > { %p11_p8 = scmp.ge.s32.totalorder %s14_s17, 11   ;;  %s1146_s16 = smov %s1148_s18 }
  0xd6   :  { %13 = sbr.rel (!%p11_p8) target bundleno = 2 (0x2), region = 83 }

// kernel: bigram_resnet_forward.38
= control target key start
LH: loop header
LB: loop body
LE: loop exit
PB: predicated region body
PF: predicated region fallthrough
CT: control target
= control target key end

     0   :  { %s923_s12 = smov 0   ;;  %s925_s13 = smov 0   ;;  %s1040_s0 = inlined_call_operand.vmem [shape: bf16[8,2304], index: 0, kind: input, shape index: {}]   ;;  %s1041_s1 = inlined_call_operand.vmem [shape: bf16[2304,256], index: 1, kind: input, shape index: {}]   ;;  %s1042_s2 = inlined_call_operand.vmem [shape: f32[1,256], index: 2, kind: input, shape index: {}]   ;;  %s1043_s3 = inlined_call_operand.vmem [shape: f32[8,256], index: 3, kind: output, shape index: {}]  }
   0x1   :  { %s927_s14 = smov 0  }
   0x2 LB: > { %s25_s15 = sadd.s32 1, %s896_s13  ;;  %p680_p0 = scmp.ge.s32.totalorder %s900_s14, 1  ;;  %s900_s14 = sphi %s927_s14, %s13_s14   ;;  %s896_s13 = sphi %s925_s13, %s1045_s13   ;;  %s892_s12 = sphi %s923_s12, %s1044_s12  }
   0x3   : > { %p26_p1 = scmp.ge.s32.totalorder %s25_s15, 9  ;;  %p194_p2 = scmp.lt.s32.totalorder %s900_s14, 10 }
   0x5   : > { %s1047_s15 = smov (%p26_p1, %s25_s15), 0  ;;  %p195_p3 = pnand %p680_p0, %p194_p2 }
   0x6   : > { %s681_s16 = sshll.u32 (!%p195_p3), %s892_s12, 1  ;;  %s683_s17 = sshll.u32 (!%p195_p3), %s892_s12, 5 }
   0x7   : > { %198 = sbr.rel (%p195_p3) target bundleno = 209 (0xd1), region = 32  ;;  %p243_p4 = scmp.lt.s32.totalorder (!%p195_p3), %s681_s16, 17 }
   0x8   : > { %p252_p5 = scmp.lt.s32.totalorder (!%p195_p3), %s683_s17, 287  ;;  %p686_p6 = scmp.ne.s32.totalorder (!%p195_p3), %s892_s12, 0 }
   0xc   : > { %s1049_s16 = smov (!%p243_p4, %s681_s16), 17  ;;  %s1051_s17 = smov (!%p252_p5, %s683_s17), 287 }
   0xd   : > { %s682_s18 = sshll.u32 %s1049_s16, 2  ;;  %s820_s22 = sshll.u32 %s1051_s17, 3 }
   0xe   : > { %s948_s21 = scalar_lea.vmem %s1040_s0, %s682_s18  ;;  %s953_s25 = scalar_lea.vmem %s1041_s1, %s820_s22 }
   0xf   : > { %280 = sbr.rel (%p686_p6) target bundleno = 23 (0x17), region = 36 }
  0x14   : > { %v902_v0 = vmov 0.0  }
  0x15   : > { %281 = vst [vmem:[#allocation2] sm:$0xff] %v902_v0 }
  0x16   : > { %282 = vst [vmem:[#allocation2 + $0x8] sm:$0xff] %v902_v0 }
  0x17 PF: > { %v745_v1 = vld [vmem:[%s953_s25 + $0x70] sm:$0xf]  ;;  %v836_v2 = vld [vmem:[%s953_s25 + $0x74] sm:$0xf0]  ;;  %v835_v6 = vld [vmem:[%s953_s25 + $0x74] sm:$0xf] }
  0x18   : > { %v809_v3 = vld [vmem:[%s953_s25 + $0xf0] sm:$0xf]  ;;  %v746_v4 = vor.u32 %v836_v2, %v745_v1  ;;  %v852_v5 = vld [vmem:[%s953_s25 + $0xf4] sm:$0xf0]  ;;  %v747_v7 = vld [vmem:[%s953_s25 + $0x78] sm:$0xf0] }
  0x19   : > { %v810_v8 = vor.u32 %v852_v5, %v809_v3  ;;  %v750_v9 = vor.u32 %v835_v6, %v747_v7  ;;  %v851_v10 = vld [vmem:[%s953_s25 + $0xf4] sm:$0xf]  ;;  %v811_v11 = vld [vmem:[%s953_s25 + $0xf8] sm:$0xf0]  ;;  %v737_v12 = vld [vmem:[%s953_s25 + $0x60] sm:$0xf] }
  0x1a   : > { %485 = vmatpush.bf16.msra.mxu0 %v746_v4  ;;  %v814_v13 = vor.u32 %v851_v10, %v811_v11  ;;  %v834_v14 = vld [vmem:[%s953_s25 + $0x64] sm:$0xf0]  ;;  %v801_v15 = vld [vmem:[%s953_s25 + $0xe0] sm:$0xf]  ;;  %v833_v19 = vld [vmem:[%s953_s25 + $0x64] sm:$0xf] }
  0x1b   : > { %v850_v16 = vld [vmem:[%s953_s25 + $0xe4] sm:$0xf0]  ;;  %498 = vmatpush.bf16.msra.mxu1 %v810_v8  ;;  %511 = vmatpush.bf16.msra.mxu2 %v750_v9  ;;  %v738_v17 = vor.u32 %v834_v14, %v737_v12  ;;  %v739_v20 = vld [vmem:[%s953_s25 + $0x68] sm:$0xf0]  ;;  %v849_v21 = vld [vmem:[%s953_s25 + $0xe4] sm:$0xf] }
  0x1c   : > { %v802_v18 = vor.u32 %v850_v16, %v801_v15  ;;  %524 = vmatpush.bf16.msra.mxu3 %v814_v13  ;;  %v742_v22 = vor.u32 %v833_v19, %v739_v20  ;;  %v803_v23 = vld [vmem:[%s953_s25 + $0xe8] sm:$0xf0]  ;;  %v729_v24 = vld [vmem:[%s953_s25 + $0x50] sm:$0xf]  ;;  %v832_v25 = vld [vmem:[%s953_s25 + $0x54] sm:$0xf0] }
  0x1d   : > { %v806_v26 = vor.u32 %v849_v21, %v803_v23  ;;  %v793_v27 = vld [vmem:[%s953_s25 + $0xd0] sm:$0xf]  ;;  %v848_v28 = vld [vmem:[%s953_s25 + $0xd4] sm:$0xf0]  ;;  %v831_v29 = vld [vmem:[%s953_s25 + $0x54] sm:$0xf]  ;;  %v730_v30 = vor.u32 %v832_v25, %v729_v24 }
  0x1e   : > { %486 = vmatpush.bf16.msra.mxu0 %v738_v17  ;;  %v731_v31 = vld [vmem:[%s953_s25 + $0x58] sm:$0xf0]  ;;  %v847_v32 = vld [vmem:[%s953_s25 + $0xd4] sm:$0xf]  ;;  %v794_v34 = vor.u32 %v848_v28, %v793_v27  ;;  %v721_v36 = vld [vmem:[%s953_s25 + $0x40] sm:$0xf] }
  0x1f   : > { %v795_v33 = vld [vmem:[%s953_s25 + $0xd8] sm:$0xf0]  ;;  %499 = vmatpush.bf16.msra.mxu1 %v802_v18  ;;  %512 = vmatpush.bf16.msra.mxu2 %v742_v22  ;;  %v734_v35 = vor.u32 %v831_v29, %v731_v31  ;;  %v830_v37 = vld [vmem:[%s953_s25 + $0x44] sm:$0xf0]  ;;  %v785_v38 = vld [vmem:[%s953_s25 + $0xc0] sm:$0xf] }
  0x20   : > { %525 = vmatpush.bf16.msra.mxu3 %v806_v26  ;;  %v798_v39 = vor.u32 %v847_v32, %v795_v33  ;;  %v846_v40 = vld [vmem:[%s953_s25 + $0xc4] sm:$0xf0]  ;;  %v829_v41 = vld [vmem:[%s953_s25 + $0x44] sm:$0xf]  ;;  %v723_v42 = vld [vmem:[%s953_s25 + $0x48] sm:$0xf0]  ;;  %v722_v45 = vor.u32 %v830_v37, %v721_v36 }
  0x21   : > { %v845_v43 = vld [vmem:[%s953_s25 + $0xc4] sm:$0xf]  ;;  %v787_v44 = vld [vmem:[%s953_s25 + $0xc8] sm:$0xf0]  ;;  %v786_v46 = vor.u32 %v846_v40, %v785_v38  ;;  %v726_v47 = vor.u32 %v829_v41, %v723_v42  ;;  %v713_v48 = vld [vmem:[%s953_s25 + $0x30] sm:$0xf] }
  0x22   : > { %487 = vmatpush.bf16.msra.mxu0 %v730_v30  ;;  %v828_v49 = vld [vmem:[%s953_s25 + $0x34] sm:$0xf0]  ;;  %v777_v50 = vld [vmem:[%s953_s25 + $0xb0] sm:$0xf]  ;;  %v790_v51 = vor.u32 %v845_v43, %v787_v44  ;;  %v827_v53 = vld [vmem:[%s953_s25 + $0x34] sm:$0xf] }
  0x23   : > { %500 = vmatpush.bf16.msra.mxu1 %v794_v34  ;;  %513 = vmatpush.bf16.msra.mxu2 %v734_v35  ;;  %v844_v52 = vld [vmem:[%s953_s25 + $0xb4] sm:$0xf0]  ;;  %v715_v54 = vld [vmem:[%s953_s25 + $0x38] sm:$0xf0]  ;;  %v843_v55 = vld [vmem:[%s953_s25 + $0xb4] sm:$0xf]  ;;  %v714_v57 = vor.u32 %v828_v49, %v713_v48 }
  0x24   : > { %526 = vmatpush.bf16.msra.mxu3 %v798_v39  ;;  %v779_v56 = vld [vmem:[%s953_s25 + $0xb8] sm:$0xf0]  ;;  %v778_v58 = vor.u32 %v844_v52, %v777_v50  ;;  %v718_v59 = vor.u32 %v827_v53, %v715_v54  ;;  %v705_v60 = vld [vmem:[%s953_s25 + $0x20] sm:$0xf]  ;;  %v826_v61 = vld [vmem:[%s953_s25 + $0x24] sm:$0xf0] }
  0x25   : > { %v769_v62 = vld [vmem:[%s953_s25 + $0xa0] sm:$0xf]  ;;  %v782_v63 = vor.u32 %v843_v55, %v779_v56  ;;  %v842_v0 = vld [vmem:[%s953_s25 + $0xa4] sm:$0xf0]  ;;  %v825_v1 = vld [vmem:[%s953_s25 + $0x24] sm:$0xf]  ;;  %v706_v5 = vor.u32 %v826_v61, %v705_v60 }
  0x26   : > { %488 = vmatpush.bf16.msra.mxu0 %v722_v45  ;;  %v707_v2 = vld [vmem:[%s953_s25 + $0x28] sm:$0xf0]  ;;  %v841_v3 = vld [vmem:[%s953_s25 + $0xa4] sm:$0xf]  ;;  %v770_v6 = vor.u32 %v842_v0, %v769_v62  ;;  %v697_v8 = vld [vmem:[%s953_s25 + $0x10] sm:$0xf] }
  0x27   : > { %501 = vmatpush.bf16.msra.mxu1 %v786_v46  ;;  %514 = vmatpush.bf16.msra.mxu2 %v726_v47  ;;  %v771_v4 = vld [vmem:[%s953_s25 + $0xa8] sm:$0xf0]  ;;  %v710_v7 = vor.u32 %v825_v1, %v707_v2  ;;  %v824_v9 = vld [vmem:[%s953_s25 + $0x14] sm:$0xf0]  ;;  %v761_v10 = vld [vmem:[%s953_s25 + $0x90] sm:$0xf] }
  0x28   : > { %527 = vmatpush.bf16.msra.mxu3 %v790_v51  ;;  %v774_v11 = vor.u32 %v841_v3, %v771_v4  ;;  %v840_v12 = vld [vmem:[%s953_s25 + $0x94] sm:$0xf0]  ;;  %v823_v13 = vld [vmem:[%s953_s25 + $0x14] sm:$0xf]  ;;  %v699_v14 = vld [vmem:[%s953_s25 + $0x18] sm:$0xf0]  ;;  %v698_v17 = vor.u32 %v824_v9, %v697_v8 }
  0x29   : > { %v839_v15 = vld [vmem:[%s953_s25 + $0x94] sm:$0xf]  ;;  %v763_v16 = vld [vmem:[%s953_s25 + $0x98] sm:$0xf0]  ;;  %v285_v18 = vld [vmem:[%s948_s21] sm:$0xff]  ;;  %v762_v19 = vor.u32 %v840_v12, %v761_v10  ;;  %v702_v20 = vor.u32 %v823_v13, %v699_v14  ;;  %p815_p7 = scmp.ne.s32.totalorder %s892_s12, 8 }
  0x2a   : > { %489 = vmatpush.bf16.msra.mxu0 %v714_v57  ;;  %v689_v21 = vld [vmem:[%s953_s25] sm:$0xf]  ;;  %v822_v22 = vld [vmem:[%s953_s25 + $0x4] sm:$0xf0]  ;;  %v766_v24 = vor.u32 %v839_v15, %v763_v16  ;;  %v821_v26 = vld [vmem:[%s953_s25 + $0x4] sm:$0xf]  ;;  %v319_v30 = vunpack.c.l.b16 %v285_v18  ;;  %v320_v32 = vunpack.c.h.b16 %v285_v18 }
  0x2b   : > { %502 = vmatpush.bf16.msra.mxu1 %v778_v58  ;;  %515 = vmatpush.bf16.msra.mxu2 %v718_v59  ;;  %v753_v23 = vld [vmem:[%s953_s25 + $0x80] sm:$0xf]  ;;  %v838_v25 = vld [vmem:[%s953_s25 + $0x84] sm:$0xf0]  ;;  %v691_v27 = vld [vmem:[%s953_s25 + $0x8] sm:$0xf0]  ;;  %v690_v31 = vor.u32 %v822_v22, %v689_v21 }
  0x2c   : > { %528 = vmatpush.bf16.msra.mxu3 %v782_v63  ;;  %v837_v28 = vld [vmem:[%s953_s25 + $0x84] sm:$0xf]  ;;  %v755_v29 = vld [vmem:[%s953_s25 + $0x88] sm:$0xf0]  ;;  %v754_v33 = vor.u32 %v838_v25, %v753_v23  ;;  %v694_v34 = vor.u32 %v821_v26, %v691_v27  ;;  %v321_v36 = vpack.c.b16 %v319_v30, %v319_v30  ;;  %v322_v37 = vpack.c.b16 %v320_v32, %v320_v32 }
  0x2d   : > { %v758_v35 = vor.u32 %v837_v28, %v755_v29  ;;  %v283_v39 = vld [vmem:[#allocation2] sm:$0xff]  ;;  %v284_v44 = vld [vmem:[#allocation2 + $0x8] sm:$0xff] }
  0x2e   : > { %490 = vmatpush.bf16.msra.mxu0 %v706_v5 }
  0x2f   : > { %503 = vmatpush.bf16.msra.mxu1 %v770_v6  ;;  %516 = vmatpush.bf16.msra.mxu2 %v710_v7 }
  0x30   : > { %529 = vmatpush.bf16.msra.mxu3 %v774_v11 }
  0x32   : > { %491 = vmatpush.bf16.msra.mxu0 %v698_v17 }
  0x33   : > { %504 = vmatpush.bf16.msra.mxu1 %v762_v19  ;;  %517 = vmatpush.bf16.msra.mxu2 %v702_v20 }
  0x34   : > { %530 = vmatpush.bf16.msra.mxu3 %v766_v24 }
  0x36   : > { %492 = vmatpush.bf16.msra.mxu0 %v690_v31 }
  0x37   : > { %505 = vmatpush.bf16.msra.mxu1 %v754_v33  ;;  %518 = vmatpush.bf16.msra.mxu2 %v694_v34 }
  0x38   : > { %531 = vmatpush.bf16.msra.mxu3 %v758_v35 }
  0x39   : > { %493 = vmatmul.bf16.vlgmr.msra.gmra.mxu0 %v321_v36 }
  0x3a   : > { %506 = vmatmul.bf16.vlgmr.msra.gmra.mxu1 %v322_v37  ;;  %519 = vmatmul.bf16.vlgmr.msra.gmra.mxu2 %v321_v36 }
  0x3b   : > { %532 = vmatmul.bf16.vlgmr.msra.gmra.mxu3 %v322_v37 }
  0xb6   : > { %v494_v38 = vpop.f32.mrf.mxu0 }
  0xb7   : > { %v507_v40 = vpop.f32.mrf.mxu1 }
  0xb8   : > { %v508_v41 = vadd.f32 %v507_v40, %v494_v38 }
  0xba   : > { %v537_v42 = vadd.f32 %v508_v41, %v283_v39 }
  0xbc   : > { %539 = vst [vmem:[#allocation2] sm:$0xff] %v537_v42 }
  0xbd   : > { %v520_v43 = vpop.f32.mrf.mxu2 }
  0xbe   : > { %v533_v45 = vpop.f32.mrf.mxu3  ;;  %v496_v46 = vpop.f32.mrf.mxu0 }
  0xbf   : > { %v534_v47 = vadd.f32 %v533_v45, %v520_v43  ;;  %v509_v48 = vpop.f32.mrf.mxu1 }
  0xc1   : > { %v538_v49 = vadd.f32 %v534_v47, %v284_v44 }
  0xc2   : > { %544 = sbr.rel (%p815_p7) target bundleno = 209 (0xd1), region = 40 }
  0xc3   : > { %540 = vst [vmem:[#allocation2 + $0x8] sm:$0xff] %v538_v49 }
  0xc5   : > { %v522_v50 = vpop.f32.mrf.mxu2 }
  0xc6   : > { %v535_v51 = vpop.f32.mrf.mxu3 }
  0xc7   : > { %v545_v52 = vld [vmem:[#allocation2] sm:$0xff] }
  0xc8   : > { %v547_v53 = vld [vmem:[%s1042_s2] sm:$0x3] }
  0xc9   : > { %v549_v55 = vperm.slane %v547_v53, 0  ;;  %v550_v56 = vperm.slane %v547_v53, 1 }
  0xca   : > { %v546_v54 = vld [vmem:[#allocation2 + $0x8] sm:$0xff] }
  0xcb   : > { %v553_v57 = vadd.f32 %v549_v55, %v545_v52  ;;  %v554_v58 = vadd.f32 %v550_v56, %v546_v54 }
  0xcd   : > { %v555_v59 = vmax.f32 %v553_v57, 0.0  ;;  %v556_v60 = vmax.f32 %v554_v58, 0.0 }
  0xcf   : > { %557 = vst [vmem:[%s1043_s3] sm:$0xff] %v555_v59 }
  0xd0   : > { %558 = vst [vmem:[%s1043_s3 + $0x8] sm:$0xff] %v556_v60 }
  0xd1 PF: > { %s13_s14 = sadd.s32 1, %s900_s14   ;;  %s1044_s12 = smov %s896_s13 }
  0xd2   : > { %p10_p8 = scmp.ge.s32.totalorder %s13_s14, 11   ;;  %s1045_s13 = smov %s1047_s15 }
  0xd4   :  { %12 = sbr.rel (!%p10_p8) target bundleno = 2 (0x2), region = 76 }

// kernel: bigram_resnet_forward.41
= control target key start
LH: loop header
LB: loop body
LE: loop exit
PB: predicated region body
PF: predicated region fallthrough
CT: control target
= control target key end

     0   :  { %s1143_s12 = smov 0   ;;  %s1145_s13 = smov 0   ;;  %s1390_s0 = inlined_call_operand.vmem [shape: bf16[8,2304], index: 0, kind: input, shape index: {}]   ;;  %s1391_s1 = inlined_call_operand.vmem [shape: bf16[2304,512], index: 1, kind: input, shape index: {}]   ;;  %s1392_s2 = inlined_call_operand.vmem [shape: f32[1,512], index: 2, kind: input, shape index: {}]   ;;  %s1393_s3 = inlined_call_operand.vmem [shape: f32[8,512], index: 3, kind: output, shape index: {}]  }
   0x1   :  { %s1147_s14 = smov 0   ;;  %s1149_s15 = smov 0  }
   0x2   :  { %s1151_s16 = smov 0   ;;  %s1153_s17 = smov 0  }
   0x3   :  { %s1155_s18 = smov 0  }
   0x4 LB: > { %s25_s19 = sadd.s32 1, %s1112_s16  ;;  %s28_s20 = sadd.s32 1, %s1116_s17  ;;  %s1120_s18 = sphi %s1155_s18, %s13_s18   ;;  %s1116_s17 = sphi %s1153_s17, %s1399_s17   ;;  %s1112_s16 = sphi %s1151_s16, %s1398_s16   ;;  %s1108_s15 = sphi %s1149_s15, %s1397_s15   ;;  %s1104_s14 = sphi %s1147_s14, %s1396_s14   ;;  %s1100_s13 = sphi %s1145_s13, %s1395_s13   ;;  %s1096_s12 = sphi %s1143_s12, %s1394_s12  }
   0x5   : > { %p26_p0 = scmp.ge.s32.totalorder %s25_s19, 9  ;;  %p76_p1 = scmp.ne.s32.totalorder %s1100_s13, %s1096_s12 }
   0x6   : > { %p77_p2 = scmp.eq.s32.totalorder %s1120_s18, 0  ;;  %s69_s24 = sadd.s32 1, %s1100_s13 }
   0x7   : > { %s1401_s19 = smov (%p26_p0, %s25_s19), 0  ;;  %s1403_s20 = smov (!%p26_p0, %s28_s20), %s1116_s17 }
   0x8   : > { %p78_p3 = por %p77_p2, %p76_p1  ;;  %p30_p4 = scmp.ge.s32.totalorder %s1403_s20, 2 }
   0x9   : > { %s64_s21 = ssub.s32 %s1112_s16, %s1401_s19  ;;  %p831_p6 = scmp.ge.s32.totalorder %s1120_s18, 18 }
   0xa   : > { %s1405_s20 = smov (%p30_p4, %s1403_s20), 0 }
   0xb   : > { %s65_s22 = ssub.s32 %s1116_s17, %s1405_s20  ;;  %156 = sbr.rel (%p831_p6) target bundleno = 55 (0x37), region = 16 }
   0xc   : > { %s66_s23 = sor.u32 %s65_s22, %s64_s21 }
   0xd   : > { %p67_p5 = scmp.eq.s32.totalorder %s66_s23, 0 }
   0xf   : > { %s1194_s25 = scalar_select %p67_p5, %s1100_s13, %s69_s24  }
  0x10   : > { %172 = sbr.rel (!%p78_p3) target bundleno = 55 (0x37), region = 24  ;;  %s174_s26 = sand.u32 (%p78_p3), 1, %s1100_s13  }
  0x11   : > { %s834_s27 = sshll.u32 (%p78_p3), %s1116_s17, 1  ;;  %s832_s28 = sshll.u32 (%p78_p3), %s174_s26, 8 }
  0x12   : > { %s976_s29 = sshll.u32 (%p78_p3), %s1112_s16, 7  ;;  %s1208_s8 = scalar_lea.vmem (%p78_p3), [#allocation3], %s832_s28 }
  0x13   : > { %s180_s30 = sadd.s32 (%p78_p3), %s976_s29, %s834_s27 }
  0x14   : > { %s836_s4 = sshll.u32 (%p78_p3), %s180_s30, 2 }
  0x15   : > { %s1203_s7 = scalar_lea.vmem %s1391_s1, %s836_s4 }
  0x16   : > { %v273_v0 = vld [vmem:[%s1203_s7] sm:$0xff]  ;;  %v275_v1 = vld [vmem:[%s1203_s7 + $0x10] sm:$0xff] }
  0x17   : > { %v277_v2 = vld [vmem:[%s1203_s7 + $0x20] sm:$0xff]  ;;  %274 = vst [vmem:[%s1208_s8] sm:$0xff] %v273_v0  ;;  %v279_v3 = vld [vmem:[%s1203_s7 + $0x30] sm:$0xff] }
  0x18   : > { %276 = vst [vmem:[%s1208_s8 + $0x8] sm:$0xff] %v275_v1  ;;  %v281_v4 = vld [vmem:[%s1203_s7 + $0x40] sm:$0xff]  ;;  %v283_v5 = vld [vmem:[%s1203_s7 + $0x50] sm:$0xff] }
  0x19   : > { %278 = vst [vmem:[%s1208_s8 + $0x10] sm:$0xff] %v277_v2  ;;  %v285_v6 = vld [vmem:[%s1203_s7 + $0x60] sm:$0xff]  ;;  %v287_v7 = vld [vmem:[%s1203_s7 + $0x70] sm:$0xff] }
  0x1a   : > { %280 = vst [vmem:[%s1208_s8 + $0x18] sm:$0xff] %v279_v3  ;;  %v289_v8 = vld [vmem:[%s1203_s7 + $0x80] sm:$0xff]  ;;  %v291_v9 = vld [vmem:[%s1203_s7 + $0x90] sm:$0xff] }
  0x1b   : > { %282 = vst [vmem:[%s1208_s8 + $0x20] sm:$0xff] %v281_v4  ;;  %v293_v10 = vld [vmem:[%s1203_s7 + $0xa0] sm:$0xff]  ;;  %v295_v11 = vld [vmem:[%s1203_s7 + $0xb0] sm:$0xff] }
  0x1c   : > { %284 = vst [vmem:[%s1208_s8 + $0x28] sm:$0xff] %v283_v5  ;;  %v297_v12 = vld [vmem:[%s1203_s7 + $0xc0] sm:$0xff]  ;;  %v299_v13 = vld [vmem:[%s1203_s7 + $0xd0] sm:$0xff] }
  0x1d   : > { %286 = vst [vmem:[%s1208_s8 + $0x30] sm:$0xff] %v285_v6  ;;  %v301_v14 = vld [vmem:[%s1203_s7 + $0xe0] sm:$0xff]  ;;  %v303_v15 = vld [vmem:[%s1203_s7 + $0xf0] sm:$0xff] }
  0x1e   : > { %288 = vst [vmem:[%s1208_s8 + $0x38] sm:$0xff] %v287_v7  ;;  %v305_v16 = vld [vmem:[%s1203_s7 + $0x100] sm:$0xff]  ;;  %v307_v17 = vld [vmem:[%s1203_s7 + $0x110] sm:$0xff] }
  0x1f   : > { %290 = vst [vmem:[%s1208_s8 + $0x40] sm:$0xff] %v289_v8  ;;  %v309_v18 = vld [vmem:[%s1203_s7 + $0x120] sm:$0xff]  ;;  %v311_v19 = vld [vmem:[%s1203_s7 + $0x130] sm:$0xff] }
  0x20   : > { %292 = vst [vmem:[%s1208_s8 + $0x48] sm:$0xff] %v291_v9  ;;  %v313_v20 = vld [vmem:[%s1203_s7 + $0x140] sm:$0xff]  ;;  %v315_v21 = vld [vmem:[%s1203_s7 + $0x150] sm:$0xff] }
  0x21   : > { %294 = vst [vmem:[%s1208_s8 + $0x50] sm:$0xff] %v293_v10  ;;  %v317_v22 = vld [vmem:[%s1203_s7 + $0x160] sm:$0xff]  ;;  %v319_v23 = vld [vmem:[%s1203_s7 + $0x170] sm:$0xff] }
  0x22   : > { %296 = vst [vmem:[%s1208_s8 + $0x58] sm:$0xff] %v295_v11  ;;  %v321_v24 = vld [vmem:[%s1203_s7 + $0x180] sm:$0xff]  ;;  %v323_v25 = vld [vmem:[%s1203_s7 + $0x190] sm:$0xff] }
  0x23   : > { %298 = vst [vmem:[%s1208_s8 + $0x60] sm:$0xff] %v297_v12  ;;  %v325_v26 = vld [vmem:[%s1203_s7 + $0x1a0] sm:$0xff]  ;;  %v327_v27 = vld [vmem:[%s1203_s7 + $0x1b0] sm:$0xff] }
  0x24   : > { %300 = vst [vmem:[%s1208_s8 + $0x68] sm:$0xff] %v299_v13  ;;  %v329_v28 = vld [vmem:[%s1203_s7 + $0x1c0] sm:$0xff]  ;;  %v331_v29 = vld [vmem:[%s1203_s7 + $0x1d0] sm:$0xff] }
  0x25   : > { %302 = vst [vmem:[%s1208_s8 + $0x70] sm:$0xff] %v301_v14  ;;  %v333_v30 = vld [vmem:[%s1203_s7 + $0x1e0] sm:$0xff]  ;;  %v335_v31 = vld [vmem:[%s1203_s7 + $0x1f0] sm:$0xff] }
  0x26   : > { %304 = vst [vmem:[%s1208_s8 + $0x78] sm:$0xff] %v303_v15 }
  0x27   : > { %306 = vst [vmem:[%s1208_s8 + $0x80] sm:$0xff] %v305_v16 }
  0x28   : > { %308 = vst [vmem:[%s1208_s8 + $0x88] sm:$0xff] %v307_v17 }
  0x29   : > { %310 = vst [vmem:[%s1208_s8 + $0x90] sm:$0xff] %v309_v18 }
  0x2a   : > { %312 = vst [vmem:[%s1208_s8 + $0x98] sm:$0xff] %v311_v19 }
  0x2b   : > { %314 = vst [vmem:[%s1208_s8 + $0xa0] sm:$0xff] %v313_v20 }
  0x2c   : > { %316 = vst [vmem:[%s1208_s8 + $0xa8] sm:$0xff] %v315_v21 }
  0x2d   : > { %318 = vst [vmem:[%s1208_s8 + $0xb0] sm:$0xff] %v317_v22 }
  0x2e   : > { %320 = vst [vmem:[%s1208_s8 + $0xb8] sm:$0xff] %v319_v23 }
  0x2f   : > { %322 = vst [vmem:[%s1208_s8 + $0xc0] sm:$0xff] %v321_v24 }
  0x30   : > { %324 = vst [vmem:[%s1208_s8 + $0xc8] sm:$0xff] %v323_v25 }
  0x31   : > { %326 = vst [vmem:[%s1208_s8 + $0xd0] sm:$0xff] %v325_v26 }
  0x32   : > { %328 = vst [vmem:[%s1208_s8 + $0xd8] sm:$0xff] %v327_v27 }
  0x33   : > { %330 = vst [vmem:[%s1208_s8 + $0xe0] sm:$0xff] %v329_v28 }
  0x34   : > { %332 = vst [vmem:[%s1208_s8 + $0xe8] sm:$0xff] %v331_v29 }
  0x35   : > { %334 = vst [vmem:[%s1208_s8 + $0xf0] sm:$0xff] %v333_v30 }
  0x36   : > { %336 = vst [vmem:[%s1208_s8 + $0xf8] sm:$0xff] %v335_v31 }
  0x37 PF: > { %p837_p7 = scmp.ge.s32.totalorder %s1120_s18, 1  ;;  %p349_p8 = scmp.lt.s32.totalorder %s1120_s18, 19 }
  0x39   : > { %p350_p9 = pnand %p837_p7, %p349_p8 }
  0x3a   : > { %s356_s9 = sand.u32 (!%p350_p9), 1, %s1096_s12   ;;  %s839_s10 = sshll.u32 (!%p350_p9), %s1104_s14, 1 }
  0x3b   : > { %353 = sbr.rel (%p350_p9) target bundleno = 261 (0x105), region = 66  ;;  %s838_s11 = sshll.u32 (!%p350_p9), %s356_s9, 8 }
  0x3c   : > { %p399_p10 = scmp.lt.s32.totalorder (!%p350_p9), %s839_s10, 17  ;;  %s841_s21 = sshll.u32 (!%p350_p9), %s1108_s15, 1 }
  0x3d   : > { %p409_p11 = scmp.lt.s32.totalorder (!%p350_p9), %s841_s21, 3  ;;  %s1293_s5 = scalar_lea.vmem (!%p350_p9), [#allocation3], %s838_s11 }
  0x3e   : > { %p844_p12 = scmp.ne.s32.totalorder (!%p350_p9), %s1104_s14, 0 }
  0x40   : > { %s1407_s10 = smov (!%p399_p10, %s839_s10), 17  ;;  %s1409_s21 = smov (!%p409_p11, %s841_s21), 3 }
  0x41   : > { %s840_s22 = sshll.u32 %s1407_s10, 2  ;;  %s411_s12 = scalar_lea.vmem %s1392_s2, %s1409_s21 }
  0x42   : > { %s1279_s26 = scalar_lea.vmem %s1390_s0, %s840_s22  ;;  %s843_s29 = sshll.u32 %s1409_s21, 3 }
  0x43   : > { %s1291_s15 = scalar_lea.vmem %s1393_s3, %s843_s29  ;;  %426 = sbr.rel (%p844_p12) target bundleno = 75 (0x4b), region = 74 }
  0x48   : > { %v1122_v32 = vmov 0.0  }
  0x49   : > { %427 = vst [vmem:[#allocation2] sm:$0xff] %v1122_v32 }
  0x4a   : > { %428 = vst [vmem:[#allocation2 + $0x8] sm:$0xff] %v1122_v32 }
  0x4b PF: > { %v903_v33 = vld [vmem:[%s1293_s5 + $0x70] sm:$0xf]  ;;  %v992_v34 = vld [vmem:[%s1293_s5 + $0x74] sm:$0xf0]  ;;  %v991_v38 = vld [vmem:[%s1293_s5 + $0x74] sm:$0xf] }
  0x4c   : > { %v967_v35 = vld [vmem:[%s1293_s5 + $0xf0] sm:$0xf]  ;;  %v904_v36 = vor.u32 %v992_v34, %v903_v33  ;;  %v1008_v37 = vld [vmem:[%s1293_s5 + $0xf4] sm:$0xf0]  ;;  %v905_v39 = vld [vmem:[%s1293_s5 + $0x78] sm:$0xf0] }
  0x4d   : > { %v968_v40 = vor.u32 %v1008_v37, %v967_v35  ;;  %v908_v41 = vor.u32 %v991_v38, %v905_v39  ;;  %v1007_v42 = vld [vmem:[%s1293_s5 + $0xf4] sm:$0xf]  ;;  %v969_v43 = vld [vmem:[%s1293_s5 + $0xf8] sm:$0xf0]  ;;  %v895_v44 = vld [vmem:[%s1293_s5 + $0x60] sm:$0xf] }
  0x4e   : > { %631 = vmatpush.bf16.msra.mxu0 %v904_v36  ;;  %v972_v45 = vor.u32 %v1007_v42, %v969_v43  ;;  %v990_v46 = vld [vmem:[%s1293_s5 + $0x64] sm:$0xf0]  ;;  %v959_v47 = vld [vmem:[%s1293_s5 + $0xe0] sm:$0xf]  ;;  %v989_v51 = vld [vmem:[%s1293_s5 + $0x64] sm:$0xf] }
  0x4f   : > { %v1006_v48 = vld [vmem:[%s1293_s5 + $0xe4] sm:$0xf0]  ;;  %644 = vmatpush.bf16.msra.mxu1 %v968_v40  ;;  %657 = vmatpush.bf16.msra.mxu2 %v908_v41  ;;  %v896_v49 = vor.u32 %v990_v46, %v895_v44  ;;  %v897_v52 = vld [vmem:[%s1293_s5 + $0x68] sm:$0xf0]  ;;  %v1005_v53 = vld [vmem:[%s1293_s5 + $0xe4] sm:$0xf] }
  0x50   : > { %v960_v50 = vor.u32 %v1006_v48, %v959_v47  ;;  %670 = vmatpush.bf16.msra.mxu3 %v972_v45  ;;  %v900_v54 = vor.u32 %v989_v51, %v897_v52  ;;  %v961_v55 = vld [vmem:[%s1293_s5 + $0xe8] sm:$0xf0]  ;;  %v887_v56 = vld [vmem:[%s1293_s5 + $0x50] sm:$0xf]  ;;  %v988_v57 = vld [vmem:[%s1293_s5 + $0x54] sm:$0xf0] }
  0x51   : > { %v964_v58 = vor.u32 %v1005_v53, %v961_v55  ;;  %v951_v59 = vld [vmem:[%s1293_s5 + $0xd0] sm:$0xf]  ;;  %v1004_v60 = vld [vmem:[%s1293_s5 + $0xd4] sm:$0xf0]  ;;  %v987_v61 = vld [vmem:[%s1293_s5 + $0x54] sm:$0xf]  ;;  %v888_v62 = vor.u32 %v988_v57, %v887_v56 }
  0x52   : > { %632 = vmatpush.bf16.msra.mxu0 %v896_v49  ;;  %v889_v63 = vld [vmem:[%s1293_s5 + $0x58] sm:$0xf0]  ;;  %v1003_v0 = vld [vmem:[%s1293_s5 + $0xd4] sm:$0xf]  ;;  %v952_v2 = vor.u32 %v1004_v60, %v951_v59  ;;  %v879_v4 = vld [vmem:[%s1293_s5 + $0x40] sm:$0xf] }
  0x53   : > { %v953_v1 = vld [vmem:[%s1293_s5 + $0xd8] sm:$0xf0]  ;;  %645 = vmatpush.bf16.msra.mxu1 %v960_v50  ;;  %658 = vmatpush.bf16.msra.mxu2 %v900_v54  ;;  %v892_v3 = vor.u32 %v987_v61, %v889_v63  ;;  %v986_v5 = vld [vmem:[%s1293_s5 + $0x44] sm:$0xf0]  ;;  %v943_v6 = vld [vmem:[%s1293_s5 + $0xc0] sm:$0xf] }
  0x54   : > { %671 = vmatpush.bf16.msra.mxu3 %v964_v58  ;;  %v956_v7 = vor.u32 %v1003_v0, %v953_v1  ;;  %v1002_v8 = vld [vmem:[%s1293_s5 + $0xc4] sm:$0xf0]  ;;  %v985_v9 = vld [vmem:[%s1293_s5 + $0x44] sm:$0xf]  ;;  %v881_v10 = vld [vmem:[%s1293_s5 + $0x48] sm:$0xf0]  ;;  %v880_v13 = vor.u32 %v986_v5, %v879_v4 }
  0x55   : > { %v1001_v11 = vld [vmem:[%s1293_s5 + $0xc4] sm:$0xf]  ;;  %v945_v12 = vld [vmem:[%s1293_s5 + $0xc8] sm:$0xf0]  ;;  %v944_v14 = vor.u32 %v1002_v8, %v943_v6  ;;  %v884_v15 = vor.u32 %v985_v9, %v881_v10  ;;  %v871_v16 = vld [vmem:[%s1293_s5 + $0x30] sm:$0xf] }
  0x56   : > { %633 = vmatpush.bf16.msra.mxu0 %v888_v62  ;;  %v984_v17 = vld [vmem:[%s1293_s5 + $0x34] sm:$0xf0]  ;;  %v935_v18 = vld [vmem:[%s1293_s5 + $0xb0] sm:$0xf]  ;;  %v948_v19 = vor.u32 %v1001_v11, %v945_v12  ;;  %v983_v21 = vld [vmem:[%s1293_s5 + $0x34] sm:$0xf] }
  0x57   : > { %646 = vmatpush.bf16.msra.mxu1 %v952_v2  ;;  %659 = vmatpush.bf16.msra.mxu2 %v892_v3  ;;  %v1000_v20 = vld [vmem:[%s1293_s5 + $0xb4] sm:$0xf0]  ;;  %v873_v22 = vld [vmem:[%s1293_s5 + $0x38] sm:$0xf0]  ;;  %v999_v23 = vld [vmem:[%s1293_s5 + $0xb4] sm:$0xf]  ;;  %v872_v25 = vor.u32 %v984_v17, %v871_v16 }
  0x58   : > { %672 = vmatpush.bf16.msra.mxu3 %v956_v7  ;;  %v937_v24 = vld [vmem:[%s1293_s5 + $0xb8] sm:$0xf0]  ;;  %v936_v26 = vor.u32 %v1000_v20, %v935_v18  ;;  %v876_v27 = vor.u32 %v983_v21, %v873_v22  ;;  %v863_v28 = vld [vmem:[%s1293_s5 + $0x20] sm:$0xf]  ;;  %v982_v29 = vld [vmem:[%s1293_s5 + $0x24] sm:$0xf0] }
  0x59   : > { %v927_v30 = vld [vmem:[%s1293_s5 + $0xa0] sm:$0xf]  ;;  %v940_v31 = vor.u32 %v999_v23, %v937_v24  ;;  %v998_v32 = vld [vmem:[%s1293_s5 + $0xa4] sm:$0xf0]  ;;  %v981_v33 = vld [vmem:[%s1293_s5 + $0x24] sm:$0xf]  ;;  %v864_v37 = vor.u32 %v982_v29, %v863_v28 }
  0x5a   : > { %634 = vmatpush.bf16.msra.mxu0 %v880_v13  ;;  %v865_v34 = vld [vmem:[%s1293_s5 + $0x28] sm:$0xf0]  ;;  %v997_v35 = vld [vmem:[%s1293_s5 + $0xa4] sm:$0xf]  ;;  %v928_v38 = vor.u32 %v998_v32, %v927_v30  ;;  %v855_v40 = vld [vmem:[%s1293_s5 + $0x10] sm:$0xf] }
  0x5b   : > { %647 = vmatpush.bf16.msra.mxu1 %v944_v14  ;;  %660 = vmatpush.bf16.msra.mxu2 %v884_v15  ;;  %v929_v36 = vld [vmem:[%s1293_s5 + $0xa8] sm:$0xf0]  ;;  %v868_v39 = vor.u32 %v981_v33, %v865_v34  ;;  %v980_v41 = vld [vmem:[%s1293_s5 + $0x14] sm:$0xf0]  ;;  %v919_v42 = vld [vmem:[%s1293_s5 + $0x90] sm:$0xf] }
  0x5c   : > { %673 = vmatpush.bf16.msra.mxu3 %v948_v19  ;;  %v932_v43 = vor.u32 %v997_v35, %v929_v36  ;;  %v996_v44 = vld [vmem:[%s1293_s5 + $0x94] sm:$0xf0]  ;;  %v979_v45 = vld [vmem:[%s1293_s5 + $0x14] sm:$0xf]  ;;  %v857_v46 = vld [vmem:[%s1293_s5 + $0x18] sm:$0xf0]  ;;  %v856_v49 = vor.u32 %v980_v41, %v855_v40 }
  0x5d   : > { %v995_v47 = vld [vmem:[%s1293_s5 + $0x94] sm:$0xf]  ;;  %v921_v48 = vld [vmem:[%s1293_s5 + $0x98] sm:$0xf0]  ;;  %v920_v51 = vor.u32 %v996_v44, %v919_v42  ;;  %v860_v52 = vor.u32 %v979_v45, %v857_v46  ;;  %v847_v53 = vld [vmem:[%s1293_s5] sm:$0xf] }
  0x5e   : > { %635 = vmatpush.bf16.msra.mxu0 %v872_v25  ;;  %v431_v50 = vld [vmem:[%s1279_s26] sm:$0xff]  ;;  %v978_v54 = vld [vmem:[%s1293_s5 + $0x4] sm:$0xf0]  ;;  %v911_v55 = vld [vmem:[%s1293_s5 + $0x80] sm:$0xf]  ;;  %v924_v56 = vor.u32 %v995_v47, %v921_v48  ;;  %p973_p13 = scmp.ne.s32.totalorder %s1104_s14, 8 }
  0x5f   : > { %648 = vmatpush.bf16.msra.mxu1 %v936_v26  ;;  %661 = vmatpush.bf16.msra.mxu2 %v876_v27  ;;  %v994_v57 = vld [vmem:[%s1293_s5 + $0x84] sm:$0xf0]  ;;  %v977_v58 = vld [vmem:[%s1293_s5 + $0x4] sm:$0xf]  ;;  %v849_v59 = vld [vmem:[%s1293_s5 + $0x8] sm:$0xf0]  ;;  %v465_v62 = vunpack.c.l.b16 %v431_v50  ;;  %v848_v63 = vor.u32 %v978_v54, %v847_v53  ;;  %v466_v0 = vunpack.c.h.b16 %v431_v50 }
  0x60   : > { %674 = vmatpush.bf16.msra.mxu3 %v940_v31  ;;  %v993_v60 = vld [vmem:[%s1293_s5 + $0x84] sm:$0xf]  ;;  %v913_v61 = vld [vmem:[%s1293_s5 + $0x88] sm:$0xf0]  ;;  %v912_v1 = vor.u32 %v994_v57, %v911_v55  ;;  %v852_v2 = vor.u32 %v977_v58, %v849_v59  ;;  %v429_v7 = vld [vmem:[#allocation2] sm:$0xff] }
  0x61   : > { %v916_v3 = vor.u32 %v993_v60, %v913_v61  ;;  %v467_v4 = vpack.c.b16 %v465_v62, %v465_v62  ;;  %v468_v5 = vpack.c.b16 %v466_v0, %v466_v0  ;;  %v430_v12 = vld [vmem:[#allocation2 + $0x8] sm:$0xff] }
  0x62   : > { %636 = vmatpush.bf16.msra.mxu0 %v864_v37 }
  0x63   : > { %649 = vmatpush.bf16.msra.mxu1 %v928_v38  ;;  %662 = vmatpush.bf16.msra.mxu2 %v868_v39 }
  0x64   : > { %675 = vmatpush.bf16.msra.mxu3 %v932_v43 }
  0x66   : > { %637 = vmatpush.bf16.msra.mxu0 %v856_v49 }
  0x67   : > { %650 = vmatpush.bf16.msra.mxu1 %v920_v51  ;;  %663 = vmatpush.bf16.msra.mxu2 %v860_v52 }
  0x68   : > { %676 = vmatpush.bf16.msra.mxu3 %v924_v56 }
  0x6a   : > { %638 = vmatpush.bf16.msra.mxu0 %v848_v63 }
  0x6b   : > { %651 = vmatpush.bf16.msra.mxu1 %v912_v1  ;;  %664 = vmatpush.bf16.msra.mxu2 %v852_v2 }
  0x6c   : > { %677 = vmatpush.bf16.msra.mxu3 %v916_v3 }
  0x6d   : > { %639 = vmatmul.bf16.vlgmr.msra.gmra.mxu0 %v467_v4 }
  0x6e   : > { %652 = vmatmul.bf16.vlgmr.msra.gmra.mxu1 %v468_v5  ;;  %665 = vmatmul.bf16.vlgmr.msra.gmra.mxu2 %v467_v4 }
  0x6f   : > { %678 = vmatmul.bf16.vlgmr.msra.gmra.mxu3 %v468_v5 }
  0xea   : > { %v640_v6 = vpop.f32.mrf.mxu0 }
  0xeb   : > { %v653_v8 = vpop.f32.mrf.mxu1 }
  0xec   : > { %v654_v9 = vadd.f32 %v653_v8, %v640_v6 }
  0xee   : > { %v683_v10 = vadd.f32 %v654_v9, %v429_v7 }
  0xf0   : > { %685 = vst [vmem:[#allocation2] sm:$0xff] %v683_v10 }
  0xf1   : > { %v666_v11 = vpop.f32.mrf.mxu2 }
  0xf2   : > { %v679_v13 = vpop.f32.mrf.mxu3  ;;  %v642_v14 = vpop.f32.mrf.mxu0 }
  0xf3   : > { %v680_v15 = vadd.f32 %v679_v13, %v666_v11  ;;  %v655_v16 = vpop.f32.mrf.mxu1 }
  0xf5   : > { %v684_v17 = vadd.f32 %v680_v15, %v430_v12 }
  0xf6   : > { %690 = sbr.rel (%p973_p13) target bundleno = 261 (0x105), region = 78 }
  0xf7   : > { %686 = vst [vmem:[#allocation2 + $0x8] sm:$0xff] %v684_v17 }
  0xf9   : > { %v668_v18 = vpop.f32.mrf.mxu2 }
  0xfa   : > { %v681_v19 = vpop.f32.mrf.mxu3 }
  0xfb   : > { %v691_v20 = vld [vmem:[#allocation2] sm:$0xff] }
  0xfc   : > { %v693_v21 = vld [vmem:[%s411_s12] sm:$0x3] }
  0xfd   : > { %v695_v23 = vperm.slane %v693_v21, 0  ;;  %v696_v24 = vperm.slane %v693_v21, 1 }
  0xfe   : > { %v692_v22 = vld [vmem:[#allocation2 + $0x8] sm:$0xff] }
  0xff   : > { %v699_v25 = vadd.f32 %v695_v23, %v691_v20  ;;  %v700_v26 = vadd.f32 %v696_v24, %v692_v22 }
 0x101   : > { %v701_v27 = vmax.f32 %v699_v25, 0.0  ;;  %v702_v28 = vmax.f32 %v700_v26, 0.0 }
 0x103   : > { %703 = vst [vmem:[%s1291_s15] sm:$0xff] %v701_v27 }
 0x104   : > { %704 = vst [vmem:[%s1291_s15 + $0x8] sm:$0xff] %v702_v28 }
 0x105 PF: > { %s13_s18 = sadd.s32 1, %s1120_s18   ;;  %s1394_s12 = smov %s1100_s13 }
 0x106   : > { %p10_p0 = scmp.ge.s32.totalorder %s13_s18, 20   ;;  %s1395_s13 = smov %s1194_s25 }
 0x107   : > { %s1396_s14 = smov %s1112_s16  ;;  %s1397_s15 = smov %s1116_s17 }
 0x108   : > { %s1398_s16 = smov %s1401_s19  ;;  %s1399_s17 = smov %s1405_s20 }
 0x109   :  { %12 = sbr.rel (!%p10_p0) target bundleno = 4 (0x4), region = 119 }

// kernel: bigram_resnet_forward.40
= control target key start
LH: loop header
LB: loop body
LE: loop exit
PB: predicated region body
PF: predicated region fallthrough
CT: control target
= control target key end

     0   :  { %s1101_s12 = smov 0   ;;  %s1103_s13 = smov 0   ;;  %s1306_s0 = inlined_call_operand.vmem [shape: bf16[8,256], index: 0, kind: input, shape index: {}]   ;;  %s1307_s1 = inlined_call_operand.vmem [shape: bf16[256,512], index: 1, kind: input, shape index: {}]   ;;  %s1308_s2 = inlined_call_operand.vmem [shape: f32[1,512], index: 2, kind: input, shape index: {}]   ;;  %s1309_s3 = inlined_call_operand.vmem [shape: f32[8,512], index: 3, kind: output, shape index: {}]  }
   0x1   :  { %s1105_s14 = smov 0   ;;  %s1107_s15 = smov 0  }
   0x2   :  { %s1109_s16 = smov 0  }
   0x3 LB: > { %s28_s17 = sadd.s32 1, %s1075_s15  ;;  %p76_p1 = scmp.ne.s32.totalorder %s1067_s13, %s1063_s12  ;;  %s1079_s16 = sphi %s1109_s16, %s13_s16   ;;  %s1075_s15 = sphi %s1107_s15, %s1313_s15   ;;  %s1071_s14 = sphi %s1105_s14, %s1312_s14   ;;  %s1067_s13 = sphi %s1103_s13, %s1311_s13   ;;  %s1063_s12 = sphi %s1101_s12, %s1310_s12  }
   0x4   : > { %p30_p0 = scmp.ge.s32.totalorder %s28_s17, 2  ;;  %p77_p2 = scmp.eq.s32.totalorder %s1079_s16, 0 }
   0x5   : > { %s69_s19 = sadd.s32 1, %s1067_s13  ;;  %p829_p5 = scmp.ge.s32.totalorder %s1079_s16, 2 }
   0x6   : > { %s1315_s17 = smov (%p30_p0, %s28_s17), 0  ;;  %p78_p3 = por %p77_p2, %p76_p1 }
   0x7   : > { %s65_s18 = ssub.s32 %s1075_s15, %s1315_s17  ;;  %169 = sbr.rel (%p829_p5) target bundleno = 48 (0x30), region = 20 }
   0x8   : > { %p67_p4 = scmp.eq.s32.totalorder %s65_s18, 0 }
   0xa   : > { %s1136_s20 = scalar_select %p67_p4, %s1067_s13, %s69_s19  }
   0xc   : > { %172 = sbr.rel (!%p78_p3) target bundleno = 48 (0x30), region = 24  ;;  %s174_s21 = sand.u32 (%p78_p3), 1, %s1067_s13  }
   0xd   : > { %s968_s22 = sshll.u32 (%p78_p3), %s1075_s15, 3  ;;  %s830_s23 = sshll.u32 (%p78_p3), %s174_s21, 8 }
   0xe   : > { %s1144_s26 = scalar_lea.vmem (%p78_p3), %s1307_s1, %s968_s22  ;;  %s1149_s27 = scalar_lea.vmem (%p78_p3), [#allocation3], %s830_s23 }
   0xf   : > { %v273_v0 = vld [vmem:[%s1144_s26] sm:$0xff] (%p78_p3)  ;;  %v275_v1 = vld [vmem:[%s1144_s26 + $0x10] sm:$0xff] (%p78_p3) }
  0x10   : > { %v277_v2 = vld [vmem:[%s1144_s26 + $0x20] sm:$0xff] (%p78_p3)  ;;  %274 = vst [vmem:[%s1149_s27] sm:$0xff] (%p78_p3), %v273_v0  ;;  %v279_v3 = vld [vmem:[%s1144_s26 + $0x30] sm:$0xff] (%p78_p3) }
  0x11   : > { %276 = vst [vmem:[%s1149_s27 + $0x8] sm:$0xff] %v275_v1  ;;  %v281_v4 = vld [vmem:[%s1144_s26 + $0x40] sm:$0xff]  ;;  %v283_v5 = vld [vmem:[%s1144_s26 + $0x50] sm:$0xff] }
  0x12   : > { %278 = vst [vmem:[%s1149_s27 + $0x10] sm:$0xff] %v277_v2  ;;  %v285_v6 = vld [vmem:[%s1144_s26 + $0x60] sm:$0xff]  ;;  %v287_v7 = vld [vmem:[%s1144_s26 + $0x70] sm:$0xff] }
  0x13   : > { %280 = vst [vmem:[%s1149_s27 + $0x18] sm:$0xff] %v279_v3  ;;  %v289_v8 = vld [vmem:[%s1144_s26 + $0x80] sm:$0xff]  ;;  %v291_v9 = vld [vmem:[%s1144_s26 + $0x90] sm:$0xff] }
  0x14   : > { %282 = vst [vmem:[%s1149_s27 + $0x20] sm:$0xff] %v281_v4  ;;  %v293_v10 = vld [vmem:[%s1144_s26 + $0xa0] sm:$0xff]  ;;  %v295_v11 = vld [vmem:[%s1144_s26 + $0xb0] sm:$0xff] }
  0x15   : > { %284 = vst [vmem:[%s1149_s27 + $0x28] sm:$0xff] %v283_v5  ;;  %v297_v12 = vld [vmem:[%s1144_s26 + $0xc0] sm:$0xff]  ;;  %v299_v13 = vld [vmem:[%s1144_s26 + $0xd0] sm:$0xff] }
  0x16   : > { %286 = vst [vmem:[%s1149_s27 + $0x30] sm:$0xff] %v285_v6  ;;  %v301_v14 = vld [vmem:[%s1144_s26 + $0xe0] sm:$0xff]  ;;  %v303_v15 = vld [vmem:[%s1144_s26 + $0xf0] sm:$0xff] }
  0x17   : > { %288 = vst [vmem:[%s1149_s27 + $0x38] sm:$0xff] %v287_v7  ;;  %v305_v16 = vld [vmem:[%s1144_s26 + $0x100] sm:$0xff]  ;;  %v307_v17 = vld [vmem:[%s1144_s26 + $0x110] sm:$0xff] }
  0x18   : > { %290 = vst [vmem:[%s1149_s27 + $0x40] sm:$0xff] %v289_v8  ;;  %v309_v18 = vld [vmem:[%s1144_s26 + $0x120] sm:$0xff]  ;;  %v311_v19 = vld [vmem:[%s1144_s26 + $0x130] sm:$0xff] }
  0x19   : > { %292 = vst [vmem:[%s1149_s27 + $0x48] sm:$0xff] %v291_v9  ;;  %v313_v20 = vld [vmem:[%s1144_s26 + $0x140] sm:$0xff]  ;;  %v315_v21 = vld [vmem:[%s1144_s26 + $0x150] sm:$0xff] }
  0x1a   : > { %294 = vst [vmem:[%s1149_s27 + $0x50] sm:$0xff] %v293_v10  ;;  %v317_v22 = vld [vmem:[%s1144_s26 + $0x160] sm:$0xff]  ;;  %v319_v23 = vld [vmem:[%s1144_s26 + $0x170] sm:$0xff] }
  0x1b   : > { %296 = vst [vmem:[%s1149_s27 + $0x58] sm:$0xff] %v295_v11  ;;  %v321_v24 = vld [vmem:[%s1144_s26 + $0x180] sm:$0xff]  ;;  %v323_v25 = vld [vmem:[%s1144_s26 + $0x190] sm:$0xff] }
  0x1c   : > { %298 = vst [vmem:[%s1149_s27 + $0x60] sm:$0xff] %v297_v12  ;;  %v325_v26 = vld [vmem:[%s1144_s26 + $0x1a0] sm:$0xff]  ;;  %v327_v27 = vld [vmem:[%s1144_s26 + $0x1b0] sm:$0xff] }
  0x1d   : > { %300 = vst [vmem:[%s1149_s27 + $0x68] sm:$0xff] %v299_v13  ;;  %v329_v28 = vld [vmem:[%s1144_s26 + $0x1c0] sm:$0xff]  ;;  %v331_v29 = vld [vmem:[%s1144_s26 + $0x1d0] sm:$0xff] }
  0x1e   : > { %302 = vst [vmem:[%s1149_s27 + $0x70] sm:$0xff] %v301_v14  ;;  %v333_v30 = vld [vmem:[%s1144_s26 + $0x1e0] sm:$0xff]  ;;  %v335_v31 = vld [vmem:[%s1144_s26 + $0x1f0] sm:$0xff] }
  0x1f   : > { %304 = vst [vmem:[%s1149_s27 + $0x78] sm:$0xff] %v303_v15 }
  0x20   : > { %306 = vst [vmem:[%s1149_s27 + $0x80] sm:$0xff] %v305_v16 }
  0x21   : > { %308 = vst [vmem:[%s1149_s27 + $0x88] sm:$0xff] %v307_v17 }
  0x22   : > { %310 = vst [vmem:[%s1149_s27 + $0x90] sm:$0xff] %v309_v18 }
  0x23   : > { %312 = vst [vmem:[%s1149_s27 + $0x98] sm:$0xff] %v311_v19 }
  0x24   : > { %314 = vst [vmem:[%s1149_s27 + $0xa0] sm:$0xff] %v313_v20 }
  0x25   : > { %316 = vst [vmem:[%s1149_s27 + $0xa8] sm:$0xff] %v315_v21 }
  0x26   : > { %318 = vst [vmem:[%s1149_s27 + $0xb0] sm:$0xff] %v317_v22 }
  0x27   : > { %320 = vst [vmem:[%s1149_s27 + $0xb8] sm:$0xff] %v319_v23 }
  0x28   : > { %322 = vst [vmem:[%s1149_s27 + $0xc0] sm:$0xff] %v321_v24 }
  0x29   : > { %324 = vst [vmem:[%s1149_s27 + $0xc8] sm:$0xff] %v323_v25 }
  0x2a   : > { %326 = vst [vmem:[%s1149_s27 + $0xd0] sm:$0xff] %v325_v26 }
  0x2b   : > { %328 = vst [vmem:[%s1149_s27 + $0xd8] sm:$0xff] %v327_v27 }
  0x2c   : > { %330 = vst [vmem:[%s1149_s27 + $0xe0] sm:$0xff] %v329_v28 }
  0x2d   : > { %332 = vst [vmem:[%s1149_s27 + $0xe8] sm:$0xff] %v331_v29 }
  0x2e   : > { %334 = vst [vmem:[%s1149_s27 + $0xf0] sm:$0xff] %v333_v30 }
  0x2f   : > { %336 = vst [vmem:[%s1149_s27 + $0xf8] sm:$0xff] %v335_v31 }
  0x30 PF: > { %p833_p6 = scmp.ge.s32.totalorder %s1079_s16, 1  ;;  %p349_p7 = scmp.lt.s32.totalorder %s1079_s16, 3 }
  0x32   : > { %p350_p8 = pnand %p833_p6, %p349_p7 }
  0x33   : > { %s356_s28 = sand.u32 (!%p350_p8), 1, %s1063_s12   ;;  %s835_s6 = sshll.u32 (!%p350_p8), %s1071_s14, 1 }
  0x34   : > { %353 = sbr.rel (%p350_p8) target bundleno = 233 (0xe9), region = 66  ;;  %s834_s29 = sshll.u32 (!%p350_p8), %s356_s28, 8 }
  0x35   : > { %s1215_s30 = scalar_lea.vmem (!%p350_p8), [#allocation3], %s834_s29  ;;  %p409_p9 = scmp.lt.s32.totalorder (!%p350_p8), %s835_s6, 3 }
  0x39   : > { %v896_v32 = vld [vmem:[%s1215_s30 + $0x70] sm:$0xf]  ;;  %v984_v33 = vld [vmem:[%s1215_s30 + $0x74] sm:$0xf0]  ;;  %v983_v37 = vld [vmem:[%s1215_s30 + $0x74] sm:$0xf] }
  0x3a   : > { %v960_v34 = vld [vmem:[%s1215_s30 + $0xf0] sm:$0xf]  ;;  %v897_v35 = vor.u32 %v984_v33, %v896_v32  ;;  %v1000_v36 = vld [vmem:[%s1215_s30 + $0xf4] sm:$0xf0]  ;;  %v898_v38 = vld [vmem:[%s1215_s30 + $0x78] sm:$0xf0] }
  0x3b   : > { %v961_v39 = vor.u32 %v1000_v36, %v960_v34  ;;  %v901_v40 = vor.u32 %v983_v37, %v898_v38  ;;  %v999_v41 = vld [vmem:[%s1215_s30 + $0xf4] sm:$0xf]  ;;  %v962_v42 = vld [vmem:[%s1215_s30 + $0xf8] sm:$0xf0]  ;;  %v888_v43 = vld [vmem:[%s1215_s30 + $0x60] sm:$0xf] }
  0x3c   : > { %631 = vmatpush.bf16.msra.mxu0 %v897_v35  ;;  %v965_v44 = vor.u32 %v999_v41, %v962_v42  ;;  %v982_v45 = vld [vmem:[%s1215_s30 + $0x64] sm:$0xf0]  ;;  %v952_v46 = vld [vmem:[%s1215_s30 + $0xe0] sm:$0xf]  ;;  %v981_v50 = vld [vmem:[%s1215_s30 + $0x64] sm:$0xf] }
  0x3d   : > { %v998_v47 = vld [vmem:[%s1215_s30 + $0xe4] sm:$0xf0]  ;;  %644 = vmatpush.bf16.msra.mxu1 %v961_v39  ;;  %657 = vmatpush.bf16.msra.mxu2 %v901_v40  ;;  %v889_v48 = vor.u32 %v982_v45, %v888_v43  ;;  %v890_v51 = vld [vmem:[%s1215_s30 + $0x68] sm:$0xf0]  ;;  %v997_v52 = vld [vmem:[%s1215_s30 + $0xe4] sm:$0xf] }
  0x3e   : > { %v953_v49 = vor.u32 %v998_v47, %v952_v46  ;;  %670 = vmatpush.bf16.msra.mxu3 %v965_v44  ;;  %v893_v53 = vor.u32 %v981_v50, %v890_v51  ;;  %v954_v54 = vld [vmem:[%s1215_s30 + $0xe8] sm:$0xf0]  ;;  %v880_v55 = vld [vmem:[%s1215_s30 + $0x50] sm:$0xf]  ;;  %v980_v56 = vld [vmem:[%s1215_s30 + $0x54] sm:$0xf0] }
  0x3f   : > { %v957_v57 = vor.u32 %v997_v52, %v954_v54  ;;  %v944_v58 = vld [vmem:[%s1215_s30 + $0xd0] sm:$0xf]  ;;  %v996_v59 = vld [vmem:[%s1215_s30 + $0xd4] sm:$0xf0]  ;;  %v979_v60 = vld [vmem:[%s1215_s30 + $0x54] sm:$0xf]  ;;  %v881_v61 = vor.u32 %v980_v56, %v880_v55 }
  0x40   : > { %632 = vmatpush.bf16.msra.mxu0 %v889_v48  ;;  %v882_v62 = vld [vmem:[%s1215_s30 + $0x58] sm:$0xf0]  ;;  %v995_v63 = vld [vmem:[%s1215_s30 + $0xd4] sm:$0xf]  ;;  %v945_v1 = vor.u32 %v996_v59, %v944_v58  ;;  %v872_v3 = vld [vmem:[%s1215_s30 + $0x40] sm:$0xf] }
  0x41   : > { %v946_v0 = vld [vmem:[%s1215_s30 + $0xd8] sm:$0xf0]  ;;  %645 = vmatpush.bf16.msra.mxu1 %v953_v49  ;;  %658 = vmatpush.bf16.msra.mxu2 %v893_v53  ;;  %v885_v2 = vor.u32 %v979_v60, %v882_v62  ;;  %v978_v4 = vld [vmem:[%s1215_s30 + $0x44] sm:$0xf0]  ;;  %v936_v5 = vld [vmem:[%s1215_s30 + $0xc0] sm:$0xf] }
  0x42   : > { %671 = vmatpush.bf16.msra.mxu3 %v957_v57  ;;  %v949_v6 = vor.u32 %v995_v63, %v946_v0  ;;  %v994_v7 = vld [vmem:[%s1215_s30 + $0xc4] sm:$0xf0]  ;;  %v977_v8 = vld [vmem:[%s1215_s30 + $0x44] sm:$0xf]  ;;  %v874_v9 = vld [vmem:[%s1215_s30 + $0x48] sm:$0xf0]  ;;  %v873_v12 = vor.u32 %v978_v4, %v872_v3 }
  0x43   : > { %v993_v10 = vld [vmem:[%s1215_s30 + $0xc4] sm:$0xf]  ;;  %v938_v11 = vld [vmem:[%s1215_s30 + $0xc8] sm:$0xf0]  ;;  %v937_v13 = vor.u32 %v994_v7, %v936_v5  ;;  %v877_v14 = vor.u32 %v977_v8, %v874_v9  ;;  %v864_v15 = vld [vmem:[%s1215_s30 + $0x30] sm:$0xf] }
  0x44   : > { %633 = vmatpush.bf16.msra.mxu0 %v881_v61  ;;  %v976_v16 = vld [vmem:[%s1215_s30 + $0x34] sm:$0xf0]  ;;  %v928_v17 = vld [vmem:[%s1215_s30 + $0xb0] sm:$0xf]  ;;  %v941_v18 = vor.u32 %v993_v10, %v938_v11  ;;  %v975_v20 = vld [vmem:[%s1215_s30 + $0x34] sm:$0xf] }
  0x45   : > { %646 = vmatpush.bf16.msra.mxu1 %v945_v1  ;;  %659 = vmatpush.bf16.msra.mxu2 %v885_v2  ;;  %v992_v19 = vld [vmem:[%s1215_s30 + $0xb4] sm:$0xf0]  ;;  %v866_v21 = vld [vmem:[%s1215_s30 + $0x38] sm:$0xf0]  ;;  %v991_v22 = vld [vmem:[%s1215_s30 + $0xb4] sm:$0xf]  ;;  %v865_v24 = vor.u32 %v976_v16, %v864_v15 }
  0x46   : > { %672 = vmatpush.bf16.msra.mxu3 %v949_v6  ;;  %v930_v23 = vld [vmem:[%s1215_s30 + $0xb8] sm:$0xf0]  ;;  %v929_v25 = vor.u32 %v992_v19, %v928_v17  ;;  %v869_v26 = vor.u32 %v975_v20, %v866_v21  ;;  %v856_v27 = vld [vmem:[%s1215_s30 + $0x20] sm:$0xf]  ;;  %v974_v28 = vld [vmem:[%s1215_s30 + $0x24] sm:$0xf0] }
  0x47   : > { %v920_v29 = vld [vmem:[%s1215_s30 + $0xa0] sm:$0xf]  ;;  %v933_v30 = vor.u32 %v991_v22, %v930_v23  ;;  %v990_v31 = vld [vmem:[%s1215_s30 + $0xa4] sm:$0xf0]  ;;  %v973_v32 = vld [vmem:[%s1215_s30 + $0x24] sm:$0xf]  ;;  %v857_v36 = vor.u32 %v974_v28, %v856_v27 }
  0x48   : > { %634 = vmatpush.bf16.msra.mxu0 %v873_v12  ;;  %v858_v33 = vld [vmem:[%s1215_s30 + $0x28] sm:$0xf0]  ;;  %v989_v34 = vld [vmem:[%s1215_s30 + $0xa4] sm:$0xf]  ;;  %v921_v37 = vor.u32 %v990_v31, %v920_v29  ;;  %v848_v39 = vld [vmem:[%s1215_s30 + $0x10] sm:$0xf] }
  0x49   : > { %647 = vmatpush.bf16.msra.mxu1 %v937_v13  ;;  %660 = vmatpush.bf16.msra.mxu2 %v877_v14  ;;  %v922_v35 = vld [vmem:[%s1215_s30 + $0xa8] sm:$0xf0]  ;;  %v861_v38 = vor.u32 %v973_v32, %v858_v33  ;;  %v972_v40 = vld [vmem:[%s1215_s30 + $0x14] sm:$0xf0]  ;;  %v912_v41 = vld [vmem:[%s1215_s30 + $0x90] sm:$0xf] }
  0x4a   : > { %673 = vmatpush.bf16.msra.mxu3 %v941_v18  ;;  %v925_v42 = vor.u32 %v989_v34, %v922_v35  ;;  %v988_v43 = vld [vmem:[%s1215_s30 + $0x94] sm:$0xf0]  ;;  %v971_v44 = vld [vmem:[%s1215_s30 + $0x14] sm:$0xf]  ;;  %v850_v45 = vld [vmem:[%s1215_s30 + $0x18] sm:$0xf0]  ;;  %v849_v48 = vor.u32 %v972_v40, %v848_v39 }
  0x4b   : > { %v987_v46 = vld [vmem:[%s1215_s30 + $0x94] sm:$0xf]  ;;  %v914_v47 = vld [vmem:[%s1215_s30 + $0x98] sm:$0xf0]  ;;  %v431_v49 = vld [vmem:[%s1306_s0] sm:$0xff]  ;;  %v913_v50 = vor.u32 %v988_v43, %v912_v41  ;;  %v853_v51 = vor.u32 %v971_v44, %v850_v45  ;;  %s1317_s6 = smov (!%p409_p9, %s835_s6), 3 }
  0x4c   : > { %635 = vmatpush.bf16.msra.mxu0 %v865_v24  ;;  %v840_v52 = vld [vmem:[%s1215_s30] sm:$0xf]  ;;  %v970_v53 = vld [vmem:[%s1215_s30 + $0x4] sm:$0xf0]  ;;  %v917_v55 = vor.u32 %v987_v46, %v914_v47  ;;  %v969_v57 = vld [vmem:[%s1215_s30 + $0x4] sm:$0xf]  ;;  %v465_v61 = vunpack.c.l.b16 %v431_v49  ;;  %v466_v63 = vunpack.c.h.b16 %v431_v49  ;;  %s411_s9 = scalar_lea.vmem %s1308_s2, %s1317_s6 }
  0x4d   : > { %648 = vmatpush.bf16.msra.mxu1 %v929_v25  ;;  %661 = vmatpush.bf16.msra.mxu2 %v869_v26  ;;  %v904_v54 = vld [vmem:[%s1215_s30 + $0x80] sm:$0xf]  ;;  %v986_v56 = vld [vmem:[%s1215_s30 + $0x84] sm:$0xf0]  ;;  %v842_v58 = vld [vmem:[%s1215_s30 + $0x8] sm:$0xf0]  ;;  %v841_v62 = vor.u32 %v970_v53, %v840_v52 }
  0x4e   : > { %674 = vmatpush.bf16.msra.mxu3 %v933_v30  ;;  %v985_v59 = vld [vmem:[%s1215_s30 + $0x84] sm:$0xf]  ;;  %v906_v60 = vld [vmem:[%s1215_s30 + $0x88] sm:$0xf0]  ;;  %v905_v0 = vor.u32 %v986_v56, %v904_v54  ;;  %v845_v1 = vor.u32 %v969_v57, %v842_v58  ;;  %v467_v3 = vpack.c.b16 %v465_v61, %v465_v61  ;;  %v468_v4 = vpack.c.b16 %v466_v63, %v466_v63  ;;  %v692_v5 = vld [vmem:[%s411_s9] sm:$0x3] }
  0x4f   : > { %v909_v2 = vor.u32 %v985_v59, %v906_v60  ;;  %s837_s10 = sshll.u32 %s1317_s6, 3  ;;  %v694_v7 = vperm.slane %v692_v5, 0  ;;  %v695_v12 = vperm.slane %v692_v5, 1 }
  0x50   : > { %636 = vmatpush.bf16.msra.mxu0 %v857_v36  ;;  %s421_s18 = scalar_lea.vmem %s1309_s3, %s837_s10 }
  0x51   : > { %649 = vmatpush.bf16.msra.mxu1 %v921_v37  ;;  %662 = vmatpush.bf16.msra.mxu2 %v861_v38 }
  0x52   : > { %675 = vmatpush.bf16.msra.mxu3 %v925_v42 }
  0x54   : > { %637 = vmatpush.bf16.msra.mxu0 %v849_v48 }
  0x55   : > { %650 = vmatpush.bf16.msra.mxu1 %v913_v50  ;;  %663 = vmatpush.bf16.msra.mxu2 %v853_v51 }
  0x56   : > { %676 = vmatpush.bf16.msra.mxu3 %v917_v55 }
  0x58   : > { %638 = vmatpush.bf16.msra.mxu0 %v841_v62 }
  0x59   : > { %651 = vmatpush.bf16.msra.mxu1 %v905_v0  ;;  %664 = vmatpush.bf16.msra.mxu2 %v845_v1 }
  0x5a   : > { %677 = vmatpush.bf16.msra.mxu3 %v909_v2 }
  0x5b   : > { %639 = vmatmul.bf16.vlgmr.msra.gmra.mxu0 %v467_v3 }
  0x5c   : > { %652 = vmatmul.bf16.vlgmr.msra.gmra.mxu1 %v468_v4  ;;  %665 = vmatmul.bf16.vlgmr.msra.gmra.mxu2 %v467_v3 }
  0x5d   : > { %678 = vmatmul.bf16.vlgmr.msra.gmra.mxu3 %v468_v4 }
  0xd8   : > { %v640_v6 = vpop.f32.mrf.mxu0 }
  0xd9   : > { %v653_v8 = vpop.f32.mrf.mxu1 }
  0xda   : > { %v654_v9 = vadd.f32 %v653_v8, %v640_v6 }
  0xdc   : > { %v698_v10 = vadd.f32 %v694_v7, %v654_v9 }
  0xde   : > { %700 = vst [vmem:[%s421_s18] sm:$0xff] %v698_v10 }
  0xdf   : > { %v666_v11 = vpop.f32.mrf.mxu2 }
  0xe0   : > { %v679_v13 = vpop.f32.mrf.mxu3  ;;  %v642_v14 = vpop.f32.mrf.mxu0 }
  0xe1   : > { %v680_v15 = vadd.f32 %v679_v13, %v666_v11  ;;  %v655_v16 = vpop.f32.mrf.mxu1 }
  0xe3   : > { %v699_v17 = vadd.f32 %v695_v12, %v680_v15 }
  0xe5   : > { %701 = vst [vmem:[%s421_s18 + $0x8] sm:$0xff] %v699_v17 }
  0xe7   : > { %v668_v18 = vpop.f32.mrf.mxu2 }
  0xe8   : > { %v681_v19 = vpop.f32.mrf.mxu3 }
  0xe9 PF: > { %s13_s16 = sadd.s32 1, %s1079_s16   ;;  %s1310_s12 = smov %s1067_s13 }
  0xea   : > { %p10_p10 = scmp.ge.s32.totalorder %s13_s16, 4   ;;  %s1311_s13 = smov %s1136_s20 }
  0xeb   : > { %s1312_s14 = smov %s1075_s15  ;;  %s1313_s15 = smov %s1315_s17 }
  0xec   :  { %12 = sbr.rel (!%p10_p10) target bundleno = 3 (0x3), region = 119 }

// kernel: bigram_resnet_forward.42
= control target key start
LH: loop header
LB: loop body
LE: loop exit
PB: predicated region body
PF: predicated region fallthrough
CT: control target
= control target key end

     0   :  { %s1235_s15 = smov 0   ;;  %s1237_s16 = smov 0   ;;  %s1489_s0 = inlined_call_operand.vmem [shape: bf16[8,4608], index: 0, kind: input, shape index: {}]   ;;  %s1490_s1 = inlined_call_operand.vmem [shape: bf16[4608,512], index: 1, kind: input, shape index: {}]   ;;  %s1491_s2 = inlined_call_operand.vmem [shape: f32[1,512], index: 2, kind: input, shape index: {}]   ;;  %s1492_s3 = inlined_call_operand.vmem [shape: f32[8,512], index: 3, kind: input, shape index: {}]   ;;  %s1493_s4 = inlined_call_operand.vmem [shape: f32[8,512], index: 4, kind: output, shape index: {}]  }
   0x1   :  { %s1239_s17 = smov 0   ;;  %s1241_s18 = smov 0  }
   0x2   :  { %s1243_s19 = smov 0   ;;  %s1245_s20 = smov 0  }
   0x3   :  { %s1247_s21 = smov 0  }
   0x4 LB: > { %s26_s22 = sadd.s32 1, %s1199_s19  ;;  %s29_s23 = sadd.s32 1, %s1203_s20  ;;  %s1207_s21 = sphi %s1247_s21, %s14_s21   ;;  %s1203_s20 = sphi %s1245_s20, %s1499_s20   ;;  %s1199_s19 = sphi %s1243_s19, %s1498_s19   ;;  %s1195_s18 = sphi %s1241_s18, %s1497_s18   ;;  %s1191_s17 = sphi %s1239_s17, %s1496_s17   ;;  %s1187_s16 = sphi %s1237_s16, %s1495_s16   ;;  %s1183_s15 = sphi %s1235_s15, %s1494_s15  }
   0x5   : > { %p27_p0 = scmp.ge.s32.totalorder %s26_s22, 18  ;;  %p77_p1 = scmp.ne.s32.totalorder %s1187_s16, %s1183_s15 }
   0x6   : > { %p78_p2 = scmp.eq.s32.totalorder %s1207_s21, 0  ;;  %s70_s27 = sadd.s32 1, %s1187_s16 }
   0x7   : > { %s1501_s22 = smov (%p27_p0, %s26_s22), 0  ;;  %s1503_s23 = smov (!%p27_p0, %s29_s23), %s1203_s20 }
   0x8   : > { %p79_p3 = por %p78_p2, %p77_p1  ;;  %p31_p4 = scmp.ge.s32.totalorder %s1503_s23, 2 }
   0x9   : > { %s65_s24 = ssub.s32 %s1199_s19, %s1501_s22  ;;  %p916_p6 = scmp.ge.s32.totalorder %s1207_s21, 36 }
   0xa   : > { %s1505_s23 = smov (%p31_p4, %s1503_s23), 0 }
   0xb   : > { %s66_s25 = ssub.s32 %s1203_s20, %s1505_s23  ;;  %185 = sbr.rel (%p916_p6) target bundleno = 55 (0x37), region = 16 }
   0xc   : > { %s67_s26 = sor.u32 %s66_s25, %s65_s24 }
   0xd   : > { %p68_p5 = scmp.eq.s32.totalorder %s67_s26, 0 }
   0xf   : > { %s1286_s28 = scalar_select %p68_p5, %s1187_s16, %s70_s27  }
  0x10   : > { %201 = sbr.rel (!%p79_p3) target bundleno = 55 (0x37), region = 24  ;;  %s203_s29 = sand.u32 (%p79_p3), 1, %s1187_s16  }
  0x11   : > { %s919_s30 = sshll.u32 (%p79_p3), %s1203_s20, 1  ;;  %s917_s5 = sshll.u32 (%p79_p3), %s203_s29, 8 }
  0x12   : > { %s1063_s6 = sshll.u32 (%p79_p3), %s1199_s19, 7  ;;  %s1300_s12 = scalar_lea.vmem (%p79_p3), [#allocation3], %s917_s5 }
  0x13   : > { %s209_s7 = sadd.s32 (%p79_p3), %s1063_s6, %s919_s30 }
  0x14   : > { %s921_s8 = sshll.u32 (%p79_p3), %s209_s7, 2 }
  0x15   : > { %s1295_s11 = scalar_lea.vmem %s1490_s1, %s921_s8 }
  0x16   : > { %v302_v0 = vld [vmem:[%s1295_s11] sm:$0xff]  ;;  %v304_v1 = vld [vmem:[%s1295_s11 + $0x10] sm:$0xff] }
  0x17   : > { %v306_v2 = vld [vmem:[%s1295_s11 + $0x20] sm:$0xff]  ;;  %303 = vst [vmem:[%s1300_s12] sm:$0xff] %v302_v0  ;;  %v308_v3 = vld [vmem:[%s1295_s11 + $0x30] sm:$0xff] }
  0x18   : > { %305 = vst [vmem:[%s1300_s12 + $0x8] sm:$0xff] %v304_v1  ;;  %v310_v4 = vld [vmem:[%s1295_s11 + $0x40] sm:$0xff]  ;;  %v312_v5 = vld [vmem:[%s1295_s11 + $0x50] sm:$0xff] }
  0x19   : > { %307 = vst [vmem:[%s1300_s12 + $0x10] sm:$0xff] %v306_v2  ;;  %v314_v6 = vld [vmem:[%s1295_s11 + $0x60] sm:$0xff]  ;;  %v316_v7 = vld [vmem:[%s1295_s11 + $0x70] sm:$0xff] }
  0x1a   : > { %309 = vst [vmem:[%s1300_s12 + $0x18] sm:$0xff] %v308_v3  ;;  %v318_v8 = vld [vmem:[%s1295_s11 + $0x80] sm:$0xff]  ;;  %v320_v9 = vld [vmem:[%s1295_s11 + $0x90] sm:$0xff] }
  0x1b   : > { %311 = vst [vmem:[%s1300_s12 + $0x20] sm:$0xff] %v310_v4  ;;  %v322_v10 = vld [vmem:[%s1295_s11 + $0xa0] sm:$0xff]  ;;  %v324_v11 = vld [vmem:[%s1295_s11 + $0xb0] sm:$0xff] }
  0x1c   : > { %313 = vst [vmem:[%s1300_s12 + $0x28] sm:$0xff] %v312_v5  ;;  %v326_v12 = vld [vmem:[%s1295_s11 + $0xc0] sm:$0xff]  ;;  %v328_v13 = vld [vmem:[%s1295_s11 + $0xd0] sm:$0xff] }
  0x1d   : > { %315 = vst [vmem:[%s1300_s12 + $0x30] sm:$0xff] %v314_v6  ;;  %v330_v14 = vld [vmem:[%s1295_s11 + $0xe0] sm:$0xff]  ;;  %v332_v15 = vld [vmem:[%s1295_s11 + $0xf0] sm:$0xff] }
  0x1e   : > { %317 = vst [vmem:[%s1300_s12 + $0x38] sm:$0xff] %v316_v7  ;;  %v334_v16 = vld [vmem:[%s1295_s11 + $0x100] sm:$0xff]  ;;  %v336_v17 = vld [vmem:[%s1295_s11 + $0x110] sm:$0xff] }
  0x1f   : > { %319 = vst [vmem:[%s1300_s12 + $0x40] sm:$0xff] %v318_v8  ;;  %v338_v18 = vld [vmem:[%s1295_s11 + $0x120] sm:$0xff]  ;;  %v340_v19 = vld [vmem:[%s1295_s11 + $0x130] sm:$0xff] }
  0x20   : > { %321 = vst [vmem:[%s1300_s12 + $0x48] sm:$0xff] %v320_v9  ;;  %v342_v20 = vld [vmem:[%s1295_s11 + $0x140] sm:$0xff]  ;;  %v344_v21 = vld [vmem:[%s1295_s11 + $0x150] sm:$0xff] }
  0x21   : > { %323 = vst [vmem:[%s1300_s12 + $0x50] sm:$0xff] %v322_v10  ;;  %v346_v22 = vld [vmem:[%s1295_s11 + $0x160] sm:$0xff]  ;;  %v348_v23 = vld [vmem:[%s1295_s11 + $0x170] sm:$0xff] }
  0x22   : > { %325 = vst [vmem:[%s1300_s12 + $0x58] sm:$0xff] %v324_v11  ;;  %v350_v24 = vld [vmem:[%s1295_s11 + $0x180] sm:$0xff]  ;;  %v352_v25 = vld [vmem:[%s1295_s11 + $0x190] sm:$0xff] }
  0x23   : > { %327 = vst [vmem:[%s1300_s12 + $0x60] sm:$0xff] %v326_v12  ;;  %v354_v26 = vld [vmem:[%s1295_s11 + $0x1a0] sm:$0xff]  ;;  %v356_v27 = vld [vmem:[%s1295_s11 + $0x1b0] sm:$0xff] }
  0x24   : > { %329 = vst [vmem:[%s1300_s12 + $0x68] sm:$0xff] %v328_v13  ;;  %v358_v28 = vld [vmem:[%s1295_s11 + $0x1c0] sm:$0xff]  ;;  %v360_v29 = vld [vmem:[%s1295_s11 + $0x1d0] sm:$0xff] }
  0x25   : > { %331 = vst [vmem:[%s1300_s12 + $0x70] sm:$0xff] %v330_v14  ;;  %v362_v30 = vld [vmem:[%s1295_s11 + $0x1e0] sm:$0xff]  ;;  %v364_v31 = vld [vmem:[%s1295_s11 + $0x1f0] sm:$0xff] }
  0x26   : > { %333 = vst [vmem:[%s1300_s12 + $0x78] sm:$0xff] %v332_v15 }
  0x27   : > { %335 = vst [vmem:[%s1300_s12 + $0x80] sm:$0xff] %v334_v16 }
  0x28   : > { %337 = vst [vmem:[%s1300_s12 + $0x88] sm:$0xff] %v336_v17 }
  0x29   : > { %339 = vst [vmem:[%s1300_s12 + $0x90] sm:$0xff] %v338_v18 }
  0x2a   : > { %341 = vst [vmem:[%s1300_s12 + $0x98] sm:$0xff] %v340_v19 }
  0x2b   : > { %343 = vst [vmem:[%s1300_s12 + $0xa0] sm:$0xff] %v342_v20 }
  0x2c   : > { %345 = vst [vmem:[%s1300_s12 + $0xa8] sm:$0xff] %v344_v21 }
  0x2d   : > { %347 = vst [vmem:[%s1300_s12 + $0xb0] sm:$0xff] %v346_v22 }
  0x2e   : > { %349 = vst [vmem:[%s1300_s12 + $0xb8] sm:$0xff] %v348_v23 }
  0x2f   : > { %351 = vst [vmem:[%s1300_s12 + $0xc0] sm:$0xff] %v350_v24 }
  0x30   : > { %353 = vst [vmem:[%s1300_s12 + $0xc8] sm:$0xff] %v352_v25 }
  0x31   : > { %355 = vst [vmem:[%s1300_s12 + $0xd0] sm:$0xff] %v354_v26 }
  0x32   : > { %357 = vst [vmem:[%s1300_s12 + $0xd8] sm:$0xff] %v356_v27 }
  0x33   : > { %359 = vst [vmem:[%s1300_s12 + $0xe0] sm:$0xff] %v358_v28 }
  0x34   : > { %361 = vst [vmem:[%s1300_s12 + $0xe8] sm:$0xff] %v360_v29 }
  0x35   : > { %363 = vst [vmem:[%s1300_s12 + $0xf0] sm:$0xff] %v362_v30 }
  0x36   : > { %365 = vst [vmem:[%s1300_s12 + $0xf8] sm:$0xff] %v364_v31 }
  0x37 PF: > { %p922_p7 = scmp.ge.s32.totalorder %s1207_s21, 1  ;;  %p391_p8 = scmp.lt.s32.totalorder %s1207_s21, 37 }
  0x39   : > { %p392_p9 = pnand %p922_p7, %p391_p8 }
  0x3a   : > { %s398_s13 = sand.u32 (!%p392_p9), 1, %s1183_s15   ;;  %s924_s14 = sshll.u32 (!%p392_p9), %s1191_s17, 1 }
  0x3b   : > { %395 = sbr.rel (%p392_p9) target bundleno = 264 (0x108), region = 70  ;;  %s923_s24 = sshll.u32 (!%p392_p9), %s398_s13, 8 }
  0x3c   : > { %p452_p10 = scmp.lt.s32.totalorder (!%p392_p9), %s924_s14, 35  ;;  %s926_s25 = sshll.u32 (!%p392_p9), %s1195_s18, 1 }
  0x3d   : > { %p462_p11 = scmp.lt.s32.totalorder (!%p392_p9), %s926_s25, 3  ;;  %s1390_s13 = scalar_lea.vmem (!%p392_p9), [#allocation3], %s923_s24 }
  0x3e   : > { %p931_p12 = scmp.ne.s32.totalorder (!%p392_p9), %s1191_s17, 0 }
  0x40   : > { %s1507_s14 = smov (!%p452_p10, %s924_s14), 35  ;;  %s1509_s25 = smov (!%p462_p11, %s926_s25), 3 }
  0x41   : > { %s925_s26 = sshll.u32 %s1507_s14, 2  ;;  %s464_s15 = scalar_lea.vmem %s1491_s2, %s1509_s25 }
  0x42   : > { %s1371_s30 = scalar_lea.vmem %s1489_s0, %s925_s26  ;;  %s928_s7 = sshll.u32 %s1509_s25, 3 }
  0x43   : > { %s1383_s18 = scalar_lea.vmem %s1492_s3, %s928_s7  ;;  %s1388_s12 = scalar_lea.vmem %s1493_s4, %s928_s7 }
  0x44   : > { %489 = sbr.rel (%p931_p12) target bundleno = 76 (0x4c), region = 78 }
  0x49   : > { %v1209_v32 = vmov 0.0  }
  0x4a   : > { %490 = vst [vmem:[#allocation2] sm:$0xff] %v1209_v32 }
  0x4b   : > { %491 = vst [vmem:[#allocation2 + $0x8] sm:$0xff] %v1209_v32 }
  0x4c PF: > { %v990_v33 = vld [vmem:[%s1390_s13 + $0x70] sm:$0xf]  ;;  %v1079_v34 = vld [vmem:[%s1390_s13 + $0x74] sm:$0xf0]  ;;  %v1078_v38 = vld [vmem:[%s1390_s13 + $0x74] sm:$0xf] }
  0x4d   : > { %v1054_v35 = vld [vmem:[%s1390_s13 + $0xf0] sm:$0xf]  ;;  %v991_v36 = vor.u32 %v1079_v34, %v990_v33  ;;  %v1095_v37 = vld [vmem:[%s1390_s13 + $0xf4] sm:$0xf0]  ;;  %v992_v39 = vld [vmem:[%s1390_s13 + $0x78] sm:$0xf0] }
  0x4e   : > { %v1055_v40 = vor.u32 %v1095_v37, %v1054_v35  ;;  %v995_v41 = vor.u32 %v1078_v38, %v992_v39  ;;  %v1094_v42 = vld [vmem:[%s1390_s13 + $0xf4] sm:$0xf]  ;;  %v1056_v43 = vld [vmem:[%s1390_s13 + $0xf8] sm:$0xf0]  ;;  %v982_v44 = vld [vmem:[%s1390_s13 + $0x60] sm:$0xf] }
  0x4f   : > { %694 = vmatpush.bf16.msra.mxu0 %v991_v36  ;;  %v1059_v45 = vor.u32 %v1094_v42, %v1056_v43  ;;  %v1077_v46 = vld [vmem:[%s1390_s13 + $0x64] sm:$0xf0]  ;;  %v1046_v47 = vld [vmem:[%s1390_s13 + $0xe0] sm:$0xf]  ;;  %v1076_v51 = vld [vmem:[%s1390_s13 + $0x64] sm:$0xf] }
  0x50   : > { %v1093_v48 = vld [vmem:[%s1390_s13 + $0xe4] sm:$0xf0]  ;;  %707 = vmatpush.bf16.msra.mxu1 %v1055_v40  ;;  %720 = vmatpush.bf16.msra.mxu2 %v995_v41  ;;  %v983_v49 = vor.u32 %v1077_v46, %v982_v44  ;;  %v984_v52 = vld [vmem:[%s1390_s13 + $0x68] sm:$0xf0]  ;;  %v1092_v53 = vld [vmem:[%s1390_s13 + $0xe4] sm:$0xf] }
  0x51   : > { %v1047_v50 = vor.u32 %v1093_v48, %v1046_v47  ;;  %733 = vmatpush.bf16.msra.mxu3 %v1059_v45  ;;  %v987_v54 = vor.u32 %v1076_v51, %v984_v52  ;;  %v1048_v55 = vld [vmem:[%s1390_s13 + $0xe8] sm:$0xf0]  ;;  %v974_v56 = vld [vmem:[%s1390_s13 + $0x50] sm:$0xf]  ;;  %v1075_v57 = vld [vmem:[%s1390_s13 + $0x54] sm:$0xf0] }
  0x52   : > { %v1051_v58 = vor.u32 %v1092_v53, %v1048_v55  ;;  %v1038_v59 = vld [vmem:[%s1390_s13 + $0xd0] sm:$0xf]  ;;  %v1091_v60 = vld [vmem:[%s1390_s13 + $0xd4] sm:$0xf0]  ;;  %v1074_v61 = vld [vmem:[%s1390_s13 + $0x54] sm:$0xf]  ;;  %v975_v62 = vor.u32 %v1075_v57, %v974_v56 }
  0x53   : > { %695 = vmatpush.bf16.msra.mxu0 %v983_v49  ;;  %v976_v63 = vld [vmem:[%s1390_s13 + $0x58] sm:$0xf0]  ;;  %v1090_v0 = vld [vmem:[%s1390_s13 + $0xd4] sm:$0xf]  ;;  %v1039_v2 = vor.u32 %v1091_v60, %v1038_v59  ;;  %v966_v4 = vld [vmem:[%s1390_s13 + $0x40] sm:$0xf] }
  0x54   : > { %v1040_v1 = vld [vmem:[%s1390_s13 + $0xd8] sm:$0xf0]  ;;  %708 = vmatpush.bf16.msra.mxu1 %v1047_v50  ;;  %721 = vmatpush.bf16.msra.mxu2 %v987_v54  ;;  %v979_v3 = vor.u32 %v1074_v61, %v976_v63  ;;  %v1073_v5 = vld [vmem:[%s1390_s13 + $0x44] sm:$0xf0]  ;;  %v1030_v6 = vld [vmem:[%s1390_s13 + $0xc0] sm:$0xf] }
  0x55   : > { %734 = vmatpush.bf16.msra.mxu3 %v1051_v58  ;;  %v1043_v7 = vor.u32 %v1090_v0, %v1040_v1  ;;  %v1089_v8 = vld [vmem:[%s1390_s13 + $0xc4] sm:$0xf0]  ;;  %v1072_v9 = vld [vmem:[%s1390_s13 + $0x44] sm:$0xf]  ;;  %v968_v10 = vld [vmem:[%s1390_s13 + $0x48] sm:$0xf0]  ;;  %v967_v13 = vor.u32 %v1073_v5, %v966_v4 }
  0x56   : > { %v1088_v11 = vld [vmem:[%s1390_s13 + $0xc4] sm:$0xf]  ;;  %v1032_v12 = vld [vmem:[%s1390_s13 + $0xc8] sm:$0xf0]  ;;  %v1031_v14 = vor.u32 %v1089_v8, %v1030_v6  ;;  %v971_v15 = vor.u32 %v1072_v9, %v968_v10  ;;  %v958_v16 = vld [vmem:[%s1390_s13 + $0x30] sm:$0xf] }
  0x57   : > { %696 = vmatpush.bf16.msra.mxu0 %v975_v62  ;;  %v1071_v17 = vld [vmem:[%s1390_s13 + $0x34] sm:$0xf0]  ;;  %v1022_v18 = vld [vmem:[%s1390_s13 + $0xb0] sm:$0xf]  ;;  %v1035_v19 = vor.u32 %v1088_v11, %v1032_v12  ;;  %v1070_v21 = vld [vmem:[%s1390_s13 + $0x34] sm:$0xf] }
  0x58   : > { %709 = vmatpush.bf16.msra.mxu1 %v1039_v2  ;;  %722 = vmatpush.bf16.msra.mxu2 %v979_v3  ;;  %v1087_v20 = vld [vmem:[%s1390_s13 + $0xb4] sm:$0xf0]  ;;  %v960_v22 = vld [vmem:[%s1390_s13 + $0x38] sm:$0xf0]  ;;  %v1086_v23 = vld [vmem:[%s1390_s13 + $0xb4] sm:$0xf]  ;;  %v959_v25 = vor.u32 %v1071_v17, %v958_v16 }
  0x59   : > { %735 = vmatpush.bf16.msra.mxu3 %v1043_v7  ;;  %v1024_v24 = vld [vmem:[%s1390_s13 + $0xb8] sm:$0xf0]  ;;  %v1023_v26 = vor.u32 %v1087_v20, %v1022_v18  ;;  %v963_v27 = vor.u32 %v1070_v21, %v960_v22  ;;  %v950_v28 = vld [vmem:[%s1390_s13 + $0x20] sm:$0xf]  ;;  %v1069_v29 = vld [vmem:[%s1390_s13 + $0x24] sm:$0xf0] }
  0x5a   : > { %v1014_v30 = vld [vmem:[%s1390_s13 + $0xa0] sm:$0xf]  ;;  %v1027_v31 = vor.u32 %v1086_v23, %v1024_v24  ;;  %v1085_v32 = vld [vmem:[%s1390_s13 + $0xa4] sm:$0xf0]  ;;  %v1068_v33 = vld [vmem:[%s1390_s13 + $0x24] sm:$0xf]  ;;  %v951_v37 = vor.u32 %v1069_v29, %v950_v28 }
  0x5b   : > { %697 = vmatpush.bf16.msra.mxu0 %v967_v13  ;;  %v952_v34 = vld [vmem:[%s1390_s13 + $0x28] sm:$0xf0]  ;;  %v1084_v35 = vld [vmem:[%s1390_s13 + $0xa4] sm:$0xf]  ;;  %v1015_v38 = vor.u32 %v1085_v32, %v1014_v30  ;;  %v942_v40 = vld [vmem:[%s1390_s13 + $0x10] sm:$0xf] }
  0x5c   : > { %710 = vmatpush.bf16.msra.mxu1 %v1031_v14  ;;  %723 = vmatpush.bf16.msra.mxu2 %v971_v15  ;;  %v1016_v36 = vld [vmem:[%s1390_s13 + $0xa8] sm:$0xf0]  ;;  %v955_v39 = vor.u32 %v1068_v33, %v952_v34  ;;  %v1067_v41 = vld [vmem:[%s1390_s13 + $0x14] sm:$0xf0]  ;;  %v1006_v42 = vld [vmem:[%s1390_s13 + $0x90] sm:$0xf] }
  0x5d   : > { %736 = vmatpush.bf16.msra.mxu3 %v1035_v19  ;;  %v1019_v43 = vor.u32 %v1084_v35, %v1016_v36  ;;  %v1083_v44 = vld [vmem:[%s1390_s13 + $0x94] sm:$0xf0]  ;;  %v1066_v45 = vld [vmem:[%s1390_s13 + $0x14] sm:$0xf]  ;;  %v944_v46 = vld [vmem:[%s1390_s13 + $0x18] sm:$0xf0]  ;;  %v943_v49 = vor.u32 %v1067_v41, %v942_v40 }
  0x5e   : > { %v1082_v47 = vld [vmem:[%s1390_s13 + $0x94] sm:$0xf]  ;;  %v1008_v48 = vld [vmem:[%s1390_s13 + $0x98] sm:$0xf0]  ;;  %v1007_v51 = vor.u32 %v1083_v44, %v1006_v42  ;;  %v947_v52 = vor.u32 %v1066_v45, %v944_v46  ;;  %v934_v53 = vld [vmem:[%s1390_s13] sm:$0xf] }
  0x5f   : > { %698 = vmatpush.bf16.msra.mxu0 %v959_v25  ;;  %v494_v50 = vld [vmem:[%s1371_s30] sm:$0xff]  ;;  %v1065_v54 = vld [vmem:[%s1390_s13 + $0x4] sm:$0xf0]  ;;  %v998_v55 = vld [vmem:[%s1390_s13 + $0x80] sm:$0xf]  ;;  %v1011_v56 = vor.u32 %v1082_v47, %v1008_v48  ;;  %p1060_p13 = scmp.ne.s32.totalorder %s1191_s17, 17 }
  0x60   : > { %711 = vmatpush.bf16.msra.mxu1 %v1023_v26  ;;  %724 = vmatpush.bf16.msra.mxu2 %v963_v27  ;;  %v1081_v57 = vld [vmem:[%s1390_s13 + $0x84] sm:$0xf0]  ;;  %v1064_v58 = vld [vmem:[%s1390_s13 + $0x4] sm:$0xf]  ;;  %v936_v59 = vld [vmem:[%s1390_s13 + $0x8] sm:$0xf0]  ;;  %v528_v62 = vunpack.c.l.b16 %v494_v50  ;;  %v935_v63 = vor.u32 %v1065_v54, %v934_v53  ;;  %v529_v0 = vunpack.c.h.b16 %v494_v50 }
  0x61   : > { %737 = vmatpush.bf16.msra.mxu3 %v1027_v31  ;;  %v1080_v60 = vld [vmem:[%s1390_s13 + $0x84] sm:$0xf]  ;;  %v1000_v61 = vld [vmem:[%s1390_s13 + $0x88] sm:$0xf0]  ;;  %v999_v1 = vor.u32 %v1081_v57, %v998_v55  ;;  %v939_v2 = vor.u32 %v1064_v58, %v936_v59  ;;  %v492_v7 = vld [vmem:[#allocation2] sm:$0xff] }
  0x62   : > { %v1003_v3 = vor.u32 %v1080_v60, %v1000_v61  ;;  %v530_v4 = vpack.c.b16 %v528_v62, %v528_v62  ;;  %v531_v5 = vpack.c.b16 %v529_v0, %v529_v0  ;;  %v493_v12 = vld [vmem:[#allocation2 + $0x8] sm:$0xff] }
  0x63   : > { %699 = vmatpush.bf16.msra.mxu0 %v951_v37 }
  0x64   : > { %712 = vmatpush.bf16.msra.mxu1 %v1015_v38  ;;  %725 = vmatpush.bf16.msra.mxu2 %v955_v39 }
  0x65   : > { %738 = vmatpush.bf16.msra.mxu3 %v1019_v43 }
  0x67   : > { %700 = vmatpush.bf16.msra.mxu0 %v943_v49 }
  0x68   : > { %713 = vmatpush.bf16.msra.mxu1 %v1007_v51  ;;  %726 = vmatpush.bf16.msra.mxu2 %v947_v52 }
  0x69   : > { %739 = vmatpush.bf16.msra.mxu3 %v1011_v56 }
  0x6b   : > { %701 = vmatpush.bf16.msra.mxu0 %v935_v63 }
  0x6c   : > { %714 = vmatpush.bf16.msra.mxu1 %v999_v1  ;;  %727 = vmatpush.bf16.msra.mxu2 %v939_v2 }
  0x6d   : > { %740 = vmatpush.bf16.msra.mxu3 %v1003_v3 }
  0x6e   : > { %702 = vmatmul.bf16.vlgmr.msra.gmra.mxu0 %v530_v4 }
  0x6f   : > { %715 = vmatmul.bf16.vlgmr.msra.gmra.mxu1 %v531_v5  ;;  %728 = vmatmul.bf16.vlgmr.msra.gmra.mxu2 %v530_v4 }
  0x70   : > { %741 = vmatmul.bf16.vlgmr.msra.gmra.mxu3 %v531_v5 }
  0xeb   : > { %v703_v6 = vpop.f32.mrf.mxu0 }
  0xec   : > { %v716_v8 = vpop.f32.mrf.mxu1 }
  0xed   : > { %v717_v9 = vadd.f32 %v716_v8, %v703_v6 }
  0xef   : > { %v746_v10 = vadd.f32 %v717_v9, %v492_v7 }
  0xf1   : > { %748 = vst [vmem:[#allocation2] sm:$0xff] %v746_v10 }
  0xf2   : > { %v729_v11 = vpop.f32.mrf.mxu2 }
  0xf3   : > { %v742_v13 = vpop.f32.mrf.mxu3  ;;  %v705_v14 = vpop.f32.mrf.mxu0 }
  0xf4   : > { %v743_v15 = vadd.f32 %v742_v13, %v729_v11  ;;  %v718_v16 = vpop.f32.mrf.mxu1 }
  0xf6   : > { %v747_v17 = vadd.f32 %v743_v15, %v493_v12 }
  0xf7   : > { %753 = sbr.rel (%p1060_p13) target bundleno = 264 (0x108), region = 82 }
  0xf8   : > { %749 = vst [vmem:[#allocation2 + $0x8] sm:$0xff] %v747_v17 }
  0xfa   : > { %v731_v18 = vpop.f32.mrf.mxu2 }
  0xfb   : > { %v744_v19 = vpop.f32.mrf.mxu3 }
  0xfc   : > { %v754_v20 = vld [vmem:[#allocation2] sm:$0xff]  ;;  %v765_v26 = vld [vmem:[%s1383_s18 + $0x8] sm:$0xff] }
  0xfd   : > { %v756_v21 = vld [vmem:[%s464_s15] sm:$0x3] }
  0xfe   : > { %v758_v22 = vperm.slane %v756_v21, 0  ;;  %v759_v24 = vperm.slane %v756_v21, 1  ;;  %v764_v25 = vld [vmem:[%s1383_s18] sm:$0xff] }
  0xff   : > { %v755_v23 = vld [vmem:[#allocation2 + $0x8] sm:$0xff] }
 0x100   : > { %v762_v27 = vadd.f32 %v758_v22, %v754_v20  ;;  %v763_v28 = vadd.f32 %v759_v24, %v755_v23 }
 0x102   : > { %v766_v29 = vadd.f32 %v764_v25, %v762_v27  ;;  %v767_v30 = vadd.f32 %v765_v26, %v763_v28 }
 0x104   : > { %v768_v31 = vmax.f32 %v766_v29, 0.0  ;;  %v769_v32 = vmax.f32 %v767_v30, 0.0 }
 0x106   : > { %770 = vst [vmem:[%s1388_s12] sm:$0xff] %v768_v31 }
 0x107   : > { %771 = vst [vmem:[%s1388_s12 + $0x8] sm:$0xff] %v769_v32 }
 0x108 PF: > { %s14_s21 = sadd.s32 1, %s1207_s21   ;;  %s1494_s15 = smov %s1187_s16 }
 0x109   : > { %p11_p0 = scmp.ge.s32.totalorder %s14_s21, 38   ;;  %s1495_s16 = smov %s1286_s28 }
 0x10a   : > { %s1496_s17 = smov %s1199_s19  ;;  %s1497_s18 = smov %s1203_s20 }
 0x10b   : > { %s1498_s19 = smov %s1501_s22  ;;  %s1499_s20 = smov %s1505_s23 }
 0x10c   :  { %13 = sbr.rel (!%p11_p0) target bundleno = 4 (0x4), region = 126 }

// kernel: bigram_resnet_forward.43
= control target key start
LH: loop header
LB: loop body
LE: loop exit
PB: predicated region body
PF: predicated region fallthrough
CT: control target
= control target key end

     0   :  { %s1143_s12 = smov 0   ;;  %s1145_s13 = smov 0   ;;  %s1390_s0 = inlined_call_operand.vmem [shape: bf16[8,4608], index: 0, kind: input, shape index: {}]   ;;  %s1391_s1 = inlined_call_operand.vmem [shape: bf16[4608,512], index: 1, kind: input, shape index: {}]   ;;  %s1392_s2 = inlined_call_operand.vmem [shape: f32[1,512], index: 2, kind: input, shape index: {}]   ;;  %s1393_s3 = inlined_call_operand.vmem [shape: f32[8,512], index: 3, kind: output, shape index: {}]  }
   0x1   :  { %s1147_s14 = smov 0   ;;  %s1149_s15 = smov 0  }
   0x2   :  { %s1151_s16 = smov 0   ;;  %s1153_s17 = smov 0  }
   0x3   :  { %s1155_s18 = smov 0  }
   0x4 LB: > { %s25_s19 = sadd.s32 1, %s1112_s16  ;;  %s28_s20 = sadd.s32 1, %s1116_s17  ;;  %s1120_s18 = sphi %s1155_s18, %s13_s18   ;;  %s1116_s17 = sphi %s1153_s17, %s1399_s17   ;;  %s1112_s16 = sphi %s1151_s16, %s1398_s16   ;;  %s1108_s15 = sphi %s1149_s15, %s1397_s15   ;;  %s1104_s14 = sphi %s1147_s14, %s1396_s14   ;;  %s1100_s13 = sphi %s1145_s13, %s1395_s13   ;;  %s1096_s12 = sphi %s1143_s12, %s1394_s12  }
   0x5   : > { %p26_p0 = scmp.ge.s32.totalorder %s25_s19, 18  ;;  %p76_p1 = scmp.ne.s32.totalorder %s1100_s13, %s1096_s12 }
   0x6   : > { %p77_p2 = scmp.eq.s32.totalorder %s1120_s18, 0  ;;  %s69_s24 = sadd.s32 1, %s1100_s13 }
   0x7   : > { %s1401_s19 = smov (%p26_p0, %s25_s19), 0  ;;  %s1403_s20 = smov (!%p26_p0, %s28_s20), %s1116_s17 }
   0x8   : > { %p78_p3 = por %p77_p2, %p76_p1  ;;  %p30_p4 = scmp.ge.s32.totalorder %s1403_s20, 2 }
   0x9   : > { %s64_s21 = ssub.s32 %s1112_s16, %s1401_s19  ;;  %p831_p6 = scmp.ge.s32.totalorder %s1120_s18, 36 }
   0xa   : > { %s1405_s20 = smov (%p30_p4, %s1403_s20), 0 }
   0xb   : > { %s65_s22 = ssub.s32 %s1116_s17, %s1405_s20  ;;  %156 = sbr.rel (%p831_p6) target bundleno = 55 (0x37), region = 16 }
   0xc   : > { %s66_s23 = sor.u32 %s65_s22, %s64_s21 }
   0xd   : > { %p67_p5 = scmp.eq.s32.totalorder %s66_s23, 0 }
   0xf   : > { %s1194_s25 = scalar_select %p67_p5, %s1100_s13, %s69_s24  }
  0x10   : > { %172 = sbr.rel (!%p78_p3) target bundleno = 55 (0x37), region = 24  ;;  %s174_s26 = sand.u32 (%p78_p3), 1, %s1100_s13  }
  0x11   : > { %s834_s27 = sshll.u32 (%p78_p3), %s1116_s17, 1  ;;  %s832_s28 = sshll.u32 (%p78_p3), %s174_s26, 8 }
  0x12   : > { %s976_s29 = sshll.u32 (%p78_p3), %s1112_s16, 7  ;;  %s1208_s8 = scalar_lea.vmem (%p78_p3), [#allocation3], %s832_s28 }
  0x13   : > { %s180_s30 = sadd.s32 (%p78_p3), %s976_s29, %s834_s27 }
  0x14   : > { %s836_s4 = sshll.u32 (%p78_p3), %s180_s30, 2 }
  0x15   : > { %s1203_s7 = scalar_lea.vmem %s1391_s1, %s836_s4 }
  0x16   : > { %v273_v0 = vld [vmem:[%s1203_s7] sm:$0xff]  ;;  %v275_v1 = vld [vmem:[%s1203_s7 + $0x10] sm:$0xff] }
  0x17   : > { %v277_v2 = vld [vmem:[%s1203_s7 + $0x20] sm:$0xff]  ;;  %274 = vst [vmem:[%s1208_s8] sm:$0xff] %v273_v0  ;;  %v279_v3 = vld [vmem:[%s1203_s7 + $0x30] sm:$0xff] }
  0x18   : > { %276 = vst [vmem:[%s1208_s8 + $0x8] sm:$0xff] %v275_v1  ;;  %v281_v4 = vld [vmem:[%s1203_s7 + $0x40] sm:$0xff]  ;;  %v283_v5 = vld [vmem:[%s1203_s7 + $0x50] sm:$0xff] }
  0x19   : > { %278 = vst [vmem:[%s1208_s8 + $0x10] sm:$0xff] %v277_v2  ;;  %v285_v6 = vld [vmem:[%s1203_s7 + $0x60] sm:$0xff]  ;;  %v287_v7 = vld [vmem:[%s1203_s7 + $0x70] sm:$0xff] }
  0x1a   : > { %280 = vst [vmem:[%s1208_s8 + $0x18] sm:$0xff] %v279_v3  ;;  %v289_v8 = vld [vmem:[%s1203_s7 + $0x80] sm:$0xff]  ;;  %v291_v9 = vld [vmem:[%s1203_s7 + $0x90] sm:$0xff] }
  0x1b   : > { %282 = vst [vmem:[%s1208_s8 + $0x20] sm:$0xff] %v281_v4  ;;  %v293_v10 = vld [vmem:[%s1203_s7 + $0xa0] sm:$0xff]  ;;  %v295_v11 = vld [vmem:[%s1203_s7 + $0xb0] sm:$0xff] }
  0x1c   : > { %284 = vst [vmem:[%s1208_s8 + $0x28] sm:$0xff] %v283_v5  ;;  %v297_v12 = vld [vmem:[%s1203_s7 + $0xc0] sm:$0xff]  ;;  %v299_v13 = vld [vmem:[%s1203_s7 + $0xd0] sm:$0xff] }
  0x1d   : > { %286 = vst [vmem:[%s1208_s8 + $0x30] sm:$0xff] %v285_v6  ;;  %v301_v14 = vld [vmem:[%s1203_s7 + $0xe0] sm:$0xff]  ;;  %v303_v15 = vld [vmem:[%s1203_s7 + $0xf0] sm:$0xff] }
  0x1e   : > { %288 = vst [vmem:[%s1208_s8 + $0x38] sm:$0xff] %v287_v7  ;;  %v305_v16 = vld [vmem:[%s1203_s7 + $0x100] sm:$0xff]  ;;  %v307_v17 = vld [vmem:[%s1203_s7 + $0x110] sm:$0xff] }
  0x1f   : > { %290 = vst [vmem:[%s1208_s8 + $0x40] sm:$0xff] %v289_v8  ;;  %v309_v18 = vld [vmem:[%s1203_s7 + $0x120] sm:$0xff]  ;;  %v311_v19 = vld [vmem:[%s1203_s7 + $0x130] sm:$0xff] }
  0x20   : > { %292 = vst [vmem:[%s1208_s8 + $0x48] sm:$0xff] %v291_v9  ;;  %v313_v20 = vld [vmem:[%s1203_s7 + $0x140] sm:$0xff]  ;;  %v315_v21 = vld [vmem:[%s1203_s7 + $0x150] sm:$0xff] }
  0x21   : > { %294 = vst [vmem:[%s1208_s8 + $0x50] sm:$0xff] %v293_v10  ;;  %v317_v22 = vld [vmem:[%s1203_s7 + $0x160] sm:$0xff]  ;;  %v319_v23 = vld [vmem:[%s1203_s7 + $0x170] sm:$0xff] }
  0x22   : > { %296 = vst [vmem:[%s1208_s8 + $0x58] sm:$0xff] %v295_v11  ;;  %v321_v24 = vld [vmem:[%s1203_s7 + $0x180] sm:$0xff]  ;;  %v323_v25 = vld [vmem:[%s1203_s7 + $0x190] sm:$0xff] }
  0x23   : > { %298 = vst [vmem:[%s1208_s8 + $0x60] sm:$0xff] %v297_v12  ;;  %v325_v26 = vld [vmem:[%s1203_s7 + $0x1a0] sm:$0xff]  ;;  %v327_v27 = vld [vmem:[%s1203_s7 + $0x1b0] sm:$0xff] }
  0x24   : > { %300 = vst [vmem:[%s1208_s8 + $0x68] sm:$0xff] %v299_v13  ;;  %v329_v28 = vld [vmem:[%s1203_s7 + $0x1c0] sm:$0xff]  ;;  %v331_v29 = vld [vmem:[%s1203_s7 + $0x1d0] sm:$0xff] }
  0x25   : > { %302 = vst [vmem:[%s1208_s8 + $0x70] sm:$0xff] %v301_v14  ;;  %v333_v30 = vld [vmem:[%s1203_s7 + $0x1e0] sm:$0xff]  ;;  %v335_v31 = vld [vmem:[%s1203_s7 + $0x1f0] sm:$0xff] }
  0x26   : > { %304 = vst [vmem:[%s1208_s8 + $0x78] sm:$0xff] %v303_v15 }
  0x27   : > { %306 = vst [vmem:[%s1208_s8 + $0x80] sm:$0xff] %v305_v16 }
  0x28   : > { %308 = vst [vmem:[%s1208_s8 + $0x88] sm:$0xff] %v307_v17 }
  0x29   : > { %310 = vst [vmem:[%s1208_s8 + $0x90] sm:$0xff] %v309_v18 }
  0x2a   : > { %312 = vst [vmem:[%s1208_s8 + $0x98] sm:$0xff] %v311_v19 }
  0x2b   : > { %314 = vst [vmem:[%s1208_s8 + $0xa0] sm:$0xff] %v313_v20 }
  0x2c   : > { %316 = vst [vmem:[%s1208_s8 + $0xa8] sm:$0xff] %v315_v21 }
  0x2d   : > { %318 = vst [vmem:[%s1208_s8 + $0xb0] sm:$0xff] %v317_v22 }
  0x2e   : > { %320 = vst [vmem:[%s1208_s8 + $0xb8] sm:$0xff] %v319_v23 }
  0x2f   : > { %322 = vst [vmem:[%s1208_s8 + $0xc0] sm:$0xff] %v321_v24 }
  0x30   : > { %324 = vst [vmem:[%s1208_s8 + $0xc8] sm:$0xff] %v323_v25 }
  0x31   : > { %326 = vst [vmem:[%s1208_s8 + $0xd0] sm:$0xff] %v325_v26 }
  0x32   : > { %328 = vst [vmem:[%s1208_s8 + $0xd8] sm:$0xff] %v327_v27 }
  0x33   : > { %330 = vst [vmem:[%s1208_s8 + $0xe0] sm:$0xff] %v329_v28 }
  0x34   : > { %332 = vst [vmem:[%s1208_s8 + $0xe8] sm:$0xff] %v331_v29 }
  0x35   : > { %334 = vst [vmem:[%s1208_s8 + $0xf0] sm:$0xff] %v333_v30 }
  0x36   : > { %336 = vst [vmem:[%s1208_s8 + $0xf8] sm:$0xff] %v335_v31 }
  0x37 PF: > { %p837_p7 = scmp.ge.s32.totalorder %s1120_s18, 1  ;;  %p349_p8 = scmp.lt.s32.totalorder %s1120_s18, 37 }
  0x39   : > { %p350_p9 = pnand %p837_p7, %p349_p8 }
  0x3a   : > { %s356_s9 = sand.u32 (!%p350_p9), 1, %s1096_s12   ;;  %s839_s10 = sshll.u32 (!%p350_p9), %s1104_s14, 1 }
  0x3b   : > { %353 = sbr.rel (%p350_p9) target bundleno = 261 (0x105), region = 66  ;;  %s838_s11 = sshll.u32 (!%p350_p9), %s356_s9, 8 }
  0x3c   : > { %p399_p10 = scmp.lt.s32.totalorder (!%p350_p9), %s839_s10, 35  ;;  %s841_s21 = sshll.u32 (!%p350_p9), %s1108_s15, 1 }
  0x3d   : > { %p409_p11 = scmp.lt.s32.totalorder (!%p350_p9), %s841_s21, 3  ;;  %s1293_s5 = scalar_lea.vmem (!%p350_p9), [#allocation3], %s838_s11 }
  0x3e   : > { %p844_p12 = scmp.ne.s32.totalorder (!%p350_p9), %s1104_s14, 0 }
  0x40   : > { %s1407_s10 = smov (!%p399_p10, %s839_s10), 35  ;;  %s1409_s21 = smov (!%p409_p11, %s841_s21), 3 }
  0x41   : > { %s840_s22 = sshll.u32 %s1407_s10, 2  ;;  %s411_s12 = scalar_lea.vmem %s1392_s2, %s1409_s21 }
  0x42   : > { %s1279_s26 = scalar_lea.vmem %s1390_s0, %s840_s22  ;;  %s843_s29 = sshll.u32 %s1409_s21, 3 }
  0x43   : > { %s1291_s15 = scalar_lea.vmem %s1393_s3, %s843_s29  ;;  %426 = sbr.rel (%p844_p12) target bundleno = 75 (0x4b), region = 74 }
  0x48   : > { %v1122_v32 = vmov 0.0  }
  0x49   : > { %427 = vst [vmem:[#allocation2] sm:$0xff] %v1122_v32 }
  0x4a   : > { %428 = vst [vmem:[#allocation2 + $0x8] sm:$0xff] %v1122_v32 }
  0x4b PF: > { %v903_v33 = vld [vmem:[%s1293_s5 + $0x70] sm:$0xf]  ;;  %v992_v34 = vld [vmem:[%s1293_s5 + $0x74] sm:$0xf0]  ;;  %v991_v38 = vld [vmem:[%s1293_s5 + $0x74] sm:$0xf] }
  0x4c   : > { %v967_v35 = vld [vmem:[%s1293_s5 + $0xf0] sm:$0xf]  ;;  %v904_v36 = vor.u32 %v992_v34, %v903_v33  ;;  %v1008_v37 = vld [vmem:[%s1293_s5 + $0xf4] sm:$0xf0]  ;;  %v905_v39 = vld [vmem:[%s1293_s5 + $0x78] sm:$0xf0] }
  0x4d   : > { %v968_v40 = vor.u32 %v1008_v37, %v967_v35  ;;  %v908_v41 = vor.u32 %v991_v38, %v905_v39  ;;  %v1007_v42 = vld [vmem:[%s1293_s5 + $0xf4] sm:$0xf]  ;;  %v969_v43 = vld [vmem:[%s1293_s5 + $0xf8] sm:$0xf0]  ;;  %v895_v44 = vld [vmem:[%s1293_s5 + $0x60] sm:$0xf] }
  0x4e   : > { %631 = vmatpush.bf16.msra.mxu0 %v904_v36  ;;  %v972_v45 = vor.u32 %v1007_v42, %v969_v43  ;;  %v990_v46 = vld [vmem:[%s1293_s5 + $0x64] sm:$0xf0]  ;;  %v959_v47 = vld [vmem:[%s1293_s5 + $0xe0] sm:$0xf]  ;;  %v989_v51 = vld [vmem:[%s1293_s5 + $0x64] sm:$0xf] }
  0x4f   : > { %v1006_v48 = vld [vmem:[%s1293_s5 + $0xe4] sm:$0xf0]  ;;  %644 = vmatpush.bf16.msra.mxu1 %v968_v40  ;;  %657 = vmatpush.bf16.msra.mxu2 %v908_v41  ;;  %v896_v49 = vor.u32 %v990_v46, %v895_v44  ;;  %v897_v52 = vld [vmem:[%s1293_s5 + $0x68] sm:$0xf0]  ;;  %v1005_v53 = vld [vmem:[%s1293_s5 + $0xe4] sm:$0xf] }
  0x50   : > { %v960_v50 = vor.u32 %v1006_v48, %v959_v47  ;;  %670 = vmatpush.bf16.msra.mxu3 %v972_v45  ;;  %v900_v54 = vor.u32 %v989_v51, %v897_v52  ;;  %v961_v55 = vld [vmem:[%s1293_s5 + $0xe8] sm:$0xf0]  ;;  %v887_v56 = vld [vmem:[%s1293_s5 + $0x50] sm:$0xf]  ;;  %v988_v57 = vld [vmem:[%s1293_s5 + $0x54] sm:$0xf0] }
  0x51   : > { %v964_v58 = vor.u32 %v1005_v53, %v961_v55  ;;  %v951_v59 = vld [vmem:[%s1293_s5 + $0xd0] sm:$0xf]  ;;  %v1004_v60 = vld [vmem:[%s1293_s5 + $0xd4] sm:$0xf0]  ;;  %v987_v61 = vld [vmem:[%s1293_s5 + $0x54] sm:$0xf]  ;;  %v888_v62 = vor.u32 %v988_v57, %v887_v56 }
  0x52   : > { %632 = vmatpush.bf16.msra.mxu0 %v896_v49  ;;  %v889_v63 = vld [vmem:[%s1293_s5 + $0x58] sm:$0xf0]  ;;  %v1003_v0 = vld [vmem:[%s1293_s5 + $0xd4] sm:$0xf]  ;;  %v952_v2 = vor.u32 %v1004_v60, %v951_v59  ;;  %v879_v4 = vld [vmem:[%s1293_s5 + $0x40] sm:$0xf] }
  0x53   : > { %v953_v1 = vld [vmem:[%s1293_s5 + $0xd8] sm:$0xf0]  ;;  %645 = vmatpush.bf16.msra.mxu1 %v960_v50  ;;  %658 = vmatpush.bf16.msra.mxu2 %v900_v54  ;;  %v892_v3 = vor.u32 %v987_v61, %v889_v63  ;;  %v986_v5 = vld [vmem:[%s1293_s5 + $0x44] sm:$0xf0]  ;;  %v943_v6 = vld [vmem:[%s1293_s5 + $0xc0] sm:$0xf] }
  0x54   : > { %671 = vmatpush.bf16.msra.mxu3 %v964_v58  ;;  %v956_v7 = vor.u32 %v1003_v0, %v953_v1  ;;  %v1002_v8 = vld [vmem:[%s1293_s5 + $0xc4] sm:$0xf0]  ;;  %v985_v9 = vld [vmem:[%s1293_s5 + $0x44] sm:$0xf]  ;;  %v881_v10 = vld [vmem:[%s1293_s5 + $0x48] sm:$0xf0]  ;;  %v880_v13 = vor.u32 %v986_v5, %v879_v4 }
  0x55   : > { %v1001_v11 = vld [vmem:[%s1293_s5 + $0xc4] sm:$0xf]  ;;  %v945_v12 = vld [vmem:[%s1293_s5 + $0xc8] sm:$0xf0]  ;;  %v944_v14 = vor.u32 %v1002_v8, %v943_v6  ;;  %v884_v15 = vor.u32 %v985_v9, %v881_v10  ;;  %v871_v16 = vld [vmem:[%s1293_s5 + $0x30] sm:$0xf] }
  0x56   : > { %633 = vmatpush.bf16.msra.mxu0 %v888_v62  ;;  %v984_v17 = vld [vmem:[%s1293_s5 + $0x34] sm:$0xf0]  ;;  %v935_v18 = vld [vmem:[%s1293_s5 + $0xb0] sm:$0xf]  ;;  %v948_v19 = vor.u32 %v1001_v11, %v945_v12  ;;  %v983_v21 = vld [vmem:[%s1293_s5 + $0x34] sm:$0xf] }
  0x57   : > { %646 = vmatpush.bf16.msra.mxu1 %v952_v2  ;;  %659 = vmatpush.bf16.msra.mxu2 %v892_v3  ;;  %v1000_v20 = vld [vmem:[%s1293_s5 + $0xb4] sm:$0xf0]  ;;  %v873_v22 = vld [vmem:[%s1293_s5 + $0x38] sm:$0xf0]  ;;  %v999_v23 = vld [vmem:[%s1293_s5 + $0xb4] sm:$0xf]  ;;  %v872_v25 = vor.u32 %v984_v17, %v871_v16 }
  0x58   : > { %672 = vmatpush.bf16.msra.mxu3 %v956_v7  ;;  %v937_v24 = vld [vmem:[%s1293_s5 + $0xb8] sm:$0xf0]  ;;  %v936_v26 = vor.u32 %v1000_v20, %v935_v18  ;;  %v876_v27 = vor.u32 %v983_v21, %v873_v22  ;;  %v863_v28 = vld [vmem:[%s1293_s5 + $0x20] sm:$0xf]  ;;  %v982_v29 = vld [vmem:[%s1293_s5 + $0x24] sm:$0xf0] }
  0x59   : > { %v927_v30 = vld [vmem:[%s1293_s5 + $0xa0] sm:$0xf]  ;;  %v940_v31 = vor.u32 %v999_v23, %v937_v24  ;;  %v998_v32 = vld [vmem:[%s1293_s5 + $0xa4] sm:$0xf0]  ;;  %v981_v33 = vld [vmem:[%s1293_s5 + $0x24] sm:$0xf]  ;;  %v864_v37 = vor.u32 %v982_v29, %v863_v28 }
  0x5a   : > { %634 = vmatpush.bf16.msra.mxu0 %v880_v13  ;;  %v865_v34 = vld [vmem:[%s1293_s5 + $0x28] sm:$0xf0]  ;;  %v997_v35 = vld [vmem:[%s1293_s5 + $0xa4] sm:$0xf]  ;;  %v928_v38 = vor.u32 %v998_v32, %v927_v30  ;;  %v855_v40 = vld [vmem:[%s1293_s5 + $0x10] sm:$0xf] }
  0x5b   : > { %647 = vmatpush.bf16.msra.mxu1 %v944_v14  ;;  %660 = vmatpush.bf16.msra.mxu2 %v884_v15  ;;  %v929_v36 = vld [vmem:[%s1293_s5 + $0xa8] sm:$0xf0]  ;;  %v868_v39 = vor.u32 %v981_v33, %v865_v34  ;;  %v980_v41 = vld [vmem:[%s1293_s5 + $0x14] sm:$0xf0]  ;;  %v919_v42 = vld [vmem:[%s1293_s5 + $0x90] sm:$0xf] }
  0x5c   : > { %673 = vmatpush.bf16.msra.mxu3 %v948_v19  ;;  %v932_v43 = vor.u32 %v997_v35, %v929_v36  ;;  %v996_v44 = vld [vmem:[%s1293_s5 + $0x94] sm:$0xf0]  ;;  %v979_v45 = vld [vmem:[%s1293_s5 + $0x14] sm:$0xf]  ;;  %v857_v46 = vld [vmem:[%s1293_s5 + $0x18] sm:$0xf0]  ;;  %v856_v49 = vor.u32 %v980_v41, %v855_v40 }
  0x5d   : > { %v995_v47 = vld [vmem:[%s1293_s5 + $0x94] sm:$0xf]  ;;  %v921_v48 = vld [vmem:[%s1293_s5 + $0x98] sm:$0xf0]  ;;  %v920_v51 = vor.u32 %v996_v44, %v919_v42  ;;  %v860_v52 = vor.u32 %v979_v45, %v857_v46  ;;  %v847_v53 = vld [vmem:[%s1293_s5] sm:$0xf] }
  0x5e   : > { %635 = vmatpush.bf16.msra.mxu0 %v872_v25  ;;  %v431_v50 = vld [vmem:[%s1279_s26] sm:$0xff]  ;;  %v978_v54 = vld [vmem:[%s1293_s5 + $0x4] sm:$0xf0]  ;;  %v911_v55 = vld [vmem:[%s1293_s5 + $0x80] sm:$0xf]  ;;  %v924_v56 = vor.u32 %v995_v47, %v921_v48  ;;  %p973_p13 = scmp.ne.s32.totalorder %s1104_s14, 17 }
  0x5f   : > { %648 = vmatpush.bf16.msra.mxu1 %v936_v26  ;;  %661 = vmatpush.bf16.msra.mxu2 %v876_v27  ;;  %v994_v57 = vld [vmem:[%s1293_s5 + $0x84] sm:$0xf0]  ;;  %v977_v58 = vld [vmem:[%s1293_s5 + $0x4] sm:$0xf]  ;;  %v849_v59 = vld [vmem:[%s1293_s5 + $0x8] sm:$0xf0]  ;;  %v465_v62 = vunpack.c.l.b16 %v431_v50  ;;  %v848_v63 = vor.u32 %v978_v54, %v847_v53  ;;  %v466_v0 = vunpack.c.h.b16 %v431_v50 }
  0x60   : > { %674 = vmatpush.bf16.msra.mxu3 %v940_v31  ;;  %v993_v60 = vld [vmem:[%s1293_s5 + $0x84] sm:$0xf]  ;;  %v913_v61 = vld [vmem:[%s1293_s5 + $0x88] sm:$0xf0]  ;;  %v912_v1 = vor.u32 %v994_v57, %v911_v55  ;;  %v852_v2 = vor.u32 %v977_v58, %v849_v59  ;;  %v429_v7 = vld [vmem:[#allocation2] sm:$0xff] }
  0x61   : > { %v916_v3 = vor.u32 %v993_v60, %v913_v61  ;;  %v467_v4 = vpack.c.b16 %v465_v62, %v465_v62  ;;  %v468_v5 = vpack.c.b16 %v466_v0, %v466_v0  ;;  %v430_v12 = vld [vmem:[#allocation2 + $0x8] sm:$0xff] }
  0x62   : > { %636 = vmatpush.bf16.msra.mxu0 %v864_v37 }
  0x63   : > { %649 = vmatpush.bf16.msra.mxu1 %v928_v38  ;;  %662 = vmatpush.bf16.msra.mxu2 %v868_v39 }
  0x64   : > { %675 = vmatpush.bf16.msra.mxu3 %v932_v43 }
  0x66   : > { %637 = vmatpush.bf16.msra.mxu0 %v856_v49 }
  0x67   : > { %650 = vmatpush.bf16.msra.mxu1 %v920_v51  ;;  %663 = vmatpush.bf16.msra.mxu2 %v860_v52 }
  0x68   : > { %676 = vmatpush.bf16.msra.mxu3 %v924_v56 }
  0x6a   : > { %638 = vmatpush.bf16.msra.mxu0 %v848_v63 }
  0x6b   : > { %651 = vmatpush.bf16.msra.mxu1 %v912_v1  ;;  %664 = vmatpush.bf16.msra.mxu2 %v852_v2 }
  0x6c   : > { %677 = vmatpush.bf16.msra.mxu3 %v916_v3 }
  0x6d   : > { %639 = vmatmul.bf16.vlgmr.msra.gmra.mxu0 %v467_v4 }
  0x6e   : > { %652 = vmatmul.bf16.vlgmr.msra.gmra.mxu1 %v468_v5  ;;  %665 = vmatmul.bf16.vlgmr.msra.gmra.mxu2 %v467_v4 }
  0x6f   : > { %678 = vmatmul.bf16.vlgmr.msra.gmra.mxu3 %v468_v5 }
  0xea   : > { %v640_v6 = vpop.f32.mrf.mxu0 }
  0xeb   : > { %v653_v8 = vpop.f32.mrf.mxu1 }
  0xec   : > { %v654_v9 = vadd.f32 %v653_v8, %v640_v6 }
  0xee   : > { %v683_v10 = vadd.f32 %v654_v9, %v429_v7 }
  0xf0   : > { %685 = vst [vmem:[#allocation2] sm:$0xff] %v683_v10 }
  0xf1   : > { %v666_v11 = vpop.f32.mrf.mxu2 }
  0xf2   : > { %v679_v13 = vpop.f32.mrf.mxu3  ;;  %v642_v14 = vpop.f32.mrf.mxu0 }
  0xf3   : > { %v680_v15 = vadd.f32 %v679_v13, %v666_v11  ;;  %v655_v16 = vpop.f32.mrf.mxu1 }
  0xf5   : > { %v684_v17 = vadd.f32 %v680_v15, %v430_v12 }
  0xf6   : > { %690 = sbr.rel (%p973_p13) target bundleno = 261 (0x105), region = 78 }
  0xf7   : > { %686 = vst [vmem:[#allocation2 + $0x8] sm:$0xff] %v684_v17 }
  0xf9   : > { %v668_v18 = vpop.f32.mrf.mxu2 }
  0xfa   : > { %v681_v19 = vpop.f32.mrf.mxu3 }
  0xfb   : > { %v691_v20 = vld [vmem:[#allocation2] sm:$0xff] }
  0xfc   : > { %v693_v21 = vld [vmem:[%s411_s12] sm:$0x3] }
  0xfd   : > { %v695_v23 = vperm.slane %v693_v21, 0  ;;  %v696_v24 = vperm.slane %v693_v21, 1 }
  0xfe   : > { %v692_v22 = vld [vmem:[#allocation2 + $0x8] sm:$0xff] }
  0xff   : > { %v699_v25 = vadd.f32 %v695_v23, %v691_v20  ;;  %v700_v26 = vadd.f32 %v696_v24, %v692_v22 }
 0x101   : > { %v701_v27 = vmax.f32 %v699_v25, 0.0  ;;  %v702_v28 = vmax.f32 %v700_v26, 0.0 }
 0x103   : > { %703 = vst [vmem:[%s1291_s15] sm:$0xff] %v701_v27 }
 0x104   : > { %704 = vst [vmem:[%s1291_s15 + $0x8] sm:$0xff] %v702_v28 }
 0x105 PF: > { %s13_s18 = sadd.s32 1, %s1120_s18   ;;  %s1394_s12 = smov %s1100_s13 }
 0x106   : > { %p10_p0 = scmp.ge.s32.totalorder %s13_s18, 38   ;;  %s1395_s13 = smov %s1194_s25 }
 0x107   : > { %s1396_s14 = smov %s1112_s16  ;;  %s1397_s15 = smov %s1116_s17 }
 0x108   : > { %s1398_s16 = smov %s1401_s19  ;;  %s1399_s17 = smov %s1405_s20 }
 0x109   :  { %12 = sbr.rel (!%p10_p0) target bundleno = 4 (0x4), region = 119 }

// kernel: bigram_resnet_forward.45
= control target key start
LH: loop header
LB: loop body
LE: loop exit
PB: predicated region body
PF: predicated region fallthrough
CT: control target
= control target key end

     0   :  { %s710_s12 = smov 0   ;;  %s712_s13 = smov 0   ;;  %s776_s0 = inlined_call_operand.vmem [shape: bf16[8,512], index: 0, kind: input, shape index: {}]   ;;  %s777_s1 = inlined_call_operand.vmem [shape: bf16[512,128], index: 1, kind: input, shape index: {}]   ;;  %s778_s2 = inlined_call_operand.vmem [shape: f32[1,128], index: 2, kind: input, shape index: {}]   ;;  %s779_s3 = inlined_call_operand.vmem [shape: f32[8,128], index: 3, kind: output, shape index: {}]  }
   0x1   :  { %s714_s14 = smov 0  }
   0x2 LB: > { %s25_s15 = sadd.s32 1, %s683_s13  ;;  %p549_p0 = scmp.ge.s32.totalorder %s687_s14, 1  ;;  %s687_s14 = sphi %s714_s14, %s13_s14   ;;  %s683_s13 = sphi %s712_s13, %s781_s13   ;;  %s679_s12 = sphi %s710_s12, %s780_s12  }
   0x3   : > { %p26_p1 = scmp.ge.s32.totalorder %s25_s15, 2  ;;  %p189_p2 = scmp.lt.s32.totalorder %s687_s14, 3 }
   0x5   : > { %s783_s15 = smov (%p26_p1, %s25_s15), 0  ;;  %p190_p3 = pnand %p549_p0, %p189_p2 }
   0x6   : > { %s550_s16 = sshll.u32 (!%p190_p3), %s679_s12, 1  ;;  %s552_s17 = sshll.u32 (!%p190_p3), %s679_s12, 5 }
   0x7   : > { %193 = sbr.rel (%p190_p3) target bundleno = 196 (0xc4), region = 32  ;;  %p233_p4 = scmp.lt.s32.totalorder (!%p190_p3), %s550_s16, 3 }
   0x8   : > { %p241_p5 = scmp.lt.s32.totalorder (!%p190_p3), %s552_s17, 63  ;;  %p554_p6 = scmp.ne.s32.totalorder (!%p190_p3), %s679_s12, 0 }
   0xc   : > { %s785_s16 = smov (!%p233_p4, %s550_s16), 3  ;;  %s787_s17 = smov (!%p241_p5, %s552_s17), 63 }
   0xd   : > { %s551_s18 = sshll.u32 %s785_s16, 2  ;;  %s553_s22 = sshll.u32 %s787_s17, 2 }
   0xe   : > { %s735_s21 = scalar_lea.vmem %s776_s0, %s551_s18  ;;  %s740_s25 = scalar_lea.vmem %s777_s1, %s553_s22 }
   0xf   : > { %262 = sbr.rel (%p554_p6) target bundleno = 22 (0x16), region = 36 }
  0x14   : > { %v689_v0 = vmov 0.0  }
  0x15   : > { %263 = vst [vmem:[#allocation2] sm:$0xff] %v689_v0 }
  0x16 PF: > { %v630_v1 = vld [vmem:[%s740_s25 + $0x38] sm:$0xff]  ;;  %v629_v3 = vld [vmem:[%s740_s25 + $0x30] sm:$0xff]  ;;  %v628_v5 = vld [vmem:[%s740_s25 + $0x28] sm:$0xff]  ;;  %p619_p7 = scmp.ne.s32.totalorder %s679_s12, 1 }
  0x17   : > { %v638_v2 = vld [vmem:[%s740_s25 + $0x78] sm:$0xff]  ;;  %401 = vmatpush.bf16.msra.mxu0 %v630_v1  ;;  %v637_v4 = vld [vmem:[%s740_s25 + $0x70] sm:$0xff]  ;;  %v636_v6 = vld [vmem:[%s740_s25 + $0x68] sm:$0xff] }
  0x18   : > { %414 = vmatpush.bf16.msra.mxu1 %v638_v2  ;;  %v627_v7 = vld [vmem:[%s740_s25 + $0x20] sm:$0xff]  ;;  %v626_v9 = vld [vmem:[%s740_s25 + $0x18] sm:$0xff]  ;;  %v625_v11 = vld [vmem:[%s740_s25 + $0x10] sm:$0xff] }
  0x19   : > { %v635_v8 = vld [vmem:[%s740_s25 + $0x60] sm:$0xff]  ;;  %v634_v10 = vld [vmem:[%s740_s25 + $0x58] sm:$0xff]  ;;  %v633_v12 = vld [vmem:[%s740_s25 + $0x50] sm:$0xff] }
  0x1a   : > { %v624_v13 = vld [vmem:[%s740_s25 + $0x8] sm:$0xff]  ;;  %v265_v15 = vld [vmem:[%s735_s21] sm:$0xff] }
  0x1b   : > { %402 = vmatpush.bf16.msra.mxu0 %v629_v3  ;;  %v632_v14 = vld [vmem:[%s740_s25 + $0x48] sm:$0xff]  ;;  %v299_v16 = vunpack.c.l.b16 %v265_v15  ;;  %v300_v17 = vunpack.c.h.b16 %v265_v15  ;;  %v623_v18 = vld [vmem:[%s740_s25] sm:$0xff] }
  0x1c   : > { %415 = vmatpush.bf16.msra.mxu1 %v637_v4  ;;  %v631_v19 = vld [vmem:[%s740_s25 + $0x40] sm:$0xff] }
  0x1d   : > { %v301_v20 = vpack.c.b16 %v299_v16, %v299_v16  ;;  %v302_v21 = vpack.c.b16 %v300_v17, %v300_v17  ;;  %v264_v23 = vld [vmem:[#allocation2] sm:$0xff] }
  0x1f   : > { %403 = vmatpush.bf16.msra.mxu0 %v628_v5 }
  0x20   : > { %416 = vmatpush.bf16.msra.mxu1 %v636_v6 }
  0x23   : > { %404 = vmatpush.bf16.msra.mxu0 %v627_v7 }
  0x24   : > { %417 = vmatpush.bf16.msra.mxu1 %v635_v8 }
  0x27   : > { %405 = vmatpush.bf16.msra.mxu0 %v626_v9 }
  0x28   : > { %418 = vmatpush.bf16.msra.mxu1 %v634_v10 }
  0x2b   : > { %406 = vmatpush.bf16.msra.mxu0 %v625_v11 }
  0x2c   : > { %419 = vmatpush.bf16.msra.mxu1 %v633_v12 }
  0x2f   : > { %407 = vmatpush.bf16.msra.mxu0 %v624_v13 }
  0x30   : > { %420 = vmatpush.bf16.msra.mxu1 %v632_v14 }
  0x33   : > { %408 = vmatpush.bf16.msra.mxu0 %v623_v18 }
  0x34   : > { %421 = vmatpush.bf16.msra.mxu1 %v631_v19 }
  0x36   : > { %409 = vmatmul.bf16.vlgmr.msra.gmra.mxu0 %v301_v20 }
  0x37   : > { %422 = vmatmul.bf16.vlgmr.msra.gmra.mxu1 %v302_v21 }
  0xb3   : > { %v410_v22 = vpop.f32.mrf.mxu0 }
  0xb4   : > { %v423_v24 = vpop.f32.mrf.mxu1 }
  0xb5   : > { %v424_v25 = vadd.f32 %v423_v24, %v410_v22 }
  0xb7   : > { %v427_v26 = vadd.f32 %v424_v25, %v264_v23 }
  0xb8   : > { %432 = sbr.rel (%p619_p7) target bundleno = 196 (0xc4), region = 40 }
  0xb9   : > { %428 = vst [vmem:[#allocation2] sm:$0xff] %v427_v26 }
  0xbb   : > { %v412_v27 = vpop.f32.mrf.mxu0 }
  0xbc   : > { %v425_v28 = vpop.f32.mrf.mxu1 }
  0xbd   : > { %v664_v30 = vld [vmem:[%s778_s2] ss:$0 sm:$0xff] }
  0xc0   : > { %v433_v29 = vld [vmem:[#allocation2] sm:$0xff] }
  0xc1   : > { %v438_v31 = vadd.f32 %v664_v30, %v433_v29 }
  0xc3   : > { %439 = vst [vmem:[%s779_s3] sm:$0xff] %v438_v31 }
  0xc4 PF: > { %s13_s14 = sadd.s32 1, %s687_s14   ;;  %s780_s12 = smov %s683_s13 }
  0xc5   : > { %p10_p8 = scmp.ge.s32.totalorder %s13_s14, 4   ;;  %s781_s13 = smov %s783_s15 }
  0xc7   :  { %12 = sbr.rel (!%p10_p8) target bundleno = 2 (0x2), region = 76 }

</bundles_post_ra>
